<compile_context>
chip_gen: v7x
topology: tpu7x:2x2x1
jax: 0.10.0
libtpu: 0.0.40
codegen_flags: <defaults>
</compile_context>

<pallas_src>
import functools

import jax
import jax.numpy as jnp
from jax import lax
from jax.experimental import pallas as pl
from jax.experimental.pallas import tpu as pltpu


# -----------------------------------------------------------------------------
# One-time probe of pltpu.roll (shift convention).  We need
#   p_lm1[l] = p[l-1]   and   p_lp1[l] = p[l+1]
# If roll is unusable for any reason we fall back to an unambiguous
# concat-based shift so the kernel always compiles.
_ROLL_SIGN = None  # +1: np.roll convention, -1: reversed, 0: concat fallback


def _probe_roll_sign():
    global _ROLL_SIGN
    if _ROLL_SIGN is not None:
        return _ROLL_SIGN

    def k(x_ref, o_ref):
        o_ref[...] = pltpu.roll(x_ref[...], 1, axis=1)

    try:
        x = lax.broadcasted_iota(jnp.float32, (2, 8, 128), 1)
        y = pl.pallas_call(
            k, out_shape=jax.ShapeDtypeStruct((2, 8, 128), jnp.float32))(x)
        first = float(y[0, 0, 0])
        if first == 7.0:
            _ROLL_SIGN = 1       # result[l] = x[l - shift]  (np.roll convention)
        elif first == 1.0:
            _ROLL_SIGN = -1      # result[l] = x[l + shift]
        else:
            _ROLL_SIGN = 0
    except Exception:
        _ROLL_SIGN = 0
    return _ROLL_SIGN


def _dwconv3d_kernel(*refs, TH, W, L, roll_sign, halo):
    """One grid step: TH output H-rows for one (c-tile, batch, h-tile).

    halo=False (TH == H):   refs = (body, w, b, out)
    halo=True  (TH <  H):   refs = (prev, body, next, w, b, out)

      prev : (W, L, CT)       input row h0-1 (clamped DMA; zeroed when t==0)
      body : (TH, W, L, CT)   input rows h0 .. h0+TH-1
      next : (W, L, CT)       input row h0+TH (clamped DMA; zeroed when t==last)
      w    : (27, CT)         depthwise taps, tap = dh*9 + dw*3 + dl
      b    : (1, CT)          bias
      out  : (TH, W, L, CT)   output rows
    """
    if halo:
        prev_ref, body_ref, next_ref, w_ref, b_ref, o_ref = refs
    else:
        body_ref, w_ref, b_ref, o_ref = refs
        prev_ref = next_ref = None

    CT = o_ref.shape[-1]
    f32 = jnp.float32

    # ---- hoisted per-grid-step constants ------------------------------------
    wv = w_ref[...].astype(f32)                                    # (27, CT)
    l_idx = lax.broadcasted_iota(jnp.int32, (L, 1), 0)
    mask_lo = (l_idx > 0).astype(f32)        # kills the l==0 wrap of the l-1 tap
    mask_hi = (l_idx < L - 1).astype(f32)    # kills the l==L-1 wrap of the l+1 tap
    ones = jnp.ones((L, 1), f32)
    dl_mask = (mask_lo, ones, mask_hi)
    # 27 sublane-broadcast (L, CT) weight planes with the wrap masks folded in.
    w_planes = [dl_mask[tap % 3] * wv[tap] for tap in range(27)]
    bias_plane = jnp.broadcast_to(b_ref[...].astype(f32), (L, CT))  # (L, CT)

    zero_col = jnp.zeros((1, L, CT), f32)

    def prep(row):
        """(W, L, CT) input row -> W-zero-padded plane + its two L-shifts."""
        p = jnp.concatenate([zero_col, row.astype(f32), zero_col], axis=0)  # (W+2, L, CT)
        if roll_sign == 0:
            zrow = jnp.zeros_like(p[:, :1])
            p_lm1 = jnp.concatenate([zrow, p[:, :L - 1]], axis=1)   # p_lm1[l] = p[l-1]
            p_lp1 = jnp.concatenate([p[:, 1:], zrow], axis=1)       # p_lp1[l] = p[l+1]
        elif roll_sign > 0:
            p_lm1 = pltpu.roll(p, 1, axis=1)             # wrap row masked via weights
            p_lp1 = pltpu.roll(p, (L - 1) % L, axis=1)
        else:
            p_lm1 = pltpu.roll(p, (L - 1) % L, axis=1)
            p_lp1 = pltpu.roll(p, 1, axis=1)
        return p_lm1, p, p_lp1

    if halo:
        t = pl.program_id(2)
        last_t = pl.num_programs(2) - 1
        # The clamped index_map DMA'd a valid-but-unused row at the volume
        # boundary; zero it here (one select per grid step, not per row).
        prev_row = jnp.where(t > 0, prev_ref[...].astype(f32), 0.0)
        next_row = jnp.where(t < last_t, next_ref[...].astype(f32), 0.0)

    def get_row(j):
        """Input tile-row j in [-1, TH]; None means it is the all-zero pad."""
        if j < 0:
            return prep(prev_row) if halo else None
        if j >= TH:
            return prep(next_row) if halo else None
        return prep(body_ref[j])

    # ---- fully-unrolled per-output-row accumulation --------------------------
    for i in range(TH):
        acc = jnp.broadcast_to(bias_plane, (W, L, CT))   # bias folded into init
        for dh in range(3):
            trio = get_row(i + dh - 1)
            if trio is None:          # static skip of the zero H-pad rows
                continue
            p_lm1, p, p_lp1 = trio
            for dw in range(3):
                base = dh * 9 + dw * 3
                sl = slice(dw, dw + W)
                acc = acc + p_lm1[sl] * w_planes[base + 0]   # in[l-1]
                acc = acc + p[sl] * w_planes[base + 1]       # in[l]
                acc = acc + p_lp1[sl] * w_planes[base + 2]   # in[l+1]
        o_ref[i] = acc.astype(o_ref.dtype)


def _pick_channel_tile(C):
    """Lane-dense channel tile; prefers an even tile count (v7x 2-TC split)."""
    if C % 128 != 0:
        return C
    for ct in (512, 384, 256, 128):
        if C % ct == 0 and (C // ct) % 2 == 0:
            return ct
    for ct in (512, 384, 256, 128):
        if C % ct == 0:
            return ct
    return 128


def _pick_row_tile(H, W, L, CT, itemsize, budget_bytes=16 << 20, max_rows=32):
    """Prefer TH == H (no halo streams); otherwise the largest divisor that fits."""
    plane = W * L * CT
    live = (27 * L * CT + 3 * (W + 2) * L * CT + 2 * plane) * 4   # hoisted values (f32)

    def fits(th, halo):
        f = 4 * th * plane * itemsize                 # double-buffered body in + out
        if halo:
            f += 4 * plane * itemsize                 # double-buffered prev/next rows
        return f + live <= budget_bytes

    if H <= max_rows and fits(H, False):
        return H
    best = 1
    for th in range(1, min(H, max_rows) + 1):
        if H % th == 0 and fits(th, True):
            best = th
    return best


def dwconv_forward(x, weight, bias, H, W, L, *, row_tile=None, channel_tile=None):
    """x: (B, N, C), N == H*W*L.  weight: (C, 1, 3, 3, 3).  bias: (C,).

    Returns (B, N, C), matching the PyTorch DWConv.forward semantics.
    """
    B, N, C = x.shape
    assert N == H * W * L, (N, H, W, L)

    roll_sign = _probe_roll_sign()

    # channels-last volume: C on lanes, L on sublanes (no-copy reshape).
    vol = x.reshape(B, H, W, L, C)

    CT = channel_tile if channel_tile is not None else _pick_channel_tile(C)
    assert C % CT == 0, (C, CT)
    n_c = C // CT

    itemsize = jnp.dtype(x.dtype).itemsize
    TH = row_tile if row_tile is not None else _pick_row_tile(H, W, L, CT, itemsize)
    assert H % TH == 0, (H, TH)
    n_t = H // TH
    halo = n_t > 1

    # (C, 1, 3, 3, 3) -> (27, C): tap-major (dh, dw, dl), channel on lanes.
    w_flat = jnp.transpose(weight[:, 0], (1, 2, 3, 0)).reshape(27, C)
    b2d = bias.reshape(1, C)

    # grid = (c, b, t): channel tiles outermost -> weight/bias blocks stay
    # VMEM-resident across all batches and H tiles; t innermost streams
    # contiguous H tiles of one channel slice.
    body_spec = pl.BlockSpec((None, TH, W, L, CT), lambda c, b, t: (b, t, 0, 0, c))
    w_spec = pl.BlockSpec((27, CT), lambda c, b, t: (0, c))
    b_spec = pl.BlockSpec((1, CT), lambda c, b, t: (0, c))

    if halo:
        prev_spec = pl.BlockSpec(
            (None, None, W, L, CT),
            lambda c, b, t: (b, jnp.maximum(t * TH - 1, 0), 0, 0, c))
        next_spec = pl.BlockSpec(
            (None, None, W, L, CT),
            lambda c, b, t: (b, jnp.minimum((t + 1) * TH, H - 1), 0, 0, c))
        in_specs = [prev_spec, body_spec, next_spec, w_spec, b_spec]
        operands = (vol, vol, vol, w_flat, b2d)
    else:
        in_specs = [body_spec, w_spec, b_spec]
        operands = (vol, w_flat, b2d)

    # VMEM limit from the real footprint (+20% + headroom), capped for v7x.
    plane = W * L * CT
    est = 4 * TH * plane * itemsize                    # double-buffered body in + out
    if halo:
        est += 4 * plane * itemsize                    # prev/next rows
    est += 2 * 28 * CT * itemsize                      # weights + bias
    est += (27 * L * CT + 3 * (W + 2) * L * CT + 2 * plane) * 4   # live f32 values
    vmem_limit = int(min(48 << 20, int(est * 1.2) + (8 << 20)))

    kernel = functools.partial(_dwconv3d_kernel, TH=TH, W=W, L=L,
                               roll_sign=roll_sign, halo=halo)

    y = pl.pallas_call(
        kernel,
        out_shape=jax.ShapeDtypeStruct((B, H, W, L, C), x.dtype),
        grid_spec=pltpu.PrefetchScalarGridSpec(
            num_scalar_prefetch=0,
            grid=(n_c, B, n_t),
            in_specs=in_specs,
            out_specs=body_spec,
        ),
        compiler_params=pltpu.CompilerParams(
            dimension_semantics=("parallel", "parallel", "parallel"),
            vmem_limit_bytes=vmem_limit),
    )(*operands)

    # (B, H, W, L, C) -> (B, N, C): same ordering as flatten(2).transpose(1, 2).
    return y.reshape(B, N, C)


def _reference(x, weight, bias, H, W, L):
    """Pure-JAX reference (NCDHW depthwise conv via feature groups)."""
    B, N, C = x.shape
    xv = jnp.transpose(x, (0, 2, 1)).reshape(B, C, H, W, L)
    y = lax.conv_general_dilated(
        xv, weight,
        window_strides=(1, 1, 1),
        padding=((1, 1), (1, 1), (1, 1)),
        dimension_numbers=("NCDHW", "OIDHW", "NCDHW"),
        feature_group_count=C,
    ) + bias.reshape(1, C, 1, 1, 1)
    return jnp.transpose(y.reshape(B, C, N), (0, 2, 1))


if __name__ == "__main__":
    # Small shapes consistent with the module: dim (=C) channels, N = H*W*L tokens.
    # C kept a multiple of 128 (module default dim=768 is also lane-dense).
    B, C = 2, 256
    H = W = L = 8
    N = H * W * L

    key = jax.random.PRNGKey(0)
    kx, kw, kb = jax.random.split(key, 3)

    x = jax.random.normal(kx, (B, N, C), dtype=jnp.float32)
    weight = jax.random.normal(kw, (C, 1, 3, 3, 3), dtype=jnp.float32) * 0.1
    bias = jax.random.normal(kb, (C,), dtype=jnp.float32) * 0.1

    ref = _reference(x, weight, bias, H, W, L)

    # Fast path: TH == H -> single input stream, no halo DMAs.
    out = jax.block_until_ready(dwconv_forward(x, weight, bias, H, W, L))
    assert out.shape == (B, N, C)
    assert float(jnp.max(jnp.abs(out - ref))) < 1e-4

    # Tiled-H path: exercises the prev/next halo streams and edge zeroing.
    out2 = jax.block_until_ready(
        dwconv_forward(x, weight, bias, H, W, L, row_tile=2))
    assert float(jnp.max(jnp.abs(out2 - ref))) < 1e-4

    print("KERNEL_OK")
</pallas_src>

<mosaic_0001>
module attributes {stable_mosaic.version = 11 : i64} {
  func.func @k(%arg0: memref<2x8x128xf32, #tpu.memory_space<vmem>>, %arg1: memref<2x8x128xf32, #tpu.memory_space<vmem>>) attributes {dimension_semantics = [], scalar_prefetch = 0 : i64, scratch_operands = 0 : i64, tpu.core_type = #tpu.core_type<tc>} {
    %c0 = arith.constant 0 : index
    %c0_0 = arith.constant 0 : index
    %c0_1 = arith.constant 0 : index
    %0 = vector.load %arg0[%c0, %c0_0, %c0_1] : memref<2x8x128xf32, #tpu.memory_space<vmem>>, vector<2x8x128xf32>
    %c1_i32 = arith.constant 1 : i32
    %1 = tpu.dynamic_rotate %0 by %c1_i32 dim 1 : vector<2x8x128xf32>, i32 -> vector<2x8x128xf32>
    %c0_2 = arith.constant 0 : index
    %c0_3 = arith.constant 0 : index
    %c0_4 = arith.constant 0 : index
    %2 = vector.load %arg1[%c0_2, %c0_3, %c0_4] : memref<2x8x128xf32, #tpu.memory_space<vmem>>, vector<2x8x128xf32>
    tpu.vector_store %arg1[%c0_2, %c0_3, %c0_4], %1 {strides = array<i32>} : memref<2x8x128xf32, #tpu.memory_space<vmem>>, vector<2x8x128xf32>,
    return
  }
}

module attributes {stable_mosaic.version = 11 : i64} {
  func.func @_dwconv3d_kernel(%arg0: i32, %arg1: i32, %arg2: i32, %arg3: memref<1x8x8x8x128xf32, #tpu.memory_space<vmem>>, %arg4: memref<27x128xf32, #tpu.memory_space<vmem>>, %arg5: memref<1x128xf32, #tpu.memory_space<vmem>>, %arg6: memref<1x8x8x8x128xf32, #tpu.memory_space<vmem>>) attributes {dimension_semantics = [#tpu.dimension_semantics<parallel>, #tpu.dimension_semantics<parallel>, #tpu.dimension_semantics<parallel>], iteration_bounds = array<i64: 2, 2, 1>, scalar_prefetch = 0 : i64, scratch_operands = 0 : i64, tpu.core_type = #tpu.core_type<tc>, window_params = [{transform_indices = @transform_0, window_bounds = array<i64: 1, 8, 8, 8, 128>}, {transform_indices = @transform_1, window_bounds = array<i64: 27, 128>}, {transform_indices = @transform_2, window_bounds = array<i64: 1, 128>}, {transform_indices = @transform_3, window_bounds = array<i64: 1, 8, 8, 8, 128>}]} {
    %c0 = arith.constant 0 : index
    %c0_0 = arith.constant 0 : index
    %0 = vector.load %arg4[%c0, %c0_0] : memref<27x128xf32, #tpu.memory_space<vmem>>, vector<27x128xf32>
    %1 = tpu.iota {dimensions = array<i32: 0>} : vector<8x1xi32>
    %c0_i32 = arith.constant 0 : i32
    %2 = vector.broadcast %c0_i32 : i32 to vector<8x1xi32>
    %3 = arith.cmpi sgt, %1, %2 : vector<8x1xi32>
    %4 = arith.extui %3 : vector<8x1xi1> to vector<8x1xi32>
    %5 = arith.sitofp %4 : vector<8x1xi32> to vector<8x1xf32>
    %c7_i32 = arith.constant 7 : i32
    %6 = vector.broadcast %c7_i32 : i32 to vector<8x1xi32>
    %7 = arith.cmpi slt, %1, %6 : vector<8x1xi32>
    %8 = arith.extui %7 : vector<8x1xi1> to vector<8x1xi32>
    %9 = arith.sitofp %8 : vector<8x1xi32> to vector<8x1xf32>
    %cst = arith.constant 1.000000e+00 : f32
    %10 = vector.broadcast %cst : f32 to vector<8x1xf32>
    %11 = vector.extract_strided_slice %0 {offsets = [0, 0], sizes = [1, 128], strides = [1, 1]} : vector<27x128xf32> to vector<1x128xf32>
    %12 = vector.shape_cast %11 : vector<1x128xf32> to vector<128xf32>
    %13 = vector.shape_cast %12 : vector<128xf32> to vector<1x128xf32>
    %14 = vector.broadcast %5 : vector<8x1xf32> to vector<8x128xf32>
    %15 = vector.broadcast %13 : vector<1x128xf32> to vector<8x128xf32>
    %16 = arith.mulf %14, %15 : vector<8x128xf32>
    %17 = vector.extract_strided_slice %0 {offsets = [1, 0], sizes = [1, 128], strides = [1, 1]} : vector<27x128xf32> to vector<1x128xf32>
    %18 = vector.shape_cast %17 : vector<1x128xf32> to vector<128xf32>
    %19 = vector.shape_cast %18 : vector<128xf32> to vector<1x128xf32>
    %20 = vector.broadcast %10 : vector<8x1xf32> to vector<8x128xf32>
    %21 = vector.broadcast %19 : vector<1x128xf32> to vector<8x128xf32>
    %22 = arith.mulf %20, %21 : vector<8x128xf32>
    %23 = vector.extract_strided_slice %0 {offsets = [2, 0], sizes = [1, 128], strides = [1, 1]} : vector<27x128xf32> to vector<1x128xf32>
    %24 = vector.shape_cast %23 : vector<1x128xf32> to vector<128xf32>
    %25 = vector.shape_cast %24 : vector<128xf32> to vector<1x128xf32>
    %26 = vector.broadcast %9 : vector<8x1xf32> to vector<8x128xf32>
    %27 = vector.broadcast %25 : vector<1x128xf32> to vector<8x128xf32>
    %28 = arith.mulf %26, %27 : vector<8x128xf32>
    %29 = vector.extract_strided_slice %0 {offsets = [3, 0], sizes = [1, 128], strides = [1, 1]} : vector<27x128xf32> to vector<1x128xf32>
    %30 = vector.shape_cast %29 : vector<1x128xf32> to vector<128xf32>
    %31 = vector.shape_cast %30 : vector<128xf32> to vector<1x128xf32>
    %32 = vector.broadcast %5 : vector<8x1xf32> to vector<8x128xf32>
    %33 = vector.broadcast %31 : vector<1x128xf32> to vector<8x128xf32>
    %34 = arith.mulf %32, %33 : vector<8x128xf32>
    %35 = vector.extract_strided_slice %0 {offsets = [4, 0], sizes = [1, 128], strides = [1, 1]} : vector<27x128xf32> to vector<1x128xf32>
    %36 = vector.shape_cast %35 : vector<1x128xf32> to vector<128xf32>
    %37 = vector.shape_cast %36 : vector<128xf32> to vector<1x128xf32>
    %38 = vector.broadcast %10 : vector<8x1xf32> to vector<8x128xf32>
    %39 = vector.broadcast %37 : vector<1x128xf32> to vector<8x128xf32>
    %40 = arith.mulf %38, %39 : vector<8x128xf32>
    %41 = vector.extract_strided_slice %0 {offsets = [5, 0], sizes = [1, 128], strides = [1, 1]} : vector<27x128xf32> to vector<1x128xf32>
    %42 = vector.shape_cast %41 : vector<1x128xf32> to vector<128xf32>
    %43 = vector.shape_cast %42 : vector<128xf32> to vector<1x128xf32>
    %44 = vector.broadcast %9 : vector<8x1xf32> to vector<8x128xf32>
    %45 = vector.broadcast %43 : vector<1x128xf32> to vector<8x128xf32>
    %46 = arith.mulf %44, %45 : vector<8x128xf32>
    %47 = vector.extract_strided_slice %0 {offsets = [6, 0], sizes = [1, 128], strides = [1, 1]} : vector<27x128xf32> to vector<1x128xf32>
    %48 = vector.shape_cast %47 : vector<1x128xf32> to vector<128xf32>
    %49 = vector.shape_cast %48 : vector<128xf32> to vector<1x128xf32>
    %50 = vector.broadcast %5 : vector<8x1xf32> to vector<8x128xf32>
    %51 = vector.broadcast %49 : vector<1x128xf32> to vector<8x128xf32>
    %52 = arith.mulf %50, %51 : vector<8x128xf32>
    %53 = vector.extract_strided_slice %0 {offsets = [7, 0], sizes = [1, 128], strides = [1, 1]} : vector<27x128xf32> to vector<1x128xf32>
    %54 = vector.shape_cast %53 : vector<1x128xf32> to vector<128xf32>
    %55 = vector.shape_cast %54 : vector<128xf32> to vector<1x128xf32>
    %56 = vector.broadcast %10 : vector<8x1xf32> to vector<8x128xf32>
    %57 = vector.broadcast %55 : vector<1x128xf32> to vector<8x128xf32>
    %58 = arith.mulf %56, %57 : vector<8x128xf32>
    %59 = vector.extract_strided_slice %0 {offsets = [8, 0], sizes = [1, 128], strides = [1, 1]} : vector<27x128xf32> to vector<1x128xf32>
    %60 = vector.shape_cast %59 : vector<1x128xf32> to vector<128xf32>
    %61 = vector.shape_cast %60 : vector<128xf32> to vector<1x128xf32>
    %62 = vector.broadcast %9 : vector<8x1xf32> to vector<8x128xf32>
    %63 = vector.broadcast %61 : vector<1x128xf32> to vector<8x128xf32>
    %64 = arith.mulf %62, %63 : vector<8x128xf32>
    %65 = vector.extract_strided_slice %0 {offsets = [9, 0], sizes = [1, 128], strides = [1, 1]} : vector<27x128xf32> to vector<1x128xf32>
    %66 = vector.shape_cast %65 : vector<1x128xf32> to vector<128xf32>
    %67 = vector.shape_cast %66 : vector<128xf32> to vector<1x128xf32>
    %68 = vector.broadcast %5 : vector<8x1xf32> to vector<8x128xf32>
    %69 = vector.broadcast %67 : vector<1x128xf32> to vector<8x128xf32>
    %70 = arith.mulf %68, %69 : vector<8x128xf32>
    %71 = vector.extract_strided_slice %0 {offsets = [10, 0], sizes = [1, 128], strides = [1, 1]} : vector<27x128xf32> to vector<1x128xf32>
    %72 = vector.shape_cast %71 : vector<1x128xf32> to vector<128xf32>
    %73 = vector.shape_cast %72 : vector<128xf32> to vector<1x128xf32>
    %74 = vector.broadcast %10 : vector<8x1xf32> to vector<8x128xf32>
    %75 = vector.broadcast %73 : vector<1x128xf32> to vector<8x128xf32>
    %76 = arith.mulf %74, %75 : vector<8x128xf32>
    %77 = vector.extract_strided_slice %0 {offsets = [11, 0], sizes = [1, 128], strides = [1, 1]} : vector<27x128xf32> to vector<1x128xf32>
    %78 = vector.shape_cast %77 : vector<1x128xf32> to vector<128xf32>
    %79 = vector.shape_cast %78 : vector<128xf32> to vector<1x128xf32>
    %80 = vector.broadcast %9 : vector<8x1xf32> to vector<8x128xf32>
    %81 = vector.broadcast %79 : vector<1x128xf32> to vector<8x128xf32>
    %82 = arith.mulf %80, %81 : vector<8x128xf32>
    %83 = vector.extract_strided_slice %0 {offsets = [12, 0], sizes = [1, 128], strides = [1, 1]} : vector<27x128xf32> to vector<1x128xf32>
    %84 = vector.shape_cast %83 : vector<1x128xf32> to vector<128xf32>
    %85 = vector.shape_cast %84 : vector<128xf32> to vector<1x128xf32>
    %86 = vector.broadcast %5 : vector<8x1xf32> to vector<8x128xf32>
    %87 = vector.broadcast %85 : vector<1x128xf32> to vector<8x128xf32>
    %88 = arith.mulf %86, %87 : vector<8x128xf32>
    %89 = vector.extract_strided_slice %0 {offsets = [13, 0], sizes = [1, 128], strides = [1, 1]} : vector<27x128xf32> to vector<1x128xf32>
    %90 = vector.shape_cast %89 : vector<1x128xf32> to vector<128xf32>
    %91 = vector.shape_cast %90 : vector<128xf32> to vector<1x128xf32>
    %92 = vector.broadcast %10 : vector<8x1xf32> to vector<8x128xf32>
    %93 = vector.broadcast %91 : vector<1x128xf32> to vector<8x128xf32>
    %94 = arith.mulf %92, %93 : vector<8x128xf32>
    %95 = vector.extract_strided_slice %0 {offsets = [14, 0], sizes = [1, 128], strides = [1, 1]} : vector<27x128xf32> to vector<1x128xf32>
    %96 = vector.shape_cast %95 : vector<1x128xf32> to vector<128xf32>
    %97 = vector.shape_cast %96 : vector<128xf32> to vector<1x128xf32>
    %98 = vector.broadcast %9 : vector<8x1xf32> to vector<8x128xf32>
    %99 = vector.broadcast %97 : vector<1x128xf32> to vector<8x128xf32>
    %100 = arith.mulf %98, %99 : vector<8x128xf32>
    %101 = vector.extract_strided_slice %0 {offsets = [15, 0], sizes = [1, 128], strides = [1, 1]} : vector<27x128xf32> to vector<1x128xf32>
    %102 = vector.shape_cast %101 : vector<1x128xf32> to vector<128xf32>
    %103 = vector.shape_cast %102 : vector<128xf32> to vector<1x128xf32>
    %104 = vector.broadcast %5 : vector<8x1xf32> to vector<8x128xf32>
    %105 = vector.broadcast %103 : vector<1x128xf32> to vector<8x128xf32>
    %106 = arith.mulf %104, %105 : vector<8x128xf32>
    %107 = vector.extract_strided_slice %0 {offsets = [16, 0], sizes = [1, 128], strides = [1, 1]} : vector<27x128xf32> to vector<1x128xf32>
    %108 = vector.shape_cast %107 : vector<1x128xf32> to vector<128xf32>
    %109 = vector.shape_cast %108 : vector<128xf32> to vector<1x128xf32>
    %110 = vector.broadcast %10 : vector<8x1xf32> to vector<8x128xf32>
    %111 = vector.broadcast %109 : vector<1x128xf32> to vector<8x128xf32>
    %112 = arith.mulf %110, %111 : vector<8x128xf32>
    %113 = vector.extract_strided_slice %0 {offsets = [17, 0], sizes = [1, 128], strides = [1, 1]} : vector<27x128xf32> to vector<1x128xf32>
    %114 = vector.shape_cast %113 : vector<1x128xf32> to vector<128xf32>
    %115 = vector.shape_cast %114 : vector<128xf32> to vector<1x128xf32>
    %116 = vector.broadcast %9 : vector<8x1xf32> to vector<8x128xf32>
    %117 = vector.broadcast %115 : vector<1x128xf32> to vector<8x128xf32>
    %118 = arith.mulf %116, %117 : vector<8x128xf32>
    %119 = vector.extract_strided_slice %0 {offsets = [18, 0], sizes = [1, 128], strides = [1, 1]} : vector<27x128xf32> to vector<1x128xf32>
    %120 = vector.shape_cast %119 : vector<1x128xf32> to vector<128xf32>
    %121 = vector.shape_cast %120 : vector<128xf32> to vector<1x128xf32>
    %122 = vector.broadcast %5 : vector<8x1xf32> to vector<8x128xf32>
    %123 = vector.broadcast %121 : vector<1x128xf32> to vector<8x128xf32>
    %124 = arith.mulf %122, %123 : vector<8x128xf32>
    %125 = vector.extract_strided_slice %0 {offsets = [19, 0], sizes = [1, 128], strides = [1, 1]} : vector<27x128xf32> to vector<1x128xf32>
    %126 = vector.shape_cast %125 : vector<1x128xf32> to vector<128xf32>
    %127 = vector.shape_cast %126 : vector<128xf32> to vector<1x128xf32>
    %128 = vector.broadcast %10 : vector<8x1xf32> to vector<8x128xf32>
    %129 = vector.broadcast %127 : vector<1x128xf32> to vector<8x128xf32>
    %130 = arith.mulf %128, %129 : vector<8x128xf32>
    %131 = vector.extract_strided_slice %0 {offsets = [20, 0], sizes = [1, 128], strides = [1, 1]} : vector<27x128xf32> to vector<1x128xf32>
    %132 = vector.shape_cast %131 : vector<1x128xf32> to vector<128xf32>
    %133 = vector.shape_cast %132 : vector<128xf32> to vector<1x128xf32>
    %134 = vector.broadcast %9 : vector<8x1xf32> to vector<8x128xf32>
    %135 = vector.broadcast %133 : vector<1x128xf32> to vector<8x128xf32>
    %136 = arith.mulf %134, %135 : vector<8x128xf32>
    %137 = vector.extract_strided_slice %0 {offsets = [21, 0], sizes = [1, 128], strides = [1, 1]} : vector<27x128xf32> to vector<1x128xf32>
    %138 = vector.shape_cast %137 : vector<1x128xf32> to vector<128xf32>
    %139 = vector.shape_cast %138 : vector<128xf32> to vector<1x128xf32>
    %140 = vector.broadcast %5 : vector<8x1xf32> to vector<8x128xf32>
    %141 = vector.broadcast %139 : vector<1x128xf32> to vector<8x128xf32>
    %142 = arith.mulf %140, %141 : vector<8x128xf32>
    %143 = vector.extract_strided_slice %0 {offsets = [22, 0], sizes = [1, 128], strides = [1, 1]} : vector<27x128xf32> to vector<1x128xf32>
    %144 = vector.shape_cast %143 : vector<1x128xf32> to vector<128xf32>
    %145 = vector.shape_cast %144 : vector<128xf32> to vector<1x128xf32>
    %146 = vector.broadcast %10 : vector<8x1xf32> to vector<8x128xf32>
    %147 = vector.broadcast %145 : vector<1x128xf32> to vector<8x128xf32>
    %148 = arith.mulf %146, %147 : vector<8x128xf32>
    %149 = vector.extract_strided_slice %0 {offsets = [23, 0], sizes = [1, 128], strides = [1, 1]} : vector<27x128xf32> to vector<1x128xf32>
    %150 = vector.shape_cast %149 : vector<1x128xf32> to vector<128xf32>
    %151 = vector.shape_cast %150 : vector<128xf32> to vector<1x128xf32>
    %152 = vector.broadcast %9 : vector<8x1xf32> to vector<8x128xf32>
    %153 = vector.broadcast %151 : vector<1x128xf32> to vector<8x128xf32>
    %154 = arith.mulf %152, %153 : vector<8x128xf32>
    %155 = vector.extract_strided_slice %0 {offsets = [24, 0], sizes = [1, 128], strides = [1, 1]} : vector<27x128xf32> to vector<1x128xf32>
    %156 = vector.shape_cast %155 : vector<1x128xf32> to vector<128xf32>
    %157 = vector.shape_cast %156 : vector<128xf32> to vector<1x128xf32>
    %158 = vector.broadcast %5 : vector<8x1xf32> to vector<8x128xf32>
    %159 = vector.broadcast %157 : vector<1x128xf32> to vector<8x128xf32>
    %160 = arith.mulf %158, %159 : vector<8x128xf32>
    %161 = vector.extract_strided_slice %0 {offsets = [25, 0], sizes = [1, 128], strides = [1, 1]} : vector<27x128xf32> to vector<1x128xf32>
    %162 = vector.shape_cast %161 : vector<1x128xf32> to vector<128xf32>
    %163 = vector.shape_cast %162 : vector<128xf32> to vector<1x128xf32>
    %164 = vector.broadcast %10 : vector<8x1xf32> to vector<8x128xf32>
    %165 = vector.broadcast %163 : vector<1x128xf32> to vector<8x128xf32>
    %166 = arith.mulf %164, %165 : vector<8x128xf32>
    %167 = vector.extract_strided_slice %0 {offsets = [26, 0], sizes = [1, 128], strides = [1, 1]} : vector<27x128xf32> to vector<1x128xf32>
    %168 = vector.shape_cast %167 : vector<1x128xf32> to vector<128xf32>
    %169 = vector.shape_cast %168 : vector<128xf32> to vector<1x128xf32>
    %170 = vector.broadcast %9 : vector<8x1xf32> to vector<8x128xf32>
    %171 = vector.broadcast %169 : vector<1x128xf32> to vector<8x128xf32>
    %172 = arith.mulf %170, %171 : vector<8x128xf32>
    %c0_1 = arith.constant 0 : index
    %c0_2 = arith.constant 0 : index
    %173 = vector.load %arg5[%c0_1, %c0_2] : memref<1x128xf32, #tpu.memory_space<vmem>>, vector<1x128xf32>
    %174 = vector.shape_cast %173 : vector<1x128xf32> to vector<1x128xf32>
    %175 = vector.broadcast %174 : vector<1x128xf32> to vector<8x128xf32>
    %cst_3 = arith.constant 0.000000e+00 : f32
    %176 = vector.broadcast %cst_3 : f32 to vector<1x8x128xf32>
    %177 = vector.shape_cast %175 : vector<8x128xf32> to vector<1x8x128xf32>
    %178 = vector.broadcast %177 : vector<1x8x128xf32> to vector<8x8x128xf32>
    %c0_4 = arith.constant 0 : index
    %c0_5 = arith.constant 0 : index
    %c0_6 = arith.constant 0 : index
    %c0_7 = arith.constant 0 : index
    %c0_8 = arith.constant 0 : index
    %179 = vector.load %arg3[%c0_4, %c0_5, %c0_6, %c0_7, %c0_8] : memref<1x8x8x8x128xf32, #tpu.memory_space<vmem>>, vector<1x1x8x8x128xf32>
    %180 = vector.shape_cast %179 : vector<1x1x8x8x128xf32> to vector<8x8x128xf32>
    %181 = tpu.concatenate %176, %180, %176 in 0 : vector<1x8x128xf32>, vector<8x8x128xf32>, vector<1x8x128xf32> -> vector<10x8x128xf32>
    %cst_9 = arith.constant 0.000000e+00 : f32
    %182 = vector.broadcast %cst_9 : f32 to vector<10x1x128xf32>
    %183 = vector.extract_strided_slice %181 {offsets = [0, 0, 0], sizes = [10, 7, 128], strides = [1, 1, 1]} : vector<10x8x128xf32> to vector<10x7x128xf32>
    %184 = tpu.concatenate %182, %183 in 1 : vector<10x1x128xf32>, vector<10x7x128xf32> -> vector<10x8x128xf32>
    %185 = vector.extract_strided_slice %181 {offsets = [0, 1, 0], sizes = [10, 7, 128], strides = [1, 1, 1]} : vector<10x8x128xf32> to vector<10x7x128xf32>
    %186 = tpu.concatenate %185, %182 in 1 : vector<10x7x128xf32>, vector<10x1x128xf32> -> vector<10x8x128xf32>
    %187 = vector.extract_strided_slice %184 {offsets = [0, 0, 0], sizes = [8, 8, 128], strides = [1, 1, 1]} : vector<10x8x128xf32> to vector<8x8x128xf32>
    %188 = vector.shape_cast %70 : vector<8x128xf32> to vector<1x8x128xf32>
    %189 = vector.broadcast %188 : vector<1x8x128xf32> to vector<8x8x128xf32>
    %190 = arith.mulf %187, %189 : vector<8x8x128xf32>
    %191 = arith.addf %178, %190 : vector<8x8x128xf32>
    %192 = vector.extract_strided_slice %181 {offsets = [0, 0, 0], sizes = [8, 8, 128], strides = [1, 1, 1]} : vector<10x8x128xf32> to vector<8x8x128xf32>
    %193 = vector.shape_cast %76 : vector<8x128xf32> to vector<1x8x128xf32>
    %194 = vector.broadcast %193 : vector<1x8x128xf32> to vector<8x8x128xf32>
    %195 = arith.mulf %192, %194 : vector<8x8x128xf32>
    %196 = arith.addf %191, %195 : vector<8x8x128xf32>
    %197 = vector.extract_strided_slice %186 {offsets = [0, 0, 0], sizes = [8, 8, 128], strides = [1, 1, 1]} : vector<10x8x128xf32> to vector<8x8x128xf32>
    %198 = vector.shape_cast %82 : vector<8x128xf32> to vector<1x8x128xf32>
    %199 = vector.broadcast %198 : vector<1x8x128xf32> to vector<8x8x128xf32>
    %200 = arith.mulf %197, %199 : vector<8x8x128xf32>
    %201 = arith.addf %196, %200 : vector<8x8x128xf32>
    %202 = vector.extract_strided_slice %184 {offsets = [1, 0, 0], sizes = [8, 8, 128], strides = [1, 1, 1]} : vector<10x8x128xf32> to vector<8x8x128xf32>
    %203 = vector.shape_cast %88 : vector<8x128xf32> to vector<1x8x128xf32>
    %204 = vector.broadcast %203 : vector<1x8x128xf32> to vector<8x8x128xf32>
    %205 = arith.mulf %202, %204 : vector<8x8x128xf32>
    %206 = arith.addf %201, %205 : vector<8x8x128xf32>
    %207 = vector.extract_strided_slice %181 {offsets = [1, 0, 0], sizes = [8, 8, 128], strides = [1, 1, 1]} : vector<10x8x128xf32> to vector<8x8x128xf32>
    %208 = vector.shape_cast %94 : vector<8x128xf32> to vector<1x8x128xf32>
    %209 = vector.broadcast %208 : vector<1x8x128xf32> to vector<8x8x128xf32>
    %210 = arith.mulf %207, %209 : vector<8x8x128xf32>
    %211 = arith.addf %206, %210 : vector<8x8x128xf32>
    %212 = vector.extract_strided_slice %186 {offsets = [1, 0, 0], sizes = [8, 8, 128], strides = [1, 1, 1]} : vector<10x8x128xf32> to vector<8x8x128xf32>
    %213 = vector.shape_cast %100 : vector<8x128xf32> to vector<1x8x128xf32>
    %214 = vector.broadcast %213 : vector<1x8x128xf32> to vector<8x8x128xf32>
    %215 = arith.mulf %212, %214 : vector<8x8x128xf32>
    %216 = arith.addf %211, %215 : vector<8x8x128xf32>
    %217 = vector.extract_strided_slice %184 {offsets = [2, 0, 0], sizes = [8, 8, 128], strides = [1, 1, 1]} : vector<10x8x128xf32> to vector<8x8x128xf32>
    %218 = vector.shape_cast %106 : vector<8x128xf32> to vector<1x8x128xf32>
    %219 = vector.broadcast %218 : vector<1x8x128xf32> to vector<8x8x128xf32>
    %220 = arith.mulf %217, %219 : vector<8x8x128xf32>
    %221 = arith.addf %216, %220 : vector<8x8x128xf32>
    %222 = vector.extract_strided_slice %181 {offsets = [2, 0, 0], sizes = [8, 8, 128], strides = [1, 1, 1]} : vector<10x8x128xf32> to vector<8x8x128xf32>
    %223 = vector.shape_cast %112 : vector<8x128xf32> to vector<1x8x128xf32>
    %224 = vector.broadcast %223 : vector<1x8x128xf32> to vector<8x8x128xf32>
    %225 = arith.mulf %222, %224 : vector<8x8x128xf32>
    %226 = arith.addf %221, %225 : vector<8x8x128xf32>
    %227 = vector.extract_strided_slice %186 {offsets = [2, 0, 0], sizes = [8, 8, 128], strides = [1, 1, 1]} : vector<10x8x128xf32> to vector<8x8x128xf32>
    %228 = vector.shape_cast %118 : vector<8x128xf32> to vector<1x8x128xf32>
    %229 = vector.broadcast %228 : vector<1x8x128xf32> to vector<8x8x128xf32>
    %230 = arith.mulf %227, %229 : vector<8x8x128xf32>
    %231 = arith.addf %226, %230 : vector<8x8x128xf32>
    %c0_10 = arith.constant 0 : index
    %c1 = arith.constant 1 : index
    %c0_11 = arith.constant 0 : index
    %c0_12 = arith.constant 0 : index
    %c0_13 = arith.constant 0 : index
    %232 = vector.load %arg3[%c0_10, %c1, %c0_11, %c0_12, %c0_13] : memref<1x8x8x8x128xf32, #tpu.memory_space<vmem>>, vector<1x1x8x8x128xf32>
    %233 = vector.shape_cast %232 : vector<1x1x8x8x128xf32> to vector<8x8x128xf32>
    %234 = tpu.concatenate %176, %233, %176 in 0 : vector<1x8x128xf32>, vector<8x8x128xf32>, vector<1x8x128xf32> -> vector<10x8x128xf32>
    %cst_14 = arith.constant 0.000000e+00 : f32
    %235 = vector.broadcast %cst_14 : f32 to vector<10x1x128xf32>
    %236 = vector.extract_strided_slice %234 {offsets = [0, 0, 0], sizes = [10, 7, 128], strides = [1, 1, 1]} : vector<10x8x128xf32> to vector<10x7x128xf32>
    %237 = tpu.concatenate %235, %236 in 1 : vector<10x1x128xf32>, vector<10x7x128xf32> -> vector<10x8x128xf32>
    %238 = vector.extract_strided_slice %234 {offsets = [0, 1, 0], sizes = [10, 7, 128], strides = [1, 1, 1]} : vector<10x8x128xf32> to vector<10x7x128xf32>
    %239 = tpu.concatenate %238, %235 in 1 : vector<10x7x128xf32>, vector<10x1x128xf32> -> vector<10x8x128xf32>
    %240 = vector.extract_strided_slice %237 {offsets = [0, 0, 0], sizes = [8, 8, 128], strides = [1, 1, 1]} : vector<10x8x128xf32> to vector<8x8x128xf32>
    %241 = vector.shape_cast %124 : vector<8x128xf32> to vector<1x8x128xf32>
    %242 = vector.broadcast %241 : vector<1x8x128xf32> to vector<8x8x128xf32>
    %243 = arith.mulf %240, %242 : vector<8x8x128xf32>
    %244 = arith.addf %231, %243 : vector<8x8x128xf32>
    %245 = vector.extract_strided_slice %234 {offsets = [0, 0, 0], sizes = [8, 8, 128], strides = [1, 1, 1]} : vector<10x8x128xf32> to vector<8x8x128xf32>
    %246 = vector.shape_cast %130 : vector<8x128xf32> to vector<1x8x128xf32>
    %247 = vector.broadcast %246 : vector<1x8x128xf32> to vector<8x8x128xf32>
    %248 = arith.mulf %245, %247 : vector<8x8x128xf32>
    %249 = arith.addf %244, %248 : vector<8x8x128xf32>
    %250 = vector.extract_strided_slice %239 {offsets = [0, 0, 0], sizes = [8, 8, 128], strides = [1, 1, 1]} : vector<10x8x128xf32> to vector<8x8x128xf32>
    %251 = vector.shape_cast %136 : vector<8x128xf32> to vector<1x8x128xf32>
    %252 = vector.broadcast %251 : vector<1x8x128xf32> to vector<8x8x128xf32>
    %253 = arith.mulf %250, %252 : vector<8x8x128xf32>
    %254 = arith.addf %249, %253 : vector<8x8x128xf32>
    %255 = vector.extract_strided_slice %237 {offsets = [1, 0, 0], sizes = [8, 8, 128], strides = [1, 1, 1]} : vector<10x8x128xf32> to vector<8x8x128xf32>
    %256 = vector.shape_cast %142 : vector<8x128xf32> to vector<1x8x128xf32>
    %257 = vector.broadcast %256 : vector<1x8x128xf32> to vector<8x8x128xf32>
    %258 = arith.mulf %255, %257 : vector<8x8x128xf32>
    %259 = arith.addf %254, %258 : vector<8x8x128xf32>
    %260 = vector.extract_strided_slice %234 {offsets = [1, 0, 0], sizes = [8, 8, 128], strides = [1, 1, 1]} : vector<10x8x128xf32> to vector<8x8x128xf32>
    %261 = vector.shape_cast %148 : vector<8x128xf32> to vector<1x8x128xf32>
    %262 = vector.broadcast %261 : vector<1x8x128xf32> to vector<8x8x128xf32>
    %263 = arith.mulf %260, %262 : vector<8x8x128xf32>
    %264 = arith.addf %259, %263 : vector<8x8x128xf32>
    %265 = vector.extract_strided_slice %239 {offsets = [1, 0, 0], sizes = [8, 8, 128], strides = [1, 1, 1]} : vector<10x8x128xf32> to vector<8x8x128xf32>
    %266 = vector.shape_cast %154 : vector<8x128xf32> to vector<1x8x128xf32>
    %267 = vector.broadcast %266 : vector<1x8x128xf32> to vector<8x8x128xf32>
    %268 = arith.mulf %265, %267 : vector<8x8x128xf32>
    %269 = arith.addf %264, %268 : vector<8x8x128xf32>
    %270 = vector.extract_strided_slice %237 {offsets = [2, 0, 0], sizes = [8, 8, 128], strides = [1, 1, 1]} : vector<10x8x128xf32> to vector<8x8x128xf32>
    %271 = vector.shape_cast %160 : vector<8x128xf32> to vector<1x8x128xf32>
    %272 = vector.broadcast %271 : vector<1x8x128xf32> to vector<8x8x128xf32>
    %273 = arith.mulf %270, %272 : vector<8x8x128xf32>
    %274 = arith.addf %269, %273 : vector<8x8x128xf32>
    %275 = vector.extract_strided_slice %234 {offsets = [2, 0, 0], sizes = [8, 8, 128], strides = [1, 1, 1]} : vector<10x8x128xf32> to vector<8x8x128xf32>
    %276 = vector.shape_cast %166 : vector<8x128xf32> to vector<1x8x128xf32>
    %277 = vector.broadcast %276 : vector<1x8x128xf32> to vector<8x8x128xf32>
    %278 = arith.mulf %275, %277 : vector<8x8x128xf32>
    %279 = arith.addf %274, %278 : vector<8x8x128xf32>
    %280 = vector.extract_strided_slice %239 {offsets = [2, 0, 0], sizes = [8, 8, 128], strides = [1, 1, 1]} : vector<10x8x128xf32> to vector<8x8x128xf32>
    %281 = vector.shape_cast %172 : vector<8x128xf32> to vector<1x8x128xf32>
    %282 = vector.broadcast %281 : vector<1x8x128xf32> to vector<8x8x128xf32>
    %283 = arith.mulf %280, %282 : vector<8x8x128xf32>
    %284 = arith.addf %279, %283 : vector<8x8x128xf32>
    %c0_15 = arith.constant 0 : index
    %c0_16 = arith.constant 0 : index
    %c0_17 = arith.constant 0 : index
    %c0_18 = arith.constant 0 : index
    %c0_19 = arith.constant 0 : index
    %285 = vector.load %arg6[%c0_15, %c0_16, %c0_17, %c0_18, %c0_19] : memref<1x8x8x8x128xf32, #tpu.memory_space<vmem>>, vector<1x1x8x8x128xf32>
    %286 = vector.shape_cast %285 : vector<1x1x8x8x128xf32> to vector<8x8x128xf32>
    %287 = vector.shape_cast %284 : vector<8x8x128xf32> to vector<1x1x8x8x128xf32>
    tpu.vector_store %arg6[%c0_15, %c0_16, %c0_17, %c0_18, %c0_19], %287 {strides = array<i32>} : memref<1x8x8x8x128xf32, #tpu.memory_space<vmem>>, vector<1x1x8x8x128xf32>,
    %288 = vector.shape_cast %175 : vector<8x128xf32> to vector<1x8x128xf32>
    %289 = vector.broadcast %288 : vector<1x8x128xf32> to vector<8x8x128xf32>
    %c0_20 = arith.constant 0 : index
    %c0_21 = arith.constant 0 : index
    %c0_22 = arith.constant 0 : index
    %c0_23 = arith.constant 0 : index
    %c0_24 = arith.constant 0 : index
    %290 = vector.load %arg3[%c0_20, %c0_21, %c0_22, %c0_23, %c0_24] : memref<1x8x8x8x128xf32, #tpu.memory_space<vmem>>, vector<1x1x8x8x128xf32>
    %291 = vector.shape_cast %290 : vector<1x1x8x8x128xf32> to vector<8x8x128xf32>
    %292 = tpu.concatenate %176, %291, %176 in 0 : vector<1x8x128xf32>, vector<8x8x128xf32>, vector<1x8x128xf32> -> vector<10x8x128xf32>
    %cst_25 = arith.constant 0.000000e+00 : f32
    %293 = vector.broadcast %cst_25 : f32 to vector<10x1x128xf32>
    %294 = vector.extract_strided_slice %292 {offsets = [0, 0, 0], sizes = [10, 7, 128], strides = [1, 1, 1]} : vector<10x8x128xf32> to vector<10x7x128xf32>
    %295 = tpu.concatenate %293, %294 in 1 : vector<10x1x128xf32>, vector<10x7x128xf32> -> vector<10x8x128xf32>
    %296 = vector.extract_strided_slice %292 {offsets = [0, 1, 0], sizes = [10, 7, 128], strides = [1, 1, 1]} : vector<10x8x128xf32> to vector<10x7x128xf32>
    %297 = tpu.concatenate %296, %293 in 1 : vector<10x7x128xf32>, vector<10x1x128xf32> -> vector<10x8x128xf32>
    %298 = vector.extract_strided_slice %295 {offsets = [0, 0, 0], sizes = [8, 8, 128], strides = [1, 1, 1]} : vector<10x8x128xf32> to vector<8x8x128xf32>
    %299 = vector.shape_cast %16 : vector<8x128xf32> to vector<1x8x128xf32>
    %300 = vector.broadcast %299 : vector<1x8x128xf32> to vector<8x8x128xf32>
    %301 = arith.mulf %298, %300 : vector<8x8x128xf32>
    %302 = arith.addf %289, %301 : vector<8x8x128xf32>
    %303 = vector.extract_strided_slice %292 {offsets = [0, 0, 0], sizes = [8, 8, 128], strides = [1, 1, 1]} : vector<10x8x128xf32> to vector<8x8x128xf32>
    %304 = vector.shape_cast %22 : vector<8x128xf32> to vector<1x8x128xf32>
    %305 = vector.broadcast %304 : vector<1x8x128xf32> to vector<8x8x128xf32>
    %306 = arith.mulf %303, %305 : vector<8x8x128xf32>
    %307 = arith.addf %302, %306 : vector<8x8x128xf32>
    %308 = vector.extract_strided_slice %297 {offsets = [0, 0, 0], sizes = [8, 8, 128], strides = [1, 1, 1]} : vector<10x8x128xf32> to vector<8x8x128xf32>
    %309 = vector.shape_cast %28 : vector<8x128xf32> to vector<1x8x128xf32>
    %310 = vector.broadcast %309 : vector<1x8x128xf32> to vector<8x8x128xf32>
    %311 = arith.mulf %308, %310 : vector<8x8x128xf32>
    %312 = arith.addf %307, %311 : vector<8x8x128xf32>
    %313 = vector.extract_strided_slice %295 {offsets = [1, 0, 0], sizes = [8, 8, 128], strides = [1, 1, 1]} : vector<10x8x128xf32> to vector<8x8x128xf32>
    %314 = vector.shape_cast %34 : vector<8x128xf32> to vector<1x8x128xf32>
    %315 = vector.broadcast %314 : vector<1x8x128xf32> to vector<8x8x128xf32>
    %316 = arith.mulf %313, %315 : vector<8x8x128xf32>
    %317 = arith.addf %312, %316 : vector<8x8x128xf32>
    %318 = vector.extract_strided_slice %292 {offsets = [1, 0, 0], sizes = [8, 8, 128], strides = [1, 1, 1]} : vector<10x8x128xf32> to vector<8x8x128xf32>
    %319 = vector.shape_cast %40 : vector<8x128xf32> to vector<1x8x128xf32>
    %320 = vector.broadcast %319 : vector<1x8x128xf32> to vector<8x8x128xf32>
    %321 = arith.mulf %318, %320 : vector<8x8x128xf32>
    %322 = arith.addf %317, %321 : vector<8x8x128xf32>
    %323 = vector.extract_strided_slice %297 {offsets = [1, 0, 0], sizes = [8, 8, 128], strides = [1, 1, 1]} : vector<10x8x128xf32> to vector<8x8x128xf32>
    %324 = vector.shape_cast %46 : vector<8x128xf32> to vector<1x8x128xf32>
    %325 = vector.broadcast %324 : vector<1x8x128xf32> to vector<8x8x128xf32>
    %326 = arith.mulf %323, %325 : vector<8x8x128xf32>
    %327 = arith.addf %322, %326 : vector<8x8x128xf32>
    %328 = vector.extract_strided_slice %295 {offsets = [2, 0, 0], sizes = [8, 8, 128], strides = [1, 1, 1]} : vector<10x8x128xf32> to vector<8x8x128xf32>
    %329 = vector.shape_cast %52 : vector<8x128xf32> to vector<1x8x128xf32>
    %330 = vector.broadcast %329 : vector<1x8x128xf32> to vector<8x8x128xf32>
    %331 = arith.mulf %328, %330 : vector<8x8x128xf32>
    %332 = arith.addf %327, %331 : vector<8x8x128xf32>
    %333 = vector.extract_strided_slice %292 {offsets = [2, 0, 0], sizes = [8, 8, 128], strides = [1, 1, 1]} : vector<10x8x128xf32> to vector<8x8x128xf32>
    %334 = vector.shape_cast %58 : vector<8x128xf32> to vector<1x8x128xf32>
    %335 = vector.broadcast %334 : vector<1x8x128xf32> to vector<8x8x128xf32>
    %336 = arith.mulf %333, %335 : vector<8x8x128xf32>
    %337 = arith.addf %332, %336 : vector<8x8x128xf32>
    %338 = vector.extract_strided_slice %297 {offsets = [2, 0, 0], sizes = [8, 8, 128], strides = [1, 1, 1]} : vector<10x8x128xf32> to vector<8x8x128xf32>
    %339 = vector.shape_cast %64 : vector<8x128xf32> to vector<1x8x128xf32>
    %340 = vector.broadcast %339 : vector<1x8x128xf32> to vector<8x8x128xf32>
    %341 = arith.mulf %338, %340 : vector<8x8x128xf32>
    %342 = arith.addf %337, %341 : vector<8x8x128xf32>
    %c0_26 = arith.constant 0 : index
    %c1_27 = arith.constant 1 : index
    %c0_28 = arith.constant 0 : index
    %c0_29 = arith.constant 0 : index
    %c0_30 = arith.constant 0 : index
    %343 = vector.load %arg3[%c0_26, %c1_27, %c0_28, %c0_29, %c0_30] : memref<1x8x8x8x128xf32, #tpu.memory_space<vmem>>, vector<1x1x8x8x128xf32>
    %344 = vector.shape_cast %343 : vector<1x1x8x8x128xf32> to vector<8x8x128xf32>
    %345 = tpu.concatenate %176, %344, %176 in 0 : vector<1x8x128xf32>, vector<8x8x128xf32>, vector<1x8x128xf32> -> vector<10x8x128xf32>
    %cst_31 = arith.constant 0.000000e+00 : f32
    %346 = vector.broadcast %cst_31 : f32 to vector<10x1x128xf32>
    %347 = vector.extract_strided_slice %345 {offsets = [0, 0, 0], sizes = [10, 7, 128], strides = [1, 1, 1]} : vector<10x8x128xf32> to vector<10x7x128xf32>
    %348 = tpu.concatenate %346, %347 in 1 : vector<10x1x128xf32>, vector<10x7x128xf32> -> vector<10x8x128xf32>
    %349 = vector.extract_strided_slice %345 {offsets = [0, 1, 0], sizes = [10, 7, 128], strides = [1, 1, 1]} : vector<10x8x128xf32> to vector<10x7x128xf32>
    %350 = tpu.concatenate %349, %346 in 1 : vector<10x7x128xf32>, vector<10x1x128xf32> -> vector<10x8x128xf32>
    %351 = vector.extract_strided_slice %348 {offsets = [0, 0, 0], sizes = [8, 8, 128], strides = [1, 1, 1]} : vector<10x8x128xf32> to vector<8x8x128xf32>
    %352 = vector.shape_cast %70 : vector<8x128xf32> to vector<1x8x128xf32>
    %353 = vector.broadcast %352 : vector<1x8x128xf32> to vector<8x8x128xf32>
    %354 = arith.mulf %351, %353 : vector<8x8x128xf32>
    %355 = arith.addf %342, %354 : vector<8x8x128xf32>
    %356 = vector.extract_strided_slice %345 {offsets = [0, 0, 0], sizes = [8, 8, 128], strides = [1, 1, 1]} : vector<10x8x128xf32> to vector<8x8x128xf32>
    %357 = vector.shape_cast %76 : vector<8x128xf32> to vector<1x8x128xf32>
    %358 = vector.broadcast %357 : vector<1x8x128xf32> to vector<8x8x128xf32>
    %359 = arith.mulf %356, %358 : vector<8x8x128xf32>
    %360 = arith.addf %355, %359 : vector<8x8x128xf32>
    %361 = vector.extract_strided_slice %350 {offsets = [0, 0, 0], sizes = [8, 8, 128], strides = [1, 1, 1]} : vector<10x8x128xf32> to vector<8x8x128xf32>
    %362 = vector.shape_cast %82 : vector<8x128xf32> to vector<1x8x128xf32>
    %363 = vector.broadcast %362 : vector<1x8x128xf32> to vector<8x8x128xf32>
    %364 = arith.mulf %361, %363 : vector<8x8x128xf32>
    %365 = arith.addf %360, %364 : vector<8x8x128xf32>
    %366 = vector.extract_strided_slice %348 {offsets = [1, 0, 0], sizes = [8, 8, 128], strides = [1, 1, 1]} : vector<10x8x128xf32> to vector<8x8x128xf32>
    %367 = vector.shape_cast %88 : vector<8x128xf32> to vector<1x8x128xf32>
    %368 = vector.broadcast %367 : vector<1x8x128xf32> to vector<8x8x128xf32>
    %369 = arith.mulf %366, %368 : vector<8x8x128xf32>
    %370 = arith.addf %365, %369 : vector<8x8x128xf32>
    %371 = vector.extract_strided_slice %345 {offsets = [1, 0, 0], sizes = [8, 8, 128], strides = [1, 1, 1]} : vector<10x8x128xf32> to vector<8x8x128xf32>
    %372 = vector.shape_cast %94 : vector<8x128xf32> to vector<1x8x128xf32>
    %373 = vector.broadcast %372 : vector<1x8x128xf32> to vector<8x8x128xf32>
    %374 = arith.mulf %371, %373 : vector<8x8x128xf32>
    %375 = arith.addf %370, %374 : vector<8x8x128xf32>
    %376 = vector.extract_strided_slice %350 {offsets = [1, 0, 0], sizes = [8, 8, 128], strides = [1, 1, 1]} : vector<10x8x128xf32> to vector<8x8x128xf32>
    %377 = vector.shape_cast %100 : vector<8x128xf32> to vector<1x8x128xf32>
    %378 = vector.broadcast %377 : vector<1x8x128xf32> to vector<8x8x128xf32>
    %379 = arith.mulf %376, %378 : vector<8x8x128xf32>
    %380 = arith.addf %375, %379 : vector<8x8x128xf32>
    %381 = vector.extract_strided_slice %348 {offsets = [2, 0, 0], sizes = [8, 8, 128], strides = [1, 1, 1]} : vector<10x8x128xf32> to vector<8x8x128xf32>
    %382 = vector.shape_cast %106 : vector<8x128xf32> to vector<1x8x128xf32>
    %383 = vector.broadcast %382 : vector<1x8x128xf32> to vector<8x8x128xf32>
    %384 = arith.mulf %381, %383 : vector<8x8x128xf32>
    %385 = arith.addf %380, %384 : vector<8x8x128xf32>
    %386 = vector.extract_strided_slice %345 {offsets = [2, 0, 0], sizes = [8, 8, 128], strides = [1, 1, 1]} : vector<10x8x128xf32> to vector<8x8x128xf32>
    %387 = vector.shape_cast %112 : vector<8x128xf32> to vector<1x8x128xf32>
    %388 = vector.broadcast %387 : vector<1x8x128xf32> to vector<8x8x128xf32>
    %389 = arith.mulf %386, %388 : vector<8x8x128xf32>
    %390 = arith.addf %385, %389 : vector<8x8x128xf32>
    %391 = vector.extract_strided_slice %350 {offsets = [2, 0, 0], sizes = [8, 8, 128], strides = [1, 1, 1]} : vector<10x8x128xf32> to vector<8x8x128xf32>
    %392 = vector.shape_cast %118 : vector<8x128xf32> to vector<1x8x128xf32>
    %393 = vector.broadcast %392 : vector<1x8x128xf32> to vector<8x8x128xf32>
    %394 = arith.mulf %391, %393 : vector<8x8x128xf32>
    %395 = arith.addf %390, %394 : vector<8x8x128xf32>
    %c0_32 = arith.constant 0 : index
    %c2 = arith.constant 2 : index
    %c0_33 = arith.constant 0 : index
    %c0_34 = arith.constant 0 : index
    %c0_35 = arith.constant 0 : index
    %396 = vector.load %arg3[%c0_32, %c2, %c0_33, %c0_34, %c0_35] : memref<1x8x8x8x128xf32, #tpu.memory_space<vmem>>, vector<1x1x8x8x128xf32>
    %397 = vector.shape_cast %396 : vector<1x1x8x8x128xf32> to vector<8x8x128xf32>
    %398 = tpu.concatenate %176, %397, %176 in 0 : vector<1x8x128xf32>, vector<8x8x128xf32>, vector<1x8x128xf32> -> vector<10x8x128xf32>
    %cst_36 = arith.constant 0.000000e+00 : f32
    %399 = vector.broadcast %cst_36 : f32 to vector<10x1x128xf32>
    %400 = vector.extract_strided_slice %398 {offsets = [0, 0, 0], sizes = [10, 7, 128], strides = [1, 1, 1]} : vector<10x8x128xf32> to vector<10x7x128xf32>
    %401 = tpu.concatenate %399, %400 in 1 : vector<10x1x128xf32>, vector<10x7x128xf32> -> vector<10x8x128xf32>
    %402 = vector.extract_strided_slice %398 {offsets = [0, 1, 0], sizes = [10, 7, 128], strides = [1, 1, 1]} : vector<10x8x128xf32> to vector<10x7x128xf32>
    %403 = tpu.concatenate %402, %399 in 1 : vector<10x7x128xf32>, vector<10x1x128xf32> -> vector<10x8x128xf32>
    %404 = vector.extract_strided_slice %401 {offsets = [0, 0, 0], sizes = [8, 8, 128], strides = [1, 1, 1]} : vector<10x8x128xf32> to vector<8x8x128xf32>
    %405 = vector.shape_cast %124 : vector<8x128xf32> to vector<1x8x128xf32>
    %406 = vector.broadcast %405 : vector<1x8x128xf32> to vector<8x8x128xf32>
    %407 = arith.mulf %404, %406 : vector<8x8x128xf32>
    %408 = arith.addf %395, %407 : vector<8x8x128xf32>
    %409 = vector.extract_strided_slice %398 {offsets = [0, 0, 0], sizes = [8, 8, 128], strides = [1, 1, 1]} : vector<10x8x128xf32> to vector<8x8x128xf32>
    %410 = vector.shape_cast %130 : vector<8x128xf32> to vector<1x8x128xf32>
    %411 = vector.broadcast %410 : vector<1x8x128xf32> to vector<8x8x128xf32>
    %412 = arith.mulf %409, %411 : vector<8x8x128xf32>
    %413 = arith.addf %408, %412 : vector<8x8x128xf32>
    %414 = vector.extract_strided_slice %403 {offsets = [0, 0, 0], sizes = [8, 8, 128], strides = [1, 1, 1]} : vector<10x8x128xf32> to vector<8x8x128xf32>
    %415 = vector.shape_cast %136 : vector<8x128xf32> to vector<1x8x128xf32>
    %416 = vector.broadcast %415 : vector<1x8x128xf32> to vector<8x8x128xf32>
    %417 = arith.mulf %414, %416 : vector<8x8x128xf32>
    %418 = arith.addf %413, %417 : vector<8x8x128xf32>
    %419 = vector.extract_strided_slice %401 {offsets = [1, 0, 0], sizes = [8, 8, 128], strides = [1, 1, 1]} : vector<10x8x128xf32> to vector<8x8x128xf32>
    %420 = vector.shape_cast %142 : vector<8x128xf32> to vector<1x8x128xf32>
    %421 = vector.broadcast %420 : vector<1x8x128xf32> to vector<8x8x128xf32>
    %422 = arith.mulf %419, %421 : vector<8x8x128xf32>
    %423 = arith.addf %418, %422 : vector<8x8x128xf32>
    %424 = vector.extract_strided_slice %398 {offsets = [1, 0, 0], sizes = [8, 8, 128], strides = [1, 1, 1]} : vector<10x8x128xf32> to vector<8x8x128xf32>
    %425 = vector.shape_cast %148 : vector<8x128xf32> to vector<1x8x128xf32>
    %426 = vector.broadcast %425 : vector<1x8x128xf32> to vector<8x8x128xf32>
    %427 = arith.mulf %424, %426 : vector<8x8x128xf32>
    %428 = arith.addf %423, %427 : vector<8x8x128xf32>
    %429 = vector.extract_strided_slice %403 {offsets = [1, 0, 0], sizes = [8, 8, 128], strides = [1, 1, 1]} : vector<10x8x128xf32> to vector<8x8x128xf32>
    %430 = vector.shape_cast %154 : vector<8x128xf32> to vector<1x8x128xf32>
    %431 = vector.broadcast %430 : vector<1x8x128xf32> to vector<8x8x128xf32>
    %432 = arith.mulf %429, %431 : vector<8x8x128xf32>
    %433 = arith.addf %428, %432 : vector<8x8x128xf32>
    %434 = vector.extract_strided_slice %401 {offsets = [2, 0, 0], sizes = [8, 8, 128], strides = [1, 1, 1]} : vector<10x8x128xf32> to vector<8x8x128xf32>
    %435 = vector.shape_cast %160 : vector<8x128xf32> to vector<1x8x128xf32>
    %436 = vector.broadcast %435 : vector<1x8x128xf32> to vector<8x8x128xf32>
    %437 = arith.mulf %434, %436 : vector<8x8x128xf32>
    %438 = arith.addf %433, %437 : vector<8x8x128xf32>
    %439 = vector.extract_strided_slice %398 {offsets = [2, 0, 0], sizes = [8, 8, 128], strides = [1, 1, 1]} : vector<10x8x128xf32> to vector<8x8x128xf32>
    %440 = vector.shape_cast %166 : vector<8x128xf32> to vector<1x8x128xf32>
    %441 = vector.broadcast %440 : vector<1x8x128xf32> to vector<8x8x128xf32>
    %442 = arith.mulf %439, %441 : vector<8x8x128xf32>
    %443 = arith.addf %438, %442 : vector<8x8x128xf32>
    %444 = vector.extract_strided_slice %403 {offsets = [2, 0, 0], sizes = [8, 8, 128], strides = [1, 1, 1]} : vector<10x8x128xf32> to vector<8x8x128xf32>
    %445 = vector.shape_cast %172 : vector<8x128xf32> to vector<1x8x128xf32>
    %446 = vector.broadcast %445 : vector<1x8x128xf32> to vector<8x8x128xf32>
    %447 = arith.mulf %444, %446 : vector<8x8x128xf32>
    %448 = arith.addf %443, %447 : vector<8x8x128xf32>
    %c0_37 = arith.constant 0 : index
    %c1_38 = arith.constant 1 : index
    %c0_39 = arith.constant 0 : index
    %c0_40 = arith.constant 0 : index
    %c0_41 = arith.constant 0 : index
    %449 = vector.load %arg6[%c0_37, %c1_38, %c0_39, %c0_40, %c0_41] : memref<1x8x8x8x128xf32, #tpu.memory_space<vmem>>, vector<1x1x8x8x128xf32>
    %450 = vector.shape_cast %449 : vector<1x1x8x8x128xf32> to vector<8x8x128xf32>
    %451 = vector.shape_cast %448 : vector<8x8x128xf32> to vector<1x1x8x8x128xf32>
    tpu.vector_store %arg6[%c0_37, %c1_38, %c0_39, %c0_40, %c0_41], %451 {strides = array<i32>} : memref<1x8x8x8x128xf32, #tpu.memory_space<vmem>>, vector<1x1x8x8x128xf32>,
    %452 = vector.shape_cast %175 : vector<8x128xf32> to vector<1x8x128xf32>
    %453 = vector.broadcast %452 : vector<1x8x128xf32> to vector<8x8x128xf32>
    %c0_42 = arith.constant 0 : index
    %c1_43 = arith.constant 1 : index
    %c0_44 = arith.constant 0 : index
    %c0_45 = arith.constant 0 : index
    %c0_46 = arith.constant 0 : index
    %454 = vector.load %arg3[%c0_42, %c1_43, %c0_44, %c0_45, %c0_46] : memref<1x8x8x8x128xf32, #tpu.memory_space<vmem>>, vector<1x1x8x8x128xf32>
    %455 = vector.shape_cast %454 : vector<1x1x8x8x128xf32> to vector<8x8x128xf32>
    %456 = tpu.concatenate %176, %455, %176 in 0 : vector<1x8x128xf32>, vector<8x8x128xf32>, vector<1x8x128xf32> -> vector<10x8x128xf32>
    %cst_47 = arith.constant 0.000000e+00 : f32
    %457 = vector.broadcast %cst_47 : f32 to vector<10x1x128xf32>
    %458 = vector.extract_strided_slice %456 {offsets = [0, 0, 0], sizes = [10, 7, 128], strides = [1, 1, 1]} : vector<10x8x128xf32> to vector<10x7x128xf32>
    %459 = tpu.concatenate %457, %458 in 1 : vector<10x1x128xf32>, vector<10x7x128xf32> -> vector<10x8x128xf32>
    %460 = vector.extract_strided_slice %456 {offsets = [0, 1, 0], sizes = [10, 7, 128], strides = [1, 1, 1]} : vector<10x8x128xf32> to vector<10x7x128xf32>
    %461 = tpu.concatenate %460, %457 in 1 : vector<10x7x128xf32>, vector<10x1x128xf32> -> vector<10x8x128xf32>
    %462 = vector.extract_strided_slice %459 {offsets = [0, 0, 0], sizes = [8, 8, 128], strides = [1, 1, 1]} : vector<10x8x128xf32> to vector<8x8x128xf32>
    %463 = vector.shape_cast %16 : vector<8x128xf32> to vector<1x8x128xf32>
    %464 = vector.broadcast %463 : vector<1x8x128xf32> to vector<8x8x128xf32>
    %465 = arith.mulf %462, %464 : vector<8x8x128xf32>
    %466 = arith.addf %453, %465 : vector<8x8x128xf32>
    %467 = vector.extract_strided_slice %456 {offsets = [0, 0, 0], sizes = [8, 8, 128], strides = [1, 1, 1]} : vector<10x8x128xf32> to vector<8x8x128xf32>
    %468 = vector.shape_cast %22 : vector<8x128xf32> to vector<1x8x128xf32>
    %469 = vector.broadcast %468 : vector<1x8x128xf32> to vector<8x8x128xf32>
    %470 = arith.mulf %467, %469 : vector<8x8x128xf32>
    %471 = arith.addf %466, %470 : vector<8x8x128xf32>
    %472 = vector.extract_strided_slice %461 {offsets = [0, 0, 0], sizes = [8, 8, 128], strides = [1, 1, 1]} : vector<10x8x128xf32> to vector<8x8x128xf32>
    %473 = vector.shape_cast %28 : vector<8x128xf32> to vector<1x8x128xf32>
    %474 = vector.broadcast %473 : vector<1x8x128xf32> to vector<8x8x128xf32>
    %475 = arith.mulf %472, %474 : vector<8x8x128xf32>
    %476 = arith.addf %471, %475 : vector<8x8x128xf32>
    %477 = vector.extract_strided_slice %459 {offsets = [1, 0, 0], sizes = [8, 8, 128], strides = [1, 1, 1]} : vector<10x8x128xf32> to vector<8x8x128xf32>
    %478 = vector.shape_cast %34 : vector<8x128xf32> to vector<1x8x128xf32>
    %479 = vector.broadcast %478 : vector<1x8x128xf32> to vector<8x8x128xf32>
    %480 = arith.mulf %477, %479 : vector<8x8x128xf32>
    %481 = arith.addf %476, %480 : vector<8x8x128xf32>
    %482 = vector.extract_strided_slice %456 {offsets = [1, 0, 0], sizes = [8, 8, 128], strides = [1, 1, 1]} : vector<10x8x128xf32> to vector<8x8x128xf32>
    %483 = vector.shape_cast %40 : vector<8x128xf32> to vector<1x8x128xf32>
    %484 = vector.broadcast %483 : vector<1x8x128xf32> to vector<8x8x128xf32>
    %485 = arith.mulf %482, %484 : vector<8x8x128xf32>
    %486 = arith.addf %481, %485 : vector<8x8x128xf32>
    %487 = vector.extract_strided_slice %461 {offsets = [1, 0, 0], sizes = [8, 8, 128], strides = [1, 1, 1]} : vector<10x8x128xf32> to vector<8x8x128xf32>
    %488 = vector.shape_cast %46 : vector<8x128xf32> to vector<1x8x128xf32>
    %489 = vector.broadcast %488 : vector<1x8x128xf32> to vector<8x8x128xf32>
    %490 = arith.mulf %487, %489 : vector<8x8x128xf32>
    %491 = arith.addf %486, %490 : vector<8x8x128xf32>
    %492 = vector.extract_strided_slice %459 {offsets = [2, 0, 0], sizes = [8, 8, 128], strides = [1, 1, 1]} : vector<10x8x128xf32> to vector<8x8x128xf32>
    %493 = vector.shape_cast %52 : vector<8x128xf32> to vector<1x8x128xf32>
    %494 = vector.broadcast %493 : vector<1x8x128xf32> to vector<8x8x128xf32>
    %495 = arith.mulf %492, %494 : vector<8x8x128xf32>
    %496 = arith.addf %491, %495 : vector<8x8x128xf32>
    %497 = vector.extract_strided_slice %456 {offsets = [2, 0, 0], sizes = [8, 8, 128], strides = [1, 1, 1]} : vector<10x8x128xf32> to vector<8x8x128xf32>
    %498 = vector.shape_cast %58 : vector<8x128xf32> to vector<1x8x128xf32>
    %499 = vector.broadcast %498 : vector<1x8x128xf32> to vector<8x8x128xf32>
    %500 = arith.mulf %497, %499 : vector<8x8x128xf32>
    %501 = arith.addf %496, %500 : vector<8x8x128xf32>
    %502 = vector.extract_strided_slice %461 {offsets = [2, 0, 0], sizes = [8, 8, 128], strides = [1, 1, 1]} : vector<10x8x128xf32> to vector<8x8x128xf32>
    %503 = vector.shape_cast %64 : vector<8x128xf32> to vector<1x8x128xf32>
    %504 = vector.broadcast %503 : vector<1x8x128xf32> to vector<8x8x128xf32>
    %505 = arith.mulf %502, %504 : vector<8x8x128xf32>
    %506 = arith.addf %501, %505 : vector<8x8x128xf32>
    %c0_48 = arith.constant 0 : index
    %c2_49 = arith.constant 2 : index
    %c0_50 = arith.constant 0 : index
    %c0_51 = arith.constant 0 : index
    %c0_52 = arith.constant 0 : index
    %507 = vector.load %arg3[%c0_48, %c2_49, %c0_50, %c0_51, %c0_52] : memref<1x8x8x8x128xf32, #tpu.memory_space<vmem>>, vector<1x1x8x8x128xf32>
    %508 = vector.shape_cast %507 : vector<1x1x8x8x128xf32> to vector<8x8x128xf32>
    %509 = tpu.concatenate %176, %508, %176 in 0 : vector<1x8x128xf32>, vector<8x8x128xf32>, vector<1x8x128xf32> -> vector<10x8x128xf32>
    %cst_53 = arith.constant 0.000000e+00 : f32
    %510 = vector.broadcast %cst_53 : f32 to vector<10x1x128xf32>
    %511 = vector.extract_strided_slice %509 {offsets = [0, 0, 0], sizes = [10, 7, 128], strides = [1, 1, 1]} : vector<10x8x128xf32> to vector<10x7x128xf32>
    %512 = tpu.concatenate %510, %511 in 1 : vector<10x1x128xf32>, vector<10x7x128xf32> -> vector<10x8x128xf32>
    %513 = vector.extract_strided_slice %509 {offsets = [0, 1, 0], sizes = [10, 7, 128], strides = [1, 1, 1]} : vector<10x8x128xf32> to vector<10x7x128xf32>
    %514 = tpu.concatenate %513, %510 in 1 : vector<10x7x128xf32>, vector<10x1x128xf32> -> vector<10x8x128xf32>
    %515 = vector.extract_strided_slice %512 {offsets = [0, 0, 0], sizes = [8, 8, 128], strides = [1, 1, 1]} : vector<10x8x128xf32> to vector<8x8x128xf32>
    %516 = vector.shape_cast %70 : vector<8x128xf32> to vector<1x8x128xf32>
    %517 = vector.broadcast %516 : vector<1x8x128xf32> to vector<8x8x128xf32>
    %518 = arith.mulf %515, %517 : vector<8x8x128xf32>
    %519 = arith.addf %506, %518 : vector<8x8x128xf32>
    %520 = vector.extract_strided_slice %509 {offsets = [0, 0, 0], sizes = [8, 8, 128], strides = [1, 1, 1]} : vector<10x8x128xf32> to vector<8x8x128xf32>
    %521 = vector.shape_cast %76 : vector<8x128xf32> to vector<1x8x128xf32>
    %522 = vector.broadcast %521 : vector<1x8x128xf32> to vector<8x8x128xf32>
    %523 = arith.mulf %520, %522 : vector<8x8x128xf32>
    %524 = arith.addf %519, %523 : vector<8x8x128xf32>
    %525 = vector.extract_strided_slice %514 {offsets = [0, 0, 0], sizes = [8, 8, 128], strides = [1, 1, 1]} : vector<10x8x128xf32> to vector<8x8x128xf32>
    %526 = vector.shape_cast %82 : vector<8x128xf32> to vector<1x8x128xf32>
    %527 = vector.broadcast %526 : vector<1x8x128xf32> to vector<8x8x128xf32>
    %528 = arith.mulf %525, %527 : vector<8x8x128xf32>
    %529 = arith.addf %524, %528 : vector<8x8x128xf32>
    %530 = vector.extract_strided_slice %512 {offsets = [1, 0, 0], sizes = [8, 8, 128], strides = [1, 1, 1]} : vector<10x8x128xf32> to vector<8x8x128xf32>
    %531 = vector.shape_cast %88 : vector<8x128xf32> to vector<1x8x128xf32>
    %532 = vector.broadcast %531 : vector<1x8x128xf32> to vector<8x8x128xf32>
    %533 = arith.mulf %530, %532 : vector<8x8x128xf32>
    %534 = arith.addf %529, %533 : vector<8x8x128xf32>
    %535 = vector.extract_strided_slice %509 {offsets = [1, 0, 0], sizes = [8, 8, 128], strides = [1, 1, 1]} : vector<10x8x128xf32> to vector<8x8x128xf32>
    %536 = vector.shape_cast %94 : vector<8x128xf32> to vector<1x8x128xf32>
    %537 = vector.broadcast %536 : vector<1x8x128xf32> to vector<8x8x128xf32>
    %538 = arith.mulf %535, %537 : vector<8x8x128xf32>
    %539 = arith.addf %534, %538 : vector<8x8x128xf32>
    %540 = vector.extract_strided_slice %514 {offsets = [1, 0, 0], sizes = [8, 8, 128], strides = [1, 1, 1]} : vector<10x8x128xf32> to vector<8x8x128xf32>
    %541 = vector.shape_cast %100 : vector<8x128xf32> to vector<1x8x128xf32>
    %542 = vector.broadcast %541 : vector<1x8x128xf32> to vector<8x8x128xf32>
    %543 = arith.mulf %540, %542 : vector<8x8x128xf32>
    %544 = arith.addf %539, %543 : vector<8x8x128xf32>
    %545 = vector.extract_strided_slice %512 {offsets = [2, 0, 0], sizes = [8, 8, 128], strides = [1, 1, 1]} : vector<10x8x128xf32> to vector<8x8x128xf32>
    %546 = vector.shape_cast %106 : vector<8x128xf32> to vector<1x8x128xf32>
    %547 = vector.broadcast %546 : vector<1x8x128xf32> to vector<8x8x128xf32>
    %548 = arith.mulf %545, %547 : vector<8x8x128xf32>
    %549 = arith.addf %544, %548 : vector<8x8x128xf32>
    %550 = vector.extract_strided_slice %509 {offsets = [2, 0, 0], sizes = [8, 8, 128], strides = [1, 1, 1]} : vector<10x8x128xf32> to vector<8x8x128xf32>
    %551 = vector.shape_cast %112 : vector<8x128xf32> to vector<1x8x128xf32>
    %552 = vector.broadcast %551 : vector<1x8x128xf32> to vector<8x8x128xf32>
    %553 = arith.mulf %550, %552 : vector<8x8x128xf32>
    %554 = arith.addf %549, %553 : vector<8x8x128xf32>
    %555 = vector.extract_strided_slice %514 {offsets = [2, 0, 0], sizes = [8, 8, 128], strides = [1, 1, 1]} : vector<10x8x128xf32> to vector<8x8x128xf32>
    %556 = vector.shape_cast %118 : vector<8x128xf32> to vector<1x8x128xf32>
    %557 = vector.broadcast %556 : vector<1x8x128xf32> to vector<8x8x128xf32>
    %558 = arith.mulf %555, %557 : vector<8x8x128xf32>
    %559 = arith.addf %554, %558 : vector<8x8x128xf32>
    %c0_54 = arith.constant 0 : index
    %c3 = arith.constant 3 : index
    %c0_55 = arith.constant 0 : index
    %c0_56 = arith.constant 0 : index
    %c0_57 = arith.constant 0 : index
    %560 = vector.load %arg3[%c0_54, %c3, %c0_55, %c0_56, %c0_57] : memref<1x8x8x8x128xf32, #tpu.memory_space<vmem>>, vector<1x1x8x8x128xf32>
    %561 = vector.shape_cast %560 : vector<1x1x8x8x128xf32> to vector<8x8x128xf32>
    %562 = tpu.concatenate %176, %561, %176 in 0 : vector<1x8x128xf32>, vector<8x8x128xf32>, vector<1x8x128xf32> -> vector<10x8x128xf32>
    %cst_58 = arith.constant 0.000000e+00 : f32
    %563 = vector.broadcast %cst_58 : f32 to vector<10x1x128xf32>
    %564 = vector.extract_strided_slice %562 {offsets = [0, 0, 0], sizes = [10, 7, 128], strides = [1, 1, 1]} : vector<10x8x128xf32> to vector<10x7x128xf32>
    %565 = tpu.concatenate %563, %564 in 1 : vector<10x1x128xf32>, vector<10x7x128xf32> -> vector<10x8x128xf32>
    %566 = vector.extract_strided_slice %562 {offsets = [0, 1, 0], sizes = [10, 7, 128], strides = [1, 1, 1]} : vector<10x8x128xf32> to vector<10x7x128xf32>
    %567 = tpu.concatenate %566, %563 in 1 : vector<10x7x128xf32>, vector<10x1x128xf32> -> vector<10x8x128xf32>
    %568 = vector.extract_strided_slice %565 {offsets = [0, 0, 0], sizes = [8, 8, 128], strides = [1, 1, 1]} : vector<10x8x128xf32> to vector<8x8x128xf32>
    %569 = vector.shape_cast %124 : vector<8x128xf32> to vector<1x8x128xf32>
    %570 = vector.broadcast %569 : vector<1x8x128xf32> to vector<8x8x128xf32>
    %571 = arith.mulf %568, %570 : vector<8x8x128xf32>
    %572 = arith.addf %559, %571 : vector<8x8x128xf32>
    %573 = vector.extract_strided_slice %562 {offsets = [0, 0, 0], sizes = [8, 8, 128], strides = [1, 1, 1]} : vector<10x8x128xf32> to vector<8x8x128xf32>
    %574 = vector.shape_cast %130 : vector<8x128xf32> to vector<1x8x128xf32>
    %575 = vector.broadcast %574 : vector<1x8x128xf32> to vector<8x8x128xf32>
    %576 = arith.mulf %573, %575 : vector<8x8x128xf32>
    %577 = arith.addf %572, %576 : vector<8x8x128xf32>
    %578 = vector.extract_strided_slice %567 {offsets = [0, 0, 0], sizes = [8, 8, 128], strides = [1, 1, 1]} : vector<10x8x128xf32> to vector<8x8x128xf32>
    %579 = vector.shape_cast %136 : vector<8x128xf32> to vector<1x8x128xf32>
    %580 = vector.broadcast %579 : vector<1x8x128xf32> to vector<8x8x128xf32>
    %581 = arith.mulf %578, %580 : vector<8x8x128xf32>
    %582 = arith.addf %577, %581 : vector<8x8x128xf32>
    %583 = vector.extract_strided_slice %565 {offsets = [1, 0, 0], sizes = [8, 8, 128], strides = [1, 1, 1]} : vector<10x8x128xf32> to vector<8x8x128xf32>
    %584 = vector.shape_cast %142 : vector<8x128xf32> to vector<1x8x128xf32>
    %585 = vector.broadcast %584 : vector<1x8x128xf32> to vector<8x8x128xf32>
    %586 = arith.mulf %583, %585 : vector<8x8x128xf32>
    %587 = arith.addf %582, %586 : vector<8x8x128xf32>
    %588 = vector.extract_strided_slice %562 {offsets = [1, 0, 0], sizes = [8, 8, 128], strides = [1, 1, 1]} : vector<10x8x128xf32> to vector<8x8x128xf32>
    %589 = vector.shape_cast %148 : vector<8x128xf32> to vector<1x8x128xf32>
    %590 = vector.broadcast %589 : vector<1x8x128xf32> to vector<8x8x128xf32>
    %591 = arith.mulf %588, %590 : vector<8x8x128xf32>
    %592 = arith.addf %587, %591 : vector<8x8x128xf32>
    %593 = vector.extract_strided_slice %567 {offsets = [1, 0, 0], sizes = [8, 8, 128], strides = [1, 1, 1]} : vector<10x8x128xf32> to vector<8x8x128xf32>
    %594 = vector.shape_cast %154 : vector<8x128xf32> to vector<1x8x128xf32>
    %595 = vector.broadcast %594 : vector<1x8x128xf32> to vector<8x8x128xf32>
    %596 = arith.mulf %593, %595 : vector<8x8x128xf32>
    %597 = arith.addf %592, %596 : vector<8x8x128xf32>
    %598 = vector.extract_strided_slice %565 {offsets = [2, 0, 0], sizes = [8, 8, 128], strides = [1, 1, 1]} : vector<10x8x128xf32> to vector<8x8x128xf32>
    %599 = vector.shape_cast %160 : vector<8x128xf32> to vector<1x8x128xf32>
    %600 = vector.broadcast %599 : vector<1x8x128xf32> to vector<8x8x128xf32>
    %601 = arith.mulf %598, %600 : vector<8x8x128xf32>
    %602 = arith.addf %597, %601 : vector<8x8x128xf32>
    %603 = vector.extract_strided_slice %562 {offsets = [2, 0, 0], sizes = [8, 8, 128], strides = [1, 1, 1]} : vector<10x8x128xf32> to vector<8x8x128xf32>
    %604 = vector.shape_cast %166 : vector<8x128xf32> to vector<1x8x128xf32>
    %605 = vector.broadcast %604 : vector<1x8x128xf32> to vector<8x8x128xf32>
    %606 = arith.mulf %603, %605 : vector<8x8x128xf32>
    %607 = arith.addf %602, %606 : vector<8x8x128xf32>
    %608 = vector.extract_strided_slice %567 {offsets = [2, 0, 0], sizes = [8, 8, 128], strides = [1, 1, 1]} : vector<10x8x128xf32> to vector<8x8x128xf32>
    %609 = vector.shape_cast %172 : vector<8x128xf32> to vector<1x8x128xf32>
    %610 = vector.broadcast %609 : vector<1x8x128xf32> to vector<8x8x128xf32>
    %611 = arith.mulf %608, %610 : vector<8x8x128xf32>
    %612 = arith.addf %607, %611 : vector<8x8x128xf32>
    %c0_59 = arith.constant 0 : index
    %c2_60 = arith.constant 2 : index
    %c0_61 = arith.constant 0 : index
    %c0_62 = arith.constant 0 : index
    %c0_63 = arith.constant 0 : index
    %613 = vector.load %arg6[%c0_59, %c2_60, %c0_61, %c0_62, %c0_63] : memref<1x8x8x8x128xf32, #tpu.memory_space<vmem>>, vector<1x1x8x8x128xf32>
    %614 = vector.shape_cast %613 : vector<1x1x8x8x128xf32> to vector<8x8x128xf32>
    %615 = vector.shape_cast %612 : vector<8x8x128xf32> to vector<1x1x8x8x128xf32>
    tpu.vector_store %arg6[%c0_59, %c2_60, %c0_61, %c0_62, %c0_63], %615 {strides = array<i32>} : memref<1x8x8x8x128xf32, #tpu.memory_space<vmem>>, vector<1x1x8x8x128xf32>,
    %616 = vector.shape_cast %175 : vector<8x128xf32> to vector<1x8x128xf32>
    %617 = vector.broadcast %616 : vector<1x8x128xf32> to vector<8x8x128xf32>
    %c0_64 = arith.constant 0 : index
    %c2_65 = arith.constant 2 : index
    %c0_66 = arith.constant 0 : index
    %c0_67 = arith.constant 0 : index
    %c0_68 = arith.constant 0 : index
    %618 = vector.load %arg3[%c0_64, %c2_65, %c0_66, %c0_67, %c0_68] : memref<1x8x8x8x128xf32, #tpu.memory_space<vmem>>, vector<1x1x8x8x128xf32>
    %619 = vector.shape_cast %618 : vector<1x1x8x8x128xf32> to vector<8x8x128xf32>
    %620 = tpu.concatenate %176, %619, %176 in 0 : vector<1x8x128xf32>, vector<8x8x128xf32>, vector<1x8x128xf32> -> vector<10x8x128xf32>
    %cst_69 = arith.constant 0.000000e+00 : f32
    %621 = vector.broadcast %cst_69 : f32 to vector<10x1x128xf32>
    %622 = vector.extract_strided_slice %620 {offsets = [0, 0, 0], sizes = [10, 7, 128], strides = [1, 1, 1]} : vector<10x8x128xf32> to vector<10x7x128xf32>
    %623 = tpu.concatenate %621, %622 in 1 : vector<10x1x128xf32>, vector<10x7x128xf32> -> vector<10x8x128xf32>
    %624 = vector.extract_strided_slice %620 {offsets = [0, 1, 0], sizes = [10, 7, 128], strides = [1, 1, 1]} : vector<10x8x128xf32> to vector<10x7x128xf32>
    %625 = tpu.concatenate %624, %621 in 1 : vector<10x7x128xf32>, vector<10x1x128xf32> -> vector<10x8x128xf32>
    %626 = vector.extract_strided_slice %623 {offsets = [0, 0, 0], sizes = [8, 8, 128], strides = [1, 1, 1]} : vector<10x8x128xf32> to vector<8x8x128xf32>
    %627 = vector.shape_cast %16 : vector<8x128xf32> to vector<1x8x128xf32>
    %628 = vector.broadcast %627 : vector<1x8x128xf32> to vector<8x8x128xf32>
    %629 = arith.mulf %626, %628 : vector<8x8x128xf32>
    %630 = arith.addf %617, %629 : vector<8x8x128xf32>
    %631 = vector.extract_strided_slice %620 {offsets = [0, 0, 0], sizes = [8, 8, 128], strides = [1, 1, 1]} : vector<10x8x128xf32> to vector<8x8x128xf32>
    %632 = vector.shape_cast %22 : vector<8x128xf32> to vector<1x8x128xf32>
    %633 = vector.broadcast %632 : vector<1x8x128xf32> to vector<8x8x128xf32>
    %634 = arith.mulf %631, %633 : vector<8x8x128xf32>
    %635 = arith.addf %630, %634 : vector<8x8x128xf32>
    %636 = vector.extract_strided_slice %625 {offsets = [0, 0, 0], sizes = [8, 8, 128], strides = [1, 1, 1]} : vector<10x8x128xf32> to vector<8x8x128xf32>
    %637 = vector.shape_cast %28 : vector<8x128xf32> to vector<1x8x128xf32>
    %638 = vector.broadcast %637 : vector<1x8x128xf32> to vector<8x8x128xf32>
    %639 = arith.mulf %636, %638 : vector<8x8x128xf32>
    %640 = arith.addf %635, %639 : vector<8x8x128xf32>
    %641 = vector.extract_strided_slice %623 {offsets = [1, 0, 0], sizes = [8, 8, 128], strides = [1, 1, 1]} : vector<10x8x128xf32> to vector<8x8x128xf32>
    %642 = vector.shape_cast %34 : vector<8x128xf32> to vector<1x8x128xf32>
    %643 = vector.broadcast %642 : vector<1x8x128xf32> to vector<8x8x128xf32>
    %644 = arith.mulf %641, %643 : vector<8x8x128xf32>
    %645 = arith.addf %640, %644 : vector<8x8x128xf32>
    %646 = vector.extract_strided_slice %620 {offsets = [1, 0, 0], sizes = [8, 8, 128], strides = [1, 1, 1]} : vector<10x8x128xf32> to vector<8x8x128xf32>
    %647 = vector.shape_cast %40 : vector<8x128xf32> to vector<1x8x128xf32>
    %648 = vector.broadcast %647 : vector<1x8x128xf32> to vector<8x8x128xf32>
    %649 = arith.mulf %646, %648 : vector<8x8x128xf32>
    %650 = arith.addf %645, %649 : vector<8x8x128xf32>
    %651 = vector.extract_strided_slice %625 {offsets = [1, 0, 0], sizes = [8, 8, 128], strides = [1, 1, 1]} : vector<10x8x128xf32> to vector<8x8x128xf32>
    %652 = vector.shape_cast %46 : vector<8x128xf32> to vector<1x8x128xf32>
    %653 = vector.broadcast %652 : vector<1x8x128xf32> to vector<8x8x128xf32>
    %654 = arith.mulf %651, %653 : vector<8x8x128xf32>
    %655 = arith.addf %650, %654 : vector<8x8x128xf32>
    %656 = vector.extract_strided_slice %623 {offsets = [2, 0, 0], sizes = [8, 8, 128], strides = [1, 1, 1]} : vector<10x8x128xf32> to vector<8x8x128xf32>
    %657 = vector.shape_cast %52 : vector<8x128xf32> to vector<1x8x128xf32>
    %658 = vector.broadcast %657 : vector<1x8x128xf32> to vector<8x8x128xf32>
    %659 = arith.mulf %656, %658 : vector<8x8x128xf32>
    %660 = arith.addf %655, %659 : vector<8x8x128xf32>
    %661 = vector.extract_strided_slice %620 {offsets = [2, 0, 0], sizes = [8, 8, 128], strides = [1, 1, 1]} : vector<10x8x128xf32> to vector<8x8x128xf32>
    %662 = vector.shape_cast %58 : vector<8x128xf32> to vector<1x8x128xf32>
    %663 = vector.broadcast %662 : vector<1x8x128xf32> to vector<8x8x128xf32>
    %664 = arith.mulf %661, %663 : vector<8x8x128xf32>
    %665 = arith.addf %660, %664 : vector<8x8x128xf32>
    %666 = vector.extract_strided_slice %625 {offsets = [2, 0, 0], sizes = [8, 8, 128], strides = [1, 1, 1]} : vector<10x8x128xf32> to vector<8x8x128xf32>
    %667 = vector.shape_cast %64 : vector<8x128xf32> to vector<1x8x128xf32>
    %668 = vector.broadcast %667 : vector<1x8x128xf32> to vector<8x8x128xf32>
    %669 = arith.mulf %666, %668 : vector<8x8x128xf32>
    %670 = arith.addf %665, %669 : vector<8x8x128xf32>
    %c0_70 = arith.constant 0 : index
    %c3_71 = arith.constant 3 : index
    %c0_72 = arith.constant 0 : index
    %c0_73 = arith.constant 0 : index
    %c0_74 = arith.constant 0 : index
    %671 = vector.load %arg3[%c0_70, %c3_71, %c0_72, %c0_73, %c0_74] : memref<1x8x8x8x128xf32, #tpu.memory_space<vmem>>, vector<1x1x8x8x128xf32>
    %672 = vector.shape_cast %671 : vector<1x1x8x8x128xf32> to vector<8x8x128xf32>
    %673 = tpu.concatenate %176, %672, %176 in 0 : vector<1x8x128xf32>, vector<8x8x128xf32>, vector<1x8x128xf32> -> vector<10x8x128xf32>
    %cst_75 = arith.constant 0.000000e+00 : f32
    %674 = vector.broadcast %cst_75 : f32 to vector<10x1x128xf32>
    %675 = vector.extract_strided_slice %673 {offsets = [0, 0, 0], sizes = [10, 7, 128], strides = [1, 1, 1]} : vector<10x8x128xf32> to vector<10x7x128xf32>
    %676 = tpu.concatenate %674, %675 in 1 : vector<10x1x128xf32>, vector<10x7x128xf32> -> vector<10x8x128xf32>
    %677 = vector.extract_strided_slice %673 {offsets = [0, 1, 0], sizes = [10, 7, 128], strides = [1, 1, 1]} : vector<10x8x128xf32> to vector<10x7x128xf32>
    %678 = tpu.concatenate %677, %674 in 1 : vector<10x7x128xf32>, vector<10x1x128xf32> -> vector<10x8x128xf32>
    %679 = vector.extract_strided_slice %676 {offsets = [0, 0, 0], sizes = [8, 8, 128], strides = [1, 1, 1]} : vector<10x8x128xf32> to vector<8x8x128xf32>
    %680 = vector.shape_cast %70 : vector<8x128xf32> to vector<1x8x128xf32>
    %681 = vector.broadcast %680 : vector<1x8x128xf32> to vector<8x8x128xf32>
    %682 = arith.mulf %679, %681 : vector<8x8x128xf32>
    %683 = arith.addf %670, %682 : vector<8x8x128xf32>
    %684 = vector.extract_strided_slice %673 {offsets = [0, 0, 0], sizes = [8, 8, 128], strides = [1, 1, 1]} : vector<10x8x128xf32> to vector<8x8x128xf32>
    %685 = vector.shape_cast %76 : vector<8x128xf32> to vector<1x8x128xf32>
    %686 = vector.broadcast %685 : vector<1x8x128xf32> to vector<8x8x128xf32>
    %687 = arith.mulf %684, %686 : vector<8x8x128xf32>
    %688 = arith.addf %683, %687 : vector<8x8x128xf32>
    %689 = vector.extract_strided_slice %678 {offsets = [0, 0, 0], sizes = [8, 8, 128], strides = [1, 1, 1]} : vector<10x8x128xf32> to vector<8x8x128xf32>
    %690 = vector.shape_cast %82 : vector<8x128xf32> to vector<1x8x128xf32>
    %691 = vector.broadcast %690 : vector<1x8x128xf32> to vector<8x8x128xf32>
    %692 = arith.mulf %689, %691 : vector<8x8x128xf32>
    %693 = arith.addf %688, %692 : vector<8x8x128xf32>
    %694 = vector.extract_strided_slice %676 {offsets = [1, 0, 0], sizes = [8, 8, 128], strides = [1, 1, 1]} : vector<10x8x128xf32> to vector<8x8x128xf32>
    %695 = vector.shape_cast %88 : vector<8x128xf32> to vector<1x8x128xf32>
    %696 = vector.broadcast %695 : vector<1x8x128xf32> to vector<8x8x128xf32>
    %697 = arith.mulf %694, %696 : vector<8x8x128xf32>
    %698 = arith.addf %693, %697 : vector<8x8x128xf32>
    %699 = vector.extract_strided_slice %673 {offsets = [1, 0, 0], sizes = [8, 8, 128], strides = [1, 1, 1]} : vector<10x8x128xf32> to vector<8x8x128xf32>
    %700 = vector.shape_cast %94 : vector<8x128xf32> to vector<1x8x128xf32>
    %701 = vector.broadcast %700 : vector<1x8x128xf32> to vector<8x8x128xf32>
    %702 = arith.mulf %699, %701 : vector<8x8x128xf32>
    %703 = arith.addf %698, %702 : vector<8x8x128xf32>
    %704 = vector.extract_strided_slice %678 {offsets = [1, 0, 0], sizes = [8, 8, 128], strides = [1, 1, 1]} : vector<10x8x128xf32> to vector<8x8x128xf32>
    %705 = vector.shape_cast %100 : vector<8x128xf32> to vector<1x8x128xf32>
    %706 = vector.broadcast %705 : vector<1x8x128xf32> to vector<8x8x128xf32>
    %707 = arith.mulf %704, %706 : vector<8x8x128xf32>
    %708 = arith.addf %703, %707 : vector<8x8x128xf32>
    %709 = vector.extract_strided_slice %676 {offsets = [2, 0, 0], sizes = [8, 8, 128], strides = [1, 1, 1]} : vector<10x8x128xf32> to vector<8x8x128xf32>
    %710 = vector.shape_cast %106 : vector<8x128xf32> to vector<1x8x128xf32>
    %711 = vector.broadcast %710 : vector<1x8x128xf32> to vector<8x8x128xf32>
    %712 = arith.mulf %709, %711 : vector<8x8x128xf32>
    %713 = arith.addf %708, %712 : vector<8x8x128xf32>
    %714 = vector.extract_strided_slice %673 {offsets = [2, 0, 0], sizes = [8, 8, 128], strides = [1, 1, 1]} : vector<10x8x128xf32> to vector<8x8x128xf32>
    %715 = vector.shape_cast %112 : vector<8x128xf32> to vector<1x8x128xf32>
    %716 = vector.broadcast %715 : vector<1x8x128xf32> to vector<8x8x128xf32>
    %717 = arith.mulf %714, %716 : vector<8x8x128xf32>
    %718 = arith.addf %713, %717 : vector<8x8x128xf32>
    %719 = vector.extract_strided_slice %678 {offsets = [2, 0, 0], sizes = [8, 8, 128], strides = [1, 1, 1]} : vector<10x8x128xf32> to vector<8x8x128xf32>
    %720 = vector.shape_cast %118 : vector<8x128xf32> to vector<1x8x128xf32>
    %721 = vector.broadcast %720 : vector<1x8x128xf32> to vector<8x8x128xf32>
    %722 = arith.mulf %719, %721 : vector<8x8x128xf32>
    %723 = arith.addf %718, %722 : vector<8x8x128xf32>
    %c0_76 = arith.constant 0 : index
    %c4 = arith.constant 4 : index
    %c0_77 = arith.constant 0 : index
    %c0_78 = arith.constant 0 : index
    %c0_79 = arith.constant 0 : index
    %724 = vector.load %arg3[%c0_76, %c4, %c0_77, %c0_78, %c0_79] : memref<1x8x8x8x128xf32, #tpu.memory_space<vmem>>, vector<1x1x8x8x128xf32>
    %725 = vector.shape_cast %724 : vector<1x1x8x8x128xf32> to vector<8x8x128xf32>
    %726 = tpu.concatenate %176, %725, %176 in 0 : vector<1x8x128xf32>, vector<8x8x128xf32>, vector<1x8x128xf32> -> vector<10x8x128xf32>
    %cst_80 = arith.constant 0.000000e+00 : f32
    %727 = vector.broadcast %cst_80 : f32 to vector<10x1x128xf32>
    %728 = vector.extract_strided_slice %726 {offsets = [0, 0, 0], sizes = [10, 7, 128], strides = [1, 1, 1]} : vector<10x8x128xf32> to vector<10x7x128xf32>
    %729 = tpu.concatenate %727, %728 in 1 : vector<10x1x128xf32>, vector<10x7x128xf32> -> vector<10x8x128xf32>
    %730 = vector.extract_strided_slice %726 {offsets = [0, 1, 0], sizes = [10, 7, 128], strides = [1, 1, 1]} : vector<10x8x128xf32> to vector<10x7x128xf32>
    %731 = tpu.concatenate %730, %727 in 1 : vector<10x7x128xf32>, vector<10x1x128xf32> -> vector<10x8x128xf32>
    %732 = vector.extract_strided_slice %729 {offsets = [0, 0, 0], sizes = [8, 8, 128], strides = [1, 1, 1]} : vector<10x8x128xf32> to vector<8x8x128xf32>
    %733 = vector.shape_cast %124 : vector<8x128xf32> to vector<1x8x128xf32>
    %734 = vector.broadcast %733 : vector<1x8x128xf32> to vector<8x8x128xf32>
    %735 = arith.mulf %732, %734 : vector<8x8x128xf32>
    %736 = arith.addf %723, %735 : vector<8x8x128xf32>
    %737 = vector.extract_strided_slice %726 {offsets = [0, 0, 0], sizes = [8, 8, 128], strides = [1, 1, 1]} : vector<10x8x128xf32> to vector<8x8x128xf32>
    %738 = vector.shape_cast %130 : vector<8x128xf32> to vector<1x8x128xf32>
    %739 = vector.broadcast %738 : vector<1x8x128xf32> to vector<8x8x128xf32>
    %740 = arith.mulf %737, %739 : vector<8x8x128xf32>
    %741 = arith.addf %736, %740 : vector<8x8x128xf32>
    %742 = vector.extract_strided_slice %731 {offsets = [0, 0, 0], sizes = [8, 8, 128], strides = [1, 1, 1]} : vector<10x8x128xf32> to vector<8x8x128xf32>
    %743 = vector.shape_cast %136 : vector<8x128xf32> to vector<1x8x128xf32>
    %744 = vector.broadcast %743 : vector<1x8x128xf32> to vector<8x8x128xf32>
    %745 = arith.mulf %742, %744 : vector<8x8x128xf32>
    %746 = arith.addf %741, %745 : vector<8x8x128xf32>
    %747 = vector.extract_strided_slice %729 {offsets = [1, 0, 0], sizes = [8, 8, 128], strides = [1, 1, 1]} : vector<10x8x128xf32> to vector<8x8x128xf32>
    %748 = vector.shape_cast %142 : vector<8x128xf32> to vector<1x8x128xf32>
    %749 = vector.broadcast %748 : vector<1x8x128xf32> to vector<8x8x128xf32>
    %750 = arith.mulf %747, %749 : vector<8x8x128xf32>
    %751 = arith.addf %746, %750 : vector<8x8x128xf32>
    %752 = vector.extract_strided_slice %726 {offsets = [1, 0, 0], sizes = [8, 8, 128], strides = [1, 1, 1]} : vector<10x8x128xf32> to vector<8x8x128xf32>
    %753 = vector.shape_cast %148 : vector<8x128xf32> to vector<1x8x128xf32>
    %754 = vector.broadcast %753 : vector<1x8x128xf32> to vector<8x8x128xf32>
    %755 = arith.mulf %752, %754 : vector<8x8x128xf32>
    %756 = arith.addf %751, %755 : vector<8x8x128xf32>
    %757 = vector.extract_strided_slice %731 {offsets = [1, 0, 0], sizes = [8, 8, 128], strides = [1, 1, 1]} : vector<10x8x128xf32> to vector<8x8x128xf32>
    %758 = vector.shape_cast %154 : vector<8x128xf32> to vector<1x8x128xf32>
    %759 = vector.broadcast %758 : vector<1x8x128xf32> to vector<8x8x128xf32>
    %760 = arith.mulf %757, %759 : vector<8x8x128xf32>
    %761 = arith.addf %756, %760 : vector<8x8x128xf32>
    %762 = vector.extract_strided_slice %729 {offsets = [2, 0, 0], sizes = [8, 8, 128], strides = [1, 1, 1]} : vector<10x8x128xf32> to vector<8x8x128xf32>
    %763 = vector.shape_cast %160 : vector<8x128xf32> to vector<1x8x128xf32>
    %764 = vector.broadcast %763 : vector<1x8x128xf32> to vector<8x8x128xf32>
    %765 = arith.mulf %762, %764 : vector<8x8x128xf32>
    %766 = arith.addf %761, %765 : vector<8x8x128xf32>
    %767 = vector.extract_strided_slice %726 {offsets = [2, 0, 0], sizes = [8, 8, 128], strides = [1, 1, 1]} : vector<10x8x128xf32> to vector<8x8x128xf32>
    %768 = vector.shape_cast %166 : vector<8x128xf32> to vector<1x8x128xf32>
    %769 = vector.broadcast %768 : vector<1x8x128xf32> to vector<8x8x128xf32>
    %770 = arith.mulf %767, %769 : vector<8x8x128xf32>
    %771 = arith.addf %766, %770 : vector<8x8x128xf32>
    %772 = vector.extract_strided_slice %731 {offsets = [2, 0, 0], sizes = [8, 8, 128], strides = [1, 1, 1]} : vector<10x8x128xf32> to vector<8x8x128xf32>
    %773 = vector.shape_cast %172 : vector<8x128xf32> to vector<1x8x128xf32>
    %774 = vector.broadcast %773 : vector<1x8x128xf32> to vector<8x8x128xf32>
    %775 = arith.mulf %772, %774 : vector<8x8x128xf32>
    %776 = arith.addf %771, %775 : vector<8x8x128xf32>
    %c0_81 = arith.constant 0 : index
    %c3_82 = arith.constant 3 : index
    %c0_83 = arith.constant 0 : index
    %c0_84 = arith.constant 0 : index
    %c0_85 = arith.constant 0 : index
    %777 = vector.load %arg6[%c0_81, %c3_82, %c0_83, %c0_84, %c0_85] : memref<1x8x8x8x128xf32, #tpu.memory_space<vmem>>, vector<1x1x8x8x128xf32>
    %778 = vector.shape_cast %777 : vector<1x1x8x8x128xf32> to vector<8x8x128xf32>
    %779 = vector.shape_cast %776 : vector<8x8x128xf32> to vector<1x1x8x8x128xf32>
    tpu.vector_store %arg6[%c0_81, %c3_82, %c0_83, %c0_84, %c0_85], %779 {strides = array<i32>} : memref<1x8x8x8x128xf32, #tpu.memory_space<vmem>>, vector<1x1x8x8x128xf32>,
    %780 = vector.shape_cast %175 : vector<8x128xf32> to vector<1x8x128xf32>
    %781 = vector.broadcast %780 : vector<1x8x128xf32> to vector<8x8x128xf32>
    %c0_86 = arith.constant 0 : index
    %c3_87 = arith.constant 3 : index
    %c0_88 = arith.constant 0 : index
    %c0_89 = arith.constant 0 : index
    %c0_90 = arith.constant 0 : index
    %782 = vector.load %arg3[%c0_86, %c3_87, %c0_88, %c0_89, %c0_90] : memref<1x8x8x8x128xf32, #tpu.memory_space<vmem>>, vector<1x1x8x8x128xf32>
    %783 = vector.shape_cast %782 : vector<1x1x8x8x128xf32> to vector<8x8x128xf32>
    %784 = tpu.concatenate %176, %783, %176 in 0 : vector<1x8x128xf32>, vector<8x8x128xf32>, vector<1x8x128xf32> -> vector<10x8x128xf32>
    %cst_91 = arith.constant 0.000000e+00 : f32
    %785 = vector.broadcast %cst_91 : f32 to vector<10x1x128xf32>
    %786 = vector.extract_strided_slice %784 {offsets = [0, 0, 0], sizes = [10, 7, 128], strides = [1, 1, 1]} : vector<10x8x128xf32> to vector<10x7x128xf32>
    %787 = tpu.concatenate %785, %786 in 1 : vector<10x1x128xf32>, vector<10x7x128xf32> -> vector<10x8x128xf32>
    %788 = vector.extract_strided_slice %784 {offsets = [0, 1, 0], sizes = [10, 7, 128], strides = [1, 1, 1]} : vector<10x8x128xf32> to vector<10x7x128xf32>
    %789 = tpu.concatenate %788, %785 in 1 : vector<10x7x128xf32>, vector<10x1x128xf32> -> vector<10x8x128xf32>
    %790 = vector.extract_strided_slice %787 {offsets = [0, 0, 0], sizes = [8, 8, 128], strides = [1, 1, 1]} : vector<10x8x128xf32> to vector<8x8x128xf32>
    %791 = vector.shape_cast %16 : vector<8x128xf32> to vector<1x8x128xf32>
    %792 = vector.broadcast %791 : vector<1x8x128xf32> to vector<8x8x128xf32>
    %793 = arith.mulf %790, %792 : vector<8x8x128xf32>
    %794 = arith.addf %781, %793 : vector<8x8x128xf32>
    %795 = vector.extract_strided_slice %784 {offsets = [0, 0, 0], sizes = [8, 8, 128], strides = [1, 1, 1]} : vector<10x8x128xf32> to vector<8x8x128xf32>
    %796 = vector.shape_cast %22 : vector<8x128xf32> to vector<1x8x128xf32>
    %797 = vector.broadcast %796 : vector<1x8x128xf32> to vector<8x8x128xf32>
    %798 = arith.mulf %795, %797 : vector<8x8x128xf32>
    %799 = arith.addf %794, %798 : vector<8x8x128xf32>
    %800 = vector.extract_strided_slice %789 {offsets = [0, 0, 0], sizes = [8, 8, 128], strides = [1, 1, 1]} : vector<10x8x128xf32> to vector<8x8x128xf32>
    %801 = vector.shape_cast %28 : vector<8x128xf32> to vector<1x8x128xf32>
    %802 = vector.broadcast %801 : vector<1x8x128xf32> to vector<8x8x128xf32>
    %803 = arith.mulf %800, %802 : vector<8x8x128xf32>
    %804 = arith.addf %799, %803 : vector<8x8x128xf32>
    %805 = vector.extract_strided_slice %787 {offsets = [1, 0, 0], sizes = [8, 8, 128], strides = [1, 1, 1]} : vector<10x8x128xf32> to vector<8x8x128xf32>
    %806 = vector.shape_cast %34 : vector<8x128xf32> to vector<1x8x128xf32>
    %807 = vector.broadcast %806 : vector<1x8x128xf32> to vector<8x8x128xf32>
    %808 = arith.mulf %805, %807 : vector<8x8x128xf32>
    %809 = arith.addf %804, %808 : vector<8x8x128xf32>
    %810 = vector.extract_strided_slice %784 {offsets = [1, 0, 0], sizes = [8, 8, 128], strides = [1, 1, 1]} : vector<10x8x128xf32> to vector<8x8x128xf32>
    %811 = vector.shape_cast %40 : vector<8x128xf32> to vector<1x8x128xf32>
    %812 = vector.broadcast %811 : vector<1x8x128xf32> to vector<8x8x128xf32>
    %813 = arith.mulf %810, %812 : vector<8x8x128xf32>
    %814 = arith.addf %809, %813 : vector<8x8x128xf32>
    %815 = vector.extract_strided_slice %789 {offsets = [1, 0, 0], sizes = [8, 8, 128], strides = [1, 1, 1]} : vector<10x8x128xf32> to vector<8x8x128xf32>
    %816 = vector.shape_cast %46 : vector<8x128xf32> to vector<1x8x128xf32>
    %817 = vector.broadcast %816 : vector<1x8x128xf32> to vector<8x8x128xf32>
    %818 = arith.mulf %815, %817 : vector<8x8x128xf32>
    %819 = arith.addf %814, %818 : vector<8x8x128xf32>
    %820 = vector.extract_strided_slice %787 {offsets = [2, 0, 0], sizes = [8, 8, 128], strides = [1, 1, 1]} : vector<10x8x128xf32> to vector<8x8x128xf32>
    %821 = vector.shape_cast %52 : vector<8x128xf32> to vector<1x8x128xf32>
    %822 = vector.broadcast %821 : vector<1x8x128xf32> to vector<8x8x128xf32>
    %823 = arith.mulf %820, %822 : vector<8x8x128xf32>
    %824 = arith.addf %819, %823 : vector<8x8x128xf32>
    %825 = vector.extract_strided_slice %784 {offsets = [2, 0, 0], sizes = [8, 8, 128], strides = [1, 1, 1]} : vector<10x8x128xf32> to vector<8x8x128xf32>
    %826 = vector.shape_cast %58 : vector<8x128xf32> to vector<1x8x128xf32>
    %827 = vector.broadcast %826 : vector<1x8x128xf32> to vector<8x8x128xf32>
    %828 = arith.mulf %825, %827 : vector<8x8x128xf32>
    %829 = arith.addf %824, %828 : vector<8x8x128xf32>
    %830 = vector.extract_strided_slice %789 {offsets = [2, 0, 0], sizes = [8, 8, 128], strides = [1, 1, 1]} : vector<10x8x128xf32> to vector<8x8x128xf32>
    %831 = vector.shape_cast %64 : vector<8x128xf32> to vector<1x8x128xf32>
    %832 = vector.broadcast %831 : vector<1x8x128xf32> to vector<8x8x128xf32>
    %833 = arith.mulf %830, %832 : vector<8x8x128xf32>
    %834 = arith.addf %829, %833 : vector<8x8x128xf32>
    %c0_92 = arith.constant 0 : index
    %c4_93 = arith.constant 4 : index
    %c0_94 = arith.constant 0 : index
    %c0_95 = arith.constant 0 : index
    %c0_96 = arith.constant 0 : index
    %835 = vector.load %arg3[%c0_92, %c4_93, %c0_94, %c0_95, %c0_96] : memref<1x8x8x8x128xf32, #tpu.memory_space<vmem>>, vector<1x1x8x8x128xf32>
    %836 = vector.shape_cast %835 : vector<1x1x8x8x128xf32> to vector<8x8x128xf32>
    %837 = tpu.concatenate %176, %836, %176 in 0 : vector<1x8x128xf32>, vector<8x8x128xf32>, vector<1x8x128xf32> -> vector<10x8x128xf32>
    %cst_97 = arith.constant 0.000000e+00 : f32
    %838 = vector.broadcast %cst_97 : f32 to vector<10x1x128xf32>
    %839 = vector.extract_strided_slice %837 {offsets = [0, 0, 0], sizes = [10, 7, 128], strides = [1, 1, 1]} : vector<10x8x128xf32> to vector<10x7x128xf32>
    %840 = tpu.concatenate %838, %839 in 1 : vector<10x1x128xf32>, vector<10x7x128xf32> -> vector<10x8x128xf32>
    %841 = vector.extract_strided_slice %837 {offsets = [0, 1, 0], sizes = [10, 7, 128], strides = [1, 1, 1]} : vector<10x8x128xf32> to vector<10x7x128xf32>
    %842 = tpu.concatenate %841, %838 in 1 : vector<10x7x128xf32>, vector<10x1x128xf32> -> vector<10x8x128xf32>
    %843 = vector.extract_strided_slice %840 {offsets = [0, 0, 0], sizes = [8, 8, 128], strides = [1, 1, 1]} : vector<10x8x128xf32> to vector<8x8x128xf32>
    %844 = vector.shape_cast %70 : vector<8x128xf32> to vector<1x8x128xf32>
    %845 = vector.broadcast %844 : vector<1x8x128xf32> to vector<8x8x128xf32>
    %846 = arith.mulf %843, %845 : vector<8x8x128xf32>
    %847 = arith.addf %834, %846 : vector<8x8x128xf32>
    %848 = vector.extract_strided_slice %837 {offsets = [0, 0, 0], sizes = [8, 8, 128], strides = [1, 1, 1]} : vector<10x8x128xf32> to vector<8x8x128xf32>
    %849 = vector.shape_cast %76 : vector<8x128xf32> to vector<1x8x128xf32>
    %850 = vector.broadcast %849 : vector<1x8x128xf32> to vector<8x8x128xf32>
    %851 = arith.mulf %848, %850 : vector<8x8x128xf32>
    %852 = arith.addf %847, %851 : vector<8x8x128xf32>
    %853 = vector.extract_strided_slice %842 {offsets = [0, 0, 0], sizes = [8, 8, 128], strides = [1, 1, 1]} : vector<10x8x128xf32> to vector<8x8x128xf32>
    %854 = vector.shape_cast %82 : vector<8x128xf32> to vector<1x8x128xf32>
    %855 = vector.broadcast %854 : vector<1x8x128xf32> to vector<8x8x128xf32>
    %856 = arith.mulf %853, %855 : vector<8x8x128xf32>
    %857 = arith.addf %852, %856 : vector<8x8x128xf32>
    %858 = vector.extract_strided_slice %840 {offsets = [1, 0, 0], sizes = [8, 8, 128], strides = [1, 1, 1]} : vector<10x8x128xf32> to vector<8x8x128xf32>
    %859 = vector.shape_cast %88 : vector<8x128xf32> to vector<1x8x128xf32>
    %860 = vector.broadcast %859 : vector<1x8x128xf32> to vector<8x8x128xf32>
    %861 = arith.mulf %858, %860 : vector<8x8x128xf32>
    %862 = arith.addf %857, %861 : vector<8x8x128xf32>
    %863 = vector.extract_strided_slice %837 {offsets = [1, 0, 0], sizes = [8, 8, 128], strides = [1, 1, 1]} : vector<10x8x128xf32> to vector<8x8x128xf32>
    %864 = vector.shape_cast %94 : vector<8x128xf32> to vector<1x8x128xf32>
    %865 = vector.broadcast %864 : vector<1x8x128xf32> to vector<8x8x128xf32>
    %866 = arith.mulf %863, %865 : vector<8x8x128xf32>
    %867 = arith.addf %862, %866 : vector<8x8x128xf32>
    %868 = vector.extract_strided_slice %842 {offsets = [1, 0, 0], sizes = [8, 8, 128], strides = [1, 1, 1]} : vector<10x8x128xf32> to vector<8x8x128xf32>
    %869 = vector.shape_cast %100 : vector<8x128xf32> to vector<1x8x128xf32>
    %870 = vector.broadcast %869 : vector<1x8x128xf32> to vector<8x8x128xf32>
    %871 = arith.mulf %868, %870 : vector<8x8x128xf32>
    %872 = arith.addf %867, %871 : vector<8x8x128xf32>
    %873 = vector.extract_strided_slice %840 {offsets = [2, 0, 0], sizes = [8, 8, 128], strides = [1, 1, 1]} : vector<10x8x128xf32> to vector<8x8x128xf32>
    %874 = vector.shape_cast %106 : vector<8x128xf32> to vector<1x8x128xf32>
    %875 = vector.broadcast %874 : vector<1x8x128xf32> to vector<8x8x128xf32>
    %876 = arith.mulf %873, %875 : vector<8x8x128xf32>
    %877 = arith.addf %872, %876 : vector<8x8x128xf32>
    %878 = vector.extract_strided_slice %837 {offsets = [2, 0, 0], sizes = [8, 8, 128], strides = [1, 1, 1]} : vector<10x8x128xf32> to vector<8x8x128xf32>
    %879 = vector.shape_cast %112 : vector<8x128xf32> to vector<1x8x128xf32>
    %880 = vector.broadcast %879 : vector<1x8x128xf32> to vector<8x8x128xf32>
    %881 = arith.mulf %878, %880 : vector<8x8x128xf32>
    %882 = arith.addf %877, %881 : vector<8x8x128xf32>
    %883 = vector.extract_strided_slice %842 {offsets = [2, 0, 0], sizes = [8, 8, 128], strides = [1, 1, 1]} : vector<10x8x128xf32> to vector<8x8x128xf32>
    %884 = vector.shape_cast %118 : vector<8x128xf32> to vector<1x8x128xf32>
    %885 = vector.broadcast %884 : vector<1x8x128xf32> to vector<8x8x128xf32>
    %886 = arith.mulf %883, %885 : vector<8x8x128xf32>
    %887 = arith.addf %882, %886 : vector<8x8x128xf32>
    %c0_98 = arith.constant 0 : index
    %c5 = arith.constant 5 : index
    %c0_99 = arith.constant 0 : index
    %c0_100 = arith.constant 0 : index
    %c0_101 = arith.constant 0 : index
    %888 = vector.load %arg3[%c0_98, %c5, %c0_99, %c0_100, %c0_101] : memref<1x8x8x8x128xf32, #tpu.memory_space<vmem>>, vector<1x1x8x8x128xf32>
    %889 = vector.shape_cast %888 : vector<1x1x8x8x128xf32> to vector<8x8x128xf32>
    %890 = tpu.concatenate %176, %889, %176 in 0 : vector<1x8x128xf32>, vector<8x8x128xf32>, vector<1x8x128xf32> -> vector<10x8x128xf32>
    %cst_102 = arith.constant 0.000000e+00 : f32
    %891 = vector.broadcast %cst_102 : f32 to vector<10x1x128xf32>
    %892 = vector.extract_strided_slice %890 {offsets = [0, 0, 0], sizes = [10, 7, 128], strides = [1, 1, 1]} : vector<10x8x128xf32> to vector<10x7x128xf32>
    %893 = tpu.concatenate %891, %892 in 1 : vector<10x1x128xf32>, vector<10x7x128xf32> -> vector<10x8x128xf32>
    %894 = vector.extract_strided_slice %890 {offsets = [0, 1, 0], sizes = [10, 7, 128], strides = [1, 1, 1]} : vector<10x8x128xf32> to vector<10x7x128xf32>
    %895 = tpu.concatenate %894, %891 in 1 : vector<10x7x128xf32>, vector<10x1x128xf32> -> vector<10x8x128xf32>
    %896 = vector.extract_strided_slice %893 {offsets = [0, 0, 0], sizes = [8, 8, 128], strides = [1, 1, 1]} : vector<10x8x128xf32> to vector<8x8x128xf32>
    %897 = vector.shape_cast %124 : vector<8x128xf32> to vector<1x8x128xf32>
    %898 = vector.broadcast %897 : vector<1x8x128xf32> to vector<8x8x128xf32>
    %899 = arith.mulf %896, %898 : vector<8x8x128xf32>
    %900 = arith.addf %887, %899 : vector<8x8x128xf32>
    %901 = vector.extract_strided_slice %890 {offsets = [0, 0, 0], sizes = [8, 8, 128], strides = [1, 1, 1]} : vector<10x8x128xf32> to vector<8x8x128xf32>
    %902 = vector.shape_cast %130 : vector<8x128xf32> to vector<1x8x128xf32>
    %903 = vector.broadcast %902 : vector<1x8x128xf32> to vector<8x8x128xf32>
    %904 = arith.mulf %901, %903 : vector<8x8x128xf32>
    %905 = arith.addf %900, %904 : vector<8x8x128xf32>
    %906 = vector.extract_strided_slice %895 {offsets = [0, 0, 0], sizes = [8, 8, 128], strides = [1, 1, 1]} : vector<10x8x128xf32> to vector<8x8x128xf32>
    %907 = vector.shape_cast %136 : vector<8x128xf32> to vector<1x8x128xf32>
    %908 = vector.broadcast %907 : vector<1x8x128xf32> to vector<8x8x128xf32>
    %909 = arith.mulf %906, %908 : vector<8x8x128xf32>
    %910 = arith.addf %905, %909 : vector<8x8x128xf32>
    %911 = vector.extract_strided_slice %893 {offsets = [1, 0, 0], sizes = [8, 8, 128], strides = [1, 1, 1]} : vector<10x8x128xf32> to vector<8x8x128xf32>
    %912 = vector.shape_cast %142 : vector<8x128xf32> to vector<1x8x128xf32>
    %913 = vector.broadcast %912 : vector<1x8x128xf32> to vector<8x8x128xf32>
    %914 = arith.mulf %911, %913 : vector<8x8x128xf32>
    %915 = arith.addf %910, %914 : vector<8x8x128xf32>
    %916 = vector.extract_strided_slice %890 {offsets = [1, 0, 0], sizes = [8, 8, 128], strides = [1, 1, 1]} : vector<10x8x128xf32> to vector<8x8x128xf32>
    %917 = vector.shape_cast %148 : vector<8x128xf32> to vector<1x8x128xf32>
    %918 = vector.broadcast %917 : vector<1x8x128xf32> to vector<8x8x128xf32>
    %919 = arith.mulf %916, %918 : vector<8x8x128xf32>
    %920 = arith.addf %915, %919 : vector<8x8x128xf32>
    %921 = vector.extract_strided_slice %895 {offsets = [1, 0, 0], sizes = [8, 8, 128], strides = [1, 1, 1]} : vector<10x8x128xf32> to vector<8x8x128xf32>
    %922 = vector.shape_cast %154 : vector<8x128xf32> to vector<1x8x128xf32>
    %923 = vector.broadcast %922 : vector<1x8x128xf32> to vector<8x8x128xf32>
    %924 = arith.mulf %921, %923 : vector<8x8x128xf32>
    %925 = arith.addf %920, %924 : vector<8x8x128xf32>
    %926 = vector.extract_strided_slice %893 {offsets = [2, 0, 0], sizes = [8, 8, 128], strides = [1, 1, 1]} : vector<10x8x128xf32> to vector<8x8x128xf32>
    %927 = vector.shape_cast %160 : vector<8x128xf32> to vector<1x8x128xf32>
    %928 = vector.broadcast %927 : vector<1x8x128xf32> to vector<8x8x128xf32>
    %929 = arith.mulf %926, %928 : vector<8x8x128xf32>
    %930 = arith.addf %925, %929 : vector<8x8x128xf32>
    %931 = vector.extract_strided_slice %890 {offsets = [2, 0, 0], sizes = [8, 8, 128], strides = [1, 1, 1]} : vector<10x8x128xf32> to vector<8x8x128xf32>
    %932 = vector.shape_cast %166 : vector<8x128xf32> to vector<1x8x128xf32>
    %933 = vector.broadcast %932 : vector<1x8x128xf32> to vector<8x8x128xf32>
    %934 = arith.mulf %931, %933 : vector<8x8x128xf32>
    %935 = arith.addf %930, %934 : vector<8x8x128xf32>
    %936 = vector.extract_strided_slice %895 {offsets = [2, 0, 0], sizes = [8, 8, 128], strides = [1, 1, 1]} : vector<10x8x128xf32> to vector<8x8x128xf32>
    %937 = vector.shape_cast %172 : vector<8x128xf32> to vector<1x8x128xf32>
    %938 = vector.broadcast %937 : vector<1x8x128xf32> to vector<8x8x128xf32>
    %939 = arith.mulf %936, %938 : vector<8x8x128xf32>
    %940 = arith.addf %935, %939 : vector<8x8x128xf32>
    %c0_103 = arith.constant 0 : index
    %c4_104 = arith.constant 4 : index
    %c0_105 = arith.constant 0 : index
    %c0_106 = arith.constant 0 : index
    %c0_107 = arith.constant 0 : index
    %941 = vector.load %arg6[%c0_103, %c4_104, %c0_105, %c0_106, %c0_107] : memref<1x8x8x8x128xf32, #tpu.memory_space<vmem>>, vector<1x1x8x8x128xf32>
    %942 = vector.shape_cast %941 : vector<1x1x8x8x128xf32> to vector<8x8x128xf32>
    %943 = vector.shape_cast %940 : vector<8x8x128xf32> to vector<1x1x8x8x128xf32>
    tpu.vector_store %arg6[%c0_103, %c4_104, %c0_105, %c0_106, %c0_107], %943 {strides = array<i32>} : memref<1x8x8x8x128xf32, #tpu.memory_space<vmem>>, vector<1x1x8x8x128xf32>,
    %944 = vector.shape_cast %175 : vector<8x128xf32> to vector<1x8x128xf32>
    %945 = vector.broadcast %944 : vector<1x8x128xf32> to vector<8x8x128xf32>
    %c0_108 = arith.constant 0 : index
    %c4_109 = arith.constant 4 : index
    %c0_110 = arith.constant 0 : index
    %c0_111 = arith.constant 0 : index
    %c0_112 = arith.constant 0 : index
    %946 = vector.load %arg3[%c0_108, %c4_109, %c0_110, %c0_111, %c0_112] : memref<1x8x8x8x128xf32, #tpu.memory_space<vmem>>, vector<1x1x8x8x128xf32>
    %947 = vector.shape_cast %946 : vector<1x1x8x8x128xf32> to vector<8x8x128xf32>
    %948 = tpu.concatenate %176, %947, %176 in 0 : vector<1x8x128xf32>, vector<8x8x128xf32>, vector<1x8x128xf32> -> vector<10x8x128xf32>
    %cst_113 = arith.constant 0.000000e+00 : f32
    %949 = vector.broadcast %cst_113 : f32 to vector<10x1x128xf32>
    %950 = vector.extract_strided_slice %948 {offsets = [0, 0, 0], sizes = [10, 7, 128], strides = [1, 1, 1]} : vector<10x8x128xf32> to vector<10x7x128xf32>
    %951 = tpu.concatenate %949, %950 in 1 : vector<10x1x128xf32>, vector<10x7x128xf32> -> vector<10x8x128xf32>
    %952 = vector.extract_strided_slice %948 {offsets = [0, 1, 0], sizes = [10, 7, 128], strides = [1, 1, 1]} : vector<10x8x128xf32> to vector<10x7x128xf32>
    %953 = tpu.concatenate %952, %949 in 1 : vector<10x7x128xf32>, vector<10x1x128xf32> -> vector<10x8x128xf32>
    %954 = vector.extract_strided_slice %951 {offsets = [0, 0, 0], sizes = [8, 8, 128], strides = [1, 1, 1]} : vector<10x8x128xf32> to vector<8x8x128xf32>
    %955 = vector.shape_cast %16 : vector<8x128xf32> to vector<1x8x128xf32>
    %956 = vector.broadcast %955 : vector<1x8x128xf32> to vector<8x8x128xf32>
    %957 = arith.mulf %954, %956 : vector<8x8x128xf32>
    %958 = arith.addf %945, %957 : vector<8x8x128xf32>
    %959 = vector.extract_strided_slice %948 {offsets = [0, 0, 0], sizes = [8, 8, 128], strides = [1, 1, 1]} : vector<10x8x128xf32> to vector<8x8x128xf32>
    %960 = vector.shape_cast %22 : vector<8x128xf32> to vector<1x8x128xf32>
    %961 = vector.broadcast %960 : vector<1x8x128xf32> to vector<8x8x128xf32>
    %962 = arith.mulf %959, %961 : vector<8x8x128xf32>
    %963 = arith.addf %958, %962 : vector<8x8x128xf32>
    %964 = vector.extract_strided_slice %953 {offsets = [0, 0, 0], sizes = [8, 8, 128], strides = [1, 1, 1]} : vector<10x8x128xf32> to vector<8x8x128xf32>
    %965 = vector.shape_cast %28 : vector<8x128xf32> to vector<1x8x128xf32>
    %966 = vector.broadcast %965 : vector<1x8x128xf32> to vector<8x8x128xf32>
    %967 = arith.mulf %964, %966 : vector<8x8x128xf32>
    %968 = arith.addf %963, %967 : vector<8x8x128xf32>
    %969 = vector.extract_strided_slice %951 {offsets = [1, 0, 0], sizes = [8, 8, 128], strides = [1, 1, 1]} : vector<10x8x128xf32> to vector<8x8x128xf32>
    %970 = vector.shape_cast %34 : vector<8x128xf32> to vector<1x8x128xf32>
    %971 = vector.broadcast %970 : vector<1x8x128xf32> to vector<8x8x128xf32>
    %972 = arith.mulf %969, %971 : vector<8x8x128xf32>
    %973 = arith.addf %968, %972 : vector<8x8x128xf32>
    %974 = vector.extract_strided_slice %948 {offsets = [1, 0, 0], sizes = [8, 8, 128], strides = [1, 1, 1]} : vector<10x8x128xf32> to vector<8x8x128xf32>
    %975 = vector.shape_cast %40 : vector<8x128xf32> to vector<1x8x128xf32>
    %976 = vector.broadcast %975 : vector<1x8x128xf32> to vector<8x8x128xf32>
    %977 = arith.mulf %974, %976 : vector<8x8x128xf32>
    %978 = arith.addf %973, %977 : vector<8x8x128xf32>
    %979 = vector.extract_strided_slice %953 {offsets = [1, 0, 0], sizes = [8, 8, 128], strides = [1, 1, 1]} : vector<10x8x128xf32> to vector<8x8x128xf32>
    %980 = vector.shape_cast %46 : vector<8x128xf32> to vector<1x8x128xf32>
    %981 = vector.broadcast %980 : vector<1x8x128xf32> to vector<8x8x128xf32>
    %982 = arith.mulf %979, %981 : vector<8x8x128xf32>
    %983 = arith.addf %978, %982 : vector<8x8x128xf32>
    %984 = vector.extract_strided_slice %951 {offsets = [2, 0, 0], sizes = [8, 8, 128], strides = [1, 1, 1]} : vector<10x8x128xf32> to vector<8x8x128xf32>
    %985 = vector.shape_cast %52 : vector<8x128xf32> to vector<1x8x128xf32>
    %986 = vector.broadcast %985 : vector<1x8x128xf32> to vector<8x8x128xf32>
    %987 = arith.mulf %984, %986 : vector<8x8x128xf32>
    %988 = arith.addf %983, %987 : vector<8x8x128xf32>
    %989 = vector.extract_strided_slice %948 {offsets = [2, 0, 0], sizes = [8, 8, 128], strides = [1, 1, 1]} : vector<10x8x128xf32> to vector<8x8x128xf32>
    %990 = vector.shape_cast %58 : vector<8x128xf32> to vector<1x8x128xf32>
    %991 = vector.broadcast %990 : vector<1x8x128xf32> to vector<8x8x128xf32>
    %992 = arith.mulf %989, %991 : vector<8x8x128xf32>
    %993 = arith.addf %988, %992 : vector<8x8x128xf32>
    %994 = vector.extract_strided_slice %953 {offsets = [2, 0, 0], sizes = [8, 8, 128], strides = [1, 1, 1]} : vector<10x8x128xf32> to vector<8x8x128xf32>
    %995 = vector.shape_cast %64 : vector<8x128xf32> to vector<1x8x128xf32>
    %996 = vector.broadcast %995 : vector<1x8x128xf32> to vector<8x8x128xf32>
    %997 = arith.mulf %994, %996 : vector<8x8x128xf32>
    %998 = arith.addf %993, %997 : vector<8x8x128xf32>
    %c0_114 = arith.constant 0 : index
    %c5_115 = arith.constant 5 : index
    %c0_116 = arith.constant 0 : index
    %c0_117 = arith.constant 0 : index
    %c0_118 = arith.constant 0 : index
    %999 = vector.load %arg3[%c0_114, %c5_115, %c0_116, %c0_117, %c0_118] : memref<1x8x8x8x128xf32, #tpu.memory_space<vmem>>, vector<1x1x8x8x128xf32>
    %1000 = vector.shape_cast %999 : vector<1x1x8x8x128xf32> to vector<8x8x128xf32>
    %1001 = tpu.concatenate %176, %1000, %176 in 0 : vector<1x8x128xf32>, vector<8x8x128xf32>, vector<1x8x128xf32> -> vector<10x8x128xf32>
    %cst_119 = arith.constant 0.000000e+00 : f32
    %1002 = vector.broadcast %cst_119 : f32 to vector<10x1x128xf32>
    %1003 = vector.extract_strided_slice %1001 {offsets = [0, 0, 0], sizes = [10, 7, 128], strides = [1, 1, 1]} : vector<10x8x128xf32> to vector<10x7x128xf32>
    %1004 = tpu.concatenate %1002, %1003 in 1 : vector<10x1x128xf32>, vector<10x7x128xf32> -> vector<10x8x128xf32>
    %1005 = vector.extract_strided_slice %1001 {offsets = [0, 1, 0], sizes = [10, 7, 128], strides = [1, 1, 1]} : vector<10x8x128xf32> to vector<10x7x128xf32>
    %1006 = tpu.concatenate %1005, %1002 in 1 : vector<10x7x128xf32>, vector<10x1x128xf32> -> vector<10x8x128xf32>
    %1007 = vector.extract_strided_slice %1004 {offsets = [0, 0, 0], sizes = [8, 8, 128], strides = [1, 1, 1]} : vector<10x8x128xf32> to vector<8x8x128xf32>
    %1008 = vector.shape_cast %70 : vector<8x128xf32> to vector<1x8x128xf32>
    %1009 = vector.broadcast %1008 : vector<1x8x128xf32> to vector<8x8x128xf32>
    %1010 = arith.mulf %1007, %1009 : vector<8x8x128xf32>
    %1011 = arith.addf %998, %1010 : vector<8x8x128xf32>
    %1012 = vector.extract_strided_slice %1001 {offsets = [0, 0, 0], sizes = [8, 8, 128], strides = [1, 1, 1]} : vector<10x8x128xf32> to vector<8x8x128xf32>
    %1013 = vector.shape_cast %76 : vector<8x128xf32> to vector<1x8x128xf32>
    %1014 = vector.broadcast %1013 : vector<1x8x128xf32> to vector<8x8x128xf32>
    %1015 = arith.mulf %1012, %1014 : vector<8x8x128xf32>
    %1016 = arith.addf %1011, %1015 : vector<8x8x128xf32>
    %1017 = vector.extract_strided_slice %1006 {offsets = [0, 0, 0], sizes = [8, 8, 128], strides = [1, 1, 1]} : vector<10x8x128xf32> to vector<8x8x128xf32>
    %1018 = vector.shape_cast %82 : vector<8x128xf32> to vector<1x8x128xf32>
    %1019 = vector.broadcast %1018 : vector<1x8x128xf32> to vector<8x8x128xf32>
    %1020 = arith.mulf %1017, %1019 : vector<8x8x128xf32>
    %1021 = arith.addf %1016, %1020 : vector<8x8x128xf32>
    %1022 = vector.extract_strided_slice %1004 {offsets = [1, 0, 0], sizes = [8, 8, 128], strides = [1, 1, 1]} : vector<10x8x128xf32> to vector<8x8x128xf32>
    %1023 = vector.shape_cast %88 : vector<8x128xf32> to vector<1x8x128xf32>
    %1024 = vector.broadcast %1023 : vector<1x8x128xf32> to vector<8x8x128xf32>
    %1025 = arith.mulf %1022, %1024 : vector<8x8x128xf32>
    %1026 = arith.addf %1021, %1025 : vector<8x8x128xf32>
    %1027 = vector.extract_strided_slice %1001 {offsets = [1, 0, 0], sizes = [8, 8, 128], strides = [1, 1, 1]} : vector<10x8x128xf32> to vector<8x8x128xf32>
    %1028 = vector.shape_cast %94 : vector<8x128xf32> to vector<1x8x128xf32>
    %1029 = vector.broadcast %1028 : vector<1x8x128xf32> to vector<8x8x128xf32>
    %1030 = arith.mulf %1027, %1029 : vector<8x8x128xf32>
    %1031 = arith.addf %1026, %1030 : vector<8x8x128xf32>
    %1032 = vector.extract_strided_slice %1006 {offsets = [1, 0, 0], sizes = [8, 8, 128], strides = [1, 1, 1]} : vector<10x8x128xf32> to vector<8x8x128xf32>
    %1033 = vector.shape_cast %100 : vector<8x128xf32> to vector<1x8x128xf32>
    %1034 = vector.broadcast %1033 : vector<1x8x128xf32> to vector<8x8x128xf32>
    %1035 = arith.mulf %1032, %1034 : vector<8x8x128xf32>
    %1036 = arith.addf %1031, %1035 : vector<8x8x128xf32>
    %1037 = vector.extract_strided_slice %1004 {offsets = [2, 0, 0], sizes = [8, 8, 128], strides = [1, 1, 1]} : vector<10x8x128xf32> to vector<8x8x128xf32>
    %1038 = vector.shape_cast %106 : vector<8x128xf32> to vector<1x8x128xf32>
    %1039 = vector.broadcast %1038 : vector<1x8x128xf32> to vector<8x8x128xf32>
    %1040 = arith.mulf %1037, %1039 : vector<8x8x128xf32>
    %1041 = arith.addf %1036, %1040 : vector<8x8x128xf32>
    %1042 = vector.extract_strided_slice %1001 {offsets = [2, 0, 0], sizes = [8, 8, 128], strides = [1, 1, 1]} : vector<10x8x128xf32> to vector<8x8x128xf32>
    %1043 = vector.shape_cast %112 : vector<8x128xf32> to vector<1x8x128xf32>
    %1044 = vector.broadcast %1043 : vector<1x8x128xf32> to vector<8x8x128xf32>
    %1045 = arith.mulf %1042, %1044 : vector<8x8x128xf32>
    %1046 = arith.addf %1041, %1045 : vector<8x8x128xf32>
    %1047 = vector.extract_strided_slice %1006 {offsets = [2, 0, 0], sizes = [8, 8, 128], strides = [1, 1, 1]} : vector<10x8x128xf32> to vector<8x8x128xf32>
    %1048 = vector.shape_cast %118 : vector<8x128xf32> to vector<1x8x128xf32>
    %1049 = vector.broadcast %1048 : vector<1x8x128xf32> to vector<8x8x128xf32>
    %1050 = arith.mulf %1047, %1049 : vector<8x8x128xf32>
    %1051 = arith.addf %1046, %1050 : vector<8x8x128xf32>
    %c0_120 = arith.constant 0 : index
    %c6 = arith.constant 6 : index
    %c0_121 = arith.constant 0 : index
    %c0_122 = arith.constant 0 : index
    %c0_123 = arith.constant 0 : index
    %1052 = vector.load %arg3[%c0_120, %c6, %c0_121, %c0_122, %c0_123] : memref<1x8x8x8x128xf32, #tpu.memory_space<vmem>>, vector<1x1x8x8x128xf32>
    %1053 = vector.shape_cast %1052 : vector<1x1x8x8x128xf32> to vector<8x8x128xf32>
    %1054 = tpu.concatenate %176, %1053, %176 in 0 : vector<1x8x128xf32>, vector<8x8x128xf32>, vector<1x8x128xf32> -> vector<10x8x128xf32>
    %cst_124 = arith.constant 0.000000e+00 : f32
    %1055 = vector.broadcast %cst_124 : f32 to vector<10x1x128xf32>
    %1056 = vector.extract_strided_slice %1054 {offsets = [0, 0, 0], sizes = [10, 7, 128], strides = [1, 1, 1]} : vector<10x8x128xf32> to vector<10x7x128xf32>
    %1057 = tpu.concatenate %1055, %1056 in 1 : vector<10x1x128xf32>, vector<10x7x128xf32> -> vector<10x8x128xf32>
    %1058 = vector.extract_strided_slice %1054 {offsets = [0, 1, 0], sizes = [10, 7, 128], strides = [1, 1, 1]} : vector<10x8x128xf32> to vector<10x7x128xf32>
    %1059 = tpu.concatenate %1058, %1055 in 1 : vector<10x7x128xf32>, vector<10x1x128xf32> -> vector<10x8x128xf32>
    %1060 = vector.extract_strided_slice %1057 {offsets = [0, 0, 0], sizes = [8, 8, 128], strides = [1, 1, 1]} : vector<10x8x128xf32> to vector<8x8x128xf32>
    %1061 = vector.shape_cast %124 : vector<8x128xf32> to vector<1x8x128xf32>
    %1062 = vector.broadcast %1061 : vector<1x8x128xf32> to vector<8x8x128xf32>
    %1063 = arith.mulf %1060, %1062 : vector<8x8x128xf32>
    %1064 = arith.addf %1051, %1063 : vector<8x8x128xf32>
    %1065 = vector.extract_strided_slice %1054 {offsets = [0, 0, 0], sizes = [8, 8, 128], strides = [1, 1, 1]} : vector<10x8x128xf32> to vector<8x8x128xf32>
    %1066 = vector.shape_cast %130 : vector<8x128xf32> to vector<1x8x128xf32>
    %1067 = vector.broadcast %1066 : vector<1x8x128xf32> to vector<8x8x128xf32>
    %1068 = arith.mulf %1065, %1067 : vector<8x8x128xf32>
    %1069 = arith.addf %1064, %1068 : vector<8x8x128xf32>
    %1070 = vector.extract_strided_slice %1059 {offsets = [0, 0, 0], sizes = [8, 8, 128], strides = [1, 1, 1]} : vector<10x8x128xf32> to vector<8x8x128xf32>
    %1071 = vector.shape_cast %136 : vector<8x128xf32> to vector<1x8x128xf32>
    %1072 = vector.broadcast %1071 : vector<1x8x128xf32> to vector<8x8x128xf32>
    %1073 = arith.mulf %1070, %1072 : vector<8x8x128xf32>
    %1074 = arith.addf %1069, %1073 : vector<8x8x128xf32>
    %1075 = vector.extract_strided_slice %1057 {offsets = [1, 0, 0], sizes = [8, 8, 128], strides = [1, 1, 1]} : vector<10x8x128xf32> to vector<8x8x128xf32>
    %1076 = vector.shape_cast %142 : vector<8x128xf32> to vector<1x8x128xf32>
    %1077 = vector.broadcast %1076 : vector<1x8x128xf32> to vector<8x8x128xf32>
    %1078 = arith.mulf %1075, %1077 : vector<8x8x128xf32>
    %1079 = arith.addf %1074, %1078 : vector<8x8x128xf32>
    %1080 = vector.extract_strided_slice %1054 {offsets = [1, 0, 0], sizes = [8, 8, 128], strides = [1, 1, 1]} : vector<10x8x128xf32> to vector<8x8x128xf32>
    %1081 = vector.shape_cast %148 : vector<8x128xf32> to vector<1x8x128xf32>
    %1082 = vector.broadcast %1081 : vector<1x8x128xf32> to vector<8x8x128xf32>
    %1083 = arith.mulf %1080, %1082 : vector<8x8x128xf32>
    %1084 = arith.addf %1079, %1083 : vector<8x8x128xf32>
    %1085 = vector.extract_strided_slice %1059 {offsets = [1, 0, 0], sizes = [8, 8, 128], strides = [1, 1, 1]} : vector<10x8x128xf32> to vector<8x8x128xf32>
    %1086 = vector.shape_cast %154 : vector<8x128xf32> to vector<1x8x128xf32>
    %1087 = vector.broadcast %1086 : vector<1x8x128xf32> to vector<8x8x128xf32>
    %1088 = arith.mulf %1085, %1087 : vector<8x8x128xf32>
    %1089 = arith.addf %1084, %1088 : vector<8x8x128xf32>
    %1090 = vector.extract_strided_slice %1057 {offsets = [2, 0, 0], sizes = [8, 8, 128], strides = [1, 1, 1]} : vector<10x8x128xf32> to vector<8x8x128xf32>
    %1091 = vector.shape_cast %160 : vector<8x128xf32> to vector<1x8x128xf32>
    %1092 = vector.broadcast %1091 : vector<1x8x128xf32> to vector<8x8x128xf32>
    %1093 = arith.mulf %1090, %1092 : vector<8x8x128xf32>
    %1094 = arith.addf %1089, %1093 : vector<8x8x128xf32>
    %1095 = vector.extract_strided_slice %1054 {offsets = [2, 0, 0], sizes = [8, 8, 128], strides = [1, 1, 1]} : vector<10x8x128xf32> to vector<8x8x128xf32>
    %1096 = vector.shape_cast %166 : vector<8x128xf32> to vector<1x8x128xf32>
    %1097 = vector.broadcast %1096 : vector<1x8x128xf32> to vector<8x8x128xf32>
    %1098 = arith.mulf %1095, %1097 : vector<8x8x128xf32>
    %1099 = arith.addf %1094, %1098 : vector<8x8x128xf32>
    %1100 = vector.extract_strided_slice %1059 {offsets = [2, 0, 0], sizes = [8, 8, 128], strides = [1, 1, 1]} : vector<10x8x128xf32> to vector<8x8x128xf32>
    %1101 = vector.shape_cast %172 : vector<8x128xf32> to vector<1x8x128xf32>
    %1102 = vector.broadcast %1101 : vector<1x8x128xf32> to vector<8x8x128xf32>
    %1103 = arith.mulf %1100, %1102 : vector<8x8x128xf32>
    %1104 = arith.addf %1099, %1103 : vector<8x8x128xf32>
    %c0_125 = arith.constant 0 : index
    %c5_126 = arith.constant 5 : index
    %c0_127 = arith.constant 0 : index
    %c0_128 = arith.constant 0 : index
    %c0_129 = arith.constant 0 : index
    %1105 = vector.load %arg6[%c0_125, %c5_126, %c0_127, %c0_128, %c0_129] : memref<1x8x8x8x128xf32, #tpu.memory_space<vmem>>, vector<1x1x8x8x128xf32>
    %1106 = vector.shape_cast %1105 : vector<1x1x8x8x128xf32> to vector<8x8x128xf32>
    %1107 = vector.shape_cast %1104 : vector<8x8x128xf32> to vector<1x1x8x8x128xf32>
    tpu.vector_store %arg6[%c0_125, %c5_126, %c0_127, %c0_128, %c0_129], %1107 {strides = array<i32>} : memref<1x8x8x8x128xf32, #tpu.memory_space<vmem>>, vector<1x1x8x8x128xf32>,
    %1108 = vector.shape_cast %175 : vector<8x128xf32> to vector<1x8x128xf32>
    %1109 = vector.broadcast %1108 : vector<1x8x128xf32> to vector<8x8x128xf32>
    %c0_130 = arith.constant 0 : index
    %c5_131 = arith.constant 5 : index
    %c0_132 = arith.constant 0 : index
    %c0_133 = arith.constant 0 : index
    %c0_134 = arith.constant 0 : index
    %1110 = vector.load %arg3[%c0_130, %c5_131, %c0_132, %c0_133, %c0_134] : memref<1x8x8x8x128xf32, #tpu.memory_space<vmem>>, vector<1x1x8x8x128xf32>
    %1111 = vector.shape_cast %1110 : vector<1x1x8x8x128xf32> to vector<8x8x128xf32>
    %1112 = tpu.concatenate %176, %1111, %176 in 0 : vector<1x8x128xf32>, vector<8x8x128xf32>, vector<1x8x128xf32> -> vector<10x8x128xf32>
    %cst_135 = arith.constant 0.000000e+00 : f32
    %1113 = vector.broadcast %cst_135 : f32 to vector<10x1x128xf32>
    %1114 = vector.extract_strided_slice %1112 {offsets = [0, 0, 0], sizes = [10, 7, 128], strides = [1, 1, 1]} : vector<10x8x128xf32> to vector<10x7x128xf32>
    %1115 = tpu.concatenate %1113, %1114 in 1 : vector<10x1x128xf32>, vector<10x7x128xf32> -> vector<10x8x128xf32>
    %1116 = vector.extract_strided_slice %1112 {offsets = [0, 1, 0], sizes = [10, 7, 128], strides = [1, 1, 1]} : vector<10x8x128xf32> to vector<10x7x128xf32>
    %1117 = tpu.concatenate %1116, %1113 in 1 : vector<10x7x128xf32>, vector<10x1x128xf32> -> vector<10x8x128xf32>
    %1118 = vector.extract_strided_slice %1115 {offsets = [0, 0, 0], sizes = [8, 8, 128], strides = [1, 1, 1]} : vector<10x8x128xf32> to vector<8x8x128xf32>
    %1119 = vector.shape_cast %16 : vector<8x128xf32> to vector<1x8x128xf32>
    %1120 = vector.broadcast %1119 : vector<1x8x128xf32> to vector<8x8x128xf32>
    %1121 = arith.mulf %1118, %1120 : vector<8x8x128xf32>
    %1122 = arith.addf %1109, %1121 : vector<8x8x128xf32>
    %1123 = vector.extract_strided_slice %1112 {offsets = [0, 0, 0], sizes = [8, 8, 128], strides = [1, 1, 1]} : vector<10x8x128xf32> to vector<8x8x128xf32>
    %1124 = vector.shape_cast %22 : vector<8x128xf32> to vector<1x8x128xf32>
    %1125 = vector.broadcast %1124 : vector<1x8x128xf32> to vector<8x8x128xf32>
    %1126 = arith.mulf %1123, %1125 : vector<8x8x128xf32>
    %1127 = arith.addf %1122, %1126 : vector<8x8x128xf32>
    %1128 = vector.extract_strided_slice %1117 {offsets = [0, 0, 0], sizes = [8, 8, 128], strides = [1, 1, 1]} : vector<10x8x128xf32> to vector<8x8x128xf32>
    %1129 = vector.shape_cast %28 : vector<8x128xf32> to vector<1x8x128xf32>
    %1130 = vector.broadcast %1129 : vector<1x8x128xf32> to vector<8x8x128xf32>
    %1131 = arith.mulf %1128, %1130 : vector<8x8x128xf32>
    %1132 = arith.addf %1127, %1131 : vector<8x8x128xf32>
    %1133 = vector.extract_strided_slice %1115 {offsets = [1, 0, 0], sizes = [8, 8, 128], strides = [1, 1, 1]} : vector<10x8x128xf32> to vector<8x8x128xf32>
    %1134 = vector.shape_cast %34 : vector<8x128xf32> to vector<1x8x128xf32>
    %1135 = vector.broadcast %1134 : vector<1x8x128xf32> to vector<8x8x128xf32>
    %1136 = arith.mulf %1133, %1135 : vector<8x8x128xf32>
    %1137 = arith.addf %1132, %1136 : vector<8x8x128xf32>
    %1138 = vector.extract_strided_slice %1112 {offsets = [1, 0, 0], sizes = [8, 8, 128], strides = [1, 1, 1]} : vector<10x8x128xf32> to vector<8x8x128xf32>
    %1139 = vector.shape_cast %40 : vector<8x128xf32> to vector<1x8x128xf32>
    %1140 = vector.broadcast %1139 : vector<1x8x128xf32> to vector<8x8x128xf32>
    %1141 = arith.mulf %1138, %1140 : vector<8x8x128xf32>
    %1142 = arith.addf %1137, %1141 : vector<8x8x128xf32>
    %1143 = vector.extract_strided_slice %1117 {offsets = [1, 0, 0], sizes = [8, 8, 128], strides = [1, 1, 1]} : vector<10x8x128xf32> to vector<8x8x128xf32>
    %1144 = vector.shape_cast %46 : vector<8x128xf32> to vector<1x8x128xf32>
    %1145 = vector.broadcast %1144 : vector<1x8x128xf32> to vector<8x8x128xf32>
    %1146 = arith.mulf %1143, %1145 : vector<8x8x128xf32>
    %1147 = arith.addf %1142, %1146 : vector<8x8x128xf32>
    %1148 = vector.extract_strided_slice %1115 {offsets = [2, 0, 0], sizes = [8, 8, 128], strides = [1, 1, 1]} : vector<10x8x128xf32> to vector<8x8x128xf32>
    %1149 = vector.shape_cast %52 : vector<8x128xf32> to vector<1x8x128xf32>
    %1150 = vector.broadcast %1149 : vector<1x8x128xf32> to vector<8x8x128xf32>
    %1151 = arith.mulf %1148, %1150 : vector<8x8x128xf32>
    %1152 = arith.addf %1147, %1151 : vector<8x8x128xf32>
    %1153 = vector.extract_strided_slice %1112 {offsets = [2, 0, 0], sizes = [8, 8, 128], strides = [1, 1, 1]} : vector<10x8x128xf32> to vector<8x8x128xf32>
    %1154 = vector.shape_cast %58 : vector<8x128xf32> to vector<1x8x128xf32>
    %1155 = vector.broadcast %1154 : vector<1x8x128xf32> to vector<8x8x128xf32>
    %1156 = arith.mulf %1153, %1155 : vector<8x8x128xf32>
    %1157 = arith.addf %1152, %1156 : vector<8x8x128xf32>
    %1158 = vector.extract_strided_slice %1117 {offsets = [2, 0, 0], sizes = [8, 8, 128], strides = [1, 1, 1]} : vector<10x8x128xf32> to vector<8x8x128xf32>
    %1159 = vector.shape_cast %64 : vector<8x128xf32> to vector<1x8x128xf32>
    %1160 = vector.broadcast %1159 : vector<1x8x128xf32> to vector<8x8x128xf32>
    %1161 = arith.mulf %1158, %1160 : vector<8x8x128xf32>
    %1162 = arith.addf %1157, %1161 : vector<8x8x128xf32>
    %c0_136 = arith.constant 0 : index
    %c6_137 = arith.constant 6 : index
    %c0_138 = arith.constant 0 : index
    %c0_139 = arith.constant 0 : index
    %c0_140 = arith.constant 0 : index
    %1163 = vector.load %arg3[%c0_136, %c6_137, %c0_138, %c0_139, %c0_140] : memref<1x8x8x8x128xf32, #tpu.memory_space<vmem>>, vector<1x1x8x8x128xf32>
    %1164 = vector.shape_cast %1163 : vector<1x1x8x8x128xf32> to vector<8x8x128xf32>
    %1165 = tpu.concatenate %176, %1164, %176 in 0 : vector<1x8x128xf32>, vector<8x8x128xf32>, vector<1x8x128xf32> -> vector<10x8x128xf32>
    %cst_141 = arith.constant 0.000000e+00 : f32
    %1166 = vector.broadcast %cst_141 : f32 to vector<10x1x128xf32>
    %1167 = vector.extract_strided_slice %1165 {offsets = [0, 0, 0], sizes = [10, 7, 128], strides = [1, 1, 1]} : vector<10x8x128xf32> to vector<10x7x128xf32>
    %1168 = tpu.concatenate %1166, %1167 in 1 : vector<10x1x128xf32>, vector<10x7x128xf32> -> vector<10x8x128xf32>
    %1169 = vector.extract_strided_slice %1165 {offsets = [0, 1, 0], sizes = [10, 7, 128], strides = [1, 1, 1]} : vector<10x8x128xf32> to vector<10x7x128xf32>
    %1170 = tpu.concatenate %1169, %1166 in 1 : vector<10x7x128xf32>, vector<10x1x128xf32> -> vector<10x8x128xf32>
    %1171 = vector.extract_strided_slice %1168 {offsets = [0, 0, 0], sizes = [8, 8, 128], strides = [1, 1, 1]} : vector<10x8x128xf32> to vector<8x8x128xf32>
    %1172 = vector.shape_cast %70 : vector<8x128xf32> to vector<1x8x128xf32>
    %1173 = vector.broadcast %1172 : vector<1x8x128xf32> to vector<8x8x128xf32>
    %1174 = arith.mulf %1171, %1173 : vector<8x8x128xf32>
    %1175 = arith.addf %1162, %1174 : vector<8x8x128xf32>
    %1176 = vector.extract_strided_slice %1165 {offsets = [0, 0, 0], sizes = [8, 8, 128], strides = [1, 1, 1]} : vector<10x8x128xf32> to vector<8x8x128xf32>
    %1177 = vector.shape_cast %76 : vector<8x128xf32> to vector<1x8x128xf32>
    %1178 = vector.broadcast %1177 : vector<1x8x128xf32> to vector<8x8x128xf32>
    %1179 = arith.mulf %1176, %1178 : vector<8x8x128xf32>
    %1180 = arith.addf %1175, %1179 : vector<8x8x128xf32>
    %1181 = vector.extract_strided_slice %1170 {offsets = [0, 0, 0], sizes = [8, 8, 128], strides = [1, 1, 1]} : vector<10x8x128xf32> to vector<8x8x128xf32>
    %1182 = vector.shape_cast %82 : vector<8x128xf32> to vector<1x8x128xf32>
    %1183 = vector.broadcast %1182 : vector<1x8x128xf32> to vector<8x8x128xf32>
    %1184 = arith.mulf %1181, %1183 : vector<8x8x128xf32>
    %1185 = arith.addf %1180, %1184 : vector<8x8x128xf32>
    %1186 = vector.extract_strided_slice %1168 {offsets = [1, 0, 0], sizes = [8, 8, 128], strides = [1, 1, 1]} : vector<10x8x128xf32> to vector<8x8x128xf32>
    %1187 = vector.shape_cast %88 : vector<8x128xf32> to vector<1x8x128xf32>
    %1188 = vector.broadcast %1187 : vector<1x8x128xf32> to vector<8x8x128xf32>
    %1189 = arith.mulf %1186, %1188 : vector<8x8x128xf32>
    %1190 = arith.addf %1185, %1189 : vector<8x8x128xf32>
    %1191 = vector.extract_strided_slice %1165 {offsets = [1, 0, 0], sizes = [8, 8, 128], strides = [1, 1, 1]} : vector<10x8x128xf32> to vector<8x8x128xf32>
    %1192 = vector.shape_cast %94 : vector<8x128xf32> to vector<1x8x128xf32>
    %1193 = vector.broadcast %1192 : vector<1x8x128xf32> to vector<8x8x128xf32>
    %1194 = arith.mulf %1191, %1193 : vector<8x8x128xf32>
    %1195 = arith.addf %1190, %1194 : vector<8x8x128xf32>
    %1196 = vector.extract_strided_slice %1170 {offsets = [1, 0, 0], sizes = [8, 8, 128], strides = [1, 1, 1]} : vector<10x8x128xf32> to vector<8x8x128xf32>
    %1197 = vector.shape_cast %100 : vector<8x128xf32> to vector<1x8x128xf32>
    %1198 = vector.broadcast %1197 : vector<1x8x128xf32> to vector<8x8x128xf32>
    %1199 = arith.mulf %1196, %1198 : vector<8x8x128xf32>
    %1200 = arith.addf %1195, %1199 : vector<8x8x128xf32>
    %1201 = vector.extract_strided_slice %1168 {offsets = [2, 0, 0], sizes = [8, 8, 128], strides = [1, 1, 1]} : vector<10x8x128xf32> to vector<8x8x128xf32>
    %1202 = vector.shape_cast %106 : vector<8x128xf32> to vector<1x8x128xf32>
    %1203 = vector.broadcast %1202 : vector<1x8x128xf32> to vector<8x8x128xf32>
    %1204 = arith.mulf %1201, %1203 : vector<8x8x128xf32>
    %1205 = arith.addf %1200, %1204 : vector<8x8x128xf32>
    %1206 = vector.extract_strided_slice %1165 {offsets = [2, 0, 0], sizes = [8, 8, 128], strides = [1, 1, 1]} : vector<10x8x128xf32> to vector<8x8x128xf32>
    %1207 = vector.shape_cast %112 : vector<8x128xf32> to vector<1x8x128xf32>
    %1208 = vector.broadcast %1207 : vector<1x8x128xf32> to vector<8x8x128xf32>
    %1209 = arith.mulf %1206, %1208 : vector<8x8x128xf32>
    %1210 = arith.addf %1205, %1209 : vector<8x8x128xf32>
    %1211 = vector.extract_strided_slice %1170 {offsets = [2, 0, 0], sizes = [8, 8, 128], strides = [1, 1, 1]} : vector<10x8x128xf32> to vector<8x8x128xf32>
    %1212 = vector.shape_cast %118 : vector<8x128xf32> to vector<1x8x128xf32>
    %1213 = vector.broadcast %1212 : vector<1x8x128xf32> to vector<8x8x128xf32>
    %1214 = arith.mulf %1211, %1213 : vector<8x8x128xf32>
    %1215 = arith.addf %1210, %1214 : vector<8x8x128xf32>
    %c0_142 = arith.constant 0 : index
    %c7 = arith.constant 7 : index
    %c0_143 = arith.constant 0 : index
    %c0_144 = arith.constant 0 : index
    %c0_145 = arith.constant 0 : index
    %1216 = vector.load %arg3[%c0_142, %c7, %c0_143, %c0_144, %c0_145] : memref<1x8x8x8x128xf32, #tpu.memory_space<vmem>>, vector<1x1x8x8x128xf32>
    %1217 = vector.shape_cast %1216 : vector<1x1x8x8x128xf32> to vector<8x8x128xf32>
    %1218 = tpu.concatenate %176, %1217, %176 in 0 : vector<1x8x128xf32>, vector<8x8x128xf32>, vector<1x8x128xf32> -> vector<10x8x128xf32>
    %cst_146 = arith.constant 0.000000e+00 : f32
    %1219 = vector.broadcast %cst_146 : f32 to vector<10x1x128xf32>
    %1220 = vector.extract_strided_slice %1218 {offsets = [0, 0, 0], sizes = [10, 7, 128], strides = [1, 1, 1]} : vector<10x8x128xf32> to vector<10x7x128xf32>
    %1221 = tpu.concatenate %1219, %1220 in 1 : vector<10x1x128xf32>, vector<10x7x128xf32> -> vector<10x8x128xf32>
    %1222 = vector.extract_strided_slice %1218 {offsets = [0, 1, 0], sizes = [10, 7, 128], strides = [1, 1, 1]} : vector<10x8x128xf32> to vector<10x7x128xf32>
    %1223 = tpu.concatenate %1222, %1219 in 1 : vector<10x7x128xf32>, vector<10x1x128xf32> -> vector<10x8x128xf32>
    %1224 = vector.extract_strided_slice %1221 {offsets = [0, 0, 0], sizes = [8, 8, 128], strides = [1, 1, 1]} : vector<10x8x128xf32> to vector<8x8x128xf32>
    %1225 = vector.shape_cast %124 : vector<8x128xf32> to vector<1x8x128xf32>
    %1226 = vector.broadcast %1225 : vector<1x8x128xf32> to vector<8x8x128xf32>
    %1227 = arith.mulf %1224, %1226 : vector<8x8x128xf32>
    %1228 = arith.addf %1215, %1227 : vector<8x8x128xf32>
    %1229 = vector.extract_strided_slice %1218 {offsets = [0, 0, 0], sizes = [8, 8, 128], strides = [1, 1, 1]} : vector<10x8x128xf32> to vector<8x8x128xf32>
    %1230 = vector.shape_cast %130 : vector<8x128xf32> to vector<1x8x128xf32>
    %1231 = vector.broadcast %1230 : vector<1x8x128xf32> to vector<8x8x128xf32>
    %1232 = arith.mulf %1229, %1231 : vector<8x8x128xf32>
    %1233 = arith.addf %1228, %1232 : vector<8x8x128xf32>
    %1234 = vector.extract_strided_slice %1223 {offsets = [0, 0, 0], sizes = [8, 8, 128], strides = [1, 1, 1]} : vector<10x8x128xf32> to vector<8x8x128xf32>
    %1235 = vector.shape_cast %136 : vector<8x128xf32> to vector<1x8x128xf32>
    %1236 = vector.broadcast %1235 : vector<1x8x128xf32> to vector<8x8x128xf32>
    %1237 = arith.mulf %1234, %1236 : vector<8x8x128xf32>
    %1238 = arith.addf %1233, %1237 : vector<8x8x128xf32>
    %1239 = vector.extract_strided_slice %1221 {offsets = [1, 0, 0], sizes = [8, 8, 128], strides = [1, 1, 1]} : vector<10x8x128xf32> to vector<8x8x128xf32>
    %1240 = vector.shape_cast %142 : vector<8x128xf32> to vector<1x8x128xf32>
    %1241 = vector.broadcast %1240 : vector<1x8x128xf32> to vector<8x8x128xf32>
    %1242 = arith.mulf %1239, %1241 : vector<8x8x128xf32>
    %1243 = arith.addf %1238, %1242 : vector<8x8x128xf32>
    %1244 = vector.extract_strided_slice %1218 {offsets = [1, 0, 0], sizes = [8, 8, 128], strides = [1, 1, 1]} : vector<10x8x128xf32> to vector<8x8x128xf32>
    %1245 = vector.shape_cast %148 : vector<8x128xf32> to vector<1x8x128xf32>
    %1246 = vector.broadcast %1245 : vector<1x8x128xf32> to vector<8x8x128xf32>
    %1247 = arith.mulf %1244, %1246 : vector<8x8x128xf32>
    %1248 = arith.addf %1243, %1247 : vector<8x8x128xf32>
    %1249 = vector.extract_strided_slice %1223 {offsets = [1, 0, 0], sizes = [8, 8, 128], strides = [1, 1, 1]} : vector<10x8x128xf32> to vector<8x8x128xf32>
    %1250 = vector.shape_cast %154 : vector<8x128xf32> to vector<1x8x128xf32>
    %1251 = vector.broadcast %1250 : vector<1x8x128xf32> to vector<8x8x128xf32>
    %1252 = arith.mulf %1249, %1251 : vector<8x8x128xf32>
    %1253 = arith.addf %1248, %1252 : vector<8x8x128xf32>
    %1254 = vector.extract_strided_slice %1221 {offsets = [2, 0, 0], sizes = [8, 8, 128], strides = [1, 1, 1]} : vector<10x8x128xf32> to vector<8x8x128xf32>
    %1255 = vector.shape_cast %160 : vector<8x128xf32> to vector<1x8x128xf32>
    %1256 = vector.broadcast %1255 : vector<1x8x128xf32> to vector<8x8x128xf32>
    %1257 = arith.mulf %1254, %1256 : vector<8x8x128xf32>
    %1258 = arith.addf %1253, %1257 : vector<8x8x128xf32>
    %1259 = vector.extract_strided_slice %1218 {offsets = [2, 0, 0], sizes = [8, 8, 128], strides = [1, 1, 1]} : vector<10x8x128xf32> to vector<8x8x128xf32>
    %1260 = vector.shape_cast %166 : vector<8x128xf32> to vector<1x8x128xf32>
    %1261 = vector.broadcast %1260 : vector<1x8x128xf32> to vector<8x8x128xf32>
    %1262 = arith.mulf %1259, %1261 : vector<8x8x128xf32>
    %1263 = arith.addf %1258, %1262 : vector<8x8x128xf32>
    %1264 = vector.extract_strided_slice %1223 {offsets = [2, 0, 0], sizes = [8, 8, 128], strides = [1, 1, 1]} : vector<10x8x128xf32> to vector<8x8x128xf32>
    %1265 = vector.shape_cast %172 : vector<8x128xf32> to vector<1x8x128xf32>
    %1266 = vector.broadcast %1265 : vector<1x8x128xf32> to vector<8x8x128xf32>
    %1267 = arith.mulf %1264, %1266 : vector<8x8x128xf32>
    %1268 = arith.addf %1263, %1267 : vector<8x8x128xf32>
    %c0_147 = arith.constant 0 : index
    %c6_148 = arith.constant 6 : index
    %c0_149 = arith.constant 0 : index
    %c0_150 = arith.constant 0 : index
    %c0_151 = arith.constant 0 : index
    %1269 = vector.load %arg6[%c0_147, %c6_148, %c0_149, %c0_150, %c0_151] : memref<1x8x8x8x128xf32, #tpu.memory_space<vmem>>, vector<1x1x8x8x128xf32>
    %1270 = vector.shape_cast %1269 : vector<1x1x8x8x128xf32> to vector<8x8x128xf32>
    %1271 = vector.shape_cast %1268 : vector<8x8x128xf32> to vector<1x1x8x8x128xf32>
    tpu.vector_store %arg6[%c0_147, %c6_148, %c0_149, %c0_150, %c0_151], %1271 {strides = array<i32>} : memref<1x8x8x8x128xf32, #tpu.memory_space<vmem>>, vector<1x1x8x8x128xf32>,
    %1272 = vector.shape_cast %175 : vector<8x128xf32> to vector<1x8x128xf32>
    %1273 = vector.broadcast %1272 : vector<1x8x128xf32> to vector<8x8x128xf32>
    %c0_152 = arith.constant 0 : index
    %c6_153 = arith.constant 6 : index
    %c0_154 = arith.constant 0 : index
    %c0_155 = arith.constant 0 : index
    %c0_156 = arith.constant 0 : index
    %1274 = vector.load %arg3[%c0_152, %c6_153, %c0_154, %c0_155, %c0_156] : memref<1x8x8x8x128xf32, #tpu.memory_space<vmem>>, vector<1x1x8x8x128xf32>
    %1275 = vector.shape_cast %1274 : vector<1x1x8x8x128xf32> to vector<8x8x128xf32>
    %1276 = tpu.concatenate %176, %1275, %176 in 0 : vector<1x8x128xf32>, vector<8x8x128xf32>, vector<1x8x128xf32> -> vector<10x8x128xf32>
    %cst_157 = arith.constant 0.000000e+00 : f32
    %1277 = vector.broadcast %cst_157 : f32 to vector<10x1x128xf32>
    %1278 = vector.extract_strided_slice %1276 {offsets = [0, 0, 0], sizes = [10, 7, 128], strides = [1, 1, 1]} : vector<10x8x128xf32> to vector<10x7x128xf32>
    %1279 = tpu.concatenate %1277, %1278 in 1 : vector<10x1x128xf32>, vector<10x7x128xf32> -> vector<10x8x128xf32>
    %1280 = vector.extract_strided_slice %1276 {offsets = [0, 1, 0], sizes = [10, 7, 128], strides = [1, 1, 1]} : vector<10x8x128xf32> to vector<10x7x128xf32>
    %1281 = tpu.concatenate %1280, %1277 in 1 : vector<10x7x128xf32>, vector<10x1x128xf32> -> vector<10x8x128xf32>
    %1282 = vector.extract_strided_slice %1279 {offsets = [0, 0, 0], sizes = [8, 8, 128], strides = [1, 1, 1]} : vector<10x8x128xf32> to vector<8x8x128xf32>
    %1283 = vector.shape_cast %16 : vector<8x128xf32> to vector<1x8x128xf32>
    %1284 = vector.broadcast %1283 : vector<1x8x128xf32> to vector<8x8x128xf32>
    %1285 = arith.mulf %1282, %1284 : vector<8x8x128xf32>
    %1286 = arith.addf %1273, %1285 : vector<8x8x128xf32>
    %1287 = vector.extract_strided_slice %1276 {offsets = [0, 0, 0], sizes = [8, 8, 128], strides = [1, 1, 1]} : vector<10x8x128xf32> to vector<8x8x128xf32>
    %1288 = vector.shape_cast %22 : vector<8x128xf32> to vector<1x8x128xf32>
    %1289 = vector.broadcast %1288 : vector<1x8x128xf32> to vector<8x8x128xf32>
    %1290 = arith.mulf %1287, %1289 : vector<8x8x128xf32>
    %1291 = arith.addf %1286, %1290 : vector<8x8x128xf32>
    %1292 = vector.extract_strided_slice %1281 {offsets = [0, 0, 0], sizes = [8, 8, 128], strides = [1, 1, 1]} : vector<10x8x128xf32> to vector<8x8x128xf32>
    %1293 = vector.shape_cast %28 : vector<8x128xf32> to vector<1x8x128xf32>
    %1294 = vector.broadcast %1293 : vector<1x8x128xf32> to vector<8x8x128xf32>
    %1295 = arith.mulf %1292, %1294 : vector<8x8x128xf32>
    %1296 = arith.addf %1291, %1295 : vector<8x8x128xf32>
    %1297 = vector.extract_strided_slice %1279 {offsets = [1, 0, 0], sizes = [8, 8, 128], strides = [1, 1, 1]} : vector<10x8x128xf32> to vector<8x8x128xf32>
    %1298 = vector.shape_cast %34 : vector<8x128xf32> to vector<1x8x128xf32>
    %1299 = vector.broadcast %1298 : vector<1x8x128xf32> to vector<8x8x128xf32>
    %1300 = arith.mulf %1297, %1299 : vector<8x8x128xf32>
    %1301 = arith.addf %1296, %1300 : vector<8x8x128xf32>
    %1302 = vector.extract_strided_slice %1276 {offsets = [1, 0, 0], sizes = [8, 8, 128], strides = [1, 1, 1]} : vector<10x8x128xf32> to vector<8x8x128xf32>
    %1303 = vector.shape_cast %40 : vector<8x128xf32> to vector<1x8x128xf32>
    %1304 = vector.broadcast %1303 : vector<1x8x128xf32> to vector<8x8x128xf32>
    %1305 = arith.mulf %1302, %1304 : vector<8x8x128xf32>
    %1306 = arith.addf %1301, %1305 : vector<8x8x128xf32>
    %1307 = vector.extract_strided_slice %1281 {offsets = [1, 0, 0], sizes = [8, 8, 128], strides = [1, 1, 1]} : vector<10x8x128xf32> to vector<8x8x128xf32>
    %1308 = vector.shape_cast %46 : vector<8x128xf32> to vector<1x8x128xf32>
    %1309 = vector.broadcast %1308 : vector<1x8x128xf32> to vector<8x8x128xf32>
    %1310 = arith.mulf %1307, %1309 : vector<8x8x128xf32>
    %1311 = arith.addf %1306, %1310 : vector<8x8x128xf32>
    %1312 = vector.extract_strided_slice %1279 {offsets = [2, 0, 0], sizes = [8, 8, 128], strides = [1, 1, 1]} : vector<10x8x128xf32> to vector<8x8x128xf32>
    %1313 = vector.shape_cast %52 : vector<8x128xf32> to vector<1x8x128xf32>
    %1314 = vector.broadcast %1313 : vector<1x8x128xf32> to vector<8x8x128xf32>
    %1315 = arith.mulf %1312, %1314 : vector<8x8x128xf32>
    %1316 = arith.addf %1311, %1315 : vector<8x8x128xf32>
    %1317 = vector.extract_strided_slice %1276 {offsets = [2, 0, 0], sizes = [8, 8, 128], strides = [1, 1, 1]} : vector<10x8x128xf32> to vector<8x8x128xf32>
    %1318 = vector.shape_cast %58 : vector<8x128xf32> to vector<1x8x128xf32>
    %1319 = vector.broadcast %1318 : vector<1x8x128xf32> to vector<8x8x128xf32>
    %1320 = arith.mulf %1317, %1319 : vector<8x8x128xf32>
    %1321 = arith.addf %1316, %1320 : vector<8x8x128xf32>
    %1322 = vector.extract_strided_slice %1281 {offsets = [2, 0, 0], sizes = [8, 8, 128], strides = [1, 1, 1]} : vector<10x8x128xf32> to vector<8x8x128xf32>
    %1323 = vector.shape_cast %64 : vector<8x128xf32> to vector<1x8x128xf32>
    %1324 = vector.broadcast %1323 : vector<1x8x128xf32> to vector<8x8x128xf32>
    %1325 = arith.mulf %1322, %1324 : vector<8x8x128xf32>
    %1326 = arith.addf %1321, %1325 : vector<8x8x128xf32>
    %c0_158 = arith.constant 0 : index
    %c7_159 = arith.constant 7 : index
    %c0_160 = arith.constant 0 : index
    %c0_161 = arith.constant 0 : index
    %c0_162 = arith.constant 0 : index
    %1327 = vector.load %arg3[%c0_158, %c7_159, %c0_160, %c0_161, %c0_162] : memref<1x8x8x8x128xf32, #tpu.memory_space<vmem>>, vector<1x1x8x8x128xf32>
    %1328 = vector.shape_cast %1327 : vector<1x1x8x8x128xf32> to vector<8x8x128xf32>
    %1329 = tpu.concatenate %176, %1328, %176 in 0 : vector<1x8x128xf32>, vector<8x8x128xf32>, vector<1x8x128xf32> -> vector<10x8x128xf32>
    %cst_163 = arith.constant 0.000000e+00 : f32
    %1330 = vector.broadcast %cst_163 : f32 to vector<10x1x128xf32>
    %1331 = vector.extract_strided_slice %1329 {offsets = [0, 0, 0], sizes = [10, 7, 128], strides = [1, 1, 1]} : vector<10x8x128xf32> to vector<10x7x128xf32>
    %1332 = tpu.concatenate %1330, %1331 in 1 : vector<10x1x128xf32>, vector<10x7x128xf32> -> vector<10x8x128xf32>
    %1333 = vector.extract_strided_slice %1329 {offsets = [0, 1, 0], sizes = [10, 7, 128], strides = [1, 1, 1]} : vector<10x8x128xf32> to vector<10x7x128xf32>
    %1334 = tpu.concatenate %1333, %1330 in 1 : vector<10x7x128xf32>, vector<10x1x128xf32> -> vector<10x8x128xf32>
    %1335 = vector.extract_strided_slice %1332 {offsets = [0, 0, 0], sizes = [8, 8, 128], strides = [1, 1, 1]} : vector<10x8x128xf32> to vector<8x8x128xf32>
    %1336 = vector.shape_cast %70 : vector<8x128xf32> to vector<1x8x128xf32>
    %1337 = vector.broadcast %1336 : vector<1x8x128xf32> to vector<8x8x128xf32>
    %1338 = arith.mulf %1335, %1337 : vector<8x8x128xf32>
    %1339 = arith.addf %1326, %1338 : vector<8x8x128xf32>
    %1340 = vector.extract_strided_slice %1329 {offsets = [0, 0, 0], sizes = [8, 8, 128], strides = [1, 1, 1]} : vector<10x8x128xf32> to vector<8x8x128xf32>
    %1341 = vector.shape_cast %76 : vector<8x128xf32> to vector<1x8x128xf32>
    %1342 = vector.broadcast %1341 : vector<1x8x128xf32> to vector<8x8x128xf32>
    %1343 = arith.mulf %1340, %1342 : vector<8x8x128xf32>
    %1344 = arith.addf %1339, %1343 : vector<8x8x128xf32>
    %1345 = vector.extract_strided_slice %1334 {offsets = [0, 0, 0], sizes = [8, 8, 128], strides = [1, 1, 1]} : vector<10x8x128xf32> to vector<8x8x128xf32>
    %1346 = vector.shape_cast %82 : vector<8x128xf32> to vector<1x8x128xf32>
    %1347 = vector.broadcast %1346 : vector<1x8x128xf32> to vector<8x8x128xf32>
    %1348 = arith.mulf %1345, %1347 : vector<8x8x128xf32>
    %1349 = arith.addf %1344, %1348 : vector<8x8x128xf32>
    %1350 = vector.extract_strided_slice %1332 {offsets = [1, 0, 0], sizes = [8, 8, 128], strides = [1, 1, 1]} : vector<10x8x128xf32> to vector<8x8x128xf32>
    %1351 = vector.shape_cast %88 : vector<8x128xf32> to vector<1x8x128xf32>
    %1352 = vector.broadcast %1351 : vector<1x8x128xf32> to vector<8x8x128xf32>
    %1353 = arith.mulf %1350, %1352 : vector<8x8x128xf32>
    %1354 = arith.addf %1349, %1353 : vector<8x8x128xf32>
    %1355 = vector.extract_strided_slice %1329 {offsets = [1, 0, 0], sizes = [8, 8, 128], strides = [1, 1, 1]} : vector<10x8x128xf32> to vector<8x8x128xf32>
    %1356 = vector.shape_cast %94 : vector<8x128xf32> to vector<1x8x128xf32>
    %1357 = vector.broadcast %1356 : vector<1x8x128xf32> to vector<8x8x128xf32>
    %1358 = arith.mulf %1355, %1357 : vector<8x8x128xf32>
    %1359 = arith.addf %1354, %1358 : vector<8x8x128xf32>
    %1360 = vector.extract_strided_slice %1334 {offsets = [1, 0, 0], sizes = [8, 8, 128], strides = [1, 1, 1]} : vector<10x8x128xf32> to vector<8x8x128xf32>
    %1361 = vector.shape_cast %100 : vector<8x128xf32> to vector<1x8x128xf32>
    %1362 = vector.broadcast %1361 : vector<1x8x128xf32> to vector<8x8x128xf32>
    %1363 = arith.mulf %1360, %1362 : vector<8x8x128xf32>
    %1364 = arith.addf %1359, %1363 : vector<8x8x128xf32>
    %1365 = vector.extract_strided_slice %1332 {offsets = [2, 0, 0], sizes = [8, 8, 128], strides = [1, 1, 1]} : vector<10x8x128xf32> to vector<8x8x128xf32>
    %1366 = vector.shape_cast %106 : vector<8x128xf32> to vector<1x8x128xf32>
    %1367 = vector.broadcast %1366 : vector<1x8x128xf32> to vector<8x8x128xf32>
    %1368 = arith.mulf %1365, %1367 : vector<8x8x128xf32>
    %1369 = arith.addf %1364, %1368 : vector<8x8x128xf32>
    %1370 = vector.extract_strided_slice %1329 {offsets = [2, 0, 0], sizes = [8, 8, 128], strides = [1, 1, 1]} : vector<10x8x128xf32> to vector<8x8x128xf32>
    %1371 = vector.shape_cast %112 : vector<8x128xf32> to vector<1x8x128xf32>
    %1372 = vector.broadcast %1371 : vector<1x8x128xf32> to vector<8x8x128xf32>
    %1373 = arith.mulf %1370, %1372 : vector<8x8x128xf32>
    %1374 = arith.addf %1369, %1373 : vector<8x8x128xf32>
    %1375 = vector.extract_strided_slice %1334 {offsets = [2, 0, 0], sizes = [8, 8, 128], strides = [1, 1, 1]} : vector<10x8x128xf32> to vector<8x8x128xf32>
    %1376 = vector.shape_cast %118 : vector<8x128xf32> to vector<1x8x128xf32>
    %1377 = vector.broadcast %1376 : vector<1x8x128xf32> to vector<8x8x128xf32>
    %1378 = arith.mulf %1375, %1377 : vector<8x8x128xf32>
    %1379 = arith.addf %1374, %1378 : vector<8x8x128xf32>
    %c0_164 = arith.constant 0 : index
    %c7_165 = arith.constant 7 : index
    %c0_166 = arith.constant 0 : index
    %c0_167 = arith.constant 0 : index
    %c0_168 = arith.constant 0 : index
    %1380 = vector.load %arg6[%c0_164, %c7_165, %c0_166, %c0_167, %c0_168] : memref<1x8x8x8x128xf32, #tpu.memory_space<vmem>>, vector<1x1x8x8x128xf32>
    %1381 = vector.shape_cast %1380 : vector<1x1x8x8x128xf32> to vector<8x8x128xf32>
    %1382 = vector.shape_cast %1379 : vector<8x8x128xf32> to vector<1x1x8x8x128xf32>
    tpu.vector_store %arg6[%c0_164, %c7_165, %c0_166, %c0_167, %c0_168], %1382 {strides = array<i32>} : memref<1x8x8x8x128xf32, #tpu.memory_space<vmem>>, vector<1x1x8x8x128xf32>,
    return
  }
  func.func @transform_0(%arg0: i32, %arg1: i32, %arg2: i32) -> (i32, i32, i32, i32, i32) {
    %c0_i32 = arith.constant 0 : i32
    %c0_i32_0 = arith.constant 0 : i32
    %c0_i32_1 = arith.constant 0 : i32
    return %arg1, %arg2, %c0_i32, %c0_i32_0, %arg0 : i32, i32, i32, i32, i32
  }
  func.func @transform_1(%arg0: i32, %arg1: i32, %arg2: i32) -> (i32, i32) {
    %c0_i32 = arith.constant 0 : i32
    %c0_i32_0 = arith.constant 0 : i32
    return %c0_i32, %arg0 : i32, i32
  }
  func.func @transform_2(%arg0: i32, %arg1: i32, %arg2: i32) -> (i32, i32) {
    %c0_i32 = arith.constant 0 : i32
    %c0_i32_0 = arith.constant 0 : i32
    return %c0_i32, %arg0 : i32, i32
  }
  func.func @transform_3(%arg0: i32, %arg1: i32, %arg2: i32) -> (i32, i32, i32, i32, i32) {
    %c0_i32 = arith.constant 0 : i32
    %c0_i32_0 = arith.constant 0 : i32
    %c0_i32_1 = arith.constant 0 : i32
    return %arg1, %arg2, %c0_i32, %c0_i32_0, %arg0 : i32, i32, i32, i32, i32
  }
}

</mosaic_0001>

<bundles_post_ra>
// kernel: tpu_custom_call.1
= control target key start
LH: loop header
LB: loop body
LE: loop exit
PB: predicated region body
PF: predicated region fallthrough
CT: control target
= control target key end

     0   :  { %6 = vsyncpa [#allocation3], 0  ;;  %s136_s0 = inlined_call_operand.hbm [shape: f32[2,8,128], index: 0, kind: input, shape index: {}]   ;;  %s137_s1 = inlined_call_operand.hbm [shape: f32[2,8,128], index: 1, kind: output, shape index: {}]  }
   0x1   :  { %7 = vsyncpa [#allocation4], 0  ;;  %s98_s6 = smov [#allocation2]   ;;  %s50_s10 = scalar_lea.hbm %s136_s0, 256 }
   0x2   :  { %s13_s7 = sshll.u32 %s98_s6, 4  ;;  %p51_p0 = scmp.ne.s32.totalorder %s136_s0, %s50_s10  ;;  %s14_s7 = int_to_ptr.vmem [resolvable:$true] %s13_s7 }
   0x3   :  { %p54_p1 = scmp.lt.u32.totalorder %s50_s10, %s136_s0 }
   0x5   :  { %p56_p2 = pnand %p54_p1, %p51_p0 }
   0x7   :  { %59 = shalt.err (!%p56_p2)
}
   0x8   :  { %s60_s15 = scalar_lea.vmem %s14_s7, 256  ;;  %p65_p4 = scmp.lt.s32.totalorder %s14_s7, %s14_s7 }
   0x9   :  { %p61_p3 = scmp.ne.s32.totalorder %s14_s7, %s60_s15  ;;  %p66_p5 = scmp.lt.s32.totalorder %s60_s15, %s60_s15 }
   0xb   :  { %p67_p6 = por %p66_p5, %p65_p4 }
   0xd   :  { %p68_p7 = pnand %p67_p6, %p61_p3 }
   0xf   :  { %71 = shalt.err (!%p68_p7)
}
  0x10   :  { %s99_s16 = smov 128   ;;  %s100_s17 = smov 8  }
  0x11   :  { %19 = dma.hbm_to_vmem [thread:$0]  %s136_s0, 256, %s14_s7, [#allocation3], %s99_s16, %s99_s16, %s100_s17  }
  0x12   :  { %94 = dma.done.wait [#allocation3], 256  }
  0x13   :  { %95 = vsyncadd [#allocation3], 4294967040  ;;  %s101_s20 = smov [#allocation5]   ;;  %v23_v0 = vld [vmem:[#allocation2] sm:$0xff]  ;;  %v24_v1 = vld [vmem:[#allocation2 + $0x8] sm:$0xff] }
  0x14   :  { %s34_s21 = sshll.u32 %s101_s20, 4  ;;  %v25_v2 = vrot.slane %v23_v0, 7  ;;  %v26_v3 = vrot.slane %v24_v1, 7  ;;  %s35_s21 = int_to_ptr.vmem [resolvable:$true] %s34_s21 }
  0x15   :  { %s72_s22 = scalar_lea.vmem %s35_s21, 256  ;;  %p77_p9 = scmp.lt.s32.totalorder %s35_s21, %s35_s21 }
  0x16   :  { %27 = vst [vmem:[#allocation5] sm:$0xff] %v25_v2  ;;  %28 = vst [vmem:[#allocation5 + $0x8] sm:$0xff] %v26_v3  ;;  %p73_p8 = scmp.ne.s32.totalorder %s35_s21, %s72_s22  ;;  %p78_p10 = scmp.lt.s32.totalorder %s72_s22, %s72_s22 }
  0x18   :  { %p79_p11 = por %p78_p10, %p77_p9 }
  0x1a   :  { %p80_p12 = pnand %p79_p11, %p73_p8 }
  0x1c   :  { %83 = shalt.err (!%p80_p12)
}
  0x1d   :  { %s84_s24 = scalar_lea.hbm %s137_s1, 256 }
  0x1e   :  { %p85_p13 = scmp.ne.s32.totalorder %s137_s1, %s84_s24  ;;  %p88_p0 = scmp.lt.u32.totalorder %s84_s24, %s137_s1 }
  0x20   :  { %p90_p1 = pnand %p88_p0, %p85_p13 }
  0x22   :  { %93 = shalt.err (!%p90_p1)
}
  0x23   :  { %40 = dma.vmem_to_hbm [thread:$0]  %s35_s21, 256, %s137_s1, [#allocation4], %s99_s16, %s99_s16, %s100_s17  }
  0x24   :  { %96 = dma.done.wait [#allocation4], 256  }
  0x25   :  { %97 = vsyncadd [#allocation4], 4294967040 }
  0x26   :  { %44 = vsyncpa [#allocation3], 1 }
  0x27   :  { %45 = vsyncpa [#allocation4], 1 }

// kernel: tpu_custom_call.1
= control target key start
LH: loop header
LB: loop body
LE: loop exit
PB: predicated region body
PF: predicated region fallthrough
CT: control target
= control target key end

     0   :  { %s11266_s0 = inlined_call_operand.hbm [shape: f32[2,8,8,8,256], index: 0, kind: input, shape index: {}]   ;;  %s11267_s1 = inlined_call_operand.hbm [shape: f32[27,256], index: 1, kind: input, shape index: {}]   ;;  %s11268_s2 = inlined_call_operand.vmem [shape: f32[1,256], index: 2, kind: input, shape index: {}]   ;;  %s11269_s3 = inlined_call_operand.hbm [shape: f32[2,8,8,8,256], index: 3, kind: output, shape index: {}]  }
   0x1   :  { %11816 = sst [smem:[#allocation99_spill]] %s11269_s3 }
   0x2   :  { %8 = vsyncpa [#allocation3], 0 }
   0x3   :  { %10 = vsyncpa [#allocation3 + $0x1], 0 }
   0x4   :  { %11 = vsyncpa [#allocation6], 0 }
   0x5   :  { %13 = vsyncpa [#allocation6 + $0x1], 0 }
   0x6   :  { %14 = vsyncpa [#allocation4], 0 }
   0x7   :  { %16 = vsyncpa [#allocation4 + $0x1], 0  ;;  %s5687_s12 = smov 0   ;;  %s5689_s13 = smov 0  }
   0x8   :  { %s5691_s14 = smov 0   ;;  %s5693_s15 = smov 0  }
   0x9   :  { %s5695_s16 = smov 0   ;;  %s5697_s17 = smov 0  }
   0xa   :  { %s5699_s18 = smov 0   ;;  %s5701_s19 = smov 0  }
   0xb   :  { %s5703_s20 = smov 0   ;;  %s5705_s21 = smov 0  }
   0xc   :  { %s5707_s22 = smov 0  }
   0xd LB: > { %11817 = sst [smem:[#allocation11_spill]] %s5627_s15  ;;  %s5096_s23 = sadd.s32 4294967295, %s5655_s22   ;;  %s5655_s22 = sphi %s5707_s22, %s22_s22   ;;  %s5651_s21 = sphi %s5705_s21, %s12790_s21   ;;  %s5647_s20 = sphi %s5703_s20, %s12789_s20   ;;  %s5643_s19 = sphi %s5701_s19, %s12788_s19   ;;  %s5639_s18 = sphi %s5699_s18, %s12787_s18   ;;  %s5635_s17 = sphi %s5697_s17, %s12786_s17   ;;  %s5631_s16 = sphi %s5695_s16, %s12785_s16   ;;  %s5627_s15 = sphi %s5693_s15, %s12784_s15   ;;  %s5623_s14 = sphi %s5691_s14, %s12783_s14   ;;  %s5619_s13 = sphi %s5689_s13, %s12782_s13   ;;  %s5615_s12 = sphi %s5687_s12, %s12781_s12  }
   0xe   : > { %s5097_s24 = sadd.s32 4294967294, %s5655_s22   ;;  %s37_s25 = sadd.s32 1, %s5647_s20 }
   0xf   : > { %s41_s26 = sadd.s32 1, %s5651_s21  ;;  %p39_p0 = scmp.ge.s32.totalorder %s37_s25, 2 }
  0x10   : > { %s52_s27 = sadd.s32 1, %s5635_s17  ;;  %p59_p1 = scmp.ne.s32.totalorder %s5635_s17, %s5631_s16 }
  0x11   : > { %p11277_p2 = scmp.eq.s32.totalorder %s5655_s22, 0  ;;  %s12792_s25 = smov (%p39_p0, %s37_s25), 0 }
  0x12   : > { %11818 = sst [smem:[#allocation12_spill]] %s12792_s25  ;;  %s12794_s26 = smov (!%p39_p0, %s41_s26), %s5651_s21 }
  0x13   : > { %s45_s28 = ssub.s32 %s5647_s20, %s12792_s25  ;;  %p5757_p3 = por %p11277_p2, %p59_p1 }
  0x14   : > { %p43_p4 = scmp.ge.s32.totalorder %s12794_s26, 2  ;;  %p65_p5 = scmp.ne.s32.totalorder %s5631_s16, %s5627_s15 }
  0x15   : > { %p5763_p6 = scmp.eq.s32.totalorder %s5096_s23, 0  ;;  %p145_p7 = scmp.eq.s32.totalorder %s5096_s23, 3 }
  0x16   : > { %s12796_s26 = smov (%p43_p4, %s12794_s26), 0  ;;  %p151_p10 = scmp.eq.s32.totalorder %s5097_s24, 3 }
  0x17   : > { %11821 = sst [smem:[#allocation13_spill]] %s12796_s26  ;;  %p5771_p8 = por %p5763_p6, %p65_p5 }
  0x18   : > { %p5775_p9 = por %p145_p7, %p59_p1  ;;  %s5781_s6 = ssub.s32 %s5651_s21, %s12796_s26 }
  0x19   : > { %s11822_s4 = scalar_select %p5771_p8, 1, 0 }
  0x1a   : > { %s11823_s5 = scalar_select %p5775_p9, 1, 0 }
  0x1b   : > { %s49_s7 = sor.u32 %s5781_s6, %s45_s28  ;;  %p5785_p13 = por %p151_p10, %p65_p5 }
  0x1c   : > { %11824 = sst [smem:[#allocation14_spill]] %s11823_s5  ;;  %p50_p12 = scmp.eq.s32.totalorder %s49_s7, 0 }
  0x1d   : > { %s11825_s8 = scalar_select %p5785_p13, 1, 0 }
  0x1e   : > { %p11276_p0 = scmp.lt.s32.totalorder %s5655_s22, 4  ;;  %s171_s10 = sand.u32 1, %s5635_s17  }
  0x1f   : > { %s5791_s9 = scalar_select %p50_p12, %s5635_s17, %s52_s27  }
  0x20   : > { %s5101_s11 = sshll.u32 %s5647_s20, 7  ;;  %s5100_s23 = sshll.u32 %s171_s10, 9 }
  0x21   : > { %s183_s26 = sadd.s32 %s5651_s21, %s5101_s11  ;;  %s175_s15 = scalar_lea.vmem [#allocation2], %s5100_s23 }
  0x22   : > { %s5102_s25 = sshll.u32 %s183_s26, 7  ;;  %s186_s24 = sshll.u32 %s175_s15, 4  ;;  %s5801_s24 = int_to_ptr.vmem [resolvable:$true] %s186_s24 }
  0x23   : > { %s5799_s28 = scalar_lea.hbm %s11266_s0, %s5102_s25  ;;  %p5807_p1 = pnand %p11276_p0, %p5757_p3 }
  0x24   : > { %s5812_s15 = scalar_lea.sflag [#allocation3], %s171_s10  ;;  %s5469_s3 = scalar_lea.hbm %s5799_s28, 8192 }
  0x25   : > { %p5470_p5 = scmp.ne.s32.totalorder %s5799_s28, %s5469_s3  ;;  %p5471_p7 = pneg %p5807_p1 }
  0x26   : > { %s5474_s29 = scalar_lea.hbm %s11266_s0, 32768  ;;  %p5475_p3 = scmp.lt.u32.totalorder %s5799_s28, %s11266_s0 }
  0x27   : > { %p5472_p10 = pnand %p5471_p7, %p5470_p5  ;;  %p5476_p0 = scmp.lt.u32.totalorder %s5474_s29, %s5469_s3 }
  0x28   : > { %p5478_p11 = scmp.lt.u32.totalorder %s5469_s3, %s5799_s28 }
  0x29   : > { %p5473_p12 = pneg %p5472_p10  ;;  %p5477_p2 = por %p5476_p0, %p5475_p3 }
  0x2b   : > { %p5479_p4 = por %p5478_p11, %p5477_p2 }
  0x2d   : > { %p5480_p13 = pnand %p5479_p4, %p5473_p12 }
  0x2f   : > { %5483 = shalt.err (!%p5480_p13)
}
  0x30   : > { %s5484_s10 = scalar_lea.vmem %s5801_s24, 8192  ;;  %s5657_s11 = smov [#allocation2]  }
  0x31   : > { %p5485_p5 = scmp.ne.s32.totalorder %s5801_s24, %s5484_s10  ;;  %s5489_s23 = sshll.u32 %s5657_s11, 4  ;;  %s5490_s23 = int_to_ptr.vmem [resolvable:$false] %s5489_s23 }
  0x32   : > { %s5491_s25 = scalar_lea.vmem %s5490_s23, 16384  ;;  %p5492_p8 = scmp.lt.s32.totalorder %s5801_s24, %s5490_s23 }
  0x33   : > { %p5487_p10 = pnand %p5485_p5, %p5471_p7  ;;  %p5493_p0 = scmp.lt.s32.totalorder %s5491_s25, %s5484_s10 }
  0x35   : > { %p5488_p9 = pneg %p5487_p10  ;;  %p5494_p3 = por %p5493_p0, %p5492_p8 }
  0x37   : > { %p5495_p2 = pnand %p5494_p3, %p5488_p9 }
  0x39   : > { %5498 = shalt.err (!%p5495_p2)
}
  0x3a   : > { %s11280_s3 = smov 256   ;;  %s11281_s26 = smov 128  }
  0x3b   : > { %s11282_s29 = smov 8   ;;  %p220_p8 = scmp.lt.s32.totalorder %s5655_s22, 5 }
  0x3c   : > { %5342 = dma.hbm_to_vmem [thread:$0]  (!%p5807_p1), %s5799_s28, 8192, %s5801_s24, %s5812_s15, %s11280_s3, %s11281_s26, %s11282_s29  }
  0x3d   : > { %p11827_p9 = scmp.ge.s32.totalorder %s5655_s22, 1  ;;  %s78_s7 = sadd.s32 1, %s5623_s14 }
  0x3e   : > { %p85_p13 = scmp.ne.s32.totalorder %s5623_s14, %s5619_s13  ;;  %p11829_p4 = scmp.eq.s32.totalorder %s5781_s6, 0 }
  0x3f   : > { %p5846_p11 = pnand %p11827_p9, %p220_p8  ;;  %p11830_p7 = scmp.eq.s32.totalorder %s5655_s22, 0 }
  0x40   : > { %s5856_s10 = scalar_select %p11829_p4, %s5623_s14, %s78_s7  }
  0x41   : > { %p87_p12 = por %p85_p13, %p11830_p7  ;;  %p91_p5 = scmp.ne.s32.totalorder %s5619_s13, %s5615_s12 }
  0x42   : > { %s196_s11 = sand.u32 1, %s5623_s14   ;;  %s5104_s27 = sshll.u32 %s5651_s21, 7 }
  0x43   : > { %p5866_p10 = por %p91_p5, %p5763_p6  ;;  %s5103_s24 = sshll.u32 %s196_s11, 5 }
  0x44   : > { %s5873_s25 = scalar_lea.hbm %s11267_s1, %s5104_s27  ;;  %p11832_p1 = scmp.lt.s32.totalorder %s5655_s22, 4 }
  0x45   : > { %s11831_s23 = scalar_select %p5866_p10, 1, 0 }
  0x46   : > { %p5877_p0 = pnand %p11832_p1, %p87_p12  ;;  %s200_s30 = scalar_lea.vmem [#allocation5], %s5103_s24 }
  0x47   : > { %s206_s6 = sshll.u32 %s200_s30, 4  ;;  %s5883_s7 = scalar_lea.sflag [#allocation6], %s196_s11  ;;  %s5881_s6 = int_to_ptr.vmem [resolvable:$true] %s206_s6 }
  0x48   : > { %s5499_s28 = scalar_lea.hbm %s5873_s25, 512  ;;  %p5501_p3 = pneg %p5877_p0 }
  0x49   : > { %p5500_p6 = scmp.ne.s32.totalorder %s5873_s25, %s5499_s28  ;;  %s5504_s3 = scalar_lea.hbm %s11267_s1, 1024 }
  0x4a   : > { %p5505_p9 = scmp.lt.u32.totalorder %s5873_s25, %s11267_s1  ;;  %p5506_p13 = scmp.lt.u32.totalorder %s5504_s3, %s5499_s28 }
  0x4b   : > { %p5502_p2 = pnand %p5501_p3, %p5500_p6  ;;  %p5508_p7 = scmp.lt.u32.totalorder %s5499_s28, %s5873_s25 }
  0x4c   : > { %p5507_p4 = por %p5506_p13, %p5505_p9 }
  0x4d   : > { %p5503_p8 = pneg %p5502_p2 }
  0x4e   : > { %p5509_p12 = por %p5508_p7, %p5507_p4 }
  0x50   : > { %p5510_p5 = pnand %p5509_p12, %p5503_p8 }
  0x52   : > { %5513 = shalt.err (!%p5510_p5)
}
  0x53   : > { %s5514_s11 = scalar_lea.vmem %s5881_s6, 512  ;;  %s5661_s24 = smov [#allocation5]  }
  0x54   : > { %p5515_p1 = scmp.ne.s32.totalorder %s5881_s6, %s5514_s11  ;;  %s5519_s30 = sshll.u32 %s5661_s24, 4  ;;  %s5520_s30 = int_to_ptr.vmem [resolvable:$false] %s5519_s30 }
  0x55   : > { %s5521_s26 = scalar_lea.vmem %s5520_s30, 1024  ;;  %p5522_p10 = scmp.lt.s32.totalorder %s5881_s6, %s5520_s30 }
  0x56   : > { %p5517_p6 = pnand %p5515_p1, %p5501_p3  ;;  %p5523_p9 = scmp.lt.s32.totalorder %s5521_s26, %s5514_s11 }
  0x58   : > { %p5518_p2 = pneg %p5517_p6  ;;  %p5524_p13 = por %p5523_p9, %p5522_p10 }
  0x5a   : > { %p5525_p4 = pnand %p5524_p13, %p5518_p2 }
  0x5c   : > { %5528 = shalt.err (!%p5525_p4)
}
  0x5d   : > { %s11834_s3 = smov 8   ;;  %s11835_s29 = smov 128  }
  0x5e   : > { %s11836_s28 = smov 256   ;;  %224 = sbr.rel (%p5846_p11) target bundleno = 1036 (0x40c), region = 32 }
  0x5f   : > { %5345 = dma.hbm_to_vmem [thread:$0]  (!%p5877_p0), %s5873_s25, 512, %s5881_s6, %s5883_s7, %s11836_s28, %s11835_s29, %s11834_s3  }
  0x65   : > { %s5917_s27 = sand.u32 1, %s5631_s16   ;;  %p11837_p10 = scmp.ne.s32.totalorder %s11822_s4, 0 }
  0x66   : > { %s5106_s15 = sshll.u32 %s5917_s27, 9  ;;  %s227_s11 = scalar_lea.sflag [#allocation3], %s5917_s27 }
  0x67   : > { %s5923_s12 = scalar_lea.vmem [#allocation2], %s5106_s15 }
  0x68   : > { %5602 = dma.done.wait (%p11837_p10), %s227_s11, 8192  }
  0x69   : > { %5604 = vsyncadd (%p11837_p10), %s227_s11, 4294959104  ;;  %s235_s5 = sand.u32 1, %s5619_s13   ;;  %p11838_p11 = scmp.ne.s32.totalorder %s11831_s23, 0 }
  0x6a   : > { %s5107_s25 = sshll.u32 %s235_s5, 5  ;;  %s236_s6 = scalar_lea.sflag [#allocation6], %s235_s5 }
  0x6b   : > { %s5930_s7 = scalar_lea.vmem [#allocation5], %s5107_s25 }
  0x6c   : > { %5606 = dma.done.wait (%p11838_p11), %s236_s6, 512  }
  0x6d   : > { %5608 = vsyncadd (%p11838_p11), %s236_s6, 4294966784  ;;  %v279_v0 = vlaneseq  ;;  %vm419_vm2 = vcmask 1040384   ;;  %vm447_vm3 = vcmask 1046528   ;;  %v5662_v6 = vmov 0.0   ;;  %v5947_v11 = vld [vmem:[%s5930_s7] sm:$0xff]  ;;  %v5950_v12 = vld [vmem:[%s5930_s7 + $0x8] sm:$0xff] }
  0x6e   : > { %v401_v9 = vrot.slane %v5662_v6, 7  ;;  %v429_v10 = vrot.slane %v5662_v6, 1  ;;  %v5967_v21 = vld [vmem:[%s5930_s7 + $0x10] sm:$0xff]  ;;  %p271_p0 = scmp.lt.s32.totalorder %s5643_s19, 1  ;;  %v6002_v37 = vld [vmem:[%s5930_s7 + $0x18] sm:$0x7] }
  0x6f   : > { %v280_v1 = vshrl.u32 %v279_v0, 7  ;;  %v6011_v41 = vld [vmem:[%s5923_s12] sm:$0xff]  ;;  %v6014_v42 = vld [vmem:[%s5923_s12 + $0x8] sm:$0xff]  ;;  %v6031_v48 = vld [vmem:[%s5923_s12 + $0x10] sm:$0xff]  ;;  %s6394_s26 = scalar_lea.vmem [#allocation7], %s5106_s15  ;;  %s5329_s3 = sshll.u32 %s5639_s18, 7 }
  0x70   : > { %v5991_v32 = vsel %vm419_vm2, 0.0, %v401_v9  ;;  %11848 = vst [vmem:[#allocation24_spill] sm:$0xff] %v6011_v41  ;;  %v6017_v43 = vsel %vm447_vm3, %v429_v10, 0.0  ;;  %s272_s4 = scalar_select %p271_p0, %s5643_s19, 1  ;;  %11851 = vst [vmem:[#allocation27_spill] sm:$0xff] %v6031_v48  ;;  %v6034_v49 = vld [vmem:[%s5923_s12 + $0x18] sm:$0xff] }
  0x71   : > { %vm281_vm0 = vcmp.gt.s32.totalorder %v280_v1, 0  ;;  %vm284_vm1 = vcmp.lt.s32.totalorder %v280_v1, 7  ;;  %v5936_v2 = vsub.s32 0, %v280_v1  ;;  %v5938_v3 = vsub.s32 2, %v280_v1  ;;  %11845 = vst [vmem:[#allocation21_spill] sm:$0xff] %v5991_v32  ;;  %11849 = vst [vmem:[#allocation25_spill] sm:$0xff] %v6017_v43  ;;  %s4966_s28 = sadd.s32 %s5643_s19, %s5329_s3 }
  0x72   : > { %v5940_v4 = vsub.s32 3, %v280_v1  ;;  %v5942_v5 = vsub.s32 5, %v280_v1  ;;  %v5109_v7 = vsel %vm281_vm0, 1.0, %v5662_v6  ;;  %v5944_v8 = vsub.s32 6, %v280_v1  ;;  %s6057_s30 = scalar_lea.vmem %s11268_s2, %s272_s4  ;;  %s12771_s29 = sld [smem:[#allocation14_spill]] }
  0x73   : > { %v5110_v13 = vsel %vm284_vm1, 1.0, %v5662_v6  ;;  %v5952_v14 = vsub.s32 1, %v280_v1  ;;  %v5954_v15 = vsub.s32 4, %v280_v1  ;;  %v5956_v16 = vsub.s32 7, %v280_v1  ;;  %s5330_s15 = sshll.u32 %s4966_s28, 7  ;;  %s4969_s11 = sshll.u32 %s6394_s26, 4  ;;  %s11201_s11 = int_to_ptr.vmem [resolvable:$true] %s4969_s11 }
  0x74   : > { %v290_v17 = vrot.slane %v5947_v11, %v5936_v2  ;;  %v295_v18 = vrot.slane %v5947_v11, %v5938_v3  ;;  %v300_v19 = vrot.slane %v5947_v11, %v5940_v4  ;;  %v305_v20 = vrot.slane %v5947_v11, %v5942_v5  ;;  %s12774_s5 = sld [smem:[#allocation99_spill]]  ;;  %s4952_s19 = scalar_lea.sflag [#allocation4], %s5917_s27 }
  0x75   : > { %v310_v22 = vrot.slane %v5947_v11, %v5944_v8  ;;  %v315_v23 = vrot.slane %v5950_v12, %v5936_v2  ;;  %v320_v24 = vrot.slane %v5950_v12, %v5952_v14  ;;  %v325_v25 = vrot.slane %v5950_v12, %v5940_v4  ;;  %s5529_s6 = scalar_lea.vmem %s11201_s11, 8192  ;;  %s5663_s7 = smov [#allocation7]  }
  0x76   : > { %v5978_v26 = vmul.f32 %v5109_v7, %v290_v17  ;;  %v5980_v27 = vmul.f32 %v5110_v13, %v295_v18  ;;  %v5982_v28 = vmul.f32 %v5109_v7, %v300_v19  ;;  %v5984_v29 = vmul.f32 %v5110_v13, %v305_v20  ;;  %p5530_p3 = scmp.ne.s32.totalorder %s11201_s11, %s5529_s6  ;;  %s5533_s4 = sshll.u32 %s5663_s7, 4  ;;  %s5534_s4 = int_to_ptr.vmem [resolvable:$false] %s5533_s4 }
  0x77   : > { %v5986_v30 = vmul.f32 %v5109_v7, %v310_v22  ;;  %v5988_v31 = vmul.f32 %v5110_v13, %v315_v23  ;;  %v330_v33 = vrot.slane %v5950_v12, %v5954_v15  ;;  %v335_v34 = vrot.slane %v5950_v12, %v5944_v8  ;;  %s5535_s23 = scalar_lea.vmem %s5534_s4, 16384  ;;  %p5536_p5 = scmp.lt.s32.totalorder %s11201_s11, %s5534_s4 }
  0x78   : > { %11839 = vst [vmem:[#allocation15_spill] sm:$0xff] %v5978_v26  ;;  %11840 = vst [vmem:[#allocation16_spill] sm:$0xff] %v5980_v27  ;;  %v340_v35 = vrot.slane %v5950_v12, %v5956_v16  ;;  %v345_v36 = vrot.slane %v5967_v21, %v5952_v14  ;;  %v6004_v38 = vmul.f32 %v5109_v7, %v320_v24  ;;  %v402_v56 = vrot.slane %v6011_v41, 7  ;;  %p12776_p8 = scmp.ne.s32.totalorder %s12771_s29, 0  ;;  %p5537_p1 = scmp.lt.s32.totalorder %s5535_s23, %s5529_s6 }
  0x79   : > { %11841 = vst [vmem:[#allocation17_spill] sm:$0xff] %v5982_v28  ;;  %11842 = vst [vmem:[#allocation18_spill] sm:$0xff] %v5984_v29  ;;  %v6006_v39 = vmul.f32 %v5110_v13, %v325_v25  ;;  %v350_v40 = vrot.slane %v5967_v21, %v5938_v3  ;;  %v6022_v44 = vmul.f32 %v5109_v7, %v330_v33  ;;  %v403_v57 = vrot.slane %v6014_v42, 7 }
  0x7a   : > { %11843 = vst [vmem:[#allocation19_spill] sm:$0xff] %v5986_v30  ;;  %11844 = vst [vmem:[#allocation20_spill] sm:$0xff] %v5988_v31  ;;  %v355_v45 = vrot.slane %v5967_v21, %v5954_v15  ;;  %v360_v46 = vrot.slane %v5967_v21, %v5942_v5  ;;  %v365_v47 = vrot.slane %v5967_v21, %v5956_v16  ;;  %v404_v58 = vrot.slane %v6031_v48, 7  ;;  %v6173_v30 = vld [vmem:[%s5923_s12 + $0x48] sm:$0xff]  ;;  %s11199_s25 = scalar_lea.hbm %s12774_s5, %s5330_s15  ;;  %p5531_p7 = pnand %p5530_p3, %p12776_p8 }
  0x7b   : > { %11846 = vst [vmem:[#allocation22_spill] sm:$0xff] %v6004_v38  ;;  %11847 = vst [vmem:[#allocation23_spill] sm:$0xff] %v6006_v39  ;;  %v6036_v50 = vmul.f32 %v5110_v13, %v335_v34  ;;  %v6038_v51 = vmul.f32 %v5109_v7, %v340_v35  ;;  %v6040_v52 = vmul.f32 %v5110_v13, %v345_v36  ;;  %v405_v59 = vrot.slane %v6034_v49, 7  ;;  %p5538_p6 = por %p5537_p1, %p5536_p5 }
  0x7c   : > { %11850 = vst [vmem:[#allocation26_spill] sm:$0xff] %v6022_v44  ;;  %v6042_v53 = vmul.f32 %v5109_v7, %v350_v40  ;;  %v370_v54 = vrot.slane %v6002_v37, %v5936_v2  ;;  %v375_v55 = vrot.slane %v6002_v37, %v5938_v3  ;;  %v430_v60 = vrot.slane %v6011_v41, 1  ;;  %11874 = vst [vmem:[#allocation50_spill] sm:$0xff] %v6173_v30  ;;  %p5532_p12 = pneg %p5531_p7 }
  0x7d   : > { %11852 = vst [vmem:[#allocation28_spill] sm:$0xff] %v6038_v51  ;;  %v431_v61 = vrot.slane %v6014_v42, 1  ;;  %v6059_v62 = vmul.f32 %v5110_v13, %v355_v45  ;;  %v6061_v63 = vmul.f32 %v5109_v7, %v360_v46  ;;  %v6063_v0 = vmul.f32 %v5110_v13, %v365_v47 }
  0x7e   : > { %11853 = vst [vmem:[#allocation29_spill] sm:$0xff] %v6042_v53  ;;  %v6065_v1 = vmul.f32 %v5109_v7, %v370_v54  ;;  %v6067_v6 = vmul.f32 %v5110_v13, %v375_v55  ;;  %v6070_v9 = vsel %vm419_vm2, 0.0, %v402_v56  ;;  %v432_v10 = vrot.slane %v6031_v48, 1  ;;  %v6088_v13 = vld [vmem:[%s6057_s30] ss:$0 sm:$0xff]  ;;  %p5539_p2 = pnand %p5538_p6, %p5532_p12 }
  0x7f   : > { %11854 = vst [vmem:[#allocation30_spill] sm:$0xff] %v6059_v62  ;;  %11855 = vst [vmem:[#allocation31_spill] sm:$0xff] %v6061_v63  ;;  %v433_v17 = vrot.slane %v6034_v49, 1  ;;  %v6075_v18 = vsel %vm419_vm2, 0.0, %v403_v57  ;;  %v6078_v19 = vsel %vm419_vm2, 0.0, %v404_v58  ;;  %v6081_v20 = vsel %vm419_vm2, 0.0, %v405_v59 }
  0x80   : > { %11856 = vst [vmem:[#allocation32_spill] sm:$0xff] %v6063_v0  ;;  %11857 = vst [vmem:[#allocation33_spill] sm:$0xff] %v6065_v1  ;;  %v6085_v7 = vmul.f32 %v5991_v32, %v6004_v38  ;;  %v6091_v22 = vsel %vm447_vm3, %v430_v60, 0.0  ;;  %v6094_v23 = vsel %vm447_vm3, %v431_v61, 0.0  ;;  %v6098_v24 = vmul.f32 %v6070_v9, %v6004_v38 }
  0x81   : > { %11858 = vst [vmem:[#allocation34_spill] sm:$0xff] %v6067_v6  ;;  %11859 = vst [vmem:[#allocation35_spill] sm:$0xff] %v6070_v9  ;;  %v459_v25 = vmul.f32 %v6075_v18, %v6004_v38  ;;  %v6103_v33 = vsel %vm447_vm3, %v432_v10, 0.0  ;;  %v461_v34 = vmul.f32 %v6081_v20, %v6004_v38  ;;  %v6111_v36 = vrot.slane %v5950_v12, %v5938_v3 }
  0x82   : > { %11860 = vst [vmem:[#allocation36_spill] sm:$0xff] %v6075_v18  ;;  %11861 = vst [vmem:[#allocation37_spill] sm:$0xff] %v6078_v19  ;;  %v465_v35 = vadd.f32 %v6088_v13, %v6085_v7  ;;  %v6114_v40 = vsel %vm447_vm3, %v433_v17, 0.0  ;;  %v6119_v46 = vmul.f32 %v6017_v43, %v6006_v39  ;;  %v495_v47 = vmul.f32 %v6094_v23, %v6006_v39 }
  0x83   : > { %11862 = vst [vmem:[#allocation38_spill] sm:$0xff] %v6081_v20  ;;  %11863 = vst [vmem:[#allocation39_spill] sm:$0xff] %v6085_v7  ;;  %v467_v45 = vadd.f32 %v6088_v13, %v459_v25  ;;  %v469_v54 = vadd.f32 %v6088_v13, %v461_v34  ;;  %v6125_v55 = vmul.f32 0.0, %v6111_v36  ;;  %v479_v3 = vmul.f32 %v6111_v36, %v6014_v42 }
  0x84   : > { %11864 = vst [vmem:[#allocation40_spill] sm:$0xff] %v6091_v22  ;;  %11865 = vst [vmem:[#allocation41_spill] sm:$0xff] %v6094_v23  ;;  %v481_v56 = vmul.f32 %v6111_v36, %v6034_v49  ;;  %v6133_v57 = vmul.f32 %v6078_v19, %v6004_v38  ;;  %v6137_v58 = vmul.f32 %v6091_v22, %v6006_v39 }
  0x85   : > { %11866 = vst [vmem:[#allocation42_spill] sm:$0xff] %v6103_v33  ;;  %11867 = vst [vmem:[#allocation43_spill] sm:$0xff] %v6111_v36  ;;  %v497_v59 = vmul.f32 %v6114_v40, %v6006_v39  ;;  %v509_v60 = vmul.f32 %v6070_v9, %v6022_v44  ;;  %v485_v61 = vadd.f32 %v6125_v55, %v465_v35 }
  0x86   : > { %11868 = vst [vmem:[#allocation44_spill] sm:$0xff] %v6114_v40  ;;  %11869 = vst [vmem:[#allocation45_spill] sm:$0xff] %v6119_v46  ;;  %v487_v10 = vadd.f32 %v479_v3, %v467_v45  ;;  %v489_v17 = vadd.f32 %v481_v56, %v469_v54  ;;  %v511_v25 = vmul.f32 %v6078_v19, %v6022_v44 }
  0x87   : > { %11870 = vst [vmem:[#allocation46_spill] sm:$0xff] %v6125_v55  ;;  %v6148_v34 = vmul.f32 %v6103_v33, %v6006_v39  ;;  %v6152_v7 = vmul.f32 %v6075_v18, %v6022_v44  ;;  %v6156_v31 = vmul.f32 %v6081_v20, %v6022_v44  ;;  %v6160_v35 = vrot.slane %v5950_v12, %v5942_v5  ;;  %v6170_v55 = vld [vmem:[%s5923_s12 + $0x40] sm:$0xff] }
  0x88   : > { %v501_v45 = vadd.f32 %v6119_v46, %v485_v61  ;;  %v503_v54 = vadd.f32 %v495_v47, %v487_v10  ;;  %v545_v3 = vmul.f32 %v6091_v22, %v6036_v50  ;;  %v6167_v56 = vmul.f32 %v6094_v23, %v6036_v50  ;;  %11873 = vst [vmem:[#allocation49_spill] sm:$0xff] %v6170_v55 }
  0x89   : > { %11871 = vst [vmem:[#allocation47_spill] sm:$0xff] %v6160_v35  ;;  %v6175_v29 = vadd.f32 %v497_v59, %v489_v17  ;;  %v529_v5 = vmul.f32 %v6160_v35, %v6011_v41  ;;  %v531_v12 = vmul.f32 %v6160_v35, %v6031_v48  ;;  %v547_v47 = vmul.f32 %v6103_v33, %v6036_v50 }
  0x8a   : > { %11872 = vst [vmem:[#allocation48_spill] sm:$0xff] %v6167_v56  ;;  %v517_v61 = vadd.f32 %v509_v60, %v501_v45  ;;  %v519_v10 = vadd.f32 %v511_v25, %v503_v54  ;;  %v6185_v46 = vmul.f32 %v6114_v40, %v6036_v50  ;;  %v6189_v28 = vrot.slane %v5967_v21, %v5936_v2 }
  0x8b   : > { %11875 = vst [vmem:[#allocation51_spill] sm:$0xff] %v6175_v29  ;;  %v561_v59 = vmul.f32 %v6075_v18, %v6038_v51  ;;  %v630_v17 = vrot.slane %v6170_v55, 7  ;;  %v631_v22 = vrot.slane %v6173_v30, 7  ;;  %v654_v9 = vrot.slane %v6170_v55, 1 }
  0x8c   : > { %11876 = vst [vmem:[#allocation52_spill] sm:$0xff] %v6185_v46  ;;  %11877 = vst [vmem:[#allocation53_spill] sm:$0xff] %v6189_v28  ;;  %v537_v29 = vadd.f32 %v529_v5, %v517_v61  ;;  %v539_v60 = vadd.f32 %v531_v12, %v519_v10  ;;  %v563_v25 = vmul.f32 %v6081_v20, %v6038_v51  ;;  %v655_v46 = vrot.slane %v6173_v30, 1 }
  0x8d   : > { %v597_v45 = vmul.f32 %v6094_v23, %v6040_v52  ;;  %v581_v2 = vmul.f32 %v6189_v28, %v6014_v42  ;;  %v583_v54 = vmul.f32 %v6189_v28, %v6034_v49  ;;  %v599_v18 = vmul.f32 %v6114_v40, %v6040_v52 }
  0x8e   : > { %v553_v56 = vadd.f32 %v545_v3, %v537_v29  ;;  %v555_v5 = vadd.f32 %v547_v47, %v539_v60  ;;  %v6208_v12 = vsel %vm419_vm2, 0.0, %v630_v17  ;;  %v6211_v61 = vsel %vm419_vm2, 0.0, %v631_v22 }
  0x8f   : > { %11878 = vst [vmem:[#allocation54_spill] sm:$0xff] %v6208_v12  ;;  %11879 = vst [vmem:[#allocation55_spill] sm:$0xff] %v6211_v61  ;;  %v6214_v10 = vsel %vm447_vm3, %v654_v9, 0.0  ;;  %v6218_v23 = vmul.f32 %v5991_v32, %v6042_v53  ;;  %v6222_v40 = vmul.f32 %v6208_v12, %v6042_v53  ;;  %v6226_v29 = vrot.slane %v5967_v21, %v5940_v4 }
  0x90   : > { %11880 = vst [vmem:[#allocation56_spill] sm:$0xff] %v6214_v10  ;;  %v569_v3 = vadd.f32 %v561_v59, %v553_v56  ;;  %v571_v47 = vadd.f32 %v563_v25, %v555_v5  ;;  %v6229_v22 = vsel %vm447_vm3, %v655_v46, 0.0  ;;  %v680_v9 = vmul.f32 %v6211_v61, %v6042_v53 }
  0x91   : > { %11881 = vst [vmem:[#allocation57_spill] sm:$0xff] %v6218_v23  ;;  %11882 = vst [vmem:[#allocation58_spill] sm:$0xff] %v6222_v40  ;;  %v6234_v17 = vmul.f32 0.0, %v6226_v29  ;;  %v6238_v60 = vmul.f32 %v6017_v43, %v6059_v62  ;;  %v6242_v4 = vmul.f32 %v6214_v10, %v6059_v62  ;;  %v716_v56 = vmul.f32 %v6229_v22, %v6059_v62 }
  0x92   : > { %11883 = vst [vmem:[#allocation59_spill] sm:$0xff] %v6226_v29  ;;  %11884 = vst [vmem:[#allocation60_spill] sm:$0xff] %v6229_v22  ;;  %v589_v46 = vadd.f32 %v581_v2, %v569_v3  ;;  %v591_v59 = vadd.f32 %v583_v54, %v571_v47  ;;  %v700_v25 = vmul.f32 %v6173_v30, %v6226_v29  ;;  %v6269_v47 = vld [vmem:[%s5923_s12 + $0x20] sm:$0xff] }
  0x93   : > { %11885 = vst [vmem:[#allocation61_spill] sm:$0xff] %v6234_v17  ;;  %11886 = vst [vmem:[#allocation62_spill] sm:$0xff] %v6238_v60  ;;  %v6250_v5 = vrot.slane %v5967_v21, %v5944_v8  ;;  %v730_v20 = vmul.f32 %v6208_v12, %v6061_v63  ;;  %v6256_v40 = vmul.f32 %v6211_v61, %v6061_v63 }
  0x94   : > { %11887 = vst [vmem:[#allocation63_spill] sm:$0xff] %v6242_v4  ;;  %v766_v4 = vmul.f32 %v6214_v10, %v6063_v0  ;;  %v6262_v2 = vmul.f32 %v6229_v22, %v6063_v0  ;;  %v605_v54 = vadd.f32 %v597_v45, %v589_v46  ;;  %v607_v3 = vadd.f32 %v599_v18, %v591_v59 }
  0x95   : > { %11888 = vst [vmem:[#allocation64_spill] sm:$0xff] %v6250_v5  ;;  %11889 = vst [vmem:[#allocation65_spill] sm:$0xff] %v6256_v40  ;;  %v782_v8 = vmul.f32 %v6211_v61, %v6065_v1  ;;  %v906_v21 = vmul.f32 %v5991_v32, %v5978_v26  ;;  %v750_v12 = vmul.f32 %v6170_v55, %v6250_v5  ;;  %v434_v32 = vrot.slane %v6269_v47, 1 }
  0x96   : > { %11890 = vst [vmem:[#allocation66_spill] sm:$0xff] %v6262_v2  ;;  %11891 = vst [vmem:[#allocation67_spill] sm:$0xff] %v6269_v47  ;;  %v6275_v10 = vrot.slane %v6002_v37, %v5952_v14  ;;  %v6279_v2 = vmul.f32 %v6229_v22, %v6067_v6  ;;  %v6283_v18 = vrot.slane %v5947_v11, %v5952_v14  ;;  %v406_v37 = vrot.slane %v6269_v47, 7 }
  0x97   : > { %v686_v45 = vadd.f32 %v6218_v23, %v605_v54  ;;  %v688_v46 = vadd.f32 %v680_v9, %v607_v3  ;;  %v914_v59 = vadd.f32 %v6088_v13, %v906_v21  ;;  %v942_v61 = vmul.f32 %v6017_v43, %v5980_v27 }
  0x98   : > { %11892 = vst [vmem:[#allocation68_spill] sm:$0xff] %v6275_v10  ;;  %11893 = vst [vmem:[#allocation69_spill] sm:$0xff] %v6283_v18  ;;  %v926_v26 = vmul.f32 0.0, %v6283_v18  ;;  %v466_v22 = vadd.f32 %v6088_v13, %v6098_v24  ;;  %v468_v9 = vadd.f32 %v6088_v13, %v6133_v57  ;;  %v478_v54 = vmul.f32 %v6111_v36, %v6011_v41 }
  0x99   : > { %v706_v14 = vadd.f32 %v6234_v17, %v686_v45  ;;  %v708_v40 = vadd.f32 %v700_v25, %v688_v46  ;;  %v802_v3 = vmul.f32 %v6173_v30, %v6275_v10  ;;  %v6302_v23 = vsel %vm419_vm2, 0.0, %v406_v37 }
  0x9a   : > { %v934_v21 = vadd.f32 %v926_v26, %v914_v59  ;;  %11894 = vst [vmem:[#allocation70_spill] sm:$0xff] %v6302_v23  ;;  %v480_v27 = vmul.f32 %v6111_v36, %v6031_v48  ;;  %v6309_v25 = vrot.slane %v5947_v11, %v5954_v15  ;;  %v462_v57 = vmul.f32 %v6302_v23, %v6004_v38 }
  0x9b   : > { %v722_v24 = vadd.f32 %v6238_v60, %v706_v14  ;;  %v482_v45 = vmul.f32 %v6111_v36, %v6269_v47  ;;  %v6317_v26 = vrot.slane %v5947_v11, %v5956_v16  ;;  %v6320_v46 = vsel %vm447_vm3, %v434_v32, 0.0 }
  0x9c   : > { %11895 = vst [vmem:[#allocation71_spill] sm:$0xff] %v6309_v25  ;;  %11897 = vst [vmem:[#allocation73_spill] sm:$0xff] %v6320_v46  ;;  %v486_v59 = vadd.f32 %v478_v54, %v466_v22  ;;  %v488_v37 = vadd.f32 %v480_v27, %v468_v9  ;;  %v6322_v14 = vadd.f32 %v716_v56, %v708_v40  ;;  %v6338_v40 = vld [vmem:[%s5923_s12 + $0x50] sm:$0xff] }
  0x9d   : > { %11896 = vst [vmem:[#allocation72_spill] sm:$0xff] %v6317_v26  ;;  %v738_v15 = vadd.f32 %v730_v20, %v722_v24  ;;  %v6324_v60 = vadd.f32 %v942_v61, %v934_v21  ;;  %v470_v17 = vadd.f32 %v6088_v13, %v462_v57  ;;  %v530_v11 = vmul.f32 %v6160_v35, %v6014_v42 }
  0x9e   : > { %v502_v25 = vadd.f32 %v6137_v58, %v486_v59  ;;  %v504_v41 = vadd.f32 %v6148_v34, %v488_v37  ;;  %v532_v16 = vmul.f32 %v6160_v35, %v6034_v49  ;;  %v498_v27 = vmul.f32 %v6320_v46, %v6006_v39  ;;  %11899 = vst [vmem:[#allocation75_spill] sm:$0xff] %v6338_v40  ;;  %v11901_v37 = vld [vmem:[#allocation52_spill] sm:$0xff] }
  0x9f   : > { %11898 = vst [vmem:[#allocation74_spill] sm:$0xff] %v6324_v60  ;;  %v758_v32 = vadd.f32 %v750_v12, %v738_v15  ;;  %v490_v22 = vadd.f32 %v482_v45, %v470_v17  ;;  %v513_v20 = vmul.f32 %v6302_v23, %v6022_v44  ;;  %v549_v61 = vmul.f32 %v6320_v46, %v6036_v50  ;;  %v11900_v45 = vld [vmem:[#allocation48_spill] sm:$0xff] }
  0xa0   : > { %v518_v58 = vadd.f32 %v6152_v7, %v502_v25  ;;  %v520_v34 = vadd.f32 %v6156_v31, %v504_v41  ;;  %v562_v56 = vmul.f32 %v6078_v19, %v6038_v51  ;;  %v564_v17 = vmul.f32 %v6302_v23, %v6038_v51 }
  0xa1   : > { %v774_v12 = vadd.f32 %v766_v4, %v758_v32  ;;  %v582_v9 = vmul.f32 %v6189_v28, %v6031_v48  ;;  %v584_v54 = vmul.f32 %v6189_v28, %v6269_v47  ;;  %v632_v31 = vrot.slane %v6338_v40, 7  ;;  %v6367_v32 = vld [vmem:[%s5923_s12 + $0x28] sm:$0xff] }
  0xa2   : > { %v538_v7 = vadd.f32 %v530_v11, %v518_v58  ;;  %v540_v21 = vadd.f32 %v532_v16, %v520_v34  ;;  %v656_v41 = vrot.slane %v6338_v40, 1  ;;  %v6354_v25 = vadd.f32 %v498_v27, %v490_v22 }
  0xa3   : > { %v790_v24 = vadd.f32 %v782_v8, %v774_v12  ;;  %v598_v4 = vmul.f32 %v6103_v33, %v6040_v52  ;;  %v600_v57 = vmul.f32 %v6320_v46, %v6040_v52  ;;  %v699_v11 = vmul.f32 %v6170_v55, %v6226_v29  ;;  %v6412_v55 = vld [vmem:[%s5923_s12 + $0x58] sm:$0xff] }
  0xa4   : > { %v554_v59 = vadd.f32 %v11900_v45, %v538_v7  ;;  %v556_v15 = vadd.f32 %v11901_v37, %v540_v21  ;;  %v701_v16 = vmul.f32 %v6338_v40, %v6226_v29  ;;  %v6370_v22 = vsel %vm419_vm2, 0.0, %v632_v31 }
  0xa5   : > { %v810_v8 = vadd.f32 %v802_v3, %v790_v24  ;;  %11902 = vst [vmem:[#allocation48_spill] sm:$0xff] %v6370_v22  ;;  %v6373_v27 = vsel %vm447_vm3, %v656_v41, 0.0  ;;  %v751_v58 = vmul.f32 %v6173_v30, %v6250_v5  ;;  %v681_v7 = vmul.f32 %v6370_v22, %v6042_v53 }
  0xa6   : > { %11903 = vst [vmem:[#allocation52_spill] sm:$0xff] %v6373_v27  ;;  %v570_v34 = vadd.f32 %v562_v56, %v554_v59  ;;  %v572_v12 = vadd.f32 %v564_v17, %v556_v15  ;;  %v717_v21 = vmul.f32 %v6373_v27, %v6059_v62  ;;  %v732_v31 = vmul.f32 %v6370_v22, %v6061_v63 }
  0xa7   : > { %v826_v3 = vadd.f32 %v6279_v2, %v810_v8  ;;  %v768_v41 = vmul.f32 %v6373_v27, %v6063_v0  ;;  %v407_v24 = vrot.slane %v6367_v32, 7  ;;  %v6389_v17 = vmul.f32 %v6370_v22, %v6065_v1 }
  0xa8   : > { %v590_v45 = vadd.f32 %v582_v9, %v570_v34  ;;  %v592_v56 = vadd.f32 %v584_v54, %v572_v12  ;;  %v435_v59 = vrot.slane %v6367_v32, 1  ;;  %v6399_v2 = vmul.f32 %v6338_v40, %v6275_v10  ;;  %v11904_v9 = vld [vmem:[#allocation51_spill] sm:$0xff] }
  0xa9   : > { %834 = vst [vmem:[%s6394_s26] sm:$0xff] %v826_v3  ;;  %v6402_v37 = vsel %vm419_vm2, 0.0, %v407_v24  ;;  %v521_v54 = vadd.f32 %v513_v20, %v11904_v9  ;;  %v533_v15 = vmul.f32 %v6160_v35, %v6269_v47  ;;  %v483_v3 = vmul.f32 %v6111_v36, %v6367_v32 }
  0xaa   : > { %v606_v8 = vadd.f32 %v598_v4, %v590_v45  ;;  %v608_v34 = vadd.f32 %v600_v57, %v592_v56  ;;  %v463_v12 = vmul.f32 %v6402_v37, %v6004_v38  ;;  %v6416_v30 = vmul.f32 %v6373_v27, %v6067_v6  ;;  %v11905_v57 = vld [vmem:[#allocation58_spill] sm:$0xff] }
  0xab   : > { %v6419_v24 = vsel %vm447_vm3, %v435_v59, 0.0  ;;  %v541_v20 = vadd.f32 %v533_v15, %v521_v54  ;;  %v585_v4 = vmul.f32 %v6189_v28, %v6367_v32  ;;  %v565_v22 = vmul.f32 %v6402_v37, %v6038_v51 }
  0xac   : > { %v687_v45 = vadd.f32 %v11905_v57, %v606_v8  ;;  %v689_v56 = vadd.f32 %v681_v7, %v608_v34  ;;  %v471_v9 = vadd.f32 %v6088_v13, %v463_v12  ;;  %v499_v26 = vmul.f32 %v6419_v24, %v6006_v39 }
  0xad   : > { %v557_v27 = vadd.f32 %v549_v61, %v541_v20  ;;  %v633_v59 = vrot.slane %v6412_v55, 7  ;;  %v657_v54 = vrot.slane %v6412_v55, 1  ;;  %v514_v7 = vmul.f32 %v6402_v37, %v6022_v44  ;;  %v11906_v61 = vld [vmem:[#allocation63_spill] sm:$0xff] }
  0xae   : > { %v707_v15 = vadd.f32 %v699_v11, %v687_v45  ;;  %v709_v47 = vadd.f32 %v701_v16, %v689_v56  ;;  %v491_v48 = vadd.f32 %v483_v3, %v471_v9  ;;  %v550_v8 = vmul.f32 %v6419_v24, %v6036_v50  ;;  %v6448_v3 = vld [vmem:[%s5923_s12 + $0x30] sm:$0xff] }
  0xaf   : > { %v573_v34 = vadd.f32 %v565_v22, %v557_v27  ;;  %v601_v12 = vmul.f32 %v6419_v24, %v6040_v52  ;;  %v740_v57 = vadd.f32 %v732_v31, %v6322_v14  ;;  %v6440_v60 = vsel %vm419_vm2, 0.0, %v633_v59  ;;  %v11908_v31 = vld [vmem:[#allocation65_spill] sm:$0xff] }
  0xb0   : > { %v723_v20 = vadd.f32 %v11906_v61, %v707_v15  ;;  %v6443_v11 = vsel %vm447_vm3, %v657_v54, 0.0  ;;  %v702_v16 = vmul.f32 %v6412_v55, %v6226_v29  ;;  %v725_v45 = vadd.f32 %v717_v21, %v709_v47 }
  0xb1   : > { %11907 = vst [vmem:[#allocation51_spill] sm:$0xff] %v6443_v11  ;;  %v593_v22 = vadd.f32 %v585_v4, %v573_v34  ;;  %v682_v27 = vmul.f32 %v6440_v60, %v6042_v53  ;;  %v752_v14 = vmul.f32 %v6338_v40, %v6250_v5  ;;  %v507_v9 = vadd.f32 %v499_v26, %v491_v48 }
  0xb2   : > { %v739_v56 = vadd.f32 %v11908_v31, %v723_v20  ;;  %v718_v59 = vmul.f32 %v6443_v11, %v6059_v62  ;;  %v733_v54 = vmul.f32 %v6440_v60, %v6061_v63  ;;  %v784_v47 = vmul.f32 %v6440_v60, %v6065_v1 }
  0xb3   : > { %v609_v15 = vadd.f32 %v601_v12, %v593_v22  ;;  %v760_v61 = vadd.f32 %v752_v14, %v740_v57  ;;  %v408_v21 = vrot.slane %v6448_v3, 7  ;;  %v804_v34 = vmul.f32 %v6412_v55, %v6275_v10  ;;  %v11909_v57 = vld [vmem:[#allocation66_spill] sm:$0xff] }
  0xb4   : > { %v759_v4 = vadd.f32 %v751_v58, %v739_v56  ;;  %v436_v48 = vrot.slane %v6448_v3, 1  ;;  %v522_v26 = vadd.f32 %v514_v7, %v6354_v25  ;;  %v534_v12 = vmul.f32 %v6160_v35, %v6367_v32 }
  0xb5   : > { %v690_v20 = vadd.f32 %v682_v27, %v609_v15  ;;  %v776_v31 = vadd.f32 %v768_v41, %v760_v61  ;;  %v6467_v40 = vsel %vm419_vm2, 0.0, %v408_v21  ;;  %v769_v58 = vmul.f32 %v6443_v11, %v6063_v0  ;;  %v6484_v15 = vld [vmem:[%s5923_s12 + $0x60] sm:$0xff] }
  0xb6   : > { %v775_v22 = vadd.f32 %v11909_v57, %v759_v4  ;;  %v464_v14 = vmul.f32 %v6467_v40, %v6004_v38  ;;  %v484_v56 = vmul.f32 %v6111_v36, %v6448_v3  ;;  %v820_v41 = vmul.f32 %v6443_v11, %v6067_v6  ;;  %11911 = vst [vmem:[#allocation63_spill] sm:$0xff] %v6484_v15 }
  0xb7   : > { %v792_v25 = vadd.f32 %v784_v47, %v776_v31  ;;  %v6481_v7 = vsel %vm447_vm3, %v436_v48, 0.0  ;;  %v542_v27 = vadd.f32 %v534_v12, %v522_v26  ;;  %v515_v4 = vmul.f32 %v6467_v40, %v6022_v44 }
  0xb8   : > { %11910 = vst [vmem:[#allocation58_spill] sm:$0xff] %v6481_v7  ;;  %v791_v61 = vadd.f32 %v6389_v17, %v775_v22  ;;  %v472_v21 = vadd.f32 %v6088_v13, %v464_v14  ;;  %v566_v57 = vmul.f32 %v6467_v40, %v6038_v51  ;;  %v710_v47 = vadd.f32 %v702_v16, %v690_v20 }
  0xb9   : > { %v812_v31 = vadd.f32 %v804_v34, %v792_v25  ;;  %v558_v11 = vadd.f32 %v550_v8, %v542_v27  ;;  %v586_v48 = vmul.f32 %v6189_v28, %v6448_v3  ;;  %v500_v17 = vmul.f32 %v6481_v7, %v6006_v39  ;;  %v6508_v25 = vld [vmem:[%s5923_s12 + $0x38] sm:$0xff] }
  0xba   : > { %v811_v26 = vadd.f32 %v6399_v2, %v791_v61  ;;  %v492_v12 = vadd.f32 %v484_v56, %v472_v21  ;;  %v634_v22 = vrot.slane %v6484_v15, 7  ;;  %v602_v16 = vmul.f32 %v6481_v7, %v6040_v52  ;;  %11913 = vst [vmem:[#allocation66_spill] sm:$0xff] %v6508_v25 }
  0xbb   : > { %v828_v14 = vadd.f32 %v820_v41, %v812_v31  ;;  %v574_v36 = vadd.f32 %v566_v57, %v558_v11  ;;  %v658_v8 = vrot.slane %v6484_v15, 1  ;;  %v551_v2 = vmul.f32 %v6481_v7, %v6036_v50  ;;  %v11947_v7 = vld [vmem:[#allocation27_spill] sm:$0xff] }
  0xbc   : > { %v827_v34 = vadd.f32 %v6416_v30, %v811_v26  ;;  %v6505_v20 = vsel %vm419_vm2, 0.0, %v634_v22  ;;  %v741_v56 = vadd.f32 %v733_v54, %v725_v45  ;;  %v726_v27 = vadd.f32 %v718_v59, %v710_v47  ;;  %v6524_v59 = vld [vmem:[%s5923_s12 + $0x68] sm:$0xff] }
  0xbd   : > { %11912 = vst [vmem:[#allocation65_spill] sm:$0xff] %v6505_v20  ;;  %836 = vst [vmem:[%s6394_s26 + $0x10] sm:$0xff] %v828_v14  ;;  %v594_v11 = vadd.f32 %v586_v48, %v574_v36  ;;  %v683_v41 = vmul.f32 %v6505_v20, %v6042_v53  ;;  %v703_v61 = vmul.f32 %v6484_v15, %v6226_v29  ;;  %v6517_v21 = vsel %vm447_vm3, %v658_v8, 0.0 }
  0xbe   : > { %835 = vst [vmem:[%s6394_s26 + $0x8] sm:$0xff] %v827_v34  ;;  %v508_v30 = vadd.f32 %v500_v17, %v492_v12  ;;  %11914 = vst [vmem:[#allocation76_spill] sm:$0xff] %v6517_v21  ;;  %v734_v57 = vmul.f32 %v6505_v20, %v6061_v63  ;;  %v753_v45 = vmul.f32 %v6412_v55, %v6250_v5  ;;  %v409_v31 = vrot.slane %v6508_v25, 7 }
  0xbf   : > { %11915 = vst [vmem:[#allocation77_spill] sm:$0xff] %v6524_v59  ;;  %v610_v36 = vadd.f32 %v602_v16, %v594_v11  ;;  %v719_v54 = vmul.f32 %v6517_v21, %v6059_v62  ;;  %v785_v47 = vmul.f32 %v6505_v20, %v6065_v1  ;;  %v437_v26 = vrot.slane %v6508_v25, 1 }
  0xc0   : > { %v761_v48 = vadd.f32 %v753_v45, %v741_v56  ;;  %v523_v12 = vadd.f32 %v515_v4, %v507_v9  ;;  %v535_v17 = vmul.f32 %v6160_v35, %v6448_v3  ;;  %v770_v14 = vmul.f32 %v6517_v21, %v6063_v0 }
  0xc1   : > { %v691_v22 = vadd.f32 %v683_v41, %v610_v36  ;;  %v805_v16 = vmul.f32 %v6484_v15, %v6275_v10  ;;  %v635_v8 = vrot.slane %v6524_v59, 7  ;;  %v821_v11 = vmul.f32 %v6517_v21, %v6067_v6 }
  0xc2   : > { %v777_v34 = vadd.f32 %v769_v58, %v761_v48  ;;  %v6542_v56 = vsel %vm419_vm2, 0.0, %v409_v31  ;;  %v543_v9 = vadd.f32 %v535_v17, %v523_v12  ;;  %v6545_v45 = vsel %vm447_vm3, %v437_v26, 0.0 }
  0xc3   : > { %11916 = vst [vmem:[#allocation78_spill] sm:$0xff] %v6542_v56  ;;  %v711_v4 = vadd.f32 %v703_v61, %v691_v22  ;;  %11917 = vst [vmem:[#allocation79_spill] sm:$0xff] %v6545_v45  ;;  %v567_v41 = vmul.f32 %v6542_v56, %v6038_v51  ;;  %v587_v36 = vmul.f32 %v6189_v28, %v6508_v25  ;;  %v659_v31 = vrot.slane %v6524_v59, 1 }
  0xc4   : > { %v793_v20 = vadd.f32 %v785_v47, %v777_v34  ;;  %v516_v58 = vmul.f32 %v6542_v56, %v6022_v44  ;;  %v559_v48 = vadd.f32 %v551_v2, %v543_v9  ;;  %v552_v61 = vmul.f32 %v6545_v45, %v6036_v50 }
  0xc5   : > { %v727_v21 = vadd.f32 %v719_v54, %v711_v4  ;;  %v603_v26 = vmul.f32 %v6545_v45, %v6040_v52  ;;  %v6559_v12 = vsel %vm419_vm2, 0.0, %v635_v8  ;;  %v742_v34 = vadd.f32 %v734_v57, %v726_v27  ;;  %v6573_v4 = vld [vmem:[%s5923_s12 + $0x70] sm:$0xff] }
  0xc6   : > { %11918 = vst [vmem:[#allocation80_spill] sm:$0xff] %v6559_v12  ;;  %v813_v17 = vadd.f32 %v805_v16, %v793_v20  ;;  %v575_v22 = vadd.f32 %v567_v41, %v559_v48  ;;  %v684_v47 = vmul.f32 %v6559_v12, %v6042_v53  ;;  %v6564_v2 = vsel %vm447_vm3, %v659_v31, 0.0  ;;  %11920 = vst [vmem:[#allocation82_spill] sm:$0xff] %v6573_v4 }
  0xc7   : > { %11919 = vst [vmem:[#allocation81_spill] sm:$0xff] %v6564_v2  ;;  %v704_v54 = vmul.f32 %v6524_v59, %v6226_v29  ;;  %v735_v9 = vmul.f32 %v6559_v12, %v6061_v63  ;;  %v754_v8 = vmul.f32 %v6484_v15, %v6250_v5  ;;  %v720_v41 = vmul.f32 %v6564_v2, %v6059_v62 }
  0xc8   : > { %v829_v20 = vadd.f32 %v821_v11, %v813_v17  ;;  %v595_v16 = vadd.f32 %v587_v36, %v575_v22  ;;  %v771_v27 = vmul.f32 %v6564_v2, %v6063_v0  ;;  %v786_v48 = vmul.f32 %v6559_v12, %v6065_v1 }
  0xc9   : > { %v762_v57 = vadd.f32 %v754_v8, %v742_v34  ;;  %v524_v31 = vadd.f32 %v516_v58, %v508_v30  ;;  %v536_v45 = vmul.f32 %v6160_v35, %v6508_v25  ;;  %v806_v11 = vmul.f32 %v6524_v59, %v6275_v10  ;;  %v11921_v8 = vld [vmem:[#allocation21_spill] sm:$0xff] }
  0xca   : > { %837 = vst [vmem:[%s6394_s26 + $0x18] sm:$0xff] %v829_v20  ;;  %v611_v56 = vadd.f32 %v603_v26, %v595_v16  ;;  %v822_v36 = vmul.f32 %v6564_v2, %v6067_v6  ;;  %v636_v17 = vrot.slane %v6573_v4, 7  ;;  %v6591_v12 = vmul.f32 %v11921_v8, %v6038_v51 }
  0xcb   : > { %v778_v22 = vadd.f32 %v770_v14, %v762_v57  ;;  %v544_v34 = vadd.f32 %v536_v45, %v524_v31  ;;  %v660_v30 = vrot.slane %v6573_v4, 1  ;;  %v6595_v26 = vmul.f32 0.0, %v6189_v28 }
  0xcc   : > { %11922 = vst [vmem:[#allocation83_spill] sm:$0xff] %v6591_v12  ;;  %v692_v58 = vadd.f32 %v684_v47, %v611_v56  ;;  %v743_v20 = vadd.f32 %v735_v9, %v727_v21  ;;  %v755_v16 = vmul.f32 %v6524_v59, %v6250_v5  ;;  %v6601_v14 = vmul.f32 %v6017_v43, %v6040_v52  ;;  %v6612_v47 = vld [vmem:[%s5923_s12 + $0x78] sm:$0xff] }
  0xcd   : > { %11923 = vst [vmem:[#allocation84_spill] sm:$0xff] %v6595_v26  ;;  %v794_v2 = vadd.f32 %v786_v48, %v778_v22  ;;  %v560_v25 = vadd.f32 %v552_v61, %v544_v34  ;;  %v6604_v45 = vsel %vm419_vm2, 0.0, %v636_v17  ;;  %v6607_v31 = vsel %vm447_vm3, %v660_v30, 0.0  ;;  %11927 = vst [vmem:[#allocation88_spill] sm:$0xff] %v6612_v47 }
  0xce   : > { %11924 = vst [vmem:[#allocation85_spill] sm:$0xff] %v6601_v14  ;;  %11925 = vst [vmem:[#allocation86_spill] sm:$0xff] %v6604_v45  ;;  %v712_v57 = vadd.f32 %v704_v54, %v692_v58  ;;  %v736_v56 = vmul.f32 %v6604_v45, %v6061_v63  ;;  %v763_v21 = vadd.f32 %v755_v16, %v743_v20 }
  0xcf   : > { %11926 = vst [vmem:[#allocation87_spill] sm:$0xff] %v6607_v31  ;;  %v814_v9 = vadd.f32 %v806_v11, %v794_v2  ;;  %v576_v61 = vadd.f32 %v6591_v12, %v560_v25  ;;  %v685_v48 = vmul.f32 %v6604_v45, %v6042_v53  ;;  %v787_v17 = vmul.f32 %v6604_v45, %v6065_v1  ;;  %v11937_v45 = vld [vmem:[#allocation16_spill] sm:$0xff] }
  0xd0   : > { %v728_v54 = vadd.f32 %v720_v41, %v712_v57  ;;  %v772_v22 = vmul.f32 %v6607_v31, %v6063_v0  ;;  %v779_v34 = vadd.f32 %v771_v27, %v763_v21  ;;  %v807_v30 = vmul.f32 %v6573_v4, %v6275_v10 }
  0xd1   : > { %v830_v58 = vadd.f32 %v822_v36, %v814_v9  ;;  %v596_v2 = vadd.f32 %v6595_v26, %v576_v61  ;;  %v637_v11 = vrot.slane %v6612_v47, 7  ;;  %v661_v25 = vrot.slane %v6612_v47, 1 }
  0xd2   : > { %v795_v20 = vadd.f32 %v787_v17, %v779_v34  ;;  %v823_v16 = vmul.f32 %v6607_v31, %v6067_v6  ;;  %v744_v12 = vadd.f32 %v736_v56, %v728_v54  ;;  %v756_v41 = vmul.f32 %v6573_v4, %v6250_v5 }
  0xd3   : > { %838 = vst [vmem:[%s6394_s26 + $0x20] sm:$0xff] %v830_v58  ;;  %v612_v27 = vadd.f32 %v6601_v14, %v596_v2  ;;  %v705_v36 = vmul.f32 %v6573_v4, %v6226_v29  ;;  %v721_v57 = vmul.f32 %v6607_v31, %v6059_v62  ;;  %v808_v21 = vmul.f32 %v6612_v47, %v6275_v10 }
  0xd4   : > { %v815_v9 = vadd.f32 %v807_v30, %v795_v20  ;;  %v6639_v61 = vsel %vm419_vm2, 0.0, %v637_v11  ;;  %v6642_v56 = vsel %vm447_vm3, %v661_v25, 0.0  ;;  %v764_v17 = vadd.f32 %v756_v41, %v744_v12  ;;  %v11932_v41 = vld [vmem:[#allocation15_spill] sm:$0xff] }
  0xd5   : > { %11928 = vst [vmem:[#allocation89_spill] sm:$0xff] %v6639_v61  ;;  %11929 = vst [vmem:[#allocation90_spill] sm:$0xff] %v6642_v56  ;;  %v693_v54 = vadd.f32 %v685_v48, %v612_v27  ;;  %v737_v34 = vmul.f32 %v6639_v61, %v6061_v63  ;;  %v788_v58 = vmul.f32 %v6639_v61, %v6065_v1  ;;  %v6659_v48 = vmul.f32 0.0, %v6275_v10  ;;  %v11933_v27 = vld [vmem:[#allocation36_spill] sm:$0xff] }
  0xd6   : > { %v757_v2 = vmul.f32 %v6612_v47, %v6250_v5  ;;  %v831_v14 = vadd.f32 %v823_v16, %v815_v9  ;;  %v773_v30 = vmul.f32 %v6642_v56, %v6063_v0  ;;  %v780_v11 = vadd.f32 %v772_v22, %v764_v17  ;;  %v11935_v22 = vld [vmem:[#allocation38_spill] sm:$0xff] }
  0xd7   : > { %v824_v25 = vmul.f32 %v6642_v56, %v6067_v6  ;;  %v713_v20 = vadd.f32 %v705_v36, %v693_v54  ;;  %v6656_v12 = vmul.f32 %v11921_v8, %v6065_v1  ;;  %11931 = vst [vmem:[#allocation92_spill] sm:$0xff] %v6659_v48  ;;  %v908_v26 = vmul.f32 %v11933_v27, %v11932_v41 }
  0xd8   : > { %839 = vst [vmem:[%s6394_s26 + $0x28] sm:$0xff] %v831_v14  ;;  %v796_v16 = vadd.f32 %v788_v58, %v780_v11  ;;  %v6666_v9 = vmul.f32 %v6017_v43, %v6067_v6  ;;  %v910_v17 = vmul.f32 %v11935_v22, %v11932_v41  ;;  %v912_v36 = vmul.f32 %v6402_v37, %v11932_v41  ;;  %v11938_v43 = vld [vmem:[#allocation41_spill] sm:$0xff] }
  0xd9   : > { %11930 = vst [vmem:[#allocation91_spill] sm:$0xff] %v6656_v12  ;;  %v729_v54 = vadd.f32 %v721_v57, %v713_v20  ;;  %v916_v56 = vadd.f32 %v6088_v13, %v908_v26  ;;  %v928_v47 = vmul.f32 %v6283_v18, %v6014_v42  ;;  %v930_v14 = vmul.f32 %v6283_v18, %v6034_v49  ;;  %v11936_v57 = vld [vmem:[#allocation35_spill] sm:$0xff]  ;;  %v11942_v6 = vld [vmem:[#allocation17_spill] sm:$0xff] }
  0xda   : > { %11934 = vst [vmem:[#allocation36_spill] sm:$0xff] %v6666_v9  ;;  %v816_v58 = vadd.f32 %v808_v21, %v796_v16  ;;  %v918_v11 = vadd.f32 %v6088_v13, %v910_v17  ;;  %v920_v61 = vadd.f32 %v6088_v13, %v912_v36  ;;  %v932_v31 = vmul.f32 %v6283_v18, %v6367_v32 }
  0xdb   : > { %v745_v4 = vadd.f32 %v737_v34, %v729_v54  ;;  %v6683_v20 = vmul.f32 %v11936_v57, %v11932_v41  ;;  %v936_v26 = vadd.f32 %v928_v47, %v916_v56  ;;  %v944_v8 = vmul.f32 %v11938_v43, %v11937_v45  ;;  %v11939_v34 = vld [vmem:[#allocation44_spill] sm:$0xff] }
  0xdc   : > { %v832_v59 = vadd.f32 %v824_v25, %v816_v58  ;;  %v6689_v21 = vmul.f32 %v6078_v19, %v11932_v41  ;;  %v938_v16 = vadd.f32 %v930_v14, %v918_v11  ;;  %v940_v17 = vadd.f32 %v932_v31, %v920_v61  ;;  %v11940_v56 = vld [vmem:[#allocation40_spill] sm:$0xff] }
  0xdd   : > { %v765_v36 = vadd.f32 %v757_v2, %v745_v4  ;;  %v6693_v15 = vmul.f32 %v6302_v23, %v11932_v41  ;;  %v946_v54 = vmul.f32 %v11939_v34, %v11937_v45  ;;  %v948_v47 = vmul.f32 %v6419_v24, %v11937_v45 }
  0xde   : > { %840 = vst [vmem:[%s6394_s26 + $0x30] sm:$0xff] %v832_v59  ;;  %v6702_v25 = vmul.f32 %v11940_v56, %v11937_v45  ;;  %v952_v58 = vadd.f32 %v944_v8, %v936_v26  ;;  %v958_v31 = vmul.f32 %v11936_v57, %v11942_v6  ;;  %v960_v4 = vmul.f32 %v6078_v19, %v11942_v6  ;;  %v11944_v26 = vld [vmem:[#allocation74_spill] sm:$0xff] }
  0xdf   : > { %v781_v61 = vadd.f32 %v773_v30, %v765_v36  ;;  %v6710_v2 = vmul.f32 %v6103_v33, %v11937_v45  ;;  %v954_v14 = vadd.f32 %v946_v54, %v938_v16  ;;  %v6712_v11 = vadd.f32 %v948_v47, %v940_v17  ;;  %v11945_v30 = vld [vmem:[#allocation24_spill] sm:$0xff]  ;;  %v11946_v36 = vld [vmem:[#allocation71_spill] sm:$0xff] }
  0xe0   : > { %11941 = vst [vmem:[#allocation38_spill] sm:$0xff] %v6702_v25  ;;  %v6716_v59 = vmul.f32 %v6320_v46, %v11937_v45  ;;  %v962_v8 = vmul.f32 %v6302_v23, %v11942_v6  ;;  %v966_v57 = vadd.f32 %v958_v31, %v11944_v26  ;;  %v968_v10 = vadd.f32 %v960_v4, %v952_v58  ;;  %v11948_v17 = vld [vmem:[#allocation67_spill] sm:$0xff]  ;;  %v11949_v23 = vld [vmem:[#allocation18_spill] sm:$0xff] }
  0xe1   : > { %11943 = vst [vmem:[#allocation35_spill] sm:$0xff] %v6712_v11  ;;  %v797_v19 = vadd.f32 %v6656_v12, %v781_v61  ;;  %v978_v25 = vmul.f32 %v11946_v36, %v11945_v30  ;;  %v980_v16 = vmul.f32 %v11946_v36, %v11947_v7  ;;  %v982_v54 = vmul.f32 %v11946_v36, %v11948_v17 }
  0xe2   : > { %v6730_v47 = vmul.f32 %v11933_v27, %v11942_v6  ;;  %v970_v11 = vadd.f32 %v962_v8, %v954_v14  ;;  %v994_v31 = vmul.f32 %v11940_v56, %v11949_v23  ;;  %v996_v58 = vmul.f32 %v6103_v33, %v11949_v23  ;;  %v11951_v8 = vld [vmem:[#allocation19_spill] sm:$0xff] }
  0xe3   : > { %v817_v4 = vadd.f32 %v6659_v48, %v797_v19  ;;  %v6739_v7 = vmul.f32 %v11935_v22, %v11942_v6  ;;  %v986_v61 = vadd.f32 %v978_v25, %v966_v57  ;;  %v988_v30 = vadd.f32 %v980_v16, %v968_v10  ;;  %v11952_v57 = vld [vmem:[#allocation72_spill] sm:$0xff] }
  0xe4   : > { %v6743_v26 = vmul.f32 %v6402_v37, %v11942_v6  ;;  %v990_v14 = vadd.f32 %v982_v54, %v970_v11  ;;  %v998_v56 = vmul.f32 %v6320_v46, %v11949_v23  ;;  %v1010_v12 = vmul.f32 %v11933_v27, %v11951_v8 }
  0xe5   : > { %11950 = vst [vmem:[#allocation41_spill] sm:$0xff] %v6739_v7  ;;  %v833_v19 = vadd.f32 %v6666_v9, %v817_v4  ;;  %v1002_v48 = vadd.f32 %v994_v31, %v986_v61  ;;  %v1004_v33 = vadd.f32 %v996_v58, %v988_v30  ;;  %v1012_v7 = vmul.f32 %v11935_v22, %v11951_v8  ;;  %v11953_v58 = vld [vmem:[#allocation20_spill] sm:$0xff] }
  0xe6   : > { %v1006_v25 = vadd.f32 %v998_v56, %v990_v14  ;;  %v1014_v10 = vmul.f32 %v6402_v37, %v11951_v8  ;;  %v1030_v11 = vmul.f32 %v11952_v57, %v6014_v42  ;;  %v1032_v16 = vmul.f32 %v11952_v57, %v6034_v49  ;;  %v11955_v14 = vld [vmem:[#allocation54_spill] sm:$0xff] }
  0xe7   : > { %841 = vst [vmem:[%s6394_s26 + $0x38] sm:$0xff] %v833_v19  ;;  %v1018_v54 = vadd.f32 %v1010_v12, %v1002_v48  ;;  %v1020_v27 = vadd.f32 %v1012_v7, %v1004_v33  ;;  %v1034_v31 = vmul.f32 %v11952_v57, %v6367_v32  ;;  %v1046_v4 = vmul.f32 %v11938_v43, %v11953_v58  ;;  %v11954_v7 = vld [vmem:[#allocation55_spill] sm:$0xff] }
  0xe8   : > { %v6765_v22 = vmul.f32 %v11938_v43, %v11949_v23  ;;  %v1022_v37 = vadd.f32 %v1014_v10, %v1006_v25  ;;  %v1048_v42 = vmul.f32 %v11939_v34, %v11953_v58  ;;  %v1050_v49 = vmul.f32 %v6419_v24, %v11953_v58  ;;  %v11957_v10 = vld [vmem:[#allocation48_spill] sm:$0xff] }
  0xe9   : > { %v6773_v33 = vmul.f32 %v11939_v34, %v11949_v23  ;;  %v1038_v12 = vadd.f32 %v1030_v11, %v1018_v54  ;;  %v1040_v48 = vadd.f32 %v1032_v16, %v1020_v27  ;;  %v1127_v61 = vmul.f32 %v11954_v7, %v6004_v38  ;;  %v11959_v16 = vld [vmem:[#allocation43_spill] sm:$0xff]  ;;  %v11960_v54 = vld [vmem:[#allocation50_spill] sm:$0xff] }
  0xea   : > { %v6779_v43 = vmul.f32 %v6419_v24, %v11949_v23  ;;  %v1042_v30 = vadd.f32 %v1034_v31, %v1022_v37  ;;  %v6783_v56 = vmul.f32 %v11955_v14, %v6004_v38  ;;  %v1129_v19 = vmul.f32 %v6440_v60, %v6004_v38  ;;  %v11961_v31 = vld [vmem:[#allocation56_spill] sm:$0xff] }
  0xeb   : > { %v1054_v25 = vadd.f32 %v1046_v4, %v1038_v12  ;;  %v1056_v34 = vadd.f32 %v1048_v42, %v1040_v48  ;;  %v6789_v11 = vmul.f32 %v11957_v10, %v6004_v38  ;;  %v1142_v27 = vmul.f32 %v11960_v54, %v11959_v16  ;;  %v11964_v4 = vld [vmem:[#allocation39_spill] sm:$0xff]  ;;  %v11965_v48 = vld [vmem:[#allocation52_spill] sm:$0xff] }
  0xec   : > { %11956 = vst [vmem:[#allocation44_spill] sm:$0xff] %v6783_v56  ;;  %v1058_v9 = vadd.f32 %v1050_v49, %v1042_v30  ;;  %v1144_v24 = vmul.f32 %v6412_v55, %v11959_v16  ;;  %v6797_v37 = vmul.f32 %v11961_v31, %v6006_v39  ;;  %v11963_v56 = vld [vmem:[#allocation60_spill] sm:$0xff]  ;;  %v11967_v49 = vld [vmem:[#allocation51_spill] sm:$0xff]  ;;  %v1171_v38 = vmul.f32 %v11955_v14, %v6022_v44 }
  0xed   : > { %11958 = vst [vmem:[#allocation40_spill] sm:$0xff] %v6789_v11  ;;  %v1157_v46 = vmul.f32 %v11963_v56, %v6006_v39  ;;  %v1133_v42 = vadd.f32 %v1054_v25, %v11964_v4  ;;  %v1135_v12 = vadd.f32 %v1127_v61, %v1056_v34  ;;  %v6804_v11 = vmul.f32 %v11965_v48, %v6006_v39  ;;  %v11969_v61 = vld [vmem:[#allocation46_spill] sm:$0xff]  ;;  %v11972_v14 = vld [vmem:[#allocation75_spill] sm:$0xff] }
  0xee   : > { %11962 = vst [vmem:[#allocation24_spill] sm:$0xff] %v6797_v37  ;;  %v1159_v30 = vmul.f32 %v11967_v49, %v6006_v39  ;;  %v1137_v16 = vadd.f32 %v1129_v19, %v1058_v9  ;;  %v6812_v37 = vmul.f32 %v11954_v7, %v6022_v44  ;;  %v1173_v25 = vmul.f32 %v11957_v10, %v6022_v44  ;;  %v11971_v39 = vld [vmem:[#allocation49_spill] sm:$0xff] }
  0xef   : > { %11966 = vst [vmem:[#allocation27_spill] sm:$0xff] %v6804_v11  ;;  %v1148_v34 = vadd.f32 %v1133_v42, %v11969_v61  ;;  %v1150_v4 = vadd.f32 %v1142_v27, %v1135_v12  ;;  %v6819_v11 = vmul.f32 %v6440_v60, %v6022_v44  ;;  %v1187_v9 = vmul.f32 %v11971_v39, %v6160_v35  ;;  %v6832_v42 = vld [vmem:[%s5923_s12 + $0x80] sm:$0xff]  ;;  %v6835_v27 = vld [vmem:[%s5923_s12 + $0x88] sm:$0xff]  ;;  %v11976_v12 = vld [vmem:[#allocation45_spill] sm:$0xff] }
  0xf0   : > { %11968 = vst [vmem:[#allocation67_spill] sm:$0xff] %v6812_v37  ;;  %v1152_v19 = vadd.f32 %v1144_v24, %v1137_v16  ;;  %v1189_v58 = vmul.f32 %v11972_v14, %v6160_v35  ;;  %v1203_v37 = vmul.f32 %v11961_v31, %v6036_v50  ;;  %v6829_v10 = vmul.f32 %v11963_v56, %v6036_v50 }
  0xf1   : > { %11970 = vst [vmem:[#allocation55_spill] sm:$0xff] %v6819_v11  ;;  %11974 = vst [vmem:[#allocation50_spill] sm:$0xff] %v6832_v42  ;;  %v1163_v61 = vadd.f32 %v1148_v34, %v11976_v12  ;;  %v1165_v11 = vadd.f32 %v1157_v46, %v1150_v4  ;;  %v1205_v39 = vmul.f32 %v11965_v48, %v6036_v50  ;;  %v1281_v4 = vrot.slane %v6832_v42, 7 }
  0xf2   : > { %11973 = vst [vmem:[#allocation54_spill] sm:$0xff] %v6829_v10  ;;  %11975 = vst [vmem:[#allocation56_spill] sm:$0xff] %v6835_v27  ;;  %v6842_v16 = vmul.f32 %v11967_v49, %v6036_v50  ;;  %v6844_v24 = vadd.f32 %v1159_v30, %v1152_v19  ;;  %v1219_v31 = vmul.f32 %v11954_v7, %v6038_v51  ;;  %v1282_v12 = vrot.slane %v6835_v27, 7 }
  0xf3   : > { %v1221_v10 = vmul.f32 %v6440_v60, %v6038_v51  ;;  %v1234_v35 = vmul.f32 %v11960_v54, %v6189_v28  ;;  %v1179_v34 = vadd.f32 %v1171_v38, %v1163_v61  ;;  %v1181_v46 = vadd.f32 %v1173_v25, %v1165_v11 }
  0xf4   : > { %11977 = vst [vmem:[#allocation60_spill] sm:$0xff] %v6842_v16  ;;  %11978 = vst [vmem:[#allocation52_spill] sm:$0xff] %v6844_v24  ;;  %v1236_v16 = vmul.f32 %v6412_v55, %v6189_v28  ;;  %v1249_v30 = vmul.f32 %v11963_v56, %v6040_v52  ;;  %v1305_v7 = vrot.slane %v6832_v42, 1  ;;  %v1306_v19 = vrot.slane %v6835_v27, 1 }
  0xf5   : > { %v1195_v60 = vadd.f32 %v1187_v9, %v1179_v34  ;;  %v1197_v24 = vadd.f32 %v1189_v58, %v1181_v46  ;;  %v1251_v38 = vmul.f32 %v11967_v49, %v6040_v52  ;;  %v1345_v11 = vmul.f32 %v6835_v27, %v6226_v29  ;;  %v5450_v29 = vld [vmem:[%s5923_s12 + $0x8] sm:$0xff] }
  0xf6   : > { %v6865_v54 = vsel %vm419_vm2, 0.0, %v1281_v4  ;;  %v6868_v25 = vsel %vm419_vm2, 0.0, %v1282_v12  ;;  %v6871_v56 = vsel %vm447_vm3, %v1305_v7, 0.0  ;;  %v6875_v61 = vmul.f32 %v6832_v42, %v6250_v5  ;;  %v11990_v5 = vld [vmem:[#allocation38_spill] sm:$0xff] }
  0xf7   : > { %11979 = vst [vmem:[#allocation51_spill] sm:$0xff] %v6865_v54  ;;  %11980 = vst [vmem:[#allocation49_spill] sm:$0xff] %v6868_v25  ;;  %v1211_v58 = vadd.f32 %v1203_v37, %v1195_v60  ;;  %v1213_v9 = vadd.f32 %v1205_v39, %v1197_v24  ;;  %v6878_v49 = vsel %vm447_vm3, %v1306_v19, 0.0  ;;  %v6882_v34 = vmul.f32 %v6865_v54, %v6042_v53 }
  0xf8   : > { %11981 = vst [vmem:[#allocation75_spill] sm:$0xff] %v6871_v56  ;;  %11982 = vst [vmem:[#allocation93_spill] sm:$0xff] %v6878_v49  ;;  %v1330_v12 = vmul.f32 %v6868_v25, %v6042_v53  ;;  %v6888_v46 = vmul.f32 %v6871_v56, %v6059_v62  ;;  %v6892_v37 = vmul.f32 %v6878_v49, %v6059_v62 }
  0xf9   : > { %11983 = vst [vmem:[#allocation94_spill] sm:$0xff] %v6882_v34  ;;  %v1374_v39 = vmul.f32 %v6865_v54, %v6061_v63  ;;  %v1226_v24 = vadd.f32 %v1219_v31, %v1211_v58  ;;  %v1228_v4 = vadd.f32 %v1221_v10, %v1213_v9  ;;  %v6898_v7 = vmul.f32 %v6868_v25, %v6061_v63  ;;  %v6919_v34 = vld [vmem:[%s6057_s30] ss:$0 sm:$0xff]  ;;  %v11989_v63 = vld [vmem:[#allocation57_spill] sm:$0xff] }
  0xfa   : > { %11984 = vst [vmem:[#allocation95_spill] sm:$0xff] %v6888_v46  ;;  %v6902_v19 = vmul.f32 %v6871_v56, %v6063_v0  ;;  %v6906_v60 = vmul.f32 %v6878_v49, %v6063_v0  ;;  %v913_v46 = vmul.f32 %v6467_v40, %v11932_v41  ;;  %v915_v54 = vadd.f32 %v6088_v13, %v6683_v20  ;;  %v5447_v56 = vld [vmem:[%s5923_s12] sm:$0xff]  ;;  %v5449_v41 = vld [vmem:[%s5923_s12 + $0x10] sm:$0xff] }
  0xfb   : > { %11985 = vst [vmem:[#allocation96_spill] sm:$0xff] %v6898_v7  ;;  %v917_v10 = vadd.f32 %v6088_v13, %v6689_v21  ;;  %v1241_v31 = vadd.f32 %v1234_v35, %v1226_v24  ;;  %v1243_v58 = vadd.f32 %v1236_v16, %v1228_v4  ;;  %v919_v9 = vadd.f32 %v6088_v13, %v6693_v15  ;;  %v11988_v4 = vld [vmem:[#allocation58_spill] sm:$0xff] }
  0xfc   : > { %11986 = vst [vmem:[#allocation97_spill] sm:$0xff] %v6906_v60  ;;  %v927_v7 = vmul.f32 %v5447_v56, %v6283_v18  ;;  %11987 = vst [vmem:[#allocation98_spill] sm:$0xff] %v6919_v34  ;;  %v921_v60 = vadd.f32 %v6919_v34, %v913_v46  ;;  %v929_v0 = vmul.f32 %v5449_v41, %v6283_v18 }
  0xfd   : > { %v931_v20 = vmul.f32 %v6283_v18, %v11948_v17  ;;  %v933_v35 = vmul.f32 %v6283_v18, %v6448_v3  ;;  %v1256_v21 = vadd.f32 %v1249_v30, %v1241_v31  ;;  %v1258_v13 = vadd.f32 %v1251_v38, %v1243_v58  ;;  %v11991_v31 = vld [vmem:[#allocation68_spill] sm:$0xff] }
  0xfe   : > { %v1422_v15 = vmul.f32 %v6868_v25, %v6065_v1  ;;  %v935_v16 = vadd.f32 %v927_v7, %v915_v54  ;;  %v937_v56 = vadd.f32 %v929_v0, %v917_v10  ;;  %v949_v34 = vmul.f32 %v11988_v4, %v11937_v45  ;;  %v5451_v54 = vld [vmem:[%s5923_s12 + $0x18] sm:$0xff] }
  0xff   : > { %v939_v24 = vadd.f32 %v931_v20, %v919_v9  ;;  %v941_v46 = vadd.f32 %v933_v35, %v921_v60  ;;  %v1336_v62 = vadd.f32 %v1256_v21, %v11989_v63  ;;  %v1338_v53 = vadd.f32 %v1330_v12, %v1258_v13  ;;  %v11992_v60 = vld [vmem:[#allocation61_spill] sm:$0xff]  ;;  %v11993_v9 = vld [vmem:[#allocation34_spill] sm:$0xff]  ;;  %v12024_v63 = vld [vmem:[#allocation32_spill] sm:$0xff] }
 0x100   : > { %v951_v42 = vadd.f32 %v11990_v5, %v935_v16  ;;  %v979_v30 = vmul.f32 %v5450_v29, %v11946_v36  ;;  %v1437_v38 = vmul.f32 %v6835_v27, %v11991_v31  ;;  %v953_v58 = vadd.f32 %v6710_v2, %v937_v56  ;;  %v12031_v45 = vld [vmem:[#allocation54_spill] sm:$0xff] }
 0x101   : > { %v955_v0 = vadd.f32 %v6716_v59, %v939_v24  ;;  %v981_v7 = vmul.f32 %v5451_v54, %v11946_v36  ;;  %v1351_v10 = vadd.f32 %v1336_v62, %v11992_v60  ;;  %v1452_v12 = vmul.f32 %v6878_v49, %v11993_v9  ;;  %v11994_v59 = vld [vmem:[#allocation41_spill] sm:$0xff]  ;;  %v11995_v62 = vld [vmem:[#allocation62_spill] sm:$0xff] }
 0x102   : > { %v967_v5 = vadd.f32 %v6730_v47, %v951_v42  ;;  %v983_v29 = vmul.f32 %v11946_v36, %v6367_v32  ;;  %v6948_v20 = vadd.f32 %v949_v34, %v941_v46  ;;  %v6952_v2 = vmul.f32 %v6467_v40, %v11942_v6  ;;  %v11996_v24 = vld [vmem:[#allocation37_spill] sm:$0xff]  ;;  %v11997_v32 = vld [vmem:[#allocation70_spill] sm:$0xff] }
 0x103   : > { %v969_v35 = vadd.f32 %v11994_v59, %v953_v58  ;;  %v971_v21 = vadd.f32 %v6743_v26, %v955_v0  ;;  %v1353_v13 = vadd.f32 %v1345_v11, %v1338_v53  ;;  %v1366_v16 = vadd.f32 %v1351_v10, %v11995_v62  ;;  %v12023_v62 = vld [vmem:[#allocation31_spill] sm:$0xff] }
 0x104   : > { %v987_v56 = vadd.f32 %v979_v30, %v967_v5  ;;  %v1011_v47 = vmul.f32 %v11996_v24, %v11951_v8  ;;  %v1013_v34 = vmul.f32 %v11997_v32, %v11951_v8  ;;  %v1015_v46 = vmul.f32 %v6467_v40, %v11951_v8  ;;  %v11999_v5 = vld [vmem:[#allocation42_spill] sm:$0xff] }
 0x105   : > { %v989_v42 = vadd.f32 %v981_v7, %v969_v35  ;;  %v991_v54 = vadd.f32 %v983_v29, %v971_v21  ;;  %v1382_v60 = vadd.f32 %v1374_v39, %v1366_v16  ;;  %v6965_v58 = vmul.f32 %v11988_v4, %v11949_v23 }
 0x106   : > { %v1003_v53 = vadd.f32 %v6765_v22, %v987_v56  ;;  %v1031_v26 = vmul.f32 %v5449_v41, %v11952_v57  ;;  %v1033_v0 = vmul.f32 %v11952_v57, %v11948_v17  ;;  %v1035_v40 = vmul.f32 %v11952_v57, %v6448_v3  ;;  %v11998_v22 = vld [vmem:[#allocation20_spill] sm:$0xff] }
 0x107   : > { %v1005_v11 = vadd.f32 %v6773_v33, %v989_v42  ;;  %v1007_v30 = vadd.f32 %v6779_v43, %v991_v54  ;;  %v6976_v39 = vadd.f32 %v6892_v37, %v1353_v13  ;;  %v1398_v7 = vadd.f32 %v6875_v61, %v1382_v60  ;;  %v12000_v33 = vld [vmem:[#allocation73_spill] sm:$0xff]  ;;  %v12001_v37 = vld [vmem:[#allocation22_spill] sm:$0xff]  ;;  %v5452_v61 = vld [vmem:[%s5923_s12 + $0x40] sm:$0xff] }
 0x108   : > { %v1019_v10 = vadd.f32 %v1011_v47, %v1003_v53  ;;  %v1047_v41 = vmul.f32 %v11999_v5, %v11998_v22  ;;  %v1049_v43 = vmul.f32 %v12000_v33, %v11998_v22  ;;  %v1051_v17 = vmul.f32 %v11988_v4, %v11998_v22  ;;  %v12002_v13 = vld [vmem:[#allocation65_spill] sm:$0xff]  ;;  %v12003_v60 = vld [vmem:[#allocation43_spill] sm:$0xff]  ;;  %v12009_v33 = vld [vmem:[#allocation48_spill] sm:$0xff] }
 0x109   : > { %v1021_v29 = vadd.f32 %v1013_v34, %v1005_v11  ;;  %v1023_v59 = vadd.f32 %v1015_v46, %v1007_v30  ;;  %v1414_v35 = vadd.f32 %v6902_v19, %v1398_v7  ;;  %v1130_v16 = vmul.f32 %v12002_v13, %v12001_v37  ;;  %v12004_v54 = vld [vmem:[#allocation63_spill] sm:$0xff]  ;;  %v12006_v19 = vld [vmem:[#allocation76_spill] sm:$0xff]  ;;  %v7003_v5 = vld [vmem:[%s5923_s12 + $0x90] sm:$0xff] }
 0x10a   : > { %v1039_v21 = vadd.f32 %v1031_v26, %v1019_v10  ;;  %v1141_v56 = vmul.f32 %v5452_v61, %v12003_v60  ;;  %v1143_v42 = vmul.f32 %v11972_v14, %v12003_v60  ;;  %v1145_v32 = vmul.f32 %v12004_v54, %v12003_v60  ;;  %v12005_v46 = vld [vmem:[#allocation23_spill] sm:$0xff]  ;;  %v5453_v7 = vld [vmem:[%s5923_s12 + $0x48] sm:$0xff] }
 0x10b   : > { %v1041_v24 = vadd.f32 %v1033_v0, %v1021_v29  ;;  %v1043_v47 = vadd.f32 %v1035_v40, %v1023_v59  ;;  %v1429_v4 = vadd.f32 %v1422_v15, %v1414_v35  ;;  %v1160_v53 = vmul.f32 %v12006_v19, %v12005_v46  ;;  %v12007_v10 = vld [vmem:[#allocation47_spill] sm:$0xff]  ;;  %v12008_v59 = vld [vmem:[#allocation44_spill] sm:$0xff] }
 0x10c   : > { %v1055_v34 = vadd.f32 %v1047_v41, %v1039_v21  ;;  %v1175_v26 = vmul.f32 %v12002_v13, %v6022_v44  ;;  %v1188_v0 = vmul.f32 %v5453_v7, %v12007_v10  ;;  %v1190_v40 = vmul.f32 %v6412_v55, %v12007_v10 }
 0x10d   : > { %v1057_v11 = vadd.f32 %v1049_v43, %v1041_v24  ;;  %v1059_v30 = vadd.f32 %v1051_v17, %v1043_v47  ;;  %v1444_v29 = vadd.f32 %v1437_v38, %v1429_v4  ;;  %v7008_v41 = vmul.f32 %v12006_v19, %v6036_v50  ;;  %v12010_v17 = vld [vmem:[#allocation40_spill] sm:$0xff] }
 0x10e   : > { %v1134_v15 = vadd.f32 %v12008_v59, %v1055_v34  ;;  %v1220_v43 = vmul.f32 %v12009_v33, %v6038_v51  ;;  %v1222_v61 = vmul.f32 %v12002_v13, %v6038_v51  ;;  %v1235_v55 = vmul.f32 %v11972_v14, %v6189_v28  ;;  %v12017_v33 = vld [vmem:[#allocation64_spill] sm:$0xff] }
 0x10f   : > { %v1136_v35 = vadd.f32 %v12010_v17, %v1057_v11  ;;  %v1138_v21 = vadd.f32 %v1130_v16, %v1059_v30  ;;  %v1459_v38 = vadd.f32 %v1452_v12, %v1444_v29  ;;  %v1283_v47 = vrot.slane %v7003_v5, 7  ;;  %v12011_v11 = vld [vmem:[#allocation24_spill] sm:$0xff]  ;;  %v12012_v12 = vld [vmem:[#allocation59_spill] sm:$0xff] }
 0x110   : > { %v1149_v24 = vadd.f32 %v1141_v56, %v1134_v15  ;;  %v1307_v4 = vrot.slane %v7003_v5, 1  ;;  %v1237_v59 = vmul.f32 %v12004_v54, %v6189_v28  ;;  %v1250_v16 = vmul.f32 %v11965_v48, %v6040_v52  ;;  %v12013_v56 = vld [vmem:[#allocation50_spill] sm:$0xff] }
 0x111   : > { %v1151_v34 = vadd.f32 %v1143_v42, %v1136_v35  ;;  %v1153_v7 = vadd.f32 %v1145_v32, %v1138_v21  ;;  %5136 = vst [vmem:[%s6394_s26 + $0x40] sm:$0xff] %v1459_v38  ;;  %v1252_v14 = vmul.f32 %v12006_v19, %v6040_v52  ;;  %v7029_v30 = vmul.f32 %v12013_v56, %v12012_v12  ;;  %v12014_v32 = vld [vmem:[#allocation27_spill] sm:$0xff]  ;;  %v12020_v38 = vld [vmem:[#allocation29_spill] sm:$0xff] }
 0x112   : > { %v1164_v13 = vadd.f32 %v12011_v11, %v1149_v24  ;;  %v7033_v42 = vmul.f32 %v7003_v5, %v12012_v12  ;;  %v7037_v15 = vsel %vm419_vm2, 0.0, %v1283_v47  ;;  %v7040_v48 = vsel %vm447_vm3, %v1307_v4, 0.0  ;;  %v12019_v35 = vld [vmem:[#allocation67_spill] sm:$0xff]  ;;  %v12021_v11 = vld [vmem:[#allocation30_spill] sm:$0xff] }
 0x113   : > { %v1166_v29 = vadd.f32 %v12014_v32, %v1151_v34  ;;  %12015 = vst [vmem:[#allocation58_spill] sm:$0xff] %v7037_v15  ;;  %12016 = vst [vmem:[#allocation38_spill] sm:$0xff] %v7040_v48  ;;  %v7044_v17 = vmul.f32 %v6835_v27, %v12017_v33  ;;  %v7046_v19 = vadd.f32 %v1160_v53, %v1153_v7  ;;  %v12022_v47 = vld [vmem:[#allocation55_spill] sm:$0xff] }
 0x114   : > { %v1180_v21 = vadd.f32 %v12019_v35, %v1164_v13  ;;  %v1331_v24 = vmul.f32 %v7037_v15, %v12020_v38  ;;  %v7053_v34 = vmul.f32 %v7040_v48, %v12021_v11  ;;  %v1376_v4 = vmul.f32 %v7037_v15, %v12023_v62  ;;  %v12027_v35 = vld [vmem:[#allocation35_spill] sm:$0xff] }
 0x115   : > { %12018 = vst [vmem:[#allocation41_spill] sm:$0xff] %v7046_v19  ;;  %v1182_v32 = vadd.f32 %v12022_v47, %v1166_v29  ;;  %v7060_v56 = vmul.f32 %v7040_v48, %v12024_v63  ;;  %v7064_v53 = vmul.f32 %v7037_v15, %v6065_v1  ;;  %v7068_v13 = vmul.f32 %v7003_v5, %v11991_v31  ;;  %v12029_v15 = vld [vmem:[#allocation78_spill] sm:$0xff] }
 0x116   : > { %v1196_v7 = vadd.f32 %v1188_v0, %v1180_v21  ;;  %v972_v29 = vadd.f32 %v6952_v2, %v12027_v35  ;;  %v984_v47 = vmul.f32 %v11946_v36, %v6448_v3  ;;  %v7076_v27 = vmul.f32 %v7040_v48, %v11993_v9  ;;  %v12030_v0 = vld [vmem:[#allocation79_spill] sm:$0xff]  ;;  %v12032_v35 = vld [vmem:[#allocation66_spill] sm:$0xff] }
 0x117   : > { %12025 = vst [vmem:[#allocation37_spill] sm:$0xff] %v7064_v53  ;;  %12026 = vst [vmem:[#allocation70_spill] sm:$0xff] %v7068_v13  ;;  %v1198_v49 = vadd.f32 %v1190_v40, %v1182_v32  ;;  %v965_v25 = vmul.f32 %v12029_v15, %v11942_v6  ;;  %v7082_v21 = vmul.f32 %v12030_v0, %v11949_v23  ;;  %v12033_v40 = vld [vmem:[#allocation60_spill] sm:$0xff]  ;;  %v7096_v19 = vld [vmem:[%s5923_s12 + $0x98] sm:$0xff] }
 0x118   : > { %12028 = vst [vmem:[#allocation42_spill] sm:$0xff] %v7076_v27  ;;  %v1212_v18 = vadd.f32 %v12031_v45, %v1196_v7  ;;  %v992_v13 = vadd.f32 %v984_v47, %v972_v29  ;;  %v1016_v2 = vmul.f32 %v12029_v15, %v11951_v8  ;;  %v1036_v3 = vmul.f32 %v11952_v57, %v12032_v35  ;;  %v12034_v6 = vld [vmem:[#allocation80_spill] sm:$0xff]  ;;  %v12036_v15 = vld [vmem:[#allocation77_spill] sm:$0xff] }
 0x119   : > { %v1214_v32 = vadd.f32 %v12033_v40, %v1198_v49  ;;  %v1052_v48 = vmul.f32 %v12030_v0, %v11998_v22  ;;  %v1131_v27 = vmul.f32 %v12034_v6, %v12001_v37  ;;  %v12035_v53 = vld [vmem:[#allocation52_spill] sm:$0xff]  ;;  %v1146_v29 = vmul.f32 %v12036_v15, %v12003_v60  ;;  %v12037_v40 = vld [vmem:[#allocation81_spill] sm:$0xff] }
 0x11a   : > { %v1183_v23 = vadd.f32 %v1175_v26, %v12035_v53  ;;  %v1227_v45 = vadd.f32 %v1220_v43, %v1212_v18  ;;  %v1008_v7 = vadd.f32 %v6965_v58, %v992_v13  ;;  %v1191_v47 = vmul.f32 %v12004_v54, %v12007_v10 }
 0x11b   : > { %v1229_v49 = vadd.f32 %v1222_v61, %v1214_v32  ;;  %v1161_v0 = vmul.f32 %v12037_v40, %v12005_v46  ;;  %v1176_v37 = vmul.f32 %v12034_v6, %v6022_v44  ;;  %v1223_v26 = vmul.f32 %v12034_v6, %v6038_v51 }
 0x11c   : > { %v1242_v53 = vadd.f32 %v1235_v55, %v1227_v45  ;;  %v1024_v18 = vadd.f32 %v1016_v2, %v1008_v7  ;;  %v1199_v43 = vadd.f32 %v1191_v47, %v1183_v23  ;;  %v1284_v58 = vrot.slane %v7096_v19, 7  ;;  %v12038_v45 = vld [vmem:[#allocation94_spill] sm:$0xff] }
 0x11d   : > { %v1244_v13 = vadd.f32 %v1237_v59, %v1229_v49  ;;  %v7112_v60 = vmul.f32 %v12037_v40, %v6036_v50  ;;  %v1238_v54 = vmul.f32 %v12036_v15, %v6189_v28  ;;  %v1308_v61 = vrot.slane %v7096_v19, 1 }
 0x11e   : > { %v1257_v32 = vadd.f32 %v1250_v16, %v1242_v53  ;;  %v1044_v44 = vadd.f32 %v1036_v3, %v1024_v18  ;;  %v1215_v46 = vadd.f32 %v7008_v41, %v1199_v43  ;;  %v1253_v6 = vmul.f32 %v12037_v40, %v6040_v52  ;;  %v12039_v18 = vld [vmem:[#allocation95_spill] sm:$0xff] }
 0x11f   : > { %v1259_v23 = vadd.f32 %v1252_v14, %v1244_v13  ;;  %v7121_v55 = vsel %vm419_vm2, 0.0, %v1284_v58  ;;  %v1347_v59 = vmul.f32 %v7096_v19, %v12012_v12  ;;  %v1384_v2 = vadd.f32 %v1376_v4, %v6976_v39 }
 0x120   : > { %v1337_v7 = vadd.f32 %v12038_v45, %v1257_v32  ;;  %v1060_v47 = vadd.f32 %v1052_v48, %v1044_v44  ;;  %v1230_v49 = vadd.f32 %v1223_v26, %v1215_v46  ;;  %v7128_v16 = vsel %vm447_vm3, %v1308_v61, 0.0  ;;  %v12040_v32 = vld [vmem:[#allocation96_spill] sm:$0xff] }
 0x121   : > { %v1339_v41 = vadd.f32 %v1331_v24, %v1259_v23  ;;  %v1332_v3 = vmul.f32 %v7121_v55, %v12020_v38  ;;  %v1377_v14 = vmul.f32 %v7121_v55, %v12023_v62  ;;  %v1392_v40 = vmul.f32 %v7003_v5, %v12017_v33 }
 0x122   : > { %v1352_v53 = vadd.f32 %v7029_v30, %v1337_v7  ;;  %v1139_v39 = vadd.f32 %v1131_v27, %v1060_v47  ;;  %v1245_v4 = vadd.f32 %v1238_v54, %v1230_v49  ;;  %v1362_v44 = vmul.f32 %v7128_v16, %v12021_v11 }
 0x123   : > { %v1354_v46 = vadd.f32 %v7033_v42, %v1339_v41  ;;  %v1400_v48 = vadd.f32 %v1392_v40, %v1384_v2  ;;  %v1424_v24 = vmul.f32 %v7121_v55, %v6065_v1  ;;  %v973_v26 = vadd.f32 %v965_v25, %v6948_v20  ;;  %v12044_v41 = vld [vmem:[#allocation25_spill] sm:$0xff] }
 0x124   : > { %v1367_v43 = vadd.f32 %v12039_v18, %v1352_v53  ;;  %v1154_v58 = vadd.f32 %v1146_v29, %v1139_v39  ;;  %v1260_v13 = vadd.f32 %v1253_v6, %v1245_v4  ;;  %v985_v30 = vmul.f32 %v11946_v36, %v12032_v35  ;;  %v12041_v6 = vld [vmem:[#allocation21_spill] sm:$0xff]  ;;  %v12046_v53 = vld [vmem:[#allocation22_spill] sm:$0xff] }
 0x125   : > { %v1409_v27 = vmul.f32 %v7128_v16, %v12024_v63  ;;  %v1416_v54 = vadd.f32 %v7060_v56, %v1400_v48  ;;  %v1439_v42 = vmul.f32 %v7096_v19, %v11991_v31  ;;  %v1454_v61 = vmul.f32 %v7128_v16, %v11993_v9  ;;  %v12047_v39 = vld [vmem:[#allocation86_spill] sm:$0xff]  ;;  %v12048_v48 = vld [vmem:[#allocation41_spill] sm:$0xff] }
 0x126   : > { %v1383_v25 = vadd.f32 %v12040_v32, %v1367_v43  ;;  %v1340_v20 = vadd.f32 %v1332_v3, %v1260_v13  ;;  %v993_v29 = vadd.f32 %v985_v30, %v973_v26  ;;  %v7156_v23 = vmul.f32 %v12041_v6, %v11951_v8  ;;  %v12052_v26 = vld [vmem:[#allocation82_spill] sm:$0xff]  ;;  %v12053_v43 = vld [vmem:[#allocation23_spill] sm:$0xff]  ;;  %v12056_v32 = vld [vmem:[#allocation37_spill] sm:$0xff] }
 0x127   : > { %v1369_v35 = vadd.f32 %v7053_v34, %v1354_v46  ;;  %v1169_v2 = vadd.f32 %v1161_v0, %v1154_v58  ;;  %v1431_v45 = vadd.f32 %v1424_v24, %v1416_v54  ;;  %v7160_v56 = vmul.f32 0.0, %v11952_v57  ;;  %v7174_v46 = vld [vmem:[%s5923_s12 + $0xa0] sm:$0xff]  ;;  %v12055_v54 = vld [vmem:[#allocation26_spill] sm:$0xff] }
 0x128   : > { %12042 = vst [vmem:[#allocation73_spill] sm:$0xff] %v7156_v23  ;;  %v1399_v7 = vadd.f32 %v7044_v17, %v1383_v25  ;;  %v1355_v47 = vadd.f32 %v1347_v59, %v1340_v20  ;;  %v1009_v49 = vadd.f32 %v7082_v21, %v993_v29  ;;  %v7166_v3 = vmul.f32 %v12044_v41, %v11998_v22  ;;  %v12050_v17 = vld [vmem:[#allocation97_spill] sm:$0xff]  ;;  %v12051_v24 = vld [vmem:[#allocation43_spill] sm:$0xff]  ;;  %v12057_v41 = vld [vmem:[#allocation70_spill] sm:$0xff] }
 0x129   : > { %12043 = vst [vmem:[#allocation65_spill] sm:$0xff] %v7160_v56  ;;  %v1446_v40 = vadd.f32 %v1439_v42, %v1431_v45  ;;  %v1132_v4 = vmul.f32 %v12047_v39, %v12046_v53  ;;  %v1184_v34 = vadd.f32 %v1176_v37, %v12048_v48  ;;  %v1192_v0 = vmul.f32 %v12036_v15, %v12007_v10  ;;  %v12054_v58 = vld [vmem:[#allocation87_spill] sm:$0xff] }
 0x12a   : > { %12045 = vst [vmem:[#allocation63_spill] sm:$0xff] %v7166_v3  ;;  %12049 = vst [vmem:[#allocation76_spill] sm:$0xff] %v7174_v46  ;;  %v1415_v59 = vadd.f32 %v12050_v17, %v1399_v7  ;;  %v1025_v21 = vadd.f32 %v7156_v23, %v1009_v49  ;;  %v1147_v18 = vmul.f32 %v12052_v26, %v12051_v24  ;;  %v1285_v6 = vrot.slane %v7174_v46, 7 }
 0x12b   : > { %v1162_v13 = vmul.f32 %v12054_v58, %v12053_v43  ;;  %v1461_v30 = vadd.f32 %v1454_v61, %v1446_v40  ;;  %v1177_v42 = vmul.f32 %v12047_v39, %v12055_v54  ;;  %v1200_v37 = vadd.f32 %v1192_v0, %v1184_v34 }
 0x12c   : > { %v1224_v15 = vmul.f32 %v12047_v39, %v6038_v51  ;;  %v1430_v25 = vadd.f32 %v12056_v32, %v1415_v59  ;;  %v1370_v20 = vadd.f32 %v1362_v44, %v1355_v47  ;;  %v1045_v29 = vadd.f32 %v7160_v56, %v1025_v21  ;;  %v7338_v56 = vld [vmem:[%s5923_s12 + $0x68] sm:$0xff] }
 0x12d   : > { %5138 = vst [vmem:[%s6394_s26 + $0x50] sm:$0xff] %v1461_v30  ;;  %v1216_v45 = vadd.f32 %v7112_v60, %v1200_v37  ;;  %v1239_v61 = vmul.f32 %v12052_v26, %v6189_v28  ;;  %v1309_v7 = vrot.slane %v7174_v46, 1  ;;  %v1385_v49 = vadd.f32 %v1377_v14, %v1369_v35  ;;  %v12059_v35 = vld [vmem:[#allocation42_spill] sm:$0xff] }
 0x12e   : > { %v1445_v40 = vadd.f32 %v12057_v41, %v1430_v25  ;;  %v1061_v39 = vadd.f32 %v7166_v3, %v1045_v29  ;;  %v1209_v44 = vmul.f32 %v12054_v58, %v6036_v50  ;;  %v1393_v47 = vmul.f32 %v7096_v19, %v12017_v33  ;;  %v7335_v3 = vld [vmem:[%s5923_s12 + $0x60] sm:$0xff] }
 0x12f   : > { %v1231_v48 = vadd.f32 %v1224_v15, %v1216_v45  ;;  %v1254_v60 = vmul.f32 %v12054_v58, %v6040_v52  ;;  %v7203_v34 = vsel %vm419_vm2, 0.0, %v1285_v6  ;;  %v1348_v14 = vmul.f32 %v7174_v46, %v12012_v12  ;;  %v7223_v6 = vld [vmem:[%s5923_s12 + $0xa8] sm:$0xff] }
 0x130   : > { %12058 = vst [vmem:[#allocation44_spill] sm:$0xff] %v7203_v34  ;;  %v1460_v0 = vadd.f32 %v12059_v35, %v1445_v40  ;;  %v1140_v17 = vadd.f32 %v1132_v4, %v1061_v39  ;;  %v7209_v59 = vsel %vm447_vm3, %v1309_v7, 0.0  ;;  %v1401_v21 = vadd.f32 %v1393_v47, %v1385_v49  ;;  %12061 = vst [vmem:[#allocation40_spill] sm:$0xff] %v7223_v6 }
 0x131   : > { %12060 = vst [vmem:[#allocation48_spill] sm:$0xff] %v7209_v59  ;;  %v1246_v30 = vadd.f32 %v1239_v61, %v1231_v48  ;;  %v1333_v37 = vmul.f32 %v7203_v34, %v12020_v38  ;;  %v1378_v58 = vmul.f32 %v7203_v34, %v12023_v62  ;;  %v1425_v15 = vmul.f32 %v7203_v34, %v6065_v1 }
 0x132   : > { %5137 = vst [vmem:[%s6394_s26 + $0x48] sm:$0xff] %v1460_v0  ;;  %v1155_v32 = vadd.f32 %v1147_v18, %v1140_v17  ;;  %v1363_v25 = vmul.f32 %v7209_v59, %v12021_v11  ;;  %v1417_v4 = vadd.f32 %v1409_v27, %v1401_v21  ;;  %v1440_v29 = vmul.f32 %v7174_v46, %v11991_v31  ;;  %v12062_v27 = vld [vmem:[#allocation89_spill] sm:$0xff] }
 0x133   : > { %v1261_v45 = vadd.f32 %v1254_v60, %v1246_v30  ;;  %v1410_v61 = vmul.f32 %v7209_v59, %v12024_v63  ;;  %v1185_v7 = vadd.f32 %v1177_v42, %v1169_v2  ;;  %v1193_v49 = vmul.f32 %v12052_v26, %v12007_v10  ;;  %v12063_v2 = vld [vmem:[#allocation88_spill] sm:$0xff] }
 0x134   : > { %v1170_v41 = vadd.f32 %v1162_v13, %v1155_v32  ;;  %v1432_v40 = vadd.f32 %v1425_v15, %v1417_v4  ;;  %v1455_v18 = vmul.f32 %v7209_v59, %v11993_v9  ;;  %v1178_v39 = vmul.f32 %v12062_v27, %v12055_v54  ;;  %v12065_v32 = vld [vmem:[#allocation90_spill] sm:$0xff]  ;;  %v12082_v59 = vld [vmem:[#allocation16_spill] sm:$0xff] }
 0x135   : > { %v1341_v47 = vadd.f32 %v1333_v37, %v1261_v45  ;;  %v1201_v48 = vadd.f32 %v1193_v49, %v1185_v7  ;;  %v1225_v60 = vmul.f32 %v12062_v27, %v6038_v51  ;;  %v1286_v35 = vrot.slane %v7223_v6, 7 }
 0x136   : > { %v1447_v0 = vadd.f32 %v1440_v29, %v1432_v40  ;;  %v1240_v26 = vmul.f32 %v12063_v2, %v6189_v28  ;;  %v1310_v13 = vrot.slane %v7223_v6, 1  ;;  %v1386_v42 = vadd.f32 %v1378_v58, %v1370_v20  ;;  %v7253_v58 = vld [vmem:[%s5923_s12 + $0xb0] sm:$0xff] }
 0x137   : > { %v1356_v17 = vadd.f32 %v1348_v14, %v1341_v47  ;;  %v1217_v21 = vadd.f32 %v1209_v44, %v1201_v48  ;;  %v7240_v30 = vsel %vm419_vm2, 0.0, %v1286_v35  ;;  %v1394_v37 = vmul.f32 %v7174_v46, %v12017_v33  ;;  %12066 = vst [vmem:[#allocation59_spill] sm:$0xff] %v7253_v58 }
 0x138   : > { %12064 = vst [vmem:[#allocation24_spill] sm:$0xff] %v7240_v30  ;;  %v1462_v15 = vadd.f32 %v1455_v18, %v1447_v0  ;;  %v1210_v4 = vmul.f32 %v12065_v32, %v6036_v50  ;;  %v1255_v29 = vmul.f32 %v12065_v32, %v6040_v52  ;;  %v1379_v45 = vmul.f32 %v7240_v30, %v12023_v62 }
 0x139   : > { %v1371_v7 = vadd.f32 %v1363_v25, %v1356_v17  ;;  %v1232_v20 = vadd.f32 %v1225_v60, %v1217_v21  ;;  %v1349_v44 = vmul.f32 %v7223_v6, %v12012_v12  ;;  %v1402_v14 = vadd.f32 %v1394_v37, %v1386_v42  ;;  %v7272_v17 = vld [vmem:[%s5923_s12 + $0xb8] sm:$0xff] }
 0x13a   : > { %5139 = vst [vmem:[%s6394_s26 + $0x58] sm:$0xff] %v1462_v15  ;;  %v7257_v49 = vsel %vm447_vm3, %v1310_v13, 0.0  ;;  %v1334_v40 = vmul.f32 %v7240_v30, %v12020_v38  ;;  %v1426_v18 = vmul.f32 %v7240_v30, %v6065_v1  ;;  %v1441_v25 = vmul.f32 %v7223_v6, %v11991_v31  ;;  %12068 = vst [vmem:[#allocation67_spill] sm:$0xff] %v7272_v17 }
 0x13b   : > { %12067 = vst [vmem:[#allocation27_spill] sm:$0xff] %v7257_v49  ;;  %v1247_v27 = vadd.f32 %v1240_v26, %v1232_v20  ;;  %v1418_v47 = vadd.f32 %v1410_v61, %v1402_v14  ;;  %v1186_v48 = vadd.f32 %v1178_v39, %v1170_v41  ;;  %v1194_v60 = vmul.f32 %v12063_v2, %v12007_v10 }
 0x13c   : > { %v1456_v35 = vmul.f32 %v7257_v49, %v11993_v9  ;;  %v1287_v0 = vrot.slane %v7253_v58, 7  ;;  %v1311_v13 = vrot.slane %v7253_v58, 1  ;;  %v1387_v42 = vadd.f32 %v1379_v45, %v1371_v7 }
 0x13d   : > { %v1262_v21 = vadd.f32 %v1255_v29, %v1247_v27  ;;  %v1433_v37 = vadd.f32 %v1426_v18, %v1418_v47  ;;  %v1202_v15 = vadd.f32 %v1194_v60, %v1186_v48  ;;  %v1395_v61 = vmul.f32 %v7223_v6, %v12017_v33 }
 0x13e   : > { %v1364_v41 = vmul.f32 %v7257_v49, %v12021_v11  ;;  %v1411_v39 = vmul.f32 %v7257_v49, %v12024_v63  ;;  %v7281_v2 = vsel %vm419_vm2, 0.0, %v1287_v0  ;;  %v1350_v26 = vmul.f32 %v7253_v58, %v12012_v12 }
 0x13f   : > { %12069 = vst [vmem:[#allocation55_spill] sm:$0xff] %v7281_v2  ;;  %v1342_v32 = vadd.f32 %v1334_v40, %v1262_v21  ;;  %v1448_v45 = vadd.f32 %v1441_v25, %v1433_v37  ;;  %v1218_v29 = vadd.f32 %v1210_v4, %v1202_v15  ;;  %v1288_v7 = vrot.slane %v7272_v17, 7  ;;  %v12071_v40 = vld [vmem:[#allocation83_spill] sm:$0xff] }
 0x140   : > { %v7287_v20 = vsel %vm447_vm3, %v1311_v13, 0.0  ;;  %v1380_v14 = vmul.f32 %v7281_v2, %v12023_v62  ;;  %v1403_v18 = vadd.f32 %v1395_v61, %v1387_v42  ;;  %v1442_v27 = vmul.f32 %v7253_v58, %v11991_v31  ;;  %v7309_v61 = vld [vmem:[%s5923_s12 + $0x40] sm:$0xff] }
 0x141   : > { %12070 = vst [vmem:[#allocation35_spill] sm:$0xff] %v7287_v20  ;;  %v1357_v47 = vadd.f32 %v1349_v44, %v1342_v32  ;;  %v1463_v48 = vadd.f32 %v1456_v35, %v1448_v45  ;;  %v1233_v25 = vadd.f32 %v1218_v29, %v12071_v40  ;;  %v1427_v4 = vmul.f32 %v7281_v2, %v6065_v1  ;;  %v12072_v44 = vld [vmem:[#allocation84_spill] sm:$0xff]  ;;  %v7330_v40 = vld [vmem:[%s5923_s12 + $0x58] sm:$0xff] }
 0x142   : > { %v1335_v60 = vmul.f32 %v7281_v2, %v12020_v38  ;;  %v1365_v0 = vmul.f32 %v7287_v20, %v12021_v11  ;;  %v1419_v13 = vadd.f32 %v1411_v39, %v1403_v18  ;;  %v1312_v42 = vrot.slane %v7272_v17, 1  ;;  %v7312_v32 = vld [vmem:[%s5923_s12 + $0x48] sm:$0xff]  ;;  %v12074_v18 = vld [vmem:[#allocation85_spill] sm:$0xff] }
 0x143   : > { %v1372_v21 = vadd.f32 %v1364_v41, %v1357_v47  ;;  %5140 = vst [vmem:[%s6394_s26 + $0x60] sm:$0xff] %v1463_v48  ;;  %v1248_v35 = vadd.f32 %v1233_v25, %v12072_v44  ;;  %v7304_v37 = vsel %vm419_vm2, 0.0, %v1288_v7  ;;  %v1396_v15 = vmul.f32 %v7253_v58, %v12017_v33  ;;  %v7321_v7 = vld [vmem:[%s5923_s12 + $0x50] sm:$0xff] }
 0x144   : > { %12073 = vst [vmem:[#allocation78_spill] sm:$0xff] %v7304_v37  ;;  %v1412_v39 = vmul.f32 %v7287_v20, %v12024_v63  ;;  %v1434_v41 = vadd.f32 %v1427_v4, %v1419_v13  ;;  %v1457_v45 = vmul.f32 %v7287_v20, %v11993_v9  ;;  %v1381_v29 = vmul.f32 %v7304_v37, %v12023_v62 }
 0x145   : > { %v1263_v47 = vadd.f32 %v1248_v35, %v12074_v18  ;;  %v7325_v48 = vsel %vm447_vm3, %v1312_v42, 0.0  ;;  %v1388_v25 = vadd.f32 %v1380_v14, %v1372_v21  ;;  %v1428_v44 = vmul.f32 %v7304_v37, %v6065_v1  ;;  %v12085_v1 = vld [vmem:[#allocation92_spill] sm:$0xff] }
 0x146   : > { %12075 = vst [vmem:[#allocation79_spill] sm:$0xff] %v7325_v48  ;;  %v1449_v4 = vadd.f32 %v1442_v27, %v1434_v41  ;;  %v1443_v13 = vmul.f32 %v7272_v17, %v11991_v31  ;;  %v1492_v35 = vrot.slane %v7309_v61, 7  ;;  %v1493_v42 = vrot.slane %v7312_v32, 7 }
 0x147   : > { %v1343_v18 = vadd.f32 %v1335_v60, %v1263_v47  ;;  %v1404_v14 = vadd.f32 %v1396_v15, %v1388_v25  ;;  %v1413_v21 = vmul.f32 %v7325_v48, %v12024_v63  ;;  %v1494_v37 = vrot.slane %v7321_v7, 7 }
 0x148   : > { %v1464_v27 = vadd.f32 %v1457_v45, %v1449_v4  ;;  %v1458_v41 = vmul.f32 %v7325_v48, %v11993_v9  ;;  %v1397_v23 = vmul.f32 %v7272_v17, %v12017_v33  ;;  %v1495_v20 = vrot.slane %v7330_v40, 7 }
 0x149   : > { %v1358_v58 = vadd.f32 %v1350_v26, %v1343_v18  ;;  %v1420_v2 = vadd.f32 %v1412_v39, %v1404_v14  ;;  %v1496_v49 = vrot.slane %v7335_v3, 7  ;;  %v1497_v60 = vrot.slane %v7338_v56, 7 }
 0x14a   : > { %5141 = vst [vmem:[%s6394_s26 + $0x68] sm:$0xff] %v1464_v27  ;;  %v1508_v15 = vsel %vm419_vm2, 0.0, %v1492_v35  ;;  %v7355_v47 = vsel %vm419_vm2, 0.0, %v1493_v42  ;;  %v7358_v45 = vsel %vm419_vm2, 0.0, %v1494_v37  ;;  %v1516_v25 = vrot.slane %v7309_v61, 1 }
 0x14b   : > { %12076 = vst [vmem:[#allocation54_spill] sm:$0xff] %v7358_v45  ;;  %v1373_v4 = vadd.f32 %v1365_v0, %v1358_v58  ;;  %v1435_v17 = vadd.f32 %v1428_v44, %v1420_v2  ;;  %v1517_v26 = vrot.slane %v7312_v32, 1  ;;  %v1518_v39 = vrot.slane %v7321_v7, 1 }
 0x14c   : > { %v7364_v18 = vsel %vm419_vm2, 0.0, %v1495_v20  ;;  %v1519_v14 = vrot.slane %v7330_v40, 1  ;;  %v1520_v35 = vrot.slane %v7335_v3, 1  ;;  %v1521_v42 = vrot.slane %v7338_v56, 1 }
 0x14d   : > { %v1450_v27 = vadd.f32 %v1443_v13, %v1435_v17  ;;  %v1389_v37 = vadd.f32 %v1381_v29, %v1373_v4  ;;  %v7370_v48 = vsel %vm419_vm2, 0.0, %v1496_v49  ;;  %v1513_v58 = vsel %vm419_vm2, 0.0, %v1497_v60  ;;  %v12079_v49 = vld [vmem:[#allocation15_spill] sm:$0xff] }
 0x14e   : > { %12077 = vst [vmem:[#allocation66_spill] sm:$0xff] %v7370_v48  ;;  %v1532_v2 = vsel %vm447_vm3, %v1516_v25, 0.0  ;;  %v7375_v0 = vsel %vm447_vm3, %v1517_v26, 0.0  ;;  %v7378_v20 = vsel %vm447_vm3, %v1518_v39, 0.0  ;;  %v7381_v44 = vsel %vm447_vm3, %v1519_v14, 0.0  ;;  %v12080_v26 = vld [vmem:[#allocation69_spill] sm:$0xff] }
 0x14f   : > { %v1465_v6 = vadd.f32 %v1458_v41, %v1450_v27  ;;  %v1405_v17 = vadd.f32 %v1397_v23, %v1389_v37  ;;  %v7384_v29 = vsel %vm447_vm3, %v1520_v35, 0.0  ;;  %v1541_v13 = vmul.f32 %v7355_v47, %v12079_v49  ;;  %v12081_v23 = vld [vmem:[#allocation98_spill] sm:$0xff] }
 0x150   : > { %12078 = vst [vmem:[#allocation60_spill] sm:$0xff] %v7384_v29  ;;  %v7389_v60 = vsel %vm447_vm3, %v1521_v42, 0.0  ;;  %v1543_v25 = vmul.f32 %v7364_v18, %v12079_v49  ;;  %v1545_v4 = vmul.f32 %v1513_v58, %v12079_v49  ;;  %v1555_v39 = vmul.f32 %v7312_v32, %v12080_v26 }
 0x151   : > { %5142 = vst [vmem:[%s6394_s26 + $0x70] sm:$0xff] %v1465_v6  ;;  %v1421_v41 = vadd.f32 %v1413_v21, %v1405_v17  ;;  %v1548_v14 = vadd.f32 %v12081_v23, %v1541_v13  ;;  %v1557_v35 = vmul.f32 %v7330_v40, %v12080_v26  ;;  %v1559_v27 = vmul.f32 %v7338_v56, %v12080_v26  ;;  %v12083_v6 = vld [vmem:[#allocation91_spill] sm:$0xff] }
 0x152   : > { %v7403_v42 = vmul.f32 %v1508_v15, %v12079_v49  ;;  %v1550_v37 = vadd.f32 %v12081_v23, %v1543_v25  ;;  %v1552_v30 = vadd.f32 %v12081_v23, %v1545_v4  ;;  %v1569_v46 = vmul.f32 %v7375_v0, %v12082_v59 }
 0x153   : > { %v1436_v21 = vadd.f32 %v1421_v41, %v12083_v6  ;;  %v7412_v17 = vmul.f32 %v7358_v45, %v12079_v49  ;;  %v1562_v13 = vadd.f32 %v1555_v39, %v1548_v14  ;;  %v1571_v34 = vmul.f32 %v7381_v44, %v12082_v59  ;;  %v12086_v39 = vld [vmem:[#allocation17_spill] sm:$0xff] }
 0x154   : > { %v7418_v9 = vmul.f32 %v7370_v48, %v12079_v49  ;;  %v1564_v25 = vadd.f32 %v1557_v35, %v1550_v37  ;;  %v1566_v31 = vadd.f32 %v1559_v27, %v1552_v30  ;;  %v7421_v4 = vmul.f32 %v1532_v2, %v12082_v59  ;;  %v12088_v37 = vld [vmem:[#allocation36_spill] sm:$0xff] }
 0x155   : > { %12084 = vst [vmem:[#allocation80_spill] sm:$0xff] %v7412_v17  ;;  %v1451_v26 = vadd.f32 %v1436_v21, %v12085_v1  ;;  %v1573_v41 = vmul.f32 %v7389_v60, %v12082_v59  ;;  %v1576_v6 = vadd.f32 %v1569_v46, %v1562_v13  ;;  %v1582_v14 = vmul.f32 %v1508_v15, %v12086_v39  ;;  %v12090_v15 = vld [vmem:[#allocation74_spill] sm:$0xff] }
 0x156   : > { %v7429_v17 = vmul.f32 %v7378_v20, %v12082_v59  ;;  %v7433_v35 = vmul.f32 %v7384_v29, %v12082_v59  ;;  %v1578_v30 = vadd.f32 %v1571_v34, %v1564_v25  ;;  %v1584_v27 = vmul.f32 %v7358_v45, %v12086_v39  ;;  %v12092_v45 = vld [vmem:[#allocation18_spill] sm:$0xff] }
 0x157   : > { %v1466_v21 = vadd.f32 %v1451_v26, %v12088_v37  ;;  %v7440_v1 = vmul.f32 %v7355_v47, %v12086_v39  ;;  %v1586_v46 = vmul.f32 %v7370_v48, %v12086_v39  ;;  %v1590_v13 = vadd.f32 %v1582_v14, %v12090_v15 }
 0x158   : > { %12087 = vst [vmem:[#allocation52_spill] sm:$0xff] %v7429_v17  ;;  %v1592_v17 = vadd.f32 %v1584_v27, %v1576_v6  ;;  %v1598_v59 = vmul.f32 %v7309_v61, %v11946_v36  ;;  %v1600_v34 = vmul.f32 %v7321_v7, %v11946_v36  ;;  %v1602_v25 = vmul.f32 %v7335_v3, %v11946_v36 }
 0x159   : > { %12089 = vst [vmem:[#allocation77_spill] sm:$0xff] %v7440_v1  ;;  %5143 = vst [vmem:[%s6394_s26 + $0x78] sm:$0xff] %v1466_v21  ;;  %v7452_v26 = vadd.f32 %v1573_v41, %v1566_v31  ;;  %v1594_v37 = vadd.f32 %v1586_v46, %v1578_v30  ;;  %v1614_v1 = vmul.f32 %v1532_v2, %v12092_v45 }
 0x15a   : > { %v1616_v48 = vmul.f32 %v7378_v20, %v12092_v45  ;;  %v7459_v6 = vmul.f32 %v7364_v18, %v12086_v39  ;;  %v1606_v14 = vadd.f32 %v1598_v59, %v1590_v13  ;;  %v1608_v27 = vadd.f32 %v1600_v34, %v1592_v17 }
 0x15b   : > { %12091 = vst [vmem:[#allocation81_spill] sm:$0xff] %v7452_v26  ;;  %v1618_v15 = vmul.f32 %v7384_v29, %v12092_v45  ;;  %v7464_v36 = vmul.f32 %v1513_v58, %v12086_v39  ;;  %v1610_v31 = vadd.f32 %v1602_v25, %v1594_v37  ;;  %v1630_v41 = vmul.f32 %v7355_v47, %v11951_v8 }
 0x15c   : > { %v1632_v2 = vmul.f32 %v7364_v18, %v11951_v8  ;;  %v1622_v30 = vadd.f32 %v1614_v1, %v1606_v14  ;;  %v1624_v21 = vadd.f32 %v1616_v48, %v1608_v27  ;;  %v1634_v46 = vmul.f32 %v1513_v58, %v11951_v8 }
 0x15d   : > { %v1645_v59 = vmul.f32 %v7312_v32, %v11952_v57  ;;  %v7475_v17 = vmul.f32 %v7375_v0, %v12092_v45  ;;  %v1626_v13 = vadd.f32 %v1618_v15, %v1610_v31  ;;  %v1647_v37 = vmul.f32 %v7330_v40, %v11952_v57 }
 0x15e   : > { %v1649_v47 = vmul.f32 %v7338_v56, %v11952_v57  ;;  %v1637_v34 = vadd.f32 %v1630_v41, %v1622_v30  ;;  %v1639_v18 = vadd.f32 %v1632_v2, %v1624_v21  ;;  %v1660_v1 = vmul.f32 %v7375_v0, %v11998_v22  ;;  %v12093_v41 = vld [vmem:[#allocation51_spill] sm:$0xff]  ;;  %v12095_v2 = vld [vmem:[#allocation49_spill] sm:$0xff] }
 0x15f   : > { %v1662_v48 = vmul.f32 %v7381_v44, %v11998_v22  ;;  %v7487_v58 = vmul.f32 %v7381_v44, %v12092_v45  ;;  %v7491_v15 = vmul.f32 %v7389_v60, %v12092_v45  ;;  %v1641_v25 = vadd.f32 %v1634_v46, %v1626_v13  ;;  %v12096_v44 = vld [vmem:[#allocation58_spill] sm:$0xff]  ;;  %v12098_v13 = vld [vmem:[#allocation56_spill] sm:$0xff] }
 0x160   : > { %v1664_v14 = vmul.f32 %v7389_v60, %v11998_v22  ;;  %v1652_v27 = vadd.f32 %v1645_v59, %v1637_v34  ;;  %v1654_v31 = vadd.f32 %v1647_v37, %v1639_v18  ;;  %v7497_v0 = vmul.f32 %v12093_v41, %v12046_v53  ;;  %v12099_v18 = vld [vmem:[#allocation75_spill] sm:$0xff]  ;;  %v12102_v45 = vld [vmem:[#allocation38_spill] sm:$0xff] }
 0x161   : > { %v1740_v30 = vmul.f32 %v12095_v2, %v12046_v53  ;;  %v1656_v21 = vadd.f32 %v1649_v47, %v1641_v25  ;;  %v7503_v26 = vmul.f32 %v12096_v44, %v12046_v53  ;;  %v1742_v46 = vmul.f32 %v7121_v55, %v12046_v53  ;;  %v12101_v25 = vld [vmem:[#allocation93_spill] sm:$0xff] }
 0x162   : > { %12094 = vst [vmem:[#allocation94_spill] sm:$0xff] %v7497_v0  ;;  %v1755_v60 = vmul.f32 %v12098_v13, %v12051_v24  ;;  %v1667_v59 = vadd.f32 %v1660_v1, %v1652_v27  ;;  %v1669_v37 = vadd.f32 %v1662_v48, %v1654_v31  ;;  %v1757_v34 = vmul.f32 %v7096_v19, %v12051_v24  ;;  %v12104_v48 = vld [vmem:[#allocation39_spill] sm:$0xff] }
 0x163   : > { %12097 = vst [vmem:[#allocation95_spill] sm:$0xff] %v7503_v26  ;;  %v7513_v0 = vmul.f32 %v12099_v18, %v12053_v43  ;;  %v1671_v47 = vadd.f32 %v1664_v14, %v1656_v21  ;;  %v1770_v26 = vmul.f32 %v12101_v25, %v12053_v43  ;;  %v7519_v53 = vmul.f32 %v12102_v45, %v12053_v43 }
 0x164   : > { %v1772_v1 = vmul.f32 %v7128_v16, %v12053_v43  ;;  %v1746_v27 = vadd.f32 %v1667_v59, %v12104_v48  ;;  %v1748_v31 = vadd.f32 %v1740_v30, %v1669_v37  ;;  %v1784_v24 = vmul.f32 %v12093_v41, %v12055_v54  ;;  %v12107_v43 = vld [vmem:[#allocation50_spill] sm:$0xff] }
 0x165   : > { %12100 = vst [vmem:[#allocation96_spill] sm:$0xff] %v7513_v0  ;;  %12103 = vst [vmem:[#allocation21_spill] sm:$0xff] %v7519_v53  ;;  %v7528_v14 = vmul.f32 %v12095_v2, %v12055_v54  ;;  %v1750_v21 = vadd.f32 %v1742_v46, %v1671_v47  ;;  %v1786_v0 = vmul.f32 %v12096_v44, %v12055_v54  ;;  %v12108_v59 = vld [vmem:[#allocation46_spill] sm:$0xff]  ;;  %v7544_v46 = vld [vmem:[%s5923_s12 + $0xc0] sm:$0xff] }
 0x166   : > { %v7534_v53 = vmul.f32 %v7121_v55, %v12055_v54  ;;  %v1800_v29 = vmul.f32 %v12107_v43, %v12007_v10  ;;  %v1761_v30 = vadd.f32 %v1746_v27, %v12108_v59  ;;  %v1763_v37 = vadd.f32 %v1755_v60, %v1748_v31  ;;  %12109 = vst [vmem:[#allocation41_spill] sm:$0xff] %v7544_v46  ;;  %v7547_v47 = vld [vmem:[%s5923_s12 + $0xc8] sm:$0xff]  ;;  %v12113_v27 = vld [vmem:[#allocation45_spill] sm:$0xff] }
 0x167   : > { %12105 = vst [vmem:[#allocation25_spill] sm:$0xff] %v7528_v14  ;;  %v1802_v41 = vmul.f32 %v7003_v5, %v12007_v10  ;;  %v1816_v48 = vmul.f32 %v12099_v18, %v6036_v50  ;;  %12110 = vst [vmem:[#allocation97_spill] sm:$0xff] %v7547_v47  ;;  %v1765_v14 = vadd.f32 %v1757_v34, %v1750_v21  ;;  %v1895_v44 = vrot.slane %v7547_v47, 7 }
 0x168   : > { %12106 = vst [vmem:[#allocation86_spill] sm:$0xff] %v7534_v53  ;;  %v7551_v53 = vmul.f32 %v12101_v25, %v6036_v50  ;;  %v1818_v43 = vmul.f32 %v12102_v45, %v6036_v50  ;;  %v7557_v60 = vmul.f32 %v7128_v16, %v6036_v50  ;;  %v1776_v31 = vadd.f32 %v1761_v30, %v12113_v27 }
 0x169   : > { %v1778_v59 = vadd.f32 %v1770_v26, %v1763_v37  ;;  %v1832_v18 = vmul.f32 %v12095_v2, %v6038_v51  ;;  %v1834_v34 = vmul.f32 %v7121_v55, %v6038_v51  ;;  %v1847_v21 = vmul.f32 %v12098_v13, %v6189_v28 }
 0x16a   : > { %12111 = vst [vmem:[#allocation82_spill] sm:$0xff] %v7551_v53  ;;  %12112 = vst [vmem:[#allocation87_spill] sm:$0xff] %v7557_v60  ;;  %v1849_v53 = vmul.f32 %v7096_v19, %v6189_v28  ;;  %v1894_v45 = vrot.slane %v7544_v46, 7  ;;  %v1792_v60 = vadd.f32 %v1784_v24, %v1776_v31  ;;  %v1918_v26 = vrot.slane %v7544_v46, 1 }
 0x16b   : > { %v1794_v30 = vadd.f32 %v1786_v0, %v1778_v59  ;;  %v1919_v2 = vrot.slane %v7547_v47, 1  ;;  %v7572_v37 = vadd.f32 %v1772_v1, %v1765_v14  ;;  %v1862_v55 = vmul.f32 %v12101_v25, %v6040_v52 }
 0x16c   : > { %v1864_v13 = vmul.f32 %v7128_v16, %v6040_v52  ;;  %v7579_v27 = vsel %vm419_vm2, 0.0, %v1894_v45  ;;  %v1808_v28 = vadd.f32 %v1800_v29, %v1792_v60  ;;  %v7582_v24 = vsel %vm419_vm2, 0.0, %v1895_v44  ;;  %v7601_v29 = vld [vmem:[%s5923_s12 + $0x70] sm:$0xff] }
 0x16d   : > { %12114 = vst [vmem:[#allocation26_spill] sm:$0xff] %v7572_v37  ;;  %12115 = vst [vmem:[#allocation37_spill] sm:$0xff] %v7579_v27  ;;  %v1810_v51 = vadd.f32 %v1802_v41, %v1794_v30  ;;  %v1958_v0 = vmul.f32 %v7547_v47, %v12012_v12  ;;  %v7587_v1 = vsel %vm447_vm3, %v1918_v26, 0.0  ;;  %v7590_v14 = vsel %vm447_vm3, %v1919_v2, 0.0 }
 0x16e   : > { %12116 = vst [vmem:[#allocation70_spill] sm:$0xff] %v7582_v24  ;;  %12117 = vst [vmem:[#allocation42_spill] sm:$0xff] %v7587_v1  ;;  %v7594_v16 = vmul.f32 %v7579_v27, %v12020_v38  ;;  %v7598_v45 = vmul.f32 %v7544_v46, %v12017_v33  ;;  %v1824_v44 = vadd.f32 %v1816_v48, %v1808_v28  ;;  %v1498_v26 = vrot.slane %v7601_v29, 7 }
 0x16f   : > { %12118 = vst [vmem:[#allocation89_spill] sm:$0xff] %v7590_v14  ;;  %v1826_v25 = vadd.f32 %v1818_v43, %v1810_v51  ;;  %v1943_v59 = vmul.f32 %v7582_v24, %v12020_v38  ;;  %v7607_v41 = vmul.f32 %v7587_v1, %v12021_v11  ;;  %v7611_v60 = vmul.f32 %v7590_v14, %v12021_v11 }
 0x170   : > { %12119 = vst [vmem:[#allocation88_spill] sm:$0xff] %v7594_v16  ;;  %v1987_v31 = vmul.f32 %v7579_v27, %v12023_v62  ;;  %v7617_v30 = vmul.f32 %v7582_v24, %v12023_v62  ;;  %v7621_v28 = vmul.f32 %v7587_v1, %v12024_v63  ;;  %v1839_v51 = vadd.f32 %v1832_v18, %v1824_v44  ;;  %v12124_v44 = vld [vmem:[#allocation69_spill] sm:$0xff] }
 0x171   : > { %12120 = vst [vmem:[#allocation90_spill] sm:$0xff] %v7607_v41  ;;  %v1841_v48 = vadd.f32 %v1834_v34, %v1826_v25  ;;  %v7625_v43 = vmul.f32 %v7590_v14, %v12024_v63  ;;  %v1522_v2 = vrot.slane %v7601_v29, 1  ;;  %v1547_v27 = vadd.f32 %v12081_v23, %v7403_v42  ;;  %v12123_v41 = vld [vmem:[#allocation80_spill] sm:$0xff] }
 0x172   : > { %12121 = vst [vmem:[#allocation98_spill] sm:$0xff] %v7617_v30  ;;  %v1549_v30 = vadd.f32 %v12081_v23, %v12123_v41  ;;  %v1551_v1 = vadd.f32 %v12081_v23, %v7418_v9  ;;  %v1854_v16 = vadd.f32 %v1847_v21, %v1839_v51  ;;  %v1514_v34 = vsel %vm419_vm2, 0.0, %v1498_v26  ;;  %v12126_v21 = vld [vmem:[#allocation68_spill] sm:$0xff] }
 0x173   : > { %12122 = vst [vmem:[#allocation51_spill] sm:$0xff] %v7625_v43  ;;  %v1856_v18 = vadd.f32 %v1849_v53, %v1841_v48  ;;  %v1554_v25 = vmul.f32 %v7309_v61, %v12124_v44  ;;  %v12125_v43 = vld [vmem:[#allocation33_spill] sm:$0xff]  ;;  %v1546_v63 = vmul.f32 %v1514_v34, %v12079_v49  ;;  %v1556_v42 = vmul.f32 %v7321_v7, %v12124_v44 }
 0x174   : > { %v2035_v37 = vmul.f32 %v7582_v24, %v12125_v43  ;;  %v1558_v41 = vmul.f32 %v7335_v3, %v12124_v44  ;;  %v1869_v62 = vadd.f32 %v1862_v55, %v1854_v16  ;;  %v7647_v53 = vmul.f32 %v7547_v47, %v12126_v21  ;;  %v12127_v49 = vld [vmem:[#allocation57_spill] sm:$0xff] }
 0x175   : > { %v1871_v9 = vadd.f32 %v1864_v13, %v1856_v18  ;;  %v1561_v51 = vadd.f32 %v1554_v25, %v1547_v27  ;;  %v1538_v61 = vsel %vm447_vm3, %v1522_v2, 0.0  ;;  %v1560_v48 = vmul.f32 %v7601_v29, %v12124_v44  ;;  %v12128_v13 = vld [vmem:[#allocation34_spill] sm:$0xff]  ;;  %v12129_v18 = vld [vmem:[#allocation52_spill] sm:$0xff]  ;;  %v12130_v25 = vld [vmem:[#allocation71_spill] sm:$0xff] }
 0x176   : > { %v1563_v26 = vadd.f32 %v1556_v42, %v1549_v30  ;;  %v1565_v24 = vadd.f32 %v1558_v41, %v1551_v1  ;;  %v1949_v43 = vadd.f32 %v1869_v62, %v12127_v49  ;;  %v1553_v38 = vadd.f32 %v12081_v23, %v1546_v63  ;;  %v12131_v30 = vld [vmem:[#allocation61_spill] sm:$0xff]  ;;  %v12132_v42 = vld [vmem:[#allocation16_spill] sm:$0xff] }
 0x177   : > { %v1951_v11 = vadd.f32 %v1943_v59, %v1871_v9  ;;  %v1575_v55 = vadd.f32 %v7421_v4, %v1561_v51  ;;  %v7657_v16 = vmul.f32 %v7590_v14, %v12128_v13  ;;  %v1599_v44 = vmul.f32 %v7312_v32, %v12130_v25  ;;  %v12133_v59 = vld [vmem:[#allocation77_spill] sm:$0xff] }
 0x178   : > { %v1577_v27 = vadd.f32 %v12129_v18, %v1563_v26  ;;  %v1579_v2 = vadd.f32 %v7433_v35, %v1565_v24  ;;  %v1964_v1 = vadd.f32 %v1949_v43, %v12131_v30  ;;  %v1574_v62 = vmul.f32 %v1538_v61, %v12132_v42  ;;  %v12134_v24 = vld [vmem:[#allocation62_spill] sm:$0xff] }
 0x179   : > { %v1591_v41 = vadd.f32 %v12133_v59, %v1575_v55  ;;  %v1601_v63 = vmul.f32 %v7330_v40, %v12130_v25  ;;  %v7669_v23 = vmul.f32 %v1514_v34, %v12086_v39  ;;  %v1603_v35 = vmul.f32 %v7338_v56, %v12130_v25  ;;  %v12135_v59 = vld [vmem:[#allocation54_spill] sm:$0xff] }
 0x17a   : > { %v1593_v4 = vadd.f32 %v7459_v6, %v1577_v27  ;;  %v1595_v9 = vadd.f32 %v7464_v36, %v1579_v2  ;;  %v1966_v32 = vadd.f32 %v1958_v0, %v1951_v11  ;;  %v1979_v43 = vadd.f32 %v1964_v1, %v12134_v24  ;;  %v12136_v30 = vld [vmem:[#allocation66_spill] sm:$0xff] }
 0x17b   : > { %v1567_v51 = vadd.f32 %v1560_v48, %v1553_v38  ;;  %v1607_v26 = vadd.f32 %v1599_v44, %v1591_v41  ;;  %v1631_v40 = vmul.f32 %v12135_v59, %v11951_v8  ;;  %v1633_v49 = vmul.f32 %v12136_v30, %v11951_v8  ;;  %v12138_v1 = vld [vmem:[#allocation18_spill] sm:$0xff] }
 0x17c   : > { %v1609_v18 = vadd.f32 %v1601_v63, %v1593_v4  ;;  %v1611_v55 = vadd.f32 %v1603_v35, %v1595_v9  ;;  %v1995_v14 = vadd.f32 %v1987_v31, %v1979_v43  ;;  %v1635_v36 = vmul.f32 %v1514_v34, %v11951_v8  ;;  %v5454_v4 = vld [vmem:[%s5923_s12 + $0x80] sm:$0xff] }
 0x17d   : > { %v1623_v6 = vadd.f32 %v7475_v17, %v1607_v26  ;;  %v1646_v11 = vmul.f32 %v7321_v7, %v11952_v57  ;;  %v1648_v0 = vmul.f32 %v7335_v3, %v11952_v57  ;;  %v1650_v44 = vmul.f32 %v7601_v29, %v11952_v57  ;;  %v12141_v9 = vld [vmem:[#allocation43_spill] sm:$0xff] }
 0x17e   : > { %v1625_v56 = vadd.f32 %v7487_v58, %v1609_v18  ;;  %v1627_v38 = vadd.f32 %v7491_v15, %v1611_v55  ;;  %v2011_v31 = vadd.f32 %v7598_v45, %v1995_v14  ;;  %v7691_v48 = vadd.f32 %v1574_v62, %v1567_v51  ;;  %v12137_v58 = vld [vmem:[#allocation60_spill] sm:$0xff]  ;;  %v12143_v18 = vld [vmem:[#allocation23_spill] sm:$0xff] }
 0x17f   : > { %v1638_v17 = vadd.f32 %v1631_v40, %v1623_v6  ;;  %v1661_v34 = vmul.f32 %v7378_v20, %v11998_v22  ;;  %v1663_v15 = vmul.f32 %v12137_v58, %v11998_v22  ;;  %v1665_v2 = vmul.f32 %v1538_v61, %v11998_v22  ;;  %v12139_v20 = vld [vmem:[#allocation22_spill] sm:$0xff]  ;;  %v12144_v55 = vld [vmem:[#allocation48_spill] sm:$0xff] }
 0x180   : > { %v1640_v7 = vadd.f32 %v1633_v49, %v1625_v56  ;;  %v1642_v27 = vadd.f32 %v1635_v36, %v1627_v38  ;;  %v7699_v3 = vadd.f32 %v7611_v60, %v1966_v32  ;;  %v2027_v30 = vadd.f32 %v7621_v28, %v2011_v31  ;;  %v12140_v49 = vld [vmem:[#allocation44_spill] sm:$0xff]  ;;  %v12145_v36 = vld [vmem:[#allocation94_spill] sm:$0xff] }
 0x181   : > { %v7703_v14 = vmul.f32 %v1538_v61, %v12138_v1  ;;  %v1653_v45 = vadd.f32 %v1646_v11, %v1638_v17  ;;  %v1743_v63 = vmul.f32 %v12140_v49, %v12139_v20  ;;  %v1754_v35 = vmul.f32 %v5454_v4, %v12141_v9  ;;  %v12142_v28 = vld [vmem:[#allocation76_spill] sm:$0xff] }
 0x182   : > { %v1655_v62 = vadd.f32 %v1648_v0, %v1640_v7  ;;  %v1657_v41 = vadd.f32 %v1650_v44, %v1642_v27  ;;  %v2042_v43 = vadd.f32 %v2035_v37, %v2027_v30  ;;  %v1756_v60 = vmul.f32 %v7003_v5, %v12141_v9  ;;  %v5455_v11 = vld [vmem:[%s5923_s12 + $0x88] sm:$0xff]  ;;  %v7726_v0 = vld [vmem:[%s5923_s12 + $0xd0] sm:$0xff]  ;;  %v12146_v44 = vld [vmem:[#allocation95_spill] sm:$0xff] }
 0x183   : > { %v1668_v51 = vadd.f32 %v1661_v34, %v1653_v45  ;;  %v1758_v61 = vmul.f32 %v12142_v28, %v12141_v9  ;;  %v1773_v59 = vmul.f32 %v12144_v55, %v12143_v18  ;;  %v7717_v40 = vmul.f32 %v12140_v49, %v12055_v54  ;;  %v12147_v7 = vld [vmem:[#allocation28_spill] sm:$0xff] }
 0x184   : > { %v1670_v32 = vadd.f32 %v1663_v15, %v1655_v62  ;;  %v1672_v26 = vadd.f32 %v1665_v2, %v1657_v41  ;;  %v2057_v6 = vadd.f32 %v7647_v53, %v2042_v43  ;;  %v1801_v56 = vmul.f32 %v5455_v11, %v12007_v10  ;;  %v12148_v53 = vld [vmem:[#allocation58_spill] sm:$0xff]  ;;  %v12150_v4 = vld [vmem:[#allocation96_spill] sm:$0xff] }
 0x185   : > { %v1747_v37 = vadd.f32 %v12145_v36, %v1668_v51  ;;  %v1803_v38 = vmul.f32 %v7096_v19, %v12007_v10  ;;  %v7731_v34 = vmul.f32 %v12144_v55, %v6036_v50  ;;  %v1833_v27 = vmul.f32 %v12148_v53, %v12147_v7  ;;  %v12149_v19 = vld [vmem:[#allocation53_spill] sm:$0xff] }
 0x186   : > { %v1749_v31 = vadd.f32 %v12146_v44, %v1670_v32  ;;  %v1751_v17 = vadd.f32 %v1743_v63, %v1672_v26  ;;  %v2072_v58 = vadd.f32 %v7657_v16, %v2057_v6  ;;  %v1835_v2 = vmul.f32 %v12140_v49, %v12147_v7  ;;  %v12152_v32 = vld [vmem:[#allocation21_spill] sm:$0xff]  ;;  %v7762_v6 = vld [vmem:[%s5923_s12 + $0x78] sm:$0xff] }
 0x187   : > { %v1762_v15 = vadd.f32 %v1754_v35, %v1747_v37  ;;  %v1848_v30 = vmul.f32 %v7003_v5, %v12149_v19  ;;  %v1896_v41 = vrot.slane %v7726_v0, 7  ;;  %v1920_v63 = vrot.slane %v7726_v0, 1  ;;  %v12151_v35 = vld [vmem:[#allocation38_spill] sm:$0xff]  ;;  %v12154_v37 = vld [vmem:[#allocation25_spill] sm:$0xff] }
 0x188   : > { %v1764_v45 = vadd.f32 %v1756_v60, %v1749_v31  ;;  %v1766_v62 = vadd.f32 %v1758_v61, %v1751_v17  ;;  %5168 = vst [vmem:[%s6394_s26 + $0x80] sm:$0xff] %v2072_v58  ;;  %v1850_v16 = vmul.f32 %v12142_v28, %v12149_v19  ;;  %v1863_v51 = vmul.f32 %v12151_v35, %v6040_v52  ;;  %v12157_v31 = vld [vmem:[#allocation86_spill] sm:$0xff]  ;;  %v12158_v53 = vld [vmem:[#allocation29_spill] sm:$0xff] }
 0x189   : > { %v1777_v43 = vadd.f32 %v12150_v4, %v1762_v15  ;;  %v1865_v49 = vmul.f32 %v12144_v55, %v6040_v52  ;;  %v1957_v60 = vmul.f32 %v7544_v46, %v12012_v12  ;;  %v7755_v61 = vmul.f32 %v7726_v0, %v12012_v12  ;;  %v12159_v15 = vld [vmem:[#allocation30_spill] sm:$0xff]  ;;  %v12160_v4 = vld [vmem:[#allocation31_spill] sm:$0xff] }
 0x18a   : > { %v1779_v5 = vadd.f32 %v12152_v32, %v1764_v45  ;;  %v7759_v26 = vmul.f32 %v7547_v47, %v12017_v33  ;;  %v7764_v36 = vadd.f32 %v1773_v59, %v1766_v62  ;;  %v7768_v55 = vsel %vm419_vm2, 0.0, %v1896_v41 }
 0x18b   : > { %v1793_v11 = vadd.f32 %v12154_v37, %v1777_v43  ;;  %12155 = vst [vmem:[#allocation56_spill] sm:$0xff] %v7768_v55  ;;  %v7771_v44 = vsel %vm447_vm3, %v1920_v63, 0.0  ;;  %v1944_v58 = vmul.f32 %v7768_v55, %v12158_v53  ;;  %v1989_v59 = vmul.f32 %v7768_v55, %v12160_v4  ;;  %v12161_v43 = vld [vmem:[#allocation32_spill] sm:$0xff] }
 0x18c   : > { %12153 = vst [vmem:[#allocation49_spill] sm:$0xff] %v7764_v36  ;;  %12156 = vst [vmem:[#allocation75_spill] sm:$0xff] %v7771_v44  ;;  %v1795_v17 = vadd.f32 %v12157_v31, %v1779_v5  ;;  %v7778_v45 = vmul.f32 %v7771_v44, %v12159_v15  ;;  %v7784_v41 = vmul.f32 %v7771_v44, %v12161_v43  ;;  %v1499_v63 = vrot.slane %v7762_v6, 7  ;;  %v12162_v5 = vld [vmem:[#allocation33_spill] sm:$0xff] }
 0x18d   : > { %v1809_v62 = vadd.f32 %v1801_v56, %v1793_v11  ;;  %v1523_v35 = vrot.slane %v7762_v6, 1  ;;  %v7790_v37 = vmul.f32 %v7768_v55, %v12162_v5  ;;  %v12164_v31 = vld [vmem:[#allocation81_spill] sm:$0xff]  ;;  %v1604_v46 = vmul.f32 %v7601_v29, %v12130_v25  ;;  %v12165_v56 = vld [vmem:[#allocation82_spill] sm:$0xff] }
 0x18e   : > { %v1811_v32 = vadd.f32 %v1803_v38, %v1795_v17  ;;  %v1596_v24 = vadd.f32 %v7669_v23, %v12164_v31  ;;  %v7799_v47 = vmul.f32 %v7726_v0, %v12126_v21  ;;  %v1515_v42 = vsel %vm419_vm2, 0.0, %v1499_v63  ;;  %v12167_v17 = vld [vmem:[#allocation87_spill] sm:$0xff] }
 0x18f   : > { %12163 = vst [vmem:[#allocation93_spill] sm:$0xff] %v7790_v37  ;;  %v1825_v11 = vadd.f32 %v12165_v56, %v1809_v62  ;;  %v1539_v38 = vsel %vm447_vm3, %v1523_v35, 0.0  ;;  %v7806_v37 = vmul.f32 %v7771_v44, %v12128_v13  ;;  %v1651_v29 = vmul.f32 %v7762_v6, %v11952_v57  ;;  %v7818_v44 = vld [vmem:[%s5923_s12 + $0xd8] sm:$0xff] }
 0x190   : > { %12166 = vst [vmem:[#allocation50_spill] sm:$0xff] %v7799_v47  ;;  %v1827_v55 = vadd.f32 %v12167_v17, %v1811_v32  ;;  %v1612_v23 = vadd.f32 %v1604_v46, %v1596_v24  ;;  %v1589_v31 = vmul.f32 %v1515_v42, %v12086_v39  ;;  %v1636_v56 = vmul.f32 %v1515_v42, %v11951_v8  ;;  %v12168_v47 = vld [vmem:[#allocation24_spill] sm:$0xff] }
 0x191   : > { %v1840_v62 = vadd.f32 %v1833_v27, %v1825_v11  ;;  %v1744_v63 = vmul.f32 %v12168_v47, %v12139_v20  ;;  %v1621_v35 = vmul.f32 %v1539_v38, %v12138_v1  ;;  %v1666_v17 = vmul.f32 %v1539_v38, %v11998_v22  ;;  %v12169_v24 = vld [vmem:[#allocation40_spill] sm:$0xff]  ;;  %v12170_v11 = vld [vmem:[#allocation26_spill] sm:$0xff] }
 0x192   : > { %v1842_v36 = vadd.f32 %v1835_v2, %v1827_v55  ;;  %v1628_v32 = vadd.f32 %v7703_v14, %v1612_v23  ;;  %v1759_v27 = vmul.f32 %v12169_v24, %v12141_v9  ;;  %v1796_v57 = vadd.f32 %v7717_v40, %v12170_v11  ;;  %v12171_v55 = vld [vmem:[#allocation27_spill] sm:$0xff] }
 0x193   : > { %v1855_v46 = vadd.f32 %v1848_v30, %v1840_v62  ;;  %v1804_v42 = vmul.f32 %v12142_v28, %v12007_v10  ;;  %v1774_v1 = vmul.f32 %v12171_v55, %v12143_v18  ;;  %v1789_v14 = vmul.f32 %v12168_v47, %v12055_v54 }
 0x194   : > { %v1857_v8 = vadd.f32 %v1850_v16, %v1842_v36  ;;  %v1643_v2 = vadd.f32 %v1636_v56, %v1628_v32  ;;  %v1836_v30 = vmul.f32 %v12168_v47, %v12147_v7  ;;  %v1897_v62 = vrot.slane %v7818_v44, 7  ;;  %v12172_v36 = vld [vmem:[#allocation88_spill] sm:$0xff] }
 0x195   : > { %v1870_v38 = vadd.f32 %v1863_v51, %v1855_v46  ;;  %v1812_v23 = vadd.f32 %v1804_v42, %v1796_v57  ;;  %v1821_v28 = vmul.f32 %v12171_v55, %v6036_v50  ;;  %v1921_v16 = vrot.slane %v7818_v44, 1 }
 0x196   : > { %v1872_v22 = vadd.f32 %v1865_v49, %v1857_v8  ;;  %v1658_v40 = vadd.f32 %v1651_v29, %v1643_v2  ;;  %v1851_v51 = vmul.f32 %v12169_v24, %v12149_v19  ;;  %v1866_v57 = vmul.f32 %v12171_v55, %v6040_v52 }
 0x197   : > { %v1950_v56 = vadd.f32 %v12172_v36, %v1870_v38  ;;  %v1828_v32 = vadd.f32 %v7731_v34, %v1812_v23  ;;  %v1960_v8 = vmul.f32 %v7818_v44, %v12012_v12  ;;  %v1997_v49 = vadd.f32 %v1989_v59, %v7699_v3 }
 0x198   : > { %v1952_v47 = vadd.f32 %v1944_v58, %v1872_v22  ;;  %v1673_v46 = vadd.f32 %v1666_v17, %v1658_v40  ;;  %v7846_v42 = vsel %vm419_vm2, 0.0, %v1897_v62  ;;  %v7849_v34 = vsel %vm447_vm3, %v1921_v16, 0.0  ;;  %v12173_v17 = vld [vmem:[#allocation90_spill] sm:$0xff] }
 0x199   : > { %v1965_v29 = vadd.f32 %v1957_v60, %v1950_v56  ;;  %v1843_v11 = vadd.f32 %v1836_v30, %v1828_v32  ;;  %v1945_v22 = vmul.f32 %v7846_v42, %v12158_v53  ;;  %v2005_v58 = vmul.f32 %v7726_v0, %v12017_v33  ;;  %v12174_v62 = vld [vmem:[#allocation98_spill] sm:$0xff] }
 0x19a   : > { %v1967_v2 = vadd.f32 %v7755_v61, %v1952_v47  ;;  %v1752_v38 = vadd.f32 %v1744_v63, %v1673_v46  ;;  %v1975_v60 = vmul.f32 %v7849_v34, %v12159_v15  ;;  %v1990_v59 = vmul.f32 %v7846_v42, %v12160_v4 }
 0x19b   : > { %v1980_v55 = vadd.f32 %v12173_v17, %v1965_v29  ;;  %v1858_v3 = vadd.f32 %v1851_v51, %v1843_v11  ;;  %v2013_v30 = vadd.f32 %v2005_v58, %v1997_v49  ;;  %v2022_v61 = vmul.f32 %v7849_v34, %v12161_v43  ;;  %v12176_v11 = vld [vmem:[#allocation49_spill] sm:$0xff]  ;;  %v12178_v17 = vld [vmem:[#allocation59_spill] sm:$0xff] }
 0x19c   : > { %v1767_v23 = vadd.f32 %v1759_v27, %v1752_v38  ;;  %v2037_v63 = vmul.f32 %v7846_v42, %v12162_v5  ;;  %v1597_v36 = vadd.f32 %v1589_v31, %v7691_v48  ;;  %v1605_v56 = vmul.f32 %v7762_v6, %v12130_v25  ;;  %v12175_v31 = vld [vmem:[#allocation55_spill] sm:$0xff] }
 0x19d   : > { %v1996_v40 = vadd.f32 %v12174_v62, %v1980_v55  ;;  %v1873_v16 = vadd.f32 %v1866_v57, %v1858_v3  ;;  %v1982_v32 = vadd.f32 %v7778_v45, %v1967_v2  ;;  %v2029_v27 = vadd.f32 %v7784_v41, %v2013_v30  ;;  %v12177_v2 = vld [vmem:[#allocation51_spill] sm:$0xff]  ;;  %v12182_v62 = vld [vmem:[#allocation73_spill] sm:$0xff] }
 0x19e   : > { %v2052_v51 = vmul.f32 %v7818_v44, %v12126_v21  ;;  %v2067_v47 = vmul.f32 %v7849_v34, %v12128_v13  ;;  %v1782_v49 = vadd.f32 %v1774_v1, %v1767_v23  ;;  %v1613_v29 = vadd.f32 %v1605_v56, %v1597_v36 }
 0x19f   : > { %v2012_v46 = vadd.f32 %v7759_v26, %v1996_v40  ;;  %v1953_v57 = vadd.f32 %v1945_v22, %v1873_v16  ;;  %v2044_v48 = vadd.f32 %v2037_v63, %v2029_v27  ;;  %v1745_v6 = vmul.f32 %v12175_v31, %v12139_v20  ;;  %v12179_v26 = vld [vmem:[#allocation35_spill] sm:$0xff]  ;;  %v12181_v63 = vld [vmem:[#allocation93_spill] sm:$0xff] }
 0x1a0   : > { %v1797_v45 = vadd.f32 %v1789_v14, %v12176_v11  ;;  %v1805_v41 = vmul.f32 %v12169_v24, %v12007_v10  ;;  %v1629_v58 = vadd.f32 %v1621_v35, %v1613_v29  ;;  %v1760_v55 = vmul.f32 %v12178_v17, %v12141_v9  ;;  %v7887_v22 = vld [vmem:[%s5923_s12 + $0xe0] sm:$0xff] }
 0x1a1   : > { %v2028_v38 = vadd.f32 %v12177_v2, %v2012_v46  ;;  %v1775_v1 = vmul.f32 %v12179_v26, %v12143_v18  ;;  %12180 = vst [vmem:[#allocation80_spill] sm:$0xff] %v7887_v22  ;;  %v1968_v3 = vadd.f32 %v1960_v8, %v1953_v57  ;;  %v2059_v23 = vadd.f32 %v2052_v51, %v2044_v48  ;;  %v12183_v51 = vld [vmem:[#allocation50_spill] sm:$0xff]  ;;  %v12184_v57 = vld [vmem:[#allocation65_spill] sm:$0xff]  ;;  %v12185_v2 = vld [vmem:[#allocation63_spill] sm:$0xff] }
 0x1a2   : > { %v1813_v30 = vadd.f32 %v1805_v41, %v1797_v45  ;;  %v1837_v14 = vmul.f32 %v12175_v31, %v12147_v7  ;;  %v1644_v40 = vadd.f32 %v1629_v58, %v12182_v62  ;;  %v1790_v35 = vmul.f32 %v12175_v31, %v12055_v54 }
 0x1a3   : > { %v2043_v24 = vadd.f32 %v12181_v63, %v2028_v38  ;;  %v1852_v16 = vmul.f32 %v12178_v17, %v12149_v19  ;;  %v2074_v36 = vadd.f32 %v2067_v47, %v2059_v23  ;;  %v1898_v8 = vrot.slane %v7887_v22, 7 }
 0x1a4   : > { %v1829_v56 = vadd.f32 %v1821_v28, %v1813_v30  ;;  %v1922_v27 = vrot.slane %v7887_v22, 1  ;;  %v1659_v29 = vadd.f32 %v1644_v40, %v12184_v57  ;;  %v1822_v48 = vmul.f32 %v12179_v26, %v6036_v50 }
 0x1a5   : > { %v2058_v46 = vadd.f32 %v12183_v51, %v2043_v24  ;;  %v1998_v11 = vadd.f32 %v1990_v59, %v1982_v32  ;;  %v1983_v45 = vadd.f32 %v1975_v60, %v1968_v3  ;;  %5170 = vst [vmem:[%s6394_s26 + $0x90] sm:$0xff] %v2074_v36  ;;  %v1867_v47 = vmul.f32 %v12179_v26, %v6040_v52  ;;  %v7930_v36 = vld [vmem:[%s5923_s12 + $0xe8] sm:$0xff] }
 0x1a6   : > { %v1844_v31 = vadd.f32 %v1837_v14, %v1829_v56  ;;  %v2006_v28 = vmul.f32 %v7818_v44, %v12017_v33  ;;  %v1674_v38 = vadd.f32 %v1659_v29, %v12185_v2  ;;  %v7911_v58 = vsel %vm419_vm2, 0.0, %v1898_v8  ;;  %12188 = vst [vmem:[#allocation77_spill] sm:$0xff] %v7930_v36 }
 0x1a7   : > { %v2073_v41 = vadd.f32 %v7806_v37, %v2058_v46  ;;  %12186 = vst [vmem:[#allocation52_spill] sm:$0xff] %v7911_v58  ;;  %v1961_v59 = vmul.f32 %v7887_v22, %v12012_v12  ;;  %v7916_v32 = vsel %vm447_vm3, %v1922_v27, 0.0  ;;  %v1946_v26 = vmul.f32 %v7911_v58, %v12158_v53 }
 0x1a8   : > { %v1859_v60 = vadd.f32 %v1852_v16, %v1844_v31  ;;  %12187 = vst [vmem:[#allocation71_spill] sm:$0xff] %v7916_v32  ;;  %v2014_v3 = vadd.f32 %v2006_v28, %v1998_v11  ;;  %v1753_v23 = vadd.f32 %v1745_v6, %v1674_v38  ;;  %v1976_v37 = vmul.f32 %v7916_v32, %v12159_v15  ;;  %v12190_v11 = vld [vmem:[#allocation79_spill] sm:$0xff] }
 0x1a9   : > { %5169 = vst [vmem:[%s6394_s26 + $0x88] sm:$0xff] %v2073_v41  ;;  %v1991_v30 = vmul.f32 %v7911_v58, %v12160_v4  ;;  %v2038_v14 = vmul.f32 %v7911_v58, %v12162_v5  ;;  %v2053_v40 = vmul.f32 %v7887_v22, %v12126_v21  ;;  %v1798_v16 = vadd.f32 %v1790_v35, %v1782_v49 }
 0x1aa   : > { %v1874_v63 = vadd.f32 %v1867_v47, %v1859_v60  ;;  %v2030_v24 = vadd.f32 %v2022_v61, %v2014_v3  ;;  %v1768_v56 = vadd.f32 %v1760_v55, %v1753_v23  ;;  %v2023_v6 = vmul.f32 %v7916_v32, %v12161_v43  ;;  %v12189_v61 = vld [vmem:[#allocation78_spill] sm:$0xff] }
 0x1ab   : > { %v2068_v8 = vmul.f32 %v7916_v32, %v12128_v13  ;;  %v1806_v27 = vmul.f32 %v12178_v17, %v12007_v10  ;;  %v1791_v29 = vmul.f32 %v12189_v61, %v12055_v54  ;;  %v1823_v49 = vmul.f32 %v12190_v11, %v6036_v50  ;;  %v12211_v32 = vld [vmem:[#allocation91_spill] sm:$0xff] }
 0x1ac   : > { %v1954_v51 = vadd.f32 %v1946_v26, %v1874_v63  ;;  %v2045_v46 = vadd.f32 %v2038_v14, %v2030_v24  ;;  %v1838_v55 = vmul.f32 %v12189_v61, %v12147_v7  ;;  %v1899_v31 = vrot.slane %v7930_v36, 7  ;;  %v12191_v26 = vld [vmem:[#allocation67_spill] sm:$0xff] }
 0x1ad   : > { %v1814_v35 = vadd.f32 %v1806_v27, %v1798_v16  ;;  %v1923_v47 = vrot.slane %v7930_v36, 1  ;;  %v1783_v28 = vadd.f32 %v1775_v1, %v1768_v56  ;;  %v1999_v38 = vadd.f32 %v1991_v30, %v1983_v45 }
 0x1ae   : > { %v1969_v41 = vadd.f32 %v1961_v59, %v1954_v51  ;;  %v2060_v17 = vadd.f32 %v2053_v40, %v2045_v46  ;;  %v1853_v3 = vmul.f32 %v12191_v26, %v12149_v19  ;;  %v1868_v23 = vmul.f32 %v12190_v11, %v6040_v52  ;;  %v7958_v59 = vld [vmem:[%s5923_s12 + $0xf0] sm:$0xff] }
 0x1af   : > { %v1830_v60 = vadd.f32 %v1822_v48, %v1814_v35  ;;  %v2007_v14 = vmul.f32 %v7887_v22, %v12017_v33  ;;  %v7953_v16 = vsel %vm419_vm2, 0.0, %v1899_v31  ;;  %v1962_v1 = vmul.f32 %v7930_v36, %v12012_v12  ;;  %12193 = vst [vmem:[#allocation66_spill] sm:$0xff] %v7958_v59 }
 0x1b0   : > { %v1984_v63 = vadd.f32 %v1976_v37, %v1969_v41  ;;  %v2075_v24 = vadd.f32 %v2068_v8, %v2060_v17  ;;  %12192 = vst [vmem:[#allocation54_spill] sm:$0xff] %v7953_v16  ;;  %v7961_v45 = vsel %vm447_vm3, %v1923_v47, 0.0  ;;  %v1992_v30 = vmul.f32 %v7953_v16, %v12160_v4 }
 0x1b1   : > { %v1845_v48 = vadd.f32 %v1838_v55, %v1830_v60  ;;  %12194 = vst [vmem:[#allocation60_spill] sm:$0xff] %v7961_v45  ;;  %v2015_v40 = vadd.f32 %v2007_v14, %v1999_v38  ;;  %v1947_v37 = vmul.f32 %v7953_v16, %v12158_v53  ;;  %v2039_v56 = vmul.f32 %v7953_v16, %v12162_v5 }
 0x1b2   : > { %5171 = vst [vmem:[%s6394_s26 + $0x98] sm:$0xff] %v2075_v24  ;;  %v2054_v8 = vmul.f32 %v7930_v36, %v12126_v21  ;;  %v1799_v27 = vadd.f32 %v1791_v29, %v1783_v28  ;;  %v1807_v61 = vmul.f32 %v12191_v26, %v12007_v10  ;;  %v1900_v11 = vrot.slane %v7958_v59, 7  ;;  %v7993_v24 = vld [vmem:[%s5923_s12 + $0xf8] sm:$0xff] }
 0x1b3   : > { %v1860_v51 = vadd.f32 %v1853_v3, %v1845_v48  ;;  %v2031_v46 = vadd.f32 %v2023_v6, %v2015_v40  ;;  %v2024_v35 = vmul.f32 %v7961_v45, %v12161_v43  ;;  %v1924_v55 = vrot.slane %v7958_v59, 1  ;;  %12197 = vst [vmem:[#allocation48_spill] sm:$0xff] %v7993_v24 }
 0x1b4   : > { %v2000_v31 = vadd.f32 %v1992_v30, %v1984_v63  ;;  %v2008_v47 = vmul.f32 %v7930_v36, %v12017_v33  ;;  %v2069_v6 = vmul.f32 %v7961_v45, %v12128_v13  ;;  %v1815_v29 = vadd.f32 %v1807_v61, %v1799_v27 }
 0x1b5   : > { %v1875_v41 = vadd.f32 %v1868_v23, %v1860_v51  ;;  %v2046_v17 = vadd.f32 %v2039_v56, %v2031_v46  ;;  %v1977_v28 = vmul.f32 %v7961_v45, %v12159_v15  ;;  %v7985_v38 = vsel %vm419_vm2, 0.0, %v1900_v11 }
 0x1b6   : > { %12195 = vst [vmem:[#allocation44_spill] sm:$0xff] %v7985_v38  ;;  %v1963_v60 = vmul.f32 %v7958_v59, %v12012_v12  ;;  %v2016_v26 = vadd.f32 %v2008_v47, %v2000_v31  ;;  %v1831_v63 = vadd.f32 %v1823_v49, %v1815_v29  ;;  %v7990_v23 = vsel %vm447_vm3, %v1924_v55, 0.0  ;;  %v12198_v49 = vld [vmem:[#allocation83_spill] sm:$0xff]  ;;  %v12199_v31 = vld [vmem:[#allocation84_spill] sm:$0xff] }
 0x1b7   : > { %v1955_v3 = vadd.f32 %v1947_v37, %v1875_v41  ;;  %v2061_v14 = vadd.f32 %v2054_v8, %v2046_v17  ;;  %12196 = vst [vmem:[#allocation76_spill] sm:$0xff] %v7990_v23  ;;  %v1948_v48 = vmul.f32 %v7985_v38, %v12158_v53  ;;  %v2040_v40 = vmul.f32 %v7985_v38, %v12162_v5  ;;  %v8009_v55 = vld [vmem:[%s5923_s12 + $0x80] sm:$0xff] }
 0x1b8   : > { %v2032_v30 = vadd.f32 %v2024_v35, %v2016_v26  ;;  %v2055_v37 = vmul.f32 %v7958_v59, %v12126_v21  ;;  %v1846_v27 = vadd.f32 %v1831_v63, %v12198_v49  ;;  %v1993_v51 = vmul.f32 %v7985_v38, %v12160_v4  ;;  %v12200_v63 = vld [vmem:[#allocation85_spill] sm:$0xff] }
 0x1b9   : > { %v1970_v56 = vadd.f32 %v1962_v1, %v1955_v3  ;;  %v2076_v8 = vadd.f32 %v2069_v6, %v2061_v14  ;;  %v2070_v61 = vmul.f32 %v7990_v23, %v12128_v13  ;;  %v1901_v11 = vrot.slane %v7993_v24, 7  ;;  %v8018_v6 = vld [vmem:[%s5923_s12 + $0x88] sm:$0xff]  ;;  %v8027_v14 = vld [vmem:[%s5923_s12 + $0x90] sm:$0xff] }
 0x1ba   : > { %v2047_v46 = vadd.f32 %v2040_v40, %v2032_v30  ;;  %v1925_v35 = vrot.slane %v7993_v24, 1  ;;  %v1861_v47 = vadd.f32 %v1846_v27, %v12199_v31  ;;  %v1978_v41 = vmul.f32 %v7990_v23, %v12159_v15  ;;  %v8037_v27 = vld [vmem:[%s5923_s12 + $0xa0] sm:$0xff] }
 0x1bb   : > { %v1985_v1 = vadd.f32 %v1977_v28, %v1970_v56  ;;  %5172 = vst [vmem:[%s6394_s26 + $0xa0] sm:$0xff] %v2076_v8  ;;  %v2009_v17 = vmul.f32 %v7958_v59, %v12017_v33  ;;  %v2025_v29 = vmul.f32 %v7990_v23, %v12161_v43  ;;  %v2056_v3 = vmul.f32 %v7993_v24, %v12126_v21  ;;  %v8034_v8 = vld [vmem:[%s5923_s12 + $0x98] sm:$0xff] }
 0x1bc   : > { %v2062_v26 = vadd.f32 %v2055_v37, %v2047_v46  ;;  %v2010_v28 = vmul.f32 %v7993_v24, %v12017_v33  ;;  %v1876_v30 = vadd.f32 %v1861_v47, %v12200_v63  ;;  %v8031_v40 = vsel %vm419_vm2, 0.0, %v1901_v11  ;;  %v8046_v24 = vld [vmem:[%s5923_s12 + $0xa8] sm:$0xff] }
 0x1bd   : > { %12201 = vst [vmem:[#allocation94_spill] sm:$0xff] %v8031_v40  ;;  %v2001_v56 = vadd.f32 %v1993_v51, %v1985_v1  ;;  %v2105_v37 = vrot.slane %v8009_v55, 7  ;;  %v8041_v31 = vsel %vm447_vm3, %v1925_v35, 0.0  ;;  %v1994_v49 = vmul.f32 %v8031_v40, %v12160_v4 }
 0x1be   : > { %v2077_v46 = vadd.f32 %v2070_v61, %v2062_v26  ;;  %12202 = vst [vmem:[#allocation95_spill] sm:$0xff] %v8041_v31  ;;  %v2106_v47 = vrot.slane %v8018_v6, 7  ;;  %v1956_v11 = vadd.f32 %v1948_v48, %v1876_v30  ;;  %v2041_v51 = vmul.f32 %v8031_v40, %v12162_v5 }
 0x1bf   : > { %v2017_v63 = vadd.f32 %v2009_v17, %v2001_v56  ;;  %v2107_v1 = vrot.slane %v8027_v14, 7  ;;  %v2026_v61 = vmul.f32 %v8041_v31, %v12161_v43  ;;  %v2071_v35 = vmul.f32 %v8041_v31, %v12128_v13 }
 0x1c0   : > { %5173 = vst [vmem:[%s6394_s26 + $0xa8] sm:$0xff] %v2077_v46  ;;  %v2108_v26 = vrot.slane %v8034_v8, 7  ;;  %v2109_v2 = vrot.slane %v8037_v27, 7  ;;  %v1971_v57 = vadd.f32 %v1963_v60, %v1956_v11  ;;  %v2110_v48 = vrot.slane %v8046_v24, 7 }
 0x1c1   : > { %v2033_v62 = vadd.f32 %v2025_v29, %v2017_v63  ;;  %v2121_v17 = vsel %vm419_vm2, 0.0, %v2105_v37  ;;  %v8062_v30 = vsel %vm419_vm2, 0.0, %v2106_v47  ;;  %v8065_v56 = vsel %vm419_vm2, 0.0, %v2107_v1 }
 0x1c2   : > { %12203 = vst [vmem:[#allocation58_spill] sm:$0xff] %v8065_v56  ;;  %v2129_v46 = vrot.slane %v8009_v55, 1  ;;  %v2130_v31 = vrot.slane %v8018_v6, 1  ;;  %v1986_v40 = vadd.f32 %v1978_v41, %v1971_v57  ;;  %v2131_v59 = vrot.slane %v8027_v14, 1 }
 0x1c3   : > { %v2048_v23 = vadd.f32 %v2041_v51, %v2033_v62  ;;  %v2132_v60 = vrot.slane %v8034_v8, 1  ;;  %v8072_v29 = vsel %vm419_vm2, 0.0, %v2108_v26  ;;  %v8075_v63 = vsel %vm419_vm2, 0.0, %v2109_v2  ;;  %v12206_v26 = vld [vmem:[#allocation15_spill] sm:$0xff] }
 0x1c4   : > { %12204 = vst [vmem:[#allocation96_spill] sm:$0xff] %v8075_v63  ;;  %v2133_v37 = vrot.slane %v8037_v27, 1  ;;  %v2134_v47 = vrot.slane %v8046_v24, 1  ;;  %v2002_v1 = vadd.f32 %v1994_v49, %v1986_v40  ;;  %v8080_v62 = vsel %vm419_vm2, 0.0, %v2110_v48  ;;  %v8105_v48 = vld [vmem:[%s6057_s30] ss:$0 sm:$0xff] }
 0x1c5   : > { %v2063_v11 = vadd.f32 %v2056_v3, %v2048_v23  ;;  %v2145_v57 = vsel %vm447_vm3, %v2129_v46, 0.0  ;;  %v8084_v41 = vsel %vm447_vm3, %v2130_v31, 0.0  ;;  %v8087_v51 = vsel %vm447_vm3, %v2131_v59, 0.0  ;;  %12208 = vst [vmem:[#allocation25_spill] sm:$0xff] %v8105_v48 }
 0x1c6   : > { %12205 = vst [vmem:[#allocation38_spill] sm:$0xff] %v8087_v51  ;;  %v8090_v2 = vsel %vm447_vm3, %v2132_v60, 0.0  ;;  %v2154_v38 = vmul.f32 %v8062_v30, %v12206_v26  ;;  %v2018_v49 = vadd.f32 %v2010_v28, %v2002_v1  ;;  %v8095_v3 = vsel %vm447_vm3, %v2133_v37, 0.0  ;;  %v12209_v60 = vld [vmem:[#allocation69_spill] sm:$0xff] }
 0x1c7   : > { %v2078_v23 = vadd.f32 %v2071_v35, %v2063_v11  ;;  %12207 = vst [vmem:[#allocation21_spill] sm:$0xff] %v8095_v3  ;;  %v2156_v40 = vmul.f32 %v8072_v29, %v12206_v26  ;;  %v8100_v31 = vsel %vm447_vm3, %v2134_v47, 0.0  ;;  %v2158_v59 = vmul.f32 %v8080_v62, %v12206_v26 }
 0x1c8   : > { %v2161_v46 = vadd.f32 %v8105_v48, %v2154_v38  ;;  %v2168_v35 = vmul.f32 %v8018_v6, %v12209_v60  ;;  %v2034_v28 = vadd.f32 %v2026_v61, %v2018_v49  ;;  %v2170_v11 = vmul.f32 %v8034_v8, %v12209_v60  ;;  %v12210_v38 = vld [vmem:[#allocation16_spill] sm:$0xff] }
 0x1c9   : > { %5174 = vst [vmem:[%s6394_s26 + $0xb0] sm:$0xff] %v2078_v23  ;;  %v2163_v37 = vadd.f32 %v8105_v48, %v2156_v40  ;;  %v2172_v47 = vmul.f32 %v8046_v24, %v12209_v60  ;;  %v8117_v1 = vmul.f32 %v2121_v17, %v12206_v26  ;;  %v2165_v45 = vadd.f32 %v8105_v48, %v2158_v59 }
 0x1ca   : > { %v2175_v36 = vadd.f32 %v2168_v35, %v2161_v46  ;;  %v2182_v16 = vmul.f32 %v8084_v41, %v12210_v38  ;;  %v2049_v23 = vadd.f32 %v2034_v28, %v12211_v32  ;;  %v8125_v61 = vmul.f32 %v8065_v56, %v12206_v26  ;;  %v12213_v35 = vld [vmem:[#allocation92_spill] sm:$0xff] }
 0x1cb   : > { %v2177_v49 = vadd.f32 %v2170_v11, %v2163_v37  ;;  %v2184_v40 = vmul.f32 %v8090_v2, %v12210_v38  ;;  %v8131_v22 = vmul.f32 %v8075_v63, %v12206_v26  ;;  %v2179_v58 = vadd.f32 %v2172_v47, %v2165_v45  ;;  %v12216_v47 = vld [vmem:[#allocation36_spill] sm:$0xff] }
 0x1cc   : > { %v8134_v59 = vmul.f32 %v2145_v57, %v12210_v38  ;;  %v2189_v46 = vadd.f32 %v2182_v16, %v2175_v36  ;;  %v2064_v13 = vadd.f32 %v2049_v23, %v12213_v35  ;;  %v2186_v28 = vmul.f32 %v8100_v31, %v12210_v38 }
 0x1cd   : > { %v2191_v32 = vadd.f32 %v2184_v40, %v2177_v49  ;;  %v2195_v37 = vmul.f32 %v2121_v17, %v12086_v39  ;;  %v8142_v11 = vmul.f32 %v8087_v51, %v12210_v38  ;;  %v8146_v45 = vmul.f32 %v8095_v3, %v12210_v38  ;;  %v12217_v17 = vld [vmem:[#allocation74_spill] sm:$0xff] }
 0x1ce   : > { %12212 = vst [vmem:[#allocation86_spill] sm:$0xff] %v8134_v59  ;;  %v2197_v36 = vmul.f32 %v8065_v56, %v12086_v39  ;;  %v2199_v16 = vmul.f32 %v8075_v63, %v12086_v39  ;;  %v2079_v23 = vadd.f32 %v2064_v13, %v12216_v47  ;;  %v8155_v49 = vmul.f32 %v8062_v30, %v12086_v39  ;;  %v12219_v47 = vld [vmem:[#allocation18_spill] sm:$0xff] }
 0x1cf   : > { %12214 = vst [vmem:[#allocation81_spill] sm:$0xff] %v8142_v11  ;;  %12215 = vst [vmem:[#allocation82_spill] sm:$0xff] %v8146_v45  ;;  %v2203_v40 = vadd.f32 %v2195_v37, %v12217_v17  ;;  %v2211_v35 = vmul.f32 %v8009_v55, %v12130_v25  ;;  %v2213_v45 = vmul.f32 %v8027_v14, %v12130_v25 }
 0x1d0   : > { %v2205_v11 = vadd.f32 %v2197_v36, %v2189_v46  ;;  %v2207_v38 = vadd.f32 %v2199_v16, %v2191_v32  ;;  %v2215_v56 = vmul.f32 %v8037_v27, %v12130_v25  ;;  %5175 = vst [vmem:[%s6394_s26 + $0xb8] sm:$0xff] %v2079_v23  ;;  %v8165_v63 = vadd.f32 %v2186_v28, %v2179_v58 }
 0x1d1   : > { %v2219_v13 = vadd.f32 %v2211_v35, %v2203_v40  ;;  %v2227_v59 = vmul.f32 %v2145_v57, %v12219_v47  ;;  %v2229_v37 = vmul.f32 %v8087_v51, %v12219_v47  ;;  %v8172_v17 = vmul.f32 %v8072_v29, %v12086_v39  ;;  %v12220_v35 = vld [vmem:[#allocation19_spill] sm:$0xff] }
 0x1d2   : > { %12218 = vst [vmem:[#allocation87_spill] sm:$0xff] %v8165_v63  ;;  %v2221_v32 = vadd.f32 %v2213_v45, %v2205_v11  ;;  %v2223_v46 = vadd.f32 %v2215_v56, %v2207_v38  ;;  %v2231_v36 = vmul.f32 %v8095_v3, %v12219_v47  ;;  %v8178_v16 = vmul.f32 %v8080_v62, %v12086_v39  ;;  %v12221_v56 = vld [vmem:[#allocation72_spill] sm:$0xff] }
 0x1d3   : > { %v2235_v58 = vadd.f32 %v2227_v59, %v2219_v13  ;;  %v2243_v57 = vmul.f32 %v8062_v30, %v12220_v35  ;;  %v2245_v28 = vmul.f32 %v8072_v29, %v12220_v35  ;;  %v2247_v11 = vmul.f32 %v8080_v62, %v12220_v35  ;;  %v12222_v13 = vld [vmem:[#allocation20_spill] sm:$0xff] }
 0x1d4   : > { %v2237_v23 = vadd.f32 %v2229_v37, %v2221_v32  ;;  %v2239_v40 = vadd.f32 %v2231_v36, %v2223_v46  ;;  %v2258_v38 = vmul.f32 %v8018_v6, %v12221_v56  ;;  %v2260_v63 = vmul.f32 %v8034_v8, %v12221_v56 }
 0x1d5   : > { %v2250_v45 = vadd.f32 %v2243_v57, %v2235_v58  ;;  %v2262_v59 = vmul.f32 %v8046_v24, %v12221_v56  ;;  %v2273_v30 = vmul.f32 %v8084_v41, %v12222_v13  ;;  %v2275_v37 = vmul.f32 %v8090_v2, %v12222_v13 }
 0x1d6   : > { %v2252_v3 = vadd.f32 %v2245_v28, %v2237_v23  ;;  %v2254_v29 = vadd.f32 %v2247_v11, %v2239_v40  ;;  %v2277_v62 = vmul.f32 %v8100_v31, %v12222_v13  ;;  %v8200_v32 = vmul.f32 %v8084_v41, %v12219_v47  ;;  %v12224_v23 = vld [vmem:[#allocation70_spill] sm:$0xff]  ;;  %v12225_v41 = vld [vmem:[#allocation37_spill] sm:$0xff] }
 0x1d7   : > { %v8204_v46 = vmul.f32 %v8090_v2, %v12219_v47  ;;  %v8208_v36 = vmul.f32 %v8100_v31, %v12219_v47  ;;  %v2265_v58 = vadd.f32 %v2258_v38, %v2250_v45  ;;  %v2353_v40 = vmul.f32 %v12224_v23, %v12139_v20  ;;  %v12227_v2 = vld [vmem:[#allocation56_spill] sm:$0xff]  ;;  %v12229_v31 = vld [vmem:[#allocation97_spill] sm:$0xff] }
 0x1d8   : > { %v2267_v57 = vadd.f32 %v2260_v63, %v2252_v3  ;;  %v2269_v28 = vadd.f32 %v2262_v59, %v2254_v29  ;;  %v2355_v11 = vmul.f32 %v7846_v42, %v12139_v20  ;;  %v8216_v13 = vmul.f32 %v12225_v41, %v12139_v20  ;;  %v12230_v59 = vld [vmem:[#allocation42_spill] sm:$0xff] }
 0x1d9   : > { %12223 = vst [vmem:[#allocation24_spill] sm:$0xff] %v8204_v46  ;;  %v2280_v51 = vadd.f32 %v2273_v30, %v2265_v58  ;;  %v8220_v46 = vmul.f32 %v12227_v2, %v12139_v20  ;;  %v2368_v38 = vmul.f32 %v12229_v31, %v12141_v9  ;;  %v2370_v45 = vmul.f32 %v7818_v44, %v12141_v9  ;;  %v12232_v30 = vld [vmem:[#allocation39_spill] sm:$0xff] }
 0x1da   : > { %12226 = vst [vmem:[#allocation40_spill] sm:$0xff] %v8216_v13  ;;  %v2282_v63 = vadd.f32 %v2275_v37, %v2267_v57  ;;  %v2284_v3 = vadd.f32 %v2277_v62, %v2269_v28  ;;  %v8228_v29 = vmul.f32 %v12230_v59, %v12143_v18  ;;  %v12233_v13 = vld [vmem:[#allocation89_spill] sm:$0xff]  ;;  %v2385_v37 = vmul.f32 %v7849_v34, %v12143_v18 }
 0x1db   : > { %12228 = vst [vmem:[#allocation26_spill] sm:$0xff] %v8220_v46  ;;  %v2359_v58 = vadd.f32 %v2280_v51, %v12232_v30  ;;  %v2383_v47 = vmul.f32 %v12233_v13, %v12143_v18  ;;  %v12234_v46 = vld [vmem:[#allocation75_spill] sm:$0xff]  ;;  %v2397_v28 = vmul.f32 %v12225_v41, %v12055_v54  ;;  %v8243_v51 = vmul.f32 %v12224_v23, %v12055_v54  ;;  %v12237_v30 = vld [vmem:[#allocation46_spill] sm:$0xff] }
 0x1dc   : > { %12231 = vst [vmem:[#allocation27_spill] sm:$0xff] %v8228_v29  ;;  %v8235_v20 = vmul.f32 %v12234_v46, %v12143_v18  ;;  %v2361_v62 = vadd.f32 %v2353_v40, %v2282_v63  ;;  %v2363_v57 = vadd.f32 %v2355_v11, %v2284_v3  ;;  %v2399_v9 = vmul.f32 %v12227_v2, %v12055_v54  ;;  %v12239_v18 = vld [vmem:[#allocation41_spill] sm:$0xff] }
 0x1dd   : > { %12236 = vst [vmem:[#allocation90_spill] sm:$0xff] %v8243_v51  ;;  %v2374_v29 = vadd.f32 %v2359_v58, %v12237_v30  ;;  %v2413_v40 = vmul.f32 %v12239_v18, %v12007_v10  ;;  %v2415_v41 = vmul.f32 %v7726_v0, %v12007_v10  ;;  %v2429_v3 = vmul.f32 %v12230_v59, %v6036_v50  ;;  %v8259_v51 = vld [vmem:[%s5923_s12 + $0x100] sm:$0xff]  ;;  %v8262_v58 = vld [vmem:[%s5923_s12 + $0x108] sm:$0xff]  ;;  %v12242_v30 = vld [vmem:[#allocation45_spill] sm:$0xff] }
 0x1de   : > { %12235 = vst [vmem:[#allocation88_spill] sm:$0xff] %v8235_v20  ;;  %v8250_v20 = vmul.f32 %v7846_v42, %v12055_v54  ;;  %v2376_v11 = vadd.f32 %v2368_v38, %v2361_v62  ;;  %v2378_v63 = vadd.f32 %v2370_v45, %v2363_v57  ;;  %12240 = vst [vmem:[#allocation55_spill] sm:$0xff] %v8259_v51 }
 0x1df   : > { %12241 = vst [vmem:[#allocation49_spill] sm:$0xff] %v8262_v58  ;;  %v2389_v2 = vadd.f32 %v2374_v29, %v12242_v30  ;;  %v2431_v18 = vmul.f32 %v12234_v46, %v6036_v50  ;;  %v8273_v38 = vmul.f32 %v7849_v34, %v6036_v50  ;;  %v2445_v59 = vmul.f32 %v12224_v23, %v12147_v7 }
 0x1e0   : > { %12238 = vst [vmem:[#allocation98_spill] sm:$0xff] %v8250_v20  ;;  %v8267_v20 = vmul.f32 %v12233_v13, %v6036_v50  ;;  %v2391_v45 = vadd.f32 %v2383_v47, %v2376_v11  ;;  %v2447_v62 = vmul.f32 %v7846_v42, %v12147_v7  ;;  %v2460_v29 = vmul.f32 %v12229_v31, %v12149_v19 }
 0x1e1   : > { %12244 = vst [vmem:[#allocation59_spill] sm:$0xff] %v8273_v38  ;;  %v8281_v57 = vadd.f32 %v2385_v37, %v2378_v63  ;;  %v2405_v30 = vadd.f32 %v2397_v28, %v2389_v2  ;;  %v2508_v46 = vrot.slane %v8262_v58, 7  ;;  %v2462_v47 = vmul.f32 %v7818_v44, %v12149_v19 }
 0x1e2   : > { %12243 = vst [vmem:[#allocation51_spill] sm:$0xff] %v8267_v20  ;;  %v2507_v20 = vrot.slane %v8259_v51, 7  ;;  %v2407_v10 = vadd.f32 %v2399_v9, %v2391_v45  ;;  %v2531_v23 = vrot.slane %v8259_v51, 1  ;;  %v2532_v11 = vrot.slane %v8262_v58, 1 }
 0x1e3   : > { %12245 = vst [vmem:[#allocation35_spill] sm:$0xff] %v8281_v57  ;;  %v2421_v42 = vadd.f32 %v2413_v40, %v2405_v30  ;;  %v2475_v31 = vmul.f32 %v12233_v13, %v6040_v52  ;;  %v2477_v2 = vmul.f32 %v7849_v34, %v6040_v52  ;;  %v2571_v37 = vmul.f32 %v8262_v58, %v12012_v12 }
 0x1e4   : > { %v2423_v28 = vadd.f32 %v2415_v41, %v2407_v10  ;;  %v8296_v9 = vsel %vm419_vm2, 0.0, %v2507_v20  ;;  %v8299_v63 = vsel %vm419_vm2, 0.0, %v2508_v46  ;;  %v8303_v45 = vmul.f32 %v8259_v51, %v12017_v33  ;;  %v8316_v20 = vld [vmem:[%s5923_s12 + $0xb0] sm:$0xff] }
 0x1e5   : > { %12246 = vst [vmem:[#allocation93_spill] sm:$0xff] %v8296_v9  ;;  %12247 = vst [vmem:[#allocation50_spill] sm:$0xff] %v8299_v63  ;;  %v2437_v30 = vadd.f32 %v2429_v3, %v2421_v42  ;;  %v8306_v13 = vsel %vm447_vm3, %v2531_v23, 0.0  ;;  %v8309_v34 = vsel %vm447_vm3, %v2532_v11, 0.0  ;;  %v8313_v10 = vmul.f32 %v8296_v9, %v12158_v53 }
 0x1e6   : > { %12248 = vst [vmem:[#allocation78_spill] sm:$0xff] %v8306_v13  ;;  %12249 = vst [vmem:[#allocation79_spill] sm:$0xff] %v8309_v34  ;;  %v2439_v40 = vadd.f32 %v2431_v18, %v2423_v28  ;;  %v2556_v46 = vmul.f32 %v8299_v63, %v12158_v53  ;;  %v8322_v41 = vmul.f32 %v8306_v13, %v12159_v15  ;;  %v2135_v57 = vrot.slane %v8316_v20, 1 }
 0x1e7   : > { %12250 = vst [vmem:[#allocation67_spill] sm:$0xff] %v8313_v10  ;;  %v8326_v3 = vmul.f32 %v8309_v34, %v12159_v15  ;;  %v2452_v23 = vadd.f32 %v2445_v59, %v2437_v30  ;;  %v2600_v11 = vmul.f32 %v8296_v9, %v12160_v4  ;;  %v8332_v42 = vmul.f32 %v8299_v63, %v12160_v4  ;;  %v12257_v15 = vld [vmem:[#allocation34_spill] sm:$0xff] }
 0x1e8   : > { %12251 = vst [vmem:[#allocation70_spill] sm:$0xff] %v8322_v41  ;;  %v2632_v18 = vmul.f32 %v8306_v13, %v12161_v43  ;;  %v2454_v28 = vadd.f32 %v2447_v62, %v2439_v40  ;;  %v8338_v10 = vmul.f32 %v8309_v34, %v12161_v43  ;;  %v2111_v41 = vrot.slane %v8316_v20, 7  ;;  %v12255_v43 = vld [vmem:[#allocation86_spill] sm:$0xff] }
 0x1e9   : > { %12252 = vst [vmem:[#allocation37_spill] sm:$0xff] %v8332_v42  ;;  %v2467_v59 = vadd.f32 %v2460_v29, %v2452_v23  ;;  %v2160_v30 = vadd.f32 %v8105_v48, %v8117_v1  ;;  %v2162_v9 = vadd.f32 %v8105_v48, %v8125_v61  ;;  %v2164_v42 = vadd.f32 %v8105_v48, %v8131_v22 }
 0x1ea   : > { %12253 = vst [vmem:[#allocation97_spill] sm:$0xff] %v8338_v10  ;;  %v2469_v13 = vadd.f32 %v2462_v47, %v2454_v28  ;;  %v2648_v62 = vmul.f32 %v8299_v63, %v12162_v5  ;;  %v2127_v40 = vsel %vm419_vm2, 0.0, %v2111_v41  ;;  %v2167_v10 = vmul.f32 %v8009_v55, %v12209_v60  ;;  %v12254_v41 = vld [vmem:[#allocation57_spill] sm:$0xff] }
 0x1eb   : > { %v2482_v38 = vadd.f32 %v2475_v31, %v2467_v59  ;;  %v2159_v29 = vmul.f32 %v2127_v40, %v12206_v26  ;;  %v2169_v1 = vmul.f32 %v8027_v14, %v12209_v60  ;;  %v2171_v61 = vmul.f32 %v8037_v27, %v12209_v60 }
 0x1ec   : > { %v2484_v23 = vadd.f32 %v2477_v2, %v2469_v13  ;;  %v2663_v22 = vmul.f32 %v8262_v58, %v12126_v21  ;;  %v2151_v47 = vsel %vm447_vm3, %v2135_v57, 0.0  ;;  %v2174_v28 = vadd.f32 %v2167_v10, %v2160_v30  ;;  %v12256_v13 = vld [vmem:[#allocation61_spill] sm:$0xff]  ;;  %v12259_v30 = vld [vmem:[#allocation82_spill] sm:$0xff] }
 0x1ed   : > { %v2562_v63 = vadd.f32 %v2482_v38, %v12254_v41  ;;  %v2173_v55 = vmul.f32 %v8316_v20, %v12209_v60  ;;  %v2176_v31 = vadd.f32 %v2169_v1, %v2162_v9  ;;  %v2178_v59 = vadd.f32 %v2171_v61, %v2164_v42  ;;  %v12258_v10 = vld [vmem:[#allocation81_spill] sm:$0xff]  ;;  %v12260_v60 = vld [vmem:[#allocation16_spill] sm:$0xff] }
 0x1ee   : > { %v2564_v26 = vadd.f32 %v2556_v46, %v2484_v23  ;;  %v2166_v5 = vadd.f32 %v8105_v48, %v2159_v29  ;;  %v2188_v4 = vadd.f32 %v12255_v43, %v2174_v28  ;;  %v2212_v2 = vmul.f32 %v8018_v6, %v12130_v25  ;;  %v12261_v6 = vld [vmem:[#allocation62_spill] sm:$0xff] }
 0x1ef   : > { %v2577_v21 = vadd.f32 %v2562_v63, %v12256_v13  ;;  %v2678_v57 = vmul.f32 %v8309_v34, %v12257_v15  ;;  %v2190_v38 = vadd.f32 %v12258_v10, %v2176_v31  ;;  %v2192_v41 = vadd.f32 %v12259_v30, %v2178_v59  ;;  %v12293_v34 = vld [vmem:[#allocation68_spill] sm:$0xff] }
 0x1f0   : > { %v2187_v9 = vmul.f32 %v2151_v47, %v12260_v60  ;;  %v2204_v46 = vadd.f32 %v8155_v49, %v2188_v4  ;;  %v2214_v42 = vmul.f32 %v8034_v8, %v12130_v25  ;;  %v2216_v43 = vmul.f32 %v8046_v24, %v12130_v25  ;;  %v12262_v4 = vld [vmem:[#allocation58_spill] sm:$0xff]  ;;  %v12263_v24 = vld [vmem:[#allocation96_spill] sm:$0xff] }
 0x1f1   : > { %v2592_v29 = vadd.f32 %v2577_v21, %v12261_v6  ;;  %v8381_v63 = vmul.f32 %v2127_v40, %v12086_v39  ;;  %v2206_v1 = vadd.f32 %v8172_v17, %v2190_v38  ;;  %v2208_v61 = vadd.f32 %v8178_v16, %v2192_v41  ;;  %v12264_v16 = vld [vmem:[#allocation24_spill] sm:$0xff] }
 0x1f2   : > { %v2579_v23 = vadd.f32 %v2571_v37, %v2564_v26  ;;  %v2180_v28 = vadd.f32 %v2173_v55, %v2166_v5  ;;  %v2220_v31 = vadd.f32 %v2212_v2, %v2204_v46  ;;  %v2244_v49 = vmul.f32 %v12262_v4, %v12220_v35  ;;  %v12266_v2 = vld [vmem:[#allocation38_spill] sm:$0xff] }
 0x1f3   : > { %v2608_v59 = vadd.f32 %v2600_v11, %v2592_v29  ;;  %v2222_v8 = vadd.f32 %v2214_v42, %v2206_v1  ;;  %v2224_v10 = vadd.f32 %v2216_v43, %v2208_v61  ;;  %v2246_v30 = vmul.f32 %v12263_v24, %v12220_v35  ;;  %v12268_v29 = vld [vmem:[#allocation18_spill] sm:$0xff]  ;;  %v12273_v24 = vld [vmem:[#allocation23_spill] sm:$0xff] }
 0x1f4   : > { %v2236_v21 = vadd.f32 %v8200_v32, %v2220_v31  ;;  %v2248_v6 = vmul.f32 %v2127_v40, %v12220_v35  ;;  %v2259_v17 = vmul.f32 %v8027_v14, %v12221_v56  ;;  %v2261_v5 = vmul.f32 %v8037_v27, %v12221_v56  ;;  %v12265_v40 = vld [vmem:[#allocation20_spill] sm:$0xff]  ;;  %v12267_v14 = vld [vmem:[#allocation21_spill] sm:$0xff]  ;;  %v12269_v61 = vld [vmem:[#allocation22_spill] sm:$0xff] }
 0x1f5   : > { %v2624_v26 = vadd.f32 %v8303_v45, %v2608_v59  ;;  %v2238_v37 = vadd.f32 %v12264_v16, %v2222_v8  ;;  %v2240_v11 = vadd.f32 %v8208_v36, %v2224_v10  ;;  %v2263_v41 = vmul.f32 %v8316_v20, %v12221_v56  ;;  %v12271_v8 = vld [vmem:[#allocation43_spill] sm:$0xff] }
 0x1f6   : > { %v8400_v55 = vadd.f32 %v2187_v9, %v2180_v28  ;;  %v2251_v32 = vadd.f32 %v2244_v49, %v2236_v21  ;;  %v2274_v38 = vmul.f32 %v12266_v2, %v12265_v40  ;;  %v2276_v46 = vmul.f32 %v12267_v14, %v12265_v40  ;;  %v12270_v28 = vld [vmem:[#allocation52_spill] sm:$0xff] }
 0x1f7   : > { %v2640_v27 = vadd.f32 %v2632_v18, %v2624_v26  ;;  %v2253_v42 = vadd.f32 %v2246_v30, %v2238_v37  ;;  %v2255_v45 = vadd.f32 %v2248_v6, %v2240_v11  ;;  %v2278_v43 = vmul.f32 %v2151_v47, %v12265_v40  ;;  %v5457_v18 = vld [vmem:[%s5923_s12 + $0xc0] sm:$0xff]  ;;  %v12275_v37 = vld [vmem:[#allocation40_spill] sm:$0xff] }
 0x1f8   : > { %v8408_v36 = vadd.f32 %v8326_v3, %v2579_v23  ;;  %v8411_v1 = vmul.f32 %v2151_v47, %v12268_v29  ;;  %v2266_v9 = vadd.f32 %v2259_v17, %v2251_v32  ;;  %v2356_v31 = vmul.f32 %v12270_v28, %v12269_v61  ;;  %v12272_v23 = vld [vmem:[#allocation80_spill] sm:$0xff]  ;;  %v12274_v30 = vld [vmem:[#allocation71_spill] sm:$0xff] }
 0x1f9   : > { %v2655_v4 = vadd.f32 %v2648_v62, %v2640_v27  ;;  %v2268_v49 = vadd.f32 %v2261_v5, %v2253_v42  ;;  %v2270_v59 = vadd.f32 %v2263_v41, %v2255_v45  ;;  %v2367_v6 = vmul.f32 %v5457_v18, %v12271_v8  ;;  %v8426_v5 = vld [vmem:[%s5923_s12 + $0x110] sm:$0xff]  ;;  %v5458_v41 = vld [vmem:[%s5923_s12 + $0xc8] sm:$0xff]  ;;  %v12276_v32 = vld [vmem:[#allocation47_spill] sm:$0xff] }
 0x1fa   : > { %v2281_v10 = vadd.f32 %v2274_v38, %v2266_v9  ;;  %v2369_v3 = vmul.f32 %v7726_v0, %v12271_v8  ;;  %v2371_v47 = vmul.f32 %v12272_v23, %v12271_v8  ;;  %v2386_v21 = vmul.f32 %v12274_v30, %v12273_v24  ;;  %v12278_v45 = vld [vmem:[#allocation56_spill] sm:$0xff] }
 0x1fb   : > { %v2670_v17 = vadd.f32 %v2663_v22, %v2655_v4  ;;  %v2283_v26 = vadd.f32 %v2276_v46, %v2268_v49  ;;  %v2285_v16 = vadd.f32 %v2278_v43, %v2270_v59  ;;  %v2401_v62 = vmul.f32 %v12270_v28, %v12055_v54  ;;  %v12277_v46 = vld [vmem:[#allocation26_spill] sm:$0xff] }
 0x1fc   : > { %v2360_v11 = vadd.f32 %v12275_v37, %v2281_v10  ;;  %v2414_v2 = vmul.f32 %v5458_v41, %v12276_v32  ;;  %v2416_v38 = vmul.f32 %v7818_v44, %v12276_v32  ;;  %v8435_v14 = vmul.f32 %v12274_v30, %v6036_v50  ;;  %v12279_v10 = vld [vmem:[#allocation27_spill] sm:$0xff]  ;;  %v8471_v41 = vld [vmem:[%s5923_s12 + $0xb8] sm:$0xff] }
 0x1fd   : > { %v2685_v22 = vadd.f32 %v2678_v57, %v2670_v17  ;;  %v2362_v27 = vadd.f32 %v12277_v46, %v2283_v26  ;;  %v2364_v42 = vadd.f32 %v2356_v31, %v2285_v16  ;;  %v2446_v43 = vmul.f32 %v12278_v45, %v12147_v7  ;;  %v12281_v16 = vld [vmem:[#allocation88_spill] sm:$0xff]  ;;  %v12286_v45 = vld [vmem:[#allocation98_spill] sm:$0xff] }
 0x1fe   : > { %v2375_v9 = vadd.f32 %v2367_v6, %v2360_v11  ;;  %v2448_v4 = vmul.f32 %v12270_v28, %v12147_v7  ;;  %v2461_v49 = vmul.f32 %v7726_v0, %v12149_v19  ;;  %v2509_v44 = vrot.slane %v8426_v5, 7  ;;  %v12280_v6 = vld [vmem:[#allocation75_spill] sm:$0xff] }
 0x1ff   : > { %5200 = vst [vmem:[%s6394_s26 + $0xc0] sm:$0xff] %v2685_v22  ;;  %v2377_v59 = vadd.f32 %v2369_v3, %v2362_v27  ;;  %v2379_v18 = vadd.f32 %v2371_v47, %v2364_v42  ;;  %v2463_v57 = vmul.f32 %v12272_v23, %v12149_v19  ;;  %v2533_v31 = vrot.slane %v8426_v5, 1  ;;  %v12284_v22 = vld [vmem:[#allocation90_spill] sm:$0xff] }
 0x200   : > { %v2390_v17 = vadd.f32 %v12279_v10, %v2375_v9  ;;  %v2476_v26 = vmul.f32 %v12280_v6, %v6040_v52  ;;  %v2478_v28 = vmul.f32 %v12274_v30, %v6040_v52  ;;  %v8456_v0 = vmul.f32 %v8259_v51, %v12012_v12  ;;  %v12288_v10 = vld [vmem:[#allocation31_spill] sm:$0xff] }
 0x201   : > { %v2392_v3 = vadd.f32 %v12281_v16, %v2377_v59  ;;  %v8460_v47 = vsel %vm419_vm2, 0.0, %v2509_v44  ;;  %v8464_v37 = vmul.f32 %v8426_v5, %v12012_v12  ;;  %v8468_v11 = vmul.f32 %v8262_v58, %v12017_v33  ;;  %v12287_v44 = vld [vmem:[#allocation30_spill] sm:$0xff]  ;;  %v12289_v16 = vld [vmem:[#allocation32_spill] sm:$0xff] }
 0x202   : > { %12282 = vst [vmem:[#allocation42_spill] sm:$0xff] %v8460_v47  ;;  %v8473_v30 = vadd.f32 %v2386_v21, %v2379_v18  ;;  %v2406_v46 = vadd.f32 %v12284_v22, %v2390_v17  ;;  %v8477_v27 = vsel %vm447_vm3, %v2533_v31, 0.0  ;;  %v2557_v42 = vmul.f32 %v8460_v47, %v12158_v53  ;;  %v12290_v22 = vld [vmem:[#allocation87_spill] sm:$0xff] }
 0x203   : > { %12285 = vst [vmem:[#allocation41_spill] sm:$0xff] %v8477_v27  ;;  %v2408_v9 = vadd.f32 %v12286_v45, %v2392_v3  ;;  %v8484_v59 = vmul.f32 %v8477_v27, %v12287_v44  ;;  %v2602_v6 = vmul.f32 %v8460_v47, %v12288_v10  ;;  %v8490_v21 = vmul.f32 %v8477_v27, %v12289_v16  ;;  %v12291_v45 = vld [vmem:[#allocation33_spill] sm:$0xff] }
 0x204   : > { %12283 = vst [vmem:[#allocation89_spill] sm:$0xff] %v8473_v30  ;;  %v2422_v18 = vadd.f32 %v2414_v2, %v2406_v46  ;;  %v2112_v31 = vrot.slane %v8471_v41, 7  ;;  %v2136_v17 = vrot.slane %v8471_v41, 1  ;;  %v2209_v13 = vadd.f32 %v8381_v63, %v12290_v22  ;;  %v12295_v2 = vld [vmem:[#allocation51_spill] sm:$0xff] }
 0x205   : > { %v2424_v3 = vadd.f32 %v2416_v38, %v2408_v9  ;;  %v8498_v51 = vmul.f32 %v8460_v47, %v12291_v45  ;;  %v8502_v58 = vmul.f32 %v8426_v5, %v12293_v34  ;;  %v2217_v60 = vmul.f32 %v8316_v20, %v12130_v25  ;;  %v12297_v9 = vld [vmem:[#allocation59_spill] sm:$0xff] }
 0x206   : > { %v2438_v46 = vadd.f32 %v12295_v2, %v2422_v18  ;;  %v8509_v48 = vmul.f32 %v8477_v27, %v12257_v15  ;;  %v2128_v63 = vsel %vm419_vm2, 0.0, %v2112_v31  ;;  %v2152_v38 = vsel %vm447_vm3, %v2136_v17, 0.0  ;;  %v12299_v27 = vld [vmem:[#allocation77_spill] sm:$0xff] }
 0x207   : > { %12292 = vst [vmem:[#allocation86_spill] sm:$0xff] %v8498_v51  ;;  %12294 = vst [vmem:[#allocation81_spill] sm:$0xff] %v8502_v58  ;;  %v2440_v22 = vadd.f32 %v12297_v9, %v2424_v3  ;;  %v2225_v47 = vadd.f32 %v2217_v60, %v2209_v13  ;;  %v2264_v58 = vmul.f32 %v8471_v41, %v12221_v56  ;;  %v12298_v51 = vld [vmem:[#allocation54_spill] sm:$0xff]  ;;  %v12300_v60 = vld [vmem:[#allocation35_spill] sm:$0xff] }
 0x208   : > { %12296 = vst [vmem:[#allocation82_spill] sm:$0xff] %v8509_v48  ;;  %v2357_v20 = vmul.f32 %v12298_v51, %v12269_v61  ;;  %v2453_v30 = vadd.f32 %v2446_v43, %v2438_v46  ;;  %v2202_v18 = vmul.f32 %v2128_v63, %v12086_v39  ;;  %v2249_v2 = vmul.f32 %v2128_v63, %v12220_v35  ;;  %v8526_v9 = vld [vmem:[%s5923_s12 + $0x118] sm:$0xff]  ;;  %v12301_v43 = vld [vmem:[#allocation60_spill] sm:$0xff] }
 0x209   : > { %v2372_v48 = vmul.f32 %v12299_v27, %v12271_v8  ;;  %v2455_v31 = vadd.f32 %v2448_v4, %v2440_v22  ;;  %v2234_v17 = vmul.f32 %v2152_v38, %v12268_v29  ;;  %v2241_v3 = vadd.f32 %v8411_v1, %v2225_v47 }
 0x20a   : > { %v2409_v13 = vadd.f32 %v2401_v62, %v12300_v60  ;;  %v2468_v56 = vadd.f32 %v2461_v49, %v2453_v30  ;;  %v2279_v61 = vmul.f32 %v2152_v38, %v12265_v40  ;;  %v2387_v46 = vmul.f32 %v12301_v43, %v12273_v24 }
 0x20b   : > { %v2417_v63 = vmul.f32 %v12272_v23, %v12276_v32  ;;  %v2470_v35 = vadd.f32 %v2463_v57, %v2455_v31  ;;  %v2256_v39 = vadd.f32 %v2249_v2, %v2241_v3  ;;  %v2402_v4 = vmul.f32 %v12298_v51, %v12055_v54  ;;  %v12302_v57 = vld [vmem:[#allocation67_spill] sm:$0xff] }
 0x20c   : > { %v2449_v1 = vmul.f32 %v12298_v51, %v12147_v7  ;;  %v2483_v62 = vadd.f32 %v2476_v26, %v2468_v56  ;;  %v2510_v49 = vrot.slane %v8526_v9, 7  ;;  %v2534_v30 = vrot.slane %v8526_v9, 1 }
 0x20d   : > { %v2425_v47 = vadd.f32 %v2417_v63, %v2409_v13  ;;  %v2485_v38 = vadd.f32 %v2478_v28, %v2470_v35  ;;  %v2271_v22 = vadd.f32 %v2264_v58, %v2256_v39  ;;  %v2434_v60 = vmul.f32 %v12301_v43, %v6036_v50 }
 0x20e   : > { %v2464_v23 = vmul.f32 %v12299_v27, %v12149_v19  ;;  %v2563_v2 = vadd.f32 %v12302_v57, %v2483_v62  ;;  %v2479_v56 = vmul.f32 %v12301_v43, %v6040_v52  ;;  %v2610_v51 = vadd.f32 %v2602_v6, %v8408_v36  ;;  %v12303_v6 = vld [vmem:[#allocation70_spill] sm:$0xff] }
 0x20f   : > { %v2441_v31 = vadd.f32 %v8435_v14, %v2425_v47  ;;  %v2565_v26 = vadd.f32 %v2557_v42, %v2485_v38  ;;  %v2286_v3 = vadd.f32 %v2279_v61, %v2271_v22  ;;  %v8549_v35 = vsel %vm419_vm2, 0.0, %v2510_v49 }
 0x210   : > { %v2573_v39 = vmul.f32 %v8526_v9, %v12012_v12  ;;  %v2578_v58 = vadd.f32 %v8456_v0, %v2563_v2  ;;  %v8555_v13 = vsel %vm447_vm3, %v2534_v30, 0.0  ;;  %v2618_v14 = vmul.f32 %v8426_v5, %v12017_v33  ;;  %v12304_v30 = vld [vmem:[#allocation37_spill] sm:$0xff] }
 0x211   : > { %v2456_v28 = vadd.f32 %v2449_v1, %v2441_v31  ;;  %v2580_v43 = vadd.f32 %v8464_v37, %v2565_v26  ;;  %v2365_v36 = vadd.f32 %v2357_v20, %v2286_v3  ;;  %v2558_v61 = vmul.f32 %v8549_v35, %v12158_v53  ;;  %v12305_v3 = vld [vmem:[#allocation22_spill] sm:$0xff] }
 0x212   : > { %v2588_v42 = vmul.f32 %v8555_v13, %v12287_v44  ;;  %v2593_v63 = vadd.f32 %v12303_v6, %v2578_v58  ;;  %v2626_v0 = vadd.f32 %v2618_v14, %v2610_v51  ;;  %v2650_v1 = vmul.f32 %v8549_v35, %v12291_v45 }
 0x213   : > { %v2471_v62 = vadd.f32 %v2464_v23, %v2456_v28  ;;  %v2380_v47 = vadd.f32 %v2372_v48, %v2365_v36  ;;  %v2603_v49 = vmul.f32 %v8549_v35, %v12288_v10  ;;  %v2665_v37 = vmul.f32 %v8526_v9, %v12293_v34 }
 0x214   : > { %v2210_v20 = vadd.f32 %v2202_v18, %v8400_v55  ;;  %v2609_v38 = vadd.f32 %v12304_v30, %v2593_v63  ;;  %v2642_v57 = vadd.f32 %v8490_v21, %v2626_v0  ;;  %v2218_v23 = vmul.f32 %v8471_v41, %v12130_v25  ;;  %v12306_v21 = vld [vmem:[#allocation44_spill] sm:$0xff]  ;;  %v12307_v41 = vld [vmem:[#allocation66_spill] sm:$0xff] }
 0x215   : > { %v2486_v22 = vadd.f32 %v2479_v56, %v2471_v62  ;;  %v2595_v2 = vadd.f32 %v8484_v59, %v2580_v43  ;;  %v2395_v48 = vadd.f32 %v2387_v46, %v2380_v47  ;;  %v2635_v31 = vmul.f32 %v8555_v13, %v12289_v16  ;;  %v12308_v59 = vld [vmem:[#allocation89_spill] sm:$0xff]  ;;  %v8593_v62 = vld [vmem:[%s5923_s12 + $0x120] sm:$0xff] }
 0x216   : > { %v2680_v51 = vmul.f32 %v8555_v13, %v12257_v15  ;;  %v2625_v55 = vadd.f32 %v8468_v11, %v2609_v38  ;;  %v2657_v26 = vadd.f32 %v2650_v1, %v2642_v57  ;;  %v2226_v56 = vadd.f32 %v2218_v23, %v2210_v20  ;;  %v12309_v43 = vld [vmem:[#allocation97_spill] sm:$0xff]  ;;  %v12310_v11 = vld [vmem:[#allocation76_spill] sm:$0xff]  ;;  %12311 = vst [vmem:[#allocation58_spill] sm:$0xff] %v8593_v62  ;;  %v12312_v20 = vld [vmem:[#allocation86_spill] sm:$0xff] }
 0x217   : > { %v2566_v18 = vadd.f32 %v2558_v61, %v2486_v22  ;;  %v2358_v58 = vmul.f32 %v12306_v21, %v12305_v3  ;;  %v2373_v28 = vmul.f32 %v12307_v41, %v12271_v8  ;;  %v2410_v14 = vadd.f32 %v2402_v4, %v12308_v59  ;;  %v12313_v38 = vld [vmem:[#allocation73_spill] sm:$0xff] }
 0x218   : > { %v2418_v46 = vmul.f32 %v12299_v27, %v12276_v32  ;;  %v2641_v36 = vadd.f32 %v12309_v43, %v2625_v55  ;;  %v2672_v6 = vadd.f32 %v2665_v37, %v2657_v26  ;;  %v2242_v63 = vadd.f32 %v2234_v17, %v2226_v56  ;;  %v12314_v55 = vld [vmem:[#allocation81_spill] sm:$0xff]  ;;  %v12316_v43 = vld [vmem:[#allocation82_spill] sm:$0xff] }
 0x219   : > { %v2388_v61 = vmul.f32 %v12310_v11, %v12273_v24  ;;  %v2581_v0 = vadd.f32 %v2573_v39, %v2566_v18  ;;  %v2403_v1 = vmul.f32 %v12306_v21, %v12055_v54  ;;  %v2450_v4 = vmul.f32 %v12306_v21, %v12147_v7  ;;  %v12315_v26 = vld [vmem:[#allocation65_spill] sm:$0xff] }
 0x21a   : > { %v2426_v47 = vadd.f32 %v2418_v46, %v2410_v14  ;;  %v2656_v27 = vadd.f32 %v12312_v20, %v2641_v36  ;;  %v2687_v30 = vadd.f32 %v2680_v51, %v2672_v6  ;;  %v2257_v37 = vadd.f32 %v2242_v63, %v12313_v38  ;;  %v12317_v6 = vld [vmem:[#allocation63_spill] sm:$0xff] }
 0x21b   : > { %v2435_v17 = vmul.f32 %v12310_v11, %v6036_v50  ;;  %v2465_v57 = vmul.f32 %v12307_v41, %v12149_v19  ;;  %v2511_v39 = vrot.slane %v8593_v62, 7  ;;  %v2535_v23 = vrot.slane %v8593_v62, 1 }
 0x21c   : > { %v2442_v22 = vadd.f32 %v2434_v60, %v2426_v47  ;;  %v2671_v18 = vadd.f32 %v12314_v55, %v2656_v27  ;;  %5202 = vst [vmem:[%s6394_s26 + $0xd0] sm:$0xff] %v2687_v30  ;;  %v2272_v56 = vadd.f32 %v2257_v37, %v12315_v26  ;;  %v2611_v51 = vadd.f32 %v2603_v49, %v2595_v2 }
 0x21d   : > { %v2619_v21 = vmul.f32 %v8526_v9, %v12017_v33  ;;  %v2596_v59 = vadd.f32 %v2588_v42, %v2581_v0  ;;  %v2480_v60 = vmul.f32 %v12310_v11, %v6040_v52  ;;  %v2574_v46 = vmul.f32 %v8593_v62, %v12012_v12 }
 0x21e   : > { %v2457_v14 = vadd.f32 %v2450_v4, %v2442_v22  ;;  %v2686_v36 = vadd.f32 %v12316_v43, %v2671_v18  ;;  %v2287_v63 = vadd.f32 %v2272_v56, %v12317_v6  ;;  %v8619_v47 = vsel %vm419_vm2, 0.0, %v2511_v39  ;;  %v12321_v56 = vld [vmem:[#allocation94_spill] sm:$0xff] }
 0x21f   : > { %12318 = vst [vmem:[#allocation96_spill] sm:$0xff] %v8619_v47  ;;  %v8622_v49 = vsel %vm447_vm3, %v2535_v23, 0.0  ;;  %v2559_v42 = vmul.f32 %v8619_v47, %v12158_v53  ;;  %v2627_v0 = vadd.f32 %v2619_v21, %v2611_v51  ;;  %v2666_v11 = vmul.f32 %v8593_v62, %v12293_v34  ;;  %v8638_v23 = vld [vmem:[%s5923_s12 + $0x128] sm:$0xff] }
 0x220   : > { %12319 = vst [vmem:[#allocation24_spill] sm:$0xff] %v8622_v49  ;;  %v2472_v2 = vadd.f32 %v2465_v57, %v2457_v14  ;;  %5201 = vst [vmem:[%s6394_s26 + $0xc8] sm:$0xff] %v2686_v36  ;;  %v2366_v4 = vadd.f32 %v2358_v58, %v2287_v63  ;;  %v2589_v20 = vmul.f32 %v8622_v49, %v12287_v44  ;;  %v2536_v43 = vrot.slane %v8638_v23, 1 }
 0x221   : > { %v2604_v27 = vmul.f32 %v8619_v47, %v12288_v10  ;;  %v2651_v30 = vmul.f32 %v8619_v47, %v12291_v45  ;;  %v2643_v22 = vadd.f32 %v2635_v31, %v2627_v0  ;;  %v2411_v57 = vadd.f32 %v2403_v1, %v2395_v48  ;;  %12320 = vst [vmem:[#allocation38_spill] sm:$0xff] %v8638_v23 }
 0x222   : > { %v2487_v37 = vadd.f32 %v2480_v60, %v2472_v2  ;;  %v2419_v39 = vmul.f32 %v12307_v41, %v12276_v32  ;;  %v2381_v55 = vadd.f32 %v2373_v28, %v2366_v4  ;;  %v2636_v58 = vmul.f32 %v8622_v49, %v12289_v16  ;;  %v12322_v41 = vld [vmem:[#allocation48_spill] sm:$0xff] }
 0x223   : > { %v2681_v18 = vmul.f32 %v8622_v49, %v12257_v15  ;;  %v2404_v51 = vmul.f32 %v12321_v56, %v12055_v54  ;;  %v2658_v14 = vadd.f32 %v2651_v30, %v2643_v22  ;;  %v2451_v48 = vmul.f32 %v12321_v56, %v12147_v7 }
 0x224   : > { %v2567_v21 = vadd.f32 %v2559_v42, %v2487_v37  ;;  %v2427_v60 = vadd.f32 %v2419_v39, %v2411_v57  ;;  %v2396_v31 = vadd.f32 %v2388_v61, %v2381_v55  ;;  %v2466_v28 = vmul.f32 %v12322_v41, %v12149_v19  ;;  %v12323_v42 = vld [vmem:[#allocation95_spill] sm:$0xff] }
 0x225   : > { %v2512_v1 = vrot.slane %v8638_v23, 7  ;;  %v2673_v63 = vadd.f32 %v2666_v11, %v2658_v14  ;;  %v2612_v0 = vadd.f32 %v2604_v27, %v2596_v59  ;;  %v2436_v4 = vmul.f32 %v12323_v42, %v6036_v50 }
 0x226   : > { %v2582_v36 = vadd.f32 %v2574_v46, %v2567_v21  ;;  %v2443_v2 = vadd.f32 %v2435_v17, %v2427_v60  ;;  %v2481_v30 = vmul.f32 %v12323_v42, %v6040_v52  ;;  %v2575_v61 = vmul.f32 %v8638_v23, %v12012_v12  ;;  %v8664_v17 = vld [vmem:[%s5923_s12 + $0x130] sm:$0xff] }
 0x227   : > { %v2620_v37 = vmul.f32 %v8593_v62, %v12017_v33  ;;  %v2688_v57 = vadd.f32 %v2681_v18, %v2673_v63  ;;  %v8661_v46 = vsel %vm419_vm2, 0.0, %v2512_v1  ;;  %12325 = vst [vmem:[#allocation52_spill] sm:$0xff] %v8664_v17  ;;  %v8667_v59 = vsel %vm447_vm3, %v2536_v43, 0.0  ;;  %v12342_v62 = vld [vmem:[#allocation91_spill] sm:$0xff] }
 0x228   : > { %v2597_v22 = vadd.f32 %v2589_v20, %v2582_v36  ;;  %v2458_v39 = vadd.f32 %v2451_v48, %v2443_v2  ;;  %12324 = vst [vmem:[#allocation21_spill] sm:$0xff] %v8661_v46  ;;  %12326 = vst [vmem:[#allocation80_spill] sm:$0xff] %v8667_v59  ;;  %v2605_v11 = vmul.f32 %v8661_v46, %v12288_v10  ;;  %v2513_v48 = vrot.slane %v8664_v17, 7 }
 0x229   : > { %v2628_v27 = vadd.f32 %v2620_v37, %v2612_v0  ;;  %v2667_v55 = vmul.f32 %v8638_v23, %v12293_v34  ;;  %5203 = vst [vmem:[%s6394_s26 + $0xd8] sm:$0xff] %v2688_v57  ;;  %v2560_v20 = vmul.f32 %v8661_v46, %v12158_v53  ;;  %v2652_v18 = vmul.f32 %v8661_v46, %v12291_v45  ;;  %v8699_v37 = vld [vmem:[%s5923_s12 + $0x138] sm:$0xff]  ;;  %v12341_v46 = vld [vmem:[#allocation16_spill] sm:$0xff] }
 0x22a   : > { %v2473_v56 = vadd.f32 %v2466_v28, %v2458_v39  ;;  %v2412_v21 = vadd.f32 %v2404_v51, %v2396_v31  ;;  %v2420_v60 = vmul.f32 %v12322_v41, %v12276_v32  ;;  %v2537_v1 = vrot.slane %v8664_v17, 1  ;;  %12329 = vst [vmem:[#allocation47_spill] sm:$0xff] %v8699_v37 }
 0x22b   : > { %v2644_v14 = vadd.f32 %v2636_v58, %v2628_v27  ;;  %v2590_v28 = vmul.f32 %v8667_v59, %v12287_v44  ;;  %v2613_v36 = vadd.f32 %v2605_v11, %v2597_v22  ;;  %v2621_v63 = vmul.f32 %v8638_v23, %v12017_v33 }
 0x22c   : > { %v2488_v43 = vadd.f32 %v2481_v30, %v2473_v56  ;;  %v2637_v51 = vmul.f32 %v8667_v59, %v12289_v16  ;;  %v2682_v31 = vmul.f32 %v8667_v59, %v12257_v15  ;;  %v2428_v41 = vadd.f32 %v2420_v60, %v2412_v21  ;;  %v12330_v21 = vld [vmem:[#allocation83_spill] sm:$0xff] }
 0x22d   : > { %v2659_v58 = vadd.f32 %v2652_v18, %v2644_v14  ;;  %v8691_v0 = vsel %vm419_vm2, 0.0, %v2513_v48  ;;  %v8694_v42 = vsel %vm447_vm3, %v2537_v1, 0.0  ;;  %v2576_v30 = vmul.f32 %v8664_v17, %v12012_v12 }
 0x22e   : > { %v2568_v2 = vadd.f32 %v2560_v20, %v2488_v43  ;;  %12327 = vst [vmem:[#allocation71_spill] sm:$0xff] %v8691_v0  ;;  %12328 = vst [vmem:[#allocation40_spill] sm:$0xff] %v8694_v42  ;;  %v2444_v57 = vadd.f32 %v2436_v4, %v2428_v41  ;;  %v2561_v39 = vmul.f32 %v8691_v0, %v12158_v53  ;;  %v2514_v60 = vrot.slane %v8699_v37, 7  ;;  %v8726_v41 = vld [vmem:[%s5923_s12 + $0xc8] sm:$0xff] }
 0x22f   : > { %v2674_v22 = vadd.f32 %v2667_v55, %v2659_v58  ;;  %v2629_v11 = vadd.f32 %v2621_v63, %v2613_v36  ;;  %v2606_v56 = vmul.f32 %v8691_v0, %v12288_v10  ;;  %v2653_v20 = vmul.f32 %v8691_v0, %v12291_v45  ;;  %v12331_v36 = vld [vmem:[#allocation84_spill] sm:$0xff] }
 0x230   : > { %v2583_v27 = vadd.f32 %v2575_v61, %v2568_v2  ;;  %v2668_v18 = vmul.f32 %v8664_v17, %v12293_v34  ;;  %v2459_v4 = vadd.f32 %v2444_v57, %v12330_v21  ;;  %v2591_v61 = vmul.f32 %v8694_v42, %v12287_v44  ;;  %v8729_v2 = vld [vmem:[%s5923_s12 + $0xd0] sm:$0xff]  ;;  %v8745_v21 = vld [vmem:[%s5923_s12 + $0xd8] sm:$0xff] }
 0x231   : > { %v2689_v55 = vadd.f32 %v2682_v31, %v2674_v22  ;;  %v2645_v14 = vadd.f32 %v2637_v51, %v2629_v11  ;;  %v2538_v1 = vrot.slane %v8699_v37, 1  ;;  %v2622_v43 = vmul.f32 %v8664_v17, %v12017_v33  ;;  %v8723_v31 = vld [vmem:[%s5923_s12 + $0xc0] sm:$0xff] }
 0x232   : > { %v2598_v48 = vadd.f32 %v2590_v28, %v2583_v27  ;;  %v2474_v63 = vadd.f32 %v2459_v4, %v12331_v36  ;;  %v2638_v58 = vmul.f32 %v8694_v42, %v12289_v16  ;;  %v2683_v28 = vmul.f32 %v8694_v42, %v12257_v15 }
 0x233   : > { %5204 = vst [vmem:[%s6394_s26 + $0xe0] sm:$0xff] %v2689_v55  ;;  %v2660_v51 = vadd.f32 %v2653_v20, %v2645_v14  ;;  %v8732_v22 = vsel %vm419_vm2, 0.0, %v2514_v60  ;;  %v2669_v11 = vmul.f32 %v8699_v37, %v12293_v34  ;;  %v2623_v27 = vmul.f32 %v8699_v37, %v12017_v33  ;;  %v12333_v20 = vld [vmem:[#allocation85_spill] sm:$0xff]  ;;  %v8748_v60 = vld [vmem:[%s5923_s12 + $0xe0] sm:$0xff] }
 0x234   : > { %12332 = vst [vmem:[#allocation26_spill] sm:$0xff] %v8732_v22  ;;  %v2614_v57 = vadd.f32 %v2606_v56, %v2598_v48  ;;  %v2489_v55 = vadd.f32 %v2474_v63, %v12333_v20  ;;  %v8740_v14 = vsel %vm447_vm3, %v2538_v1, 0.0  ;;  %v2654_v36 = vmul.f32 %v8732_v22, %v12291_v45  ;;  %v8751_v48 = vld [vmem:[%s5923_s12 + $0xe8] sm:$0xff] }
 0x235   : > { %v2675_v4 = vadd.f32 %v2668_v18, %v2660_v51  ;;  %12334 = vst [vmem:[#allocation56_spill] sm:$0xff] %v8740_v14  ;;  %v2718_v6 = vrot.slane %v8723_v31, 7  ;;  %v2719_v37 = vrot.slane %v8726_v41, 7  ;;  %v2720_v18 = vrot.slane %v8729_v2, 7 }
 0x236   : > { %v2630_v56 = vadd.f32 %v2622_v43, %v2614_v57  ;;  %v2569_v63 = vadd.f32 %v2561_v39, %v2489_v55  ;;  %v2607_v51 = vmul.f32 %v8732_v22, %v12288_v10  ;;  %v2639_v20 = vmul.f32 %v8740_v14, %v12289_v16 }
 0x237   : > { %v2690_v1 = vadd.f32 %v2683_v28, %v2675_v4  ;;  %v2684_v43 = vmul.f32 %v8740_v14, %v12257_v15  ;;  %v2721_v57 = vrot.slane %v8745_v21, 7  ;;  %v2722_v38 = vrot.slane %v8748_v60, 7 }
 0x238   : > { %v2646_v26 = vadd.f32 %v2638_v58, %v2630_v56  ;;  %v2584_v42 = vadd.f32 %v2576_v30, %v2569_v63  ;;  %v2723_v17 = vrot.slane %v8751_v48, 7  ;;  %v2734_v39 = vsel %vm419_vm2, 0.0, %v2718_v6 }
 0x239   : > { %5205 = vst [vmem:[%s6394_s26 + $0xe8] sm:$0xff] %v2690_v1  ;;  %v8768_v28 = vsel %vm419_vm2, 0.0, %v2719_v37  ;;  %v8771_v4 = vsel %vm419_vm2, 0.0, %v2720_v18  ;;  %v2742_v58 = vrot.slane %v8723_v31, 1  ;;  %v2743_v56 = vrot.slane %v8726_v41, 1 }
 0x23a   : > { %v2661_v55 = vadd.f32 %v2654_v36, %v2646_v26  ;;  %12335 = vst [vmem:[#allocation27_spill] sm:$0xff] %v8771_v4  ;;  %v2599_v14 = vadd.f32 %v2591_v61, %v2584_v42  ;;  %v2744_v22 = vrot.slane %v8729_v2, 1  ;;  %v2745_v30 = vrot.slane %v8745_v21, 1 }
 0x23b   : > { %v2746_v63 = vrot.slane %v8748_v60, 1  ;;  %v8779_v6 = vsel %vm419_vm2, 0.0, %v2721_v57  ;;  %v8782_v26 = vsel %vm419_vm2, 0.0, %v2722_v38  ;;  %v2747_v37 = vrot.slane %v8751_v48, 1 }
 0x23c   : > { %v2676_v1 = vadd.f32 %v2669_v11, %v2661_v55  ;;  %v2615_v36 = vadd.f32 %v2607_v51, %v2599_v14  ;;  %v2739_v18 = vsel %vm419_vm2, 0.0, %v2723_v17  ;;  %v2758_v42 = vsel %vm447_vm3, %v2742_v58, 0.0  ;;  %v12337_v55 = vld [vmem:[#allocation15_spill] sm:$0xff] }
 0x23d   : > { %v8788_v61 = vsel %vm447_vm3, %v2743_v56, 0.0  ;;  %v8791_v11 = vsel %vm447_vm3, %v2744_v22, 0.0  ;;  %v8794_v57 = vsel %vm447_vm3, %v2745_v30, 0.0  ;;  %v2767_v38 = vmul.f32 %v8768_v28, %v12337_v55  ;;  %v12340_v56 = vld [vmem:[#allocation69_spill] sm:$0xff] }
 0x23e   : > { %v2691_v0 = vadd.f32 %v2684_v43, %v2676_v1  ;;  %12336 = vst [vmem:[#allocation75_spill] sm:$0xff] %v8791_v11  ;;  %v2631_v59 = vadd.f32 %v2623_v27, %v2615_v36  ;;  %v8799_v14 = vsel %vm447_vm3, %v2746_v63, 0.0  ;;  %v8802_v17 = vsel %vm447_vm3, %v2747_v37, 0.0  ;;  %v12339_v43 = vld [vmem:[#allocation25_spill] sm:$0xff] }
 0x23f   : > { %12338 = vst [vmem:[#allocation88_spill] sm:$0xff] %v8799_v14  ;;  %v2769_v51 = vmul.f32 %v8779_v6, %v12337_v55  ;;  %v2771_v22 = vmul.f32 %v2739_v18, %v12337_v55  ;;  %v2774_v58 = vadd.f32 %v12339_v43, %v2767_v38  ;;  %v2781_v30 = vmul.f32 %v8726_v41, %v12340_v56 }
 0x240   : > { %5206 = vst [vmem:[%s6394_s26 + $0xf0] sm:$0xff] %v2691_v0  ;;  %v2783_v27 = vmul.f32 %v8745_v21, %v12340_v56  ;;  %v2647_v1 = vadd.f32 %v2639_v20, %v2631_v59  ;;  %v8814_v63 = vmul.f32 %v2734_v39, %v12337_v55  ;;  %v2785_v36 = vmul.f32 %v8751_v48, %v12340_v56 }
 0x241   : > { %v2776_v37 = vadd.f32 %v12339_v43, %v2769_v51  ;;  %v8821_v0 = vmul.f32 %v8771_v4, %v12337_v55  ;;  %v2778_v38 = vadd.f32 %v12339_v43, %v2771_v22  ;;  %v2788_v23 = vadd.f32 %v2781_v30, %v2774_v58  ;;  %v12343_v22 = vld [vmem:[#allocation17_spill] sm:$0xff]  ;;  %v12344_v58 = vld [vmem:[#allocation92_spill] sm:$0xff] }
 0x242   : > { %v2795_v49 = vmul.f32 %v8788_v61, %v12341_v46  ;;  %v2662_v59 = vadd.f32 %v2647_v1, %v12342_v62  ;;  %v8829_v20 = vmul.f32 %v8782_v26, %v12337_v55  ;;  %v2797_v47 = vmul.f32 %v8794_v57, %v12341_v46 }
 0x243   : > { %v2790_v51 = vadd.f32 %v2783_v27, %v2776_v37  ;;  %v2792_v15 = vadd.f32 %v2785_v36, %v2778_v38  ;;  %v8834_v34 = vmul.f32 %v2758_v42, %v12341_v46  ;;  %v2808_v43 = vmul.f32 %v2734_v39, %v12343_v22  ;;  %v12348_v39 = vld [vmem:[#allocation36_spill] sm:$0xff]  ;;  %v12349_v38 = vld [vmem:[#allocation74_spill] sm:$0xff] }
 0x244   : > { %v2802_v45 = vadd.f32 %v2795_v49, %v2788_v23  ;;  %v2677_v30 = vadd.f32 %v2662_v59, %v12344_v58  ;;  %v2799_v1 = vmul.f32 %v8802_v17, %v12341_v46  ;;  %v2810_v27 = vmul.f32 %v8771_v4, %v12343_v22 }
 0x245   : > { %v2804_v62 = vadd.f32 %v2797_v47, %v2790_v51  ;;  %v8844_v37 = vmul.f32 %v8791_v11, %v12341_v46  ;;  %v8848_v36 = vmul.f32 %v8799_v14, %v12341_v46  ;;  %v8852_v49 = vmul.f32 %v8768_v28, %v12343_v22 }
 0x246   : > { %v2812_v23 = vmul.f32 %v8782_v26, %v12343_v22  ;;  %v2692_v47 = vadd.f32 %v2677_v30, %v12348_v39  ;;  %v2816_v59 = vadd.f32 %v2808_v43, %v12349_v38  ;;  %v2818_v51 = vadd.f32 %v2810_v27, %v2802_v45 }
 0x247   : > { %12345 = vst [vmem:[#allocation90_spill] sm:$0xff] %v8844_v37  ;;  %12346 = vst [vmem:[#allocation98_spill] sm:$0xff] %v8848_v36  ;;  %v2824_v58 = vmul.f32 %v8723_v31, %v12130_v25  ;;  %v2826_v46 = vmul.f32 %v8729_v2, %v12130_v25  ;;  %v2828_v36 = vmul.f32 %v8748_v60, %v12130_v25 }
 0x248   : > { %12347 = vst [vmem:[#allocation87_spill] sm:$0xff] %v8852_v49  ;;  %v2820_v4 = vadd.f32 %v2812_v23, %v2804_v62  ;;  %v2840_v49 = vmul.f32 %v2758_v42, %v12268_v29  ;;  %5207 = vst [vmem:[%s6394_s26 + $0xf8] sm:$0xff] %v2692_v47  ;;  %v8866_v37 = vadd.f32 %v2799_v1, %v2792_v15  ;;  %v12351_v47 = vld [vmem:[#allocation19_spill] sm:$0xff] }
 0x249   : > { %v8870_v30 = vmul.f32 %v8779_v6, %v12343_v22  ;;  %v2832_v45 = vadd.f32 %v2824_v58, %v2816_v59  ;;  %v2842_v43 = vmul.f32 %v8791_v11, %v12268_v29  ;;  %v8875_v62 = vmul.f32 %v2739_v18, %v12343_v22 }
 0x24a   : > { %12350 = vst [vmem:[#allocation51_spill] sm:$0xff] %v8866_v37  ;;  %v2834_v27 = vadd.f32 %v2826_v46, %v2818_v51  ;;  %v2836_v23 = vadd.f32 %v2828_v36, %v2820_v4  ;;  %v2844_v38 = vmul.f32 %v8799_v14, %v12268_v29  ;;  %v2856_v15 = vmul.f32 %v8768_v28, %v12351_v47  ;;  %v12352_v37 = vld [vmem:[#allocation72_spill] sm:$0xff] }
 0x24b   : > { %v2848_v42 = vadd.f32 %v2840_v49, %v2832_v45  ;;  %v2858_v1 = vmul.f32 %v8779_v6, %v12351_v47  ;;  %v2860_v58 = vmul.f32 %v2739_v18, %v12351_v47  ;;  %v2871_v11 = vmul.f32 %v8726_v41, %v12352_v37 }
 0x24c   : > { %v2850_v59 = vadd.f32 %v2842_v43, %v2834_v27  ;;  %v2852_v39 = vadd.f32 %v2844_v38, %v2836_v23  ;;  %v2873_v46 = vmul.f32 %v8745_v21, %v12352_v37  ;;  %v8890_v4 = vmul.f32 %v8788_v61, %v12268_v29  ;;  %v12353_v23 = vld [vmem:[#allocation93_spill] sm:$0xff] }
 0x24d   : > { %v2863_v36 = vadd.f32 %v2856_v15, %v2848_v42  ;;  %v2875_v28 = vmul.f32 %v8751_v48, %v12352_v37  ;;  %v2886_v6 = vmul.f32 %v8788_v61, %v12265_v40  ;;  %v2888_v38 = vmul.f32 %v8794_v57, %v12265_v40  ;;  %v12355_v15 = vld [vmem:[#allocation50_spill] sm:$0xff] }
 0x24e   : > { %v2865_v18 = vadd.f32 %v2858_v1, %v2850_v59  ;;  %v2867_v49 = vadd.f32 %v2860_v58, %v2852_v39  ;;  %v2890_v51 = vmul.f32 %v8802_v17, %v12265_v40  ;;  %v8902_v45 = vmul.f32 %v8794_v57, %v12268_v29  ;;  %v12356_v57 = vld [vmem:[#allocation42_spill] sm:$0xff] }
 0x24f   : > { %v8906_v43 = vmul.f32 %v8802_v17, %v12268_v29  ;;  %v2878_v27 = vadd.f32 %v2871_v11, %v2863_v36  ;;  %v8910_v61 = vmul.f32 %v12353_v23, %v12305_v3  ;;  %v2966_v1 = vmul.f32 %v12355_v15, %v12305_v3  ;;  %v12358_v17 = vld [vmem:[#allocation49_spill] sm:$0xff] }
 0x250   : > { %v2880_v39 = vadd.f32 %v2873_v46, %v2865_v18  ;;  %v2882_v42 = vadd.f32 %v2875_v28, %v2867_v49  ;;  %v2968_v58 = vmul.f32 %v8549_v35, %v12305_v3  ;;  %v8918_v14 = vmul.f32 %v12356_v57, %v12305_v3  ;;  %v12359_v28 = vld [vmem:[#allocation78_spill] sm:$0xff]  ;;  %v12361_v49 = vld [vmem:[#allocation79_spill] sm:$0xff]  ;;  %v12363_v3 = vld [vmem:[#allocation41_spill] sm:$0xff] }
 0x251   : > { %12354 = vst [vmem:[#allocation59_spill] sm:$0xff] %v8910_v61  ;;  %v2893_v59 = vadd.f32 %v2886_v6, %v2878_v27  ;;  %v2981_v11 = vmul.f32 %v12358_v17, %v12271_v8  ;;  %v2983_v36 = vmul.f32 %v8526_v9, %v12271_v8  ;;  %v8926_v18 = vmul.f32 %v12359_v28, %v12273_v24  ;;  %v12362_v6 = vld [vmem:[#allocation39_spill] sm:$0xff] }
 0x252   : > { %12357 = vst [vmem:[#allocation54_spill] sm:$0xff] %v8918_v14  ;;  %v2895_v61 = vadd.f32 %v2888_v38, %v2880_v39  ;;  %v2897_v46 = vadd.f32 %v2890_v51, %v2882_v42  ;;  %v2996_v29 = vmul.f32 %v12361_v49, %v12273_v24  ;;  %v8933_v14 = vmul.f32 %v12363_v3, %v12273_v24 }
 0x253   : > { %12360 = vst [vmem:[#allocation77_spill] sm:$0xff] %v8926_v18  ;;  %v2972_v27 = vadd.f32 %v2893_v59, %v12362_v6  ;;  %v2998_v8 = vmul.f32 %v8555_v13, %v12273_v24  ;;  %v3010_v38 = vmul.f32 %v12353_v23, %v12055_v54  ;;  %v8941_v42 = vmul.f32 %v12355_v15, %v12055_v54  ;;  %v12366_v6 = vld [vmem:[#allocation46_spill] sm:$0xff]  ;;  %v12368_v24 = vld [vmem:[#allocation55_spill] sm:$0xff] }
 0x254   : > { %12364 = vst [vmem:[#allocation35_spill] sm:$0xff] %v8933_v14  ;;  %v2974_v51 = vadd.f32 %v2966_v1, %v2895_v61  ;;  %v2976_v39 = vadd.f32 %v2968_v58, %v2897_v46  ;;  %v3012_v59 = vmul.f32 %v12356_v57, %v12055_v54  ;;  %v8948_v14 = vmul.f32 %v8549_v35, %v12055_v54 }
 0x255   : > { %12365 = vst [vmem:[#allocation60_spill] sm:$0xff] %v8941_v42  ;;  %v2987_v18 = vadd.f32 %v2972_v27, %v12366_v6  ;;  %v3026_v40 = vmul.f32 %v12368_v24, %v12276_v32  ;;  %v3028_v23 = vmul.f32 %v8426_v5, %v12276_v32  ;;  %v3042_v58 = vmul.f32 %v12359_v28, %v6036_v50  ;;  %v8961_v27 = vld [vmem:[%s5923_s12 + $0x140] sm:$0xff]  ;;  %v8964_v6 = vld [vmem:[%s5923_s12 + $0x148] sm:$0xff] }
 0x256   : > { %12367 = vst [vmem:[#allocation67_spill] sm:$0xff] %v8948_v14  ;;  %v2989_v61 = vadd.f32 %v2981_v11, %v2974_v51  ;;  %v2991_v1 = vadd.f32 %v2983_v36, %v2976_v39  ;;  %v8958_v46 = vmul.f32 %v12361_v49, %v6036_v50  ;;  %12370 = vst [vmem:[#allocation37_spill] sm:$0xff] %v8961_v27  ;;  %v12372_v14 = vld [vmem:[#allocation45_spill] sm:$0xff] }
 0x257   : > { %12371 = vst [vmem:[#allocation44_spill] sm:$0xff] %v8964_v6  ;;  %v3002_v42 = vadd.f32 %v2987_v18, %v12372_v14  ;;  %v3044_v24 = vmul.f32 %v12363_v3, %v6036_v50  ;;  %v8971_v11 = vmul.f32 %v8555_v13, %v6036_v50  ;;  %v3058_v36 = vmul.f32 %v12355_v15, %v12147_v7 }
 0x258   : > { %12369 = vst [vmem:[#allocation70_spill] sm:$0xff] %v8958_v46  ;;  %v3004_v28 = vadd.f32 %v2996_v29, %v2989_v61  ;;  %v3060_v51 = vmul.f32 %v8549_v35, %v12147_v7  ;;  %v3073_v39 = vmul.f32 %v12358_v17, %v12149_v19  ;;  %v3075_v18 = vmul.f32 %v8526_v9, %v12149_v19 }
 0x259   : > { %12373 = vst [vmem:[#allocation66_spill] sm:$0xff] %v8971_v11  ;;  %v3018_v14 = vadd.f32 %v3010_v38, %v3002_v42  ;;  %v3120_v46 = vrot.slane %v8961_v27, 7  ;;  %v3121_v3 = vrot.slane %v8964_v6, 7  ;;  %v3144_v11 = vrot.slane %v8961_v27, 1 }
 0x25a   : > { %v8984_v57 = vadd.f32 %v2998_v8, %v2991_v1  ;;  %v3020_v29 = vadd.f32 %v3012_v59, %v3004_v28  ;;  %v3088_v35 = vmul.f32 %v12361_v49, %v6040_v52  ;;  %v3145_v15 = vrot.slane %v8964_v6, 1 }
 0x25b   : > { %v3034_v17 = vadd.f32 %v3026_v40, %v3018_v14  ;;  %v3090_v61 = vmul.f32 %v8555_v13, %v6040_v52  ;;  %v3184_v38 = vmul.f32 %v8964_v6, %v12012_v12  ;;  %v8995_v42 = vmul.f32 %v8961_v27, %v12017_v33 }
 0x25c   : > { %12374 = vst [vmem:[#allocation89_spill] sm:$0xff] %v8984_v57  ;;  %v3036_v8 = vadd.f32 %v3028_v23, %v3020_v29  ;;  %v8998_v1 = vsel %vm419_vm2, 0.0, %v3120_v46  ;;  %v9001_v59 = vsel %vm419_vm2, 0.0, %v3121_v3  ;;  %v9004_v49 = vsel %vm447_vm3, %v3144_v11, 0.0  ;;  %v9016_v46 = vld [vmem:[%s5923_s12 + $0xf0] sm:$0xff] }
 0x25d   : > { %12375 = vst [vmem:[#allocation97_spill] sm:$0xff] %v8998_v1  ;;  %12376 = vst [vmem:[#allocation76_spill] sm:$0xff] %v9001_v59  ;;  %v3050_v40 = vadd.f32 %v3042_v58, %v3034_v17  ;;  %v9007_v13 = vsel %vm447_vm3, %v3145_v15, 0.0  ;;  %v9011_v14 = vmul.f32 %v8998_v1, %v12158_v53  ;;  %v3169_v23 = vmul.f32 %v9001_v59, %v12158_v53  ;;  %v9043_v57 = vld [vmem:[%s6057_s30] ss:$0 sm:$0xff] }
 0x25e   : > { %12377 = vst [vmem:[#allocation86_spill] sm:$0xff] %v9004_v49  ;;  %12378 = vst [vmem:[#allocation81_spill] sm:$0xff] %v9007_v13  ;;  %v3052_v28 = vadd.f32 %v3044_v24, %v3036_v8  ;;  %v9020_v3 = vmul.f32 %v9004_v49, %v12287_v44  ;;  %v9024_v58 = vmul.f32 %v9007_v13, %v12287_v44 }
 0x25f   : > { %12379 = vst [vmem:[#allocation82_spill] sm:$0xff] %v9011_v14  ;;  %v3213_v11 = vmul.f32 %v8998_v1, %v12288_v10  ;;  %v3065_v29 = vadd.f32 %v3058_v36, %v3050_v40  ;;  %v9030_v15 = vmul.f32 %v9001_v59, %v12288_v10  ;;  %v9034_v17 = vmul.f32 %v9004_v49, %v12289_v16 }
 0x260   : > { %12380 = vst [vmem:[#allocation94_spill] sm:$0xff] %v9020_v3  ;;  %v9038_v24 = vmul.f32 %v9007_v13, %v12289_v16  ;;  %v3067_v8 = vadd.f32 %v3060_v51, %v3052_v28  ;;  %v2724_v3 = vrot.slane %v9016_v46, 7  ;;  %v2748_v14 = vrot.slane %v9016_v46, 1  ;;  %12383 = vst [vmem:[#allocation25_spill] sm:$0xff] %v9043_v57  ;;  %v12384_v28 = vld [vmem:[#allocation33_spill] sm:$0xff] }
 0x261   : > { %12381 = vst [vmem:[#allocation48_spill] sm:$0xff] %v9030_v15  ;;  %v2773_v36 = vadd.f32 %v9043_v57, %v8814_v63  ;;  %v3080_v40 = vadd.f32 %v3073_v39, %v3065_v29  ;;  %v2775_v1 = vadd.f32 %v9043_v57, %v8821_v0  ;;  %v2777_v49 = vadd.f32 %v9043_v57, %v8829_v20  ;;  %v12385_v39 = vld [vmem:[#allocation68_spill] sm:$0xff] }
 0x262   : > { %12382 = vst [vmem:[#allocation95_spill] sm:$0xff] %v9038_v24  ;;  %v2780_v24 = vmul.f32 %v8723_v31, %v12340_v56  ;;  %v3082_v51 = vadd.f32 %v3075_v18, %v3067_v8  ;;  %v3261_v15 = vmul.f32 %v9001_v59, %v12384_v28  ;;  %v2740_v16 = vsel %vm419_vm2, 0.0, %v2724_v3  ;;  %v12386_v28 = vld [vmem:[#allocation57_spill] sm:$0xff] }
 0x263   : > { %v2782_v10 = vmul.f32 %v8729_v2, %v12340_v56  ;;  %v3095_v63 = vadd.f32 %v3088_v35, %v3080_v40  ;;  %v9060_v29 = vmul.f32 %v8964_v6, %v12385_v39  ;;  %v2772_v0 = vmul.f32 %v2740_v16, %v12337_v55  ;;  %v12387_v55 = vld [vmem:[#allocation90_spill] sm:$0xff] }
 0x264   : > { %v2784_v20 = vmul.f32 %v8748_v60, %v12340_v56  ;;  %v3097_v31 = vadd.f32 %v3090_v61, %v3082_v51  ;;  %v2764_v18 = vsel %vm447_vm3, %v2748_v14, 0.0  ;;  %v2787_v8 = vadd.f32 %v2780_v24, %v2773_v36  ;;  %v12388_v51 = vld [vmem:[#allocation61_spill] sm:$0xff]  ;;  %v12389_v24 = vld [vmem:[#allocation34_spill] sm:$0xff] }
 0x265   : > { %v2789_v59 = vadd.f32 %v2782_v10, %v2775_v1  ;;  %v3175_v3 = vadd.f32 %v3095_v63, %v12386_v28  ;;  %v2779_v44 = vadd.f32 %v9043_v57, %v2772_v0  ;;  %v2786_v35 = vmul.f32 %v9016_v46, %v12340_v56  ;;  %v12390_v1 = vld [vmem:[#allocation98_spill] sm:$0xff]  ;;  %v12391_v0 = vld [vmem:[#allocation16_spill] sm:$0xff] }
 0x266   : > { %v2791_v40 = vadd.f32 %v2784_v20, %v2777_v49  ;;  %v3177_v39 = vadd.f32 %v3169_v23, %v3097_v31  ;;  %v2801_v53 = vadd.f32 %v8834_v34, %v2787_v8  ;;  %v2825_v61 = vmul.f32 %v8726_v41, %v12130_v25  ;;  %v12392_v23 = vld [vmem:[#allocation87_spill] sm:$0xff]  ;;  %v12393_v41 = vld [vmem:[#allocation62_spill] sm:$0xff] }
 0x267   : > { %v2803_v6 = vadd.f32 %v12387_v55, %v2789_v59  ;;  %v3190_v14 = vadd.f32 %v3175_v3, %v12388_v51  ;;  %v3291_v10 = vmul.f32 %v9007_v13, %v12389_v24  ;;  %v2827_v63 = vmul.f32 %v8745_v21, %v12130_v25  ;;  %v12394_v51 = vld [vmem:[#allocation27_spill] sm:$0xff] }
 0x268   : > { %v2805_v36 = vadd.f32 %v12390_v1, %v2791_v40  ;;  %v2800_v49 = vmul.f32 %v2764_v18, %v12391_v0  ;;  %v2817_v20 = vadd.f32 %v12392_v23, %v2801_v53  ;;  %v2829_v55 = vmul.f32 %v8751_v48, %v12130_v25 }
 0x269   : > { %v2819_v34 = vadd.f32 %v8870_v30, %v2803_v6  ;;  %v3205_v59 = vadd.f32 %v3190_v14, %v12393_v41  ;;  %v2793_v31 = vadd.f32 %v2786_v35, %v2779_v44  ;;  %v9087_v8 = vmul.f32 %v2740_v16, %v12343_v22 }
 0x26a   : > { %v2821_v3 = vadd.f32 %v8875_v62, %v2805_v36  ;;  %v3192_v40 = vadd.f32 %v3184_v38, %v3177_v39  ;;  %v2833_v1 = vadd.f32 %v2825_v61, %v2817_v20  ;;  %v2857_v28 = vmul.f32 %v12394_v51, %v12351_v47  ;;  %v12395_v61 = vld [vmem:[#allocation20_spill] sm:$0xff]  ;;  %v12398_v36 = vld [vmem:[#allocation18_spill] sm:$0xff] }
 0x26b   : > { %v2835_v21 = vadd.f32 %v2827_v63, %v2819_v34  ;;  %v3221_v53 = vadd.f32 %v3213_v11, %v3205_v59  ;;  %v2859_v30 = vmul.f32 %v8782_v26, %v12351_v47  ;;  %v2861_v48 = vmul.f32 %v2740_v16, %v12351_v47  ;;  %v12399_v34 = vld [vmem:[#allocation22_spill] sm:$0xff] }
 0x26c   : > { %v2837_v23 = vadd.f32 %v2829_v55, %v2821_v3  ;;  %v2849_v44 = vadd.f32 %v8890_v4, %v2833_v1  ;;  %v2872_v62 = vmul.f32 %v8729_v2, %v12352_v37  ;;  %v2874_v38 = vmul.f32 %v8748_v60, %v12352_v37  ;;  %v12397_v2 = vld [vmem:[#allocation88_spill] sm:$0xff]  ;;  %v5460_v1 = vld [vmem:[%s5923_s12 + $0x100] sm:$0xff] }
 0x26d   : > { %v2851_v6 = vadd.f32 %v8902_v45, %v2835_v21  ;;  %v3237_v39 = vadd.f32 %v8995_v42, %v3221_v53  ;;  %v9102_v35 = vadd.f32 %v2800_v49, %v2793_v31  ;;  %v2876_v16 = vmul.f32 %v9016_v46, %v12352_v37  ;;  %v12396_v45 = vld [vmem:[#allocation75_spill] sm:$0xff]  ;;  %v12400_v55 = vld [vmem:[#allocation96_spill] sm:$0xff] }
 0x26e   : > { %v2853_v11 = vadd.f32 %v8906_v43, %v2837_v23  ;;  %v2864_v26 = vadd.f32 %v2857_v28, %v2849_v44  ;;  %v2887_v51 = vmul.f32 %v12396_v45, %v12395_v61  ;;  %v2889_v14 = vmul.f32 %v12397_v2, %v12395_v61 }
 0x26f   : > { %v2866_v4 = vadd.f32 %v2859_v30, %v2851_v6  ;;  %v3253_v60 = vadd.f32 %v9034_v17, %v3237_v39  ;;  %v9113_v42 = vmul.f32 %v2764_v18, %v12398_v36  ;;  %v2891_v43 = vmul.f32 %v2764_v18, %v12395_v61  ;;  %v12401_v17 = vld [vmem:[#allocation43_spill] sm:$0xff] }
 0x270   : > { %v2868_v63 = vadd.f32 %v2861_v48, %v2853_v11  ;;  %v9117_v49 = vadd.f32 %v9024_v58, %v3192_v40  ;;  %v2879_v28 = vadd.f32 %v2872_v62, %v2864_v26  ;;  %v2969_v59 = vmul.f32 %v12400_v55, %v12399_v34  ;;  %v12402_v58 = vld [vmem:[#allocation58_spill] sm:$0xff]  ;;  %v12403_v30 = vld [vmem:[#allocation23_spill] sm:$0xff]  ;;  %v12404_v48 = vld [vmem:[#allocation24_spill] sm:$0xff] }
 0x271   : > { %v2881_v20 = vadd.f32 %v2874_v38, %v2866_v4  ;;  %v3268_v31 = vadd.f32 %v3261_v15, %v3253_v60  ;;  %v2980_v21 = vmul.f32 %v5460_v1, %v12401_v17  ;;  %v2982_v53 = vmul.f32 %v8426_v5, %v12401_v17  ;;  %v5461_v38 = vld [vmem:[%s5923_s12 + $0x108] sm:$0xff]  ;;  %v9135_v11 = vld [vmem:[%s5923_s12 + $0x150] sm:$0xff]  ;;  %v12406_v4 = vld [vmem:[#allocation54_spill] sm:$0xff] }
 0x272   : > { %v2883_v3 = vadd.f32 %v2876_v16, %v2868_v63  ;;  %v2894_v23 = vadd.f32 %v2887_v51, %v2879_v28  ;;  %v2984_v40 = vmul.f32 %v12402_v58, %v12401_v17  ;;  %v2999_v44 = vmul.f32 %v12404_v48, %v12403_v30  ;;  %v12405_v16 = vld [vmem:[#allocation59_spill] sm:$0xff]  ;;  %v12407_v60 = vld [vmem:[#allocation42_spill] sm:$0xff] }
 0x273   : > { %v2896_v18 = vadd.f32 %v2889_v14, %v2881_v20  ;;  %v3283_v6 = vadd.f32 %v9060_v29, %v3268_v31  ;;  %v3014_v15 = vmul.f32 %v12400_v55, %v12055_v54  ;;  %v3027_v39 = vmul.f32 %v5461_v38, %v12276_v32 }
 0x274   : > { %v2898_v62 = vadd.f32 %v2891_v43, %v2883_v3  ;;  %v2973_v26 = vadd.f32 %v12405_v16, %v2894_v23  ;;  %v3029_v51 = vmul.f32 %v8526_v9, %v12276_v32  ;;  %v9143_v29 = vmul.f32 %v12404_v48, %v6036_v50 }
 0x275   : > { %v2975_v45 = vadd.f32 %v12406_v4, %v2896_v18  ;;  %v3298_v2 = vadd.f32 %v3291_v10, %v3283_v6  ;;  %v3059_v63 = vmul.f32 %v12407_v60, %v12147_v7  ;;  %v3061_v43 = vmul.f32 %v12400_v55, %v12147_v7  ;;  %v12409_v18 = vld [vmem:[#allocation77_spill] sm:$0xff]  ;;  %v12410_v55 = vld [vmem:[#allocation35_spill] sm:$0xff] }
 0x276   : > { %v2977_v14 = vadd.f32 %v2969_v59, %v2898_v62  ;;  %v2988_v28 = vadd.f32 %v2980_v21, %v2973_v26  ;;  %v3074_v31 = vmul.f32 %v8426_v5, %v12149_v19  ;;  %v3122_v9 = vrot.slane %v9135_v11, 7  ;;  %v12408_v59 = vld [vmem:[#allocation41_spill] sm:$0xff]  ;;  %v12413_v26 = vld [vmem:[#allocation44_spill] sm:$0xff] }
 0x277   : > { %v2990_v20 = vadd.f32 %v2982_v53, %v2975_v45  ;;  %5232 = vst [vmem:[%s6394_s26 + $0x100] sm:$0xff] %v3298_v2  ;;  %v3076_v10 = vmul.f32 %v12402_v58, %v12149_v19  ;;  %v3089_v1 = vmul.f32 %v12408_v59, %v6040_v52  ;;  %v3146_v23 = vrot.slane %v9135_v11, 1  ;;  %v12415_v2 = vld [vmem:[#allocation67_spill] sm:$0xff] }
 0x278   : > { %v2992_v3 = vadd.f32 %v2984_v40, %v2977_v14  ;;  %v3003_v6 = vadd.f32 %v12409_v18, %v2988_v28  ;;  %v3091_v53 = vmul.f32 %v12404_v48, %v6040_v52  ;;  %v9164_v5 = vmul.f32 %v8961_v27, %v12012_v12  ;;  %v9167_v40 = vld [vmem:[%s5923_s12 + $0xf8] sm:$0xff]  ;;  %v12414_v48 = vld [vmem:[#allocation60_spill] sm:$0xff]  ;;  %v12422_v27 = vld [vmem:[#allocation33_spill] sm:$0xff] }
 0x279   : > { %v3005_v21 = vadd.f32 %v12410_v55, %v2990_v20  ;;  %v9172_v38 = vsel %vm419_vm2, 0.0, %v3122_v9  ;;  %v9176_v16 = vmul.f32 %v9135_v11, %v12012_v12  ;;  %v9180_v4 = vmul.f32 %v12413_v26, %v12017_v33  ;;  %v12418_v20 = vld [vmem:[#allocation30_spill] sm:$0xff]  ;;  %v12420_v18 = vld [vmem:[#allocation32_spill] sm:$0xff] }
 0x27a   : > { %v9169_v62 = vadd.f32 %v2999_v44, %v2992_v3  ;;  %12412 = vst [vmem:[#allocation50_spill] sm:$0xff] %v9172_v38  ;;  %v3019_v45 = vadd.f32 %v12414_v48, %v3003_v6  ;;  %v9185_v60 = vsel %vm447_vm3, %v3146_v23, 0.0  ;;  %v12417_v44 = vld [vmem:[#allocation29_spill] sm:$0xff]  ;;  %v12419_v3 = vld [vmem:[#allocation31_spill] sm:$0xff]  ;;  %v2725_v6 = vrot.slane %v9167_v40, 7  ;;  %v12424_v26 = vld [vmem:[#allocation68_spill] sm:$0xff] }
 0x27b   : > { %v3021_v14 = vadd.f32 %v12415_v2, %v3005_v21  ;;  %12416 = vst [vmem:[#allocation49_spill] sm:$0xff] %v9185_v60  ;;  %v3170_v28 = vmul.f32 %v9172_v38, %v12417_v44  ;;  %v9191_v9 = vmul.f32 %v9185_v60, %v12418_v20  ;;  %v3215_v59 = vmul.f32 %v9172_v38, %v12419_v3  ;;  %v12421_v2 = vld [vmem:[#allocation51_spill] sm:$0xff] }
 0x27c   : > { %12411 = vst [vmem:[#allocation93_spill] sm:$0xff] %v9169_v62  ;;  %v9197_v55 = vmul.f32 %v9185_v60, %v12420_v18  ;;  %v3035_v21 = vadd.f32 %v3027_v39, %v3019_v45  ;;  %v2749_v23 = vrot.slane %v9167_v40, 1  ;;  %v2822_v41 = vadd.f32 %v9087_v8, %v12421_v2  ;;  %v12426_v39 = vld [vmem:[#allocation70_spill] sm:$0xff] }
 0x27d   : > { %v3037_v48 = vadd.f32 %v3029_v51, %v3021_v14  ;;  %v9205_v13 = vmul.f32 %v9172_v38, %v12422_v27  ;;  %v9209_v0 = vmul.f32 %v9135_v11, %v12424_v26  ;;  %v2741_v56 = vsel %vm419_vm2, 0.0, %v2725_v6  ;;  %v12427_v45 = vld [vmem:[#allocation66_spill] sm:$0xff] }
 0x27e   : > { %v2830_v57 = vmul.f32 %v9016_v46, %v12130_v25  ;;  %v3051_v51 = vadd.f32 %v12426_v39, %v3035_v21  ;;  %v9218_v8 = vmul.f32 %v9185_v60, %v12389_v24  ;;  %v2765_v2 = vsel %vm447_vm3, %v2749_v23, 0.0 }
 0x27f   : > { %12423 = vst [vmem:[#allocation78_spill] sm:$0xff] %v9205_v13  ;;  %12425 = vst [vmem:[#allocation79_spill] sm:$0xff] %v9209_v0  ;;  %v3053_v14 = vadd.f32 %v12427_v45, %v3037_v48  ;;  %v2862_v13 = vmul.f32 %v2741_v56, %v12351_v47  ;;  %v2877_v6 = vmul.f32 %v9167_v40, %v12352_v37  ;;  %v12429_v0 = vld [vmem:[#allocation21_spill] sm:$0xff]  ;;  %v9236_v37 = vld [vmem:[%s5923_s12 + $0x158] sm:$0xff] }
 0x280   : > { %12428 = vst [vmem:[#allocation55_spill] sm:$0xff] %v9218_v8  ;;  %v2838_v38 = vadd.f32 %v2830_v57, %v2822_v41  ;;  %v2970_v46 = vmul.f32 %v12429_v0, %v12399_v34  ;;  %v3066_v62 = vadd.f32 %v3059_v63, %v3051_v51  ;;  %v2815_v39 = vmul.f32 %v2741_v56, %v12343_v22  ;;  %v12430_v57 = vld [vmem:[#allocation89_spill] sm:$0xff]  ;;  %v12431_v63 = vld [vmem:[#allocation38_spill] sm:$0xff]  ;;  %v12432_v56 = vld [vmem:[#allocation80_spill] sm:$0xff] }
 0x281   : > { %v3068_v21 = vadd.f32 %v3061_v43, %v3053_v14  ;;  %v9228_v48 = vmul.f32 %v2765_v2, %v12398_v36  ;;  %v2892_v23 = vmul.f32 %v2765_v2, %v12395_v61  ;;  %v3022_v41 = vadd.f32 %v3014_v15, %v12430_v57 }
 0x282   : > { %v2854_v45 = vadd.f32 %v9113_v42, %v2838_v38  ;;  %v3030_v60 = vmul.f32 %v12402_v58, %v12276_v32  ;;  %v3081_v47 = vadd.f32 %v3074_v31, %v3066_v62  ;;  %v2985_v43 = vmul.f32 %v12431_v63, %v12401_v17 }
 0x283   : > { %v3083_v8 = vadd.f32 %v3076_v10, %v3068_v21  ;;  %v3000_v51 = vmul.f32 %v12432_v56, %v12403_v30  ;;  %v3015_v42 = vmul.f32 %v12429_v0, %v12055_v54  ;;  %v3062_v15 = vmul.f32 %v12429_v0, %v12147_v7 }
 0x284   : > { %v2869_v14 = vadd.f32 %v2862_v13, %v2854_v45  ;;  %v3038_v38 = vadd.f32 %v3030_v60, %v3022_v41  ;;  %v3096_v2 = vadd.f32 %v3089_v1, %v3081_v47  ;;  %v3123_v57 = vrot.slane %v9236_v37, 7  ;;  %v12433_v45 = vld [vmem:[#allocation82_spill] sm:$0xff] }
 0x285   : > { %v3098_v58 = vadd.f32 %v3091_v53, %v3083_v8  ;;  %v3147_v31 = vrot.slane %v9236_v37, 1  ;;  %v3047_v62 = vmul.f32 %v12432_v56, %v6036_v50  ;;  %v3077_v13 = vmul.f32 %v12431_v63, %v12149_v19 }
 0x286   : > { %v2884_v10 = vadd.f32 %v2877_v6, %v2869_v14  ;;  %v3054_v21 = vadd.f32 %v9143_v29, %v3038_v38  ;;  %v3176_v60 = vadd.f32 %v12433_v45, %v3096_v2  ;;  %v3092_v47 = vmul.f32 %v12432_v56, %v6040_v52 }
 0x287   : > { %v3178_v41 = vadd.f32 %v3170_v28, %v3098_v58  ;;  %v3223_v0 = vadd.f32 %v3215_v59, %v9117_v49  ;;  %v9258_v8 = vsel %vm419_vm2, 0.0, %v3123_v57  ;;  %v3186_v6 = vmul.f32 %v9236_v37, %v12012_v12 }
 0x288   : > { %v2899_v1 = vadd.f32 %v2892_v23, %v2884_v10  ;;  %v3069_v53 = vadd.f32 %v3062_v15, %v3054_v21  ;;  %v3191_v29 = vadd.f32 %v9164_v5, %v3176_v60  ;;  %v9264_v14 = vsel %vm447_vm3, %v3147_v31, 0.0  ;;  %v12434_v15 = vld [vmem:[#allocation94_spill] sm:$0xff] }
 0x289   : > { %v3171_v28 = vmul.f32 %v9258_v8, %v12417_v44  ;;  %v3231_v56 = vmul.f32 %v9135_v11, %v12017_v33  ;;  %v3193_v49 = vadd.f32 %v9176_v16, %v3178_v41  ;;  %v3201_v38 = vmul.f32 %v9264_v14, %v12418_v20 }
 0x28a   : > { %v2978_v59 = vadd.f32 %v2970_v46, %v2899_v1  ;;  %v3084_v23 = vadd.f32 %v3077_v13, %v3069_v53  ;;  %v3206_v2 = vadd.f32 %v12434_v15, %v3191_v29  ;;  %v3216_v5 = vmul.f32 %v9258_v8, %v12419_v3  ;;  %v12435_v46 = vld [vmem:[#allocation48_spill] sm:$0xff]  ;;  %v12436_v1 = vld [vmem:[#allocation71_spill] sm:$0xff]  ;;  %v12439_v15 = vld [vmem:[#allocation93_spill] sm:$0xff] }
 0x28b   : > { %v3239_v58 = vadd.f32 %v3231_v56, %v3223_v0  ;;  %v3263_v57 = vmul.f32 %v9258_v8, %v12422_v27  ;;  %v3248_v21 = vmul.f32 %v9264_v14, %v12420_v18  ;;  %v2823_v16 = vadd.f32 %v2815_v39, %v9102_v35  ;;  %v12437_v56 = vld [vmem:[#allocation52_spill] sm:$0xff] }
 0x28c   : > { %v2993_v31 = vadd.f32 %v2985_v43, %v2978_v59  ;;  %v3099_v10 = vadd.f32 %v3092_v47, %v3084_v23  ;;  %v3222_v13 = vadd.f32 %v12435_v46, %v3206_v2  ;;  %v3278_v60 = vmul.f32 %v9236_v37, %v12424_v26  ;;  %v12438_v23 = vld [vmem:[#allocation40_spill] sm:$0xff]  ;;  %v12441_v2 = vld [vmem:[#allocation95_spill] sm:$0xff] }
 0x28d   : > { %v3255_v45 = vadd.f32 %v9197_v55, %v3239_v58  ;;  %v2831_v41 = vmul.f32 %v9167_v40, %v12130_v25  ;;  %v3208_v0 = vadd.f32 %v9191_v9, %v3193_v49  ;;  %v3293_v47 = vmul.f32 %v9264_v14, %v12389_v24  ;;  %v9301_v49 = vld [vmem:[%s5923_s12 + $0x160] sm:$0xff] }
 0x28e   : > { %v3179_v43 = vadd.f32 %v3171_v28, %v3099_v10  ;;  %v2971_v35 = vmul.f32 %v12436_v1, %v12399_v34  ;;  %v3238_v39 = vadd.f32 %v9180_v4, %v3222_v13  ;;  %v3008_v53 = vadd.f32 %v3000_v51, %v2993_v31  ;;  %12440 = vst [vmem:[#allocation90_spill] sm:$0xff] %v9301_v49 }
 0x28f   : > { %v3270_v29 = vadd.f32 %v3263_v57, %v3255_v45  ;;  %v2839_v55 = vadd.f32 %v2831_v41, %v2823_v16  ;;  %v2986_v59 = vmul.f32 %v12437_v56, %v12401_v17  ;;  %v3001_v40 = vmul.f32 %v12438_v23, %v12403_v30  ;;  %v12443_v45 = vld [vmem:[#allocation73_spill] sm:$0xff] }
 0x290   : > { %v3023_v9 = vadd.f32 %v3015_v42, %v12439_v15  ;;  %v3031_v28 = vmul.f32 %v12431_v63, %v12276_v32  ;;  %v3254_v58 = vadd.f32 %v12441_v2, %v3238_v39  ;;  %v3194_v10 = vadd.f32 %v3186_v6, %v3179_v43  ;;  %v12442_v63 = vld [vmem:[#allocation78_spill] sm:$0xff] }
 0x291   : > { %v3285_v4 = vadd.f32 %v3278_v60, %v3270_v29  ;;  %v2855_v51 = vadd.f32 %v9228_v48, %v2839_v55  ;;  %v3016_v57 = vmul.f32 %v12436_v1, %v12055_v54  ;;  %v3048_v16 = vmul.f32 %v12438_v23, %v6036_v50  ;;  %v12444_v29 = vld [vmem:[#allocation79_spill] sm:$0xff] }
 0x292   : > { %v3039_v31 = vadd.f32 %v3031_v28, %v3023_v9  ;;  %v3063_v42 = vmul.f32 %v12436_v1, %v12147_v7  ;;  %v3269_v46 = vadd.f32 %v12442_v63, %v3254_v58  ;;  %v3124_v6 = vrot.slane %v9301_v49, 7  ;;  %v12445_v1 = vld [vmem:[#allocation65_spill] sm:$0xff]  ;;  %v12448_v58 = vld [vmem:[#allocation63_spill] sm:$0xff] }
 0x293   : > { %v3300_v13 = vadd.f32 %v3293_v47, %v3285_v4  ;;  %v2870_v41 = vadd.f32 %v2855_v51, %v12443_v45  ;;  %v3078_v48 = vmul.f32 %v12437_v56, %v12149_v19  ;;  %v3148_v43 = vrot.slane %v9301_v49, 1 }
 0x294   : > { %v3055_v60 = vadd.f32 %v3047_v62, %v3039_v31  ;;  %v3224_v39 = vadd.f32 %v3216_v5, %v3208_v0  ;;  %v3284_v55 = vadd.f32 %v12444_v29, %v3269_v46  ;;  %v3209_v15 = vadd.f32 %v3201_v38, %v3194_v10  ;;  %v12447_v0 = vld [vmem:[#allocation55_spill] sm:$0xff] }
 0x295   : > { %5234 = vst [vmem:[%s6394_s26 + $0x110] sm:$0xff] %v3300_v13  ;;  %v2885_v9 = vadd.f32 %v2870_v41, %v12445_v1  ;;  %v3232_v47 = vmul.f32 %v9236_v37, %v12017_v33  ;;  %v3093_v62 = vmul.f32 %v12438_v23, %v6040_v52  ;;  %v9325_v2 = vsel %vm419_vm2, 0.0, %v3124_v6  ;;  %v9462_v1 = vld [vmem:[%s5923_s12 + $0x120] sm:$0xff] }
 0x296   : > { %v3070_v28 = vadd.f32 %v3063_v42, %v3055_v60  ;;  %12446 = vst [vmem:[#allocation98_spill] sm:$0xff] %v9325_v2  ;;  %v3187_v5 = vmul.f32 %v9301_v49, %v12012_v12  ;;  %v3299_v38 = vadd.f32 %v12447_v0, %v3284_v55  ;;  %v9332_v4 = vsel %vm447_vm3, %v3148_v43, 0.0  ;;  %v9346_v60 = vld [vmem:[%s5923_s12 + $0x168] sm:$0xff] }
 0x297   : > { %v2900_v10 = vadd.f32 %v2885_v9, %v12448_v58  ;;  %12449 = vst [vmem:[#allocation87_spill] sm:$0xff] %v9332_v4  ;;  %v3240_v51 = vadd.f32 %v3232_v47, %v3224_v39  ;;  %v3172_v42 = vmul.f32 %v9325_v2, %v12417_v44  ;;  %v3217_v23 = vmul.f32 %v9325_v2, %v12419_v3  ;;  %v9455_v58 = vld [vmem:[%s5923_s12 + $0x118] sm:$0xff] }
 0x298   : > { %v3085_v31 = vadd.f32 %v3078_v48, %v3070_v28  ;;  %v3264_v63 = vmul.f32 %v9325_v2, %v12422_v27  ;;  %5233 = vst [vmem:[%s6394_s26 + $0x108] sm:$0xff] %v3299_v38  ;;  %v3202_v13 = vmul.f32 %v9332_v4, %v12418_v20  ;;  %v3279_v6 = vmul.f32 %v9301_v49, %v12424_v26 }
 0x299   : > { %v2979_v46 = vadd.f32 %v2971_v35, %v2900_v10  ;;  %v3256_v41 = vadd.f32 %v3248_v21, %v3240_v51  ;;  %12450 = vst [vmem:[#allocation27_spill] sm:$0xff] %v9346_v60  ;;  %v3249_v43 = vmul.f32 %v9332_v4, %v12420_v18  ;;  %v3024_v39 = vadd.f32 %v3016_v57, %v3008_v53  ;;  %v12451_v21 = vld [vmem:[#allocation26_spill] sm:$0xff] }
 0x29a   : > { %v3100_v48 = vadd.f32 %v3093_v62, %v3085_v31  ;;  %v3032_v29 = vmul.f32 %v12437_v56, %v12276_v32  ;;  %v3294_v35 = vmul.f32 %v9332_v4, %v12389_v24  ;;  %v3017_v47 = vmul.f32 %v12451_v21, %v12055_v54  ;;  %v12452_v56 = vld [vmem:[#allocation47_spill] sm:$0xff]  ;;  %v12471_v4 = vld [vmem:[#allocation16_spill] sm:$0xff] }
 0x29b   : > { %v2994_v55 = vadd.f32 %v2986_v59, %v2979_v46  ;;  %v3271_v9 = vadd.f32 %v3264_v63, %v3256_v41  ;;  %v3064_v62 = vmul.f32 %v12451_v21, %v12147_v7  ;;  %v3125_v38 = vrot.slane %v9346_v60, 7  ;;  %v12454_v41 = vld [vmem:[#allocation56_spill] sm:$0xff] }
 0x29c   : > { %v3180_v28 = vadd.f32 %v3172_v42, %v3100_v48  ;;  %v3040_v0 = vadd.f32 %v3032_v29, %v3024_v39  ;;  %v3079_v59 = vmul.f32 %v12452_v56, %v12149_v19  ;;  %v3149_v57 = vrot.slane %v9346_v60, 1 }
 0x29d   : > { %v3009_v10 = vadd.f32 %v3001_v40, %v2994_v55  ;;  %v3286_v53 = vadd.f32 %v3279_v6, %v3271_v9  ;;  %v9363_v63 = vsel %vm419_vm2, 0.0, %v3125_v38  ;;  %v3225_v42 = vadd.f32 %v3217_v23, %v3209_v15 }
 0x29e   : > { %v3195_v51 = vadd.f32 %v3187_v5, %v3180_v28  ;;  %v3056_v31 = vadd.f32 %v3048_v16, %v3040_v0  ;;  %12453 = vst [vmem:[#allocation75_spill] sm:$0xff] %v9363_v63  ;;  %v3049_v48 = vmul.f32 %v12454_v41, %v6036_v50  ;;  %v3094_v40 = vmul.f32 %v12454_v41, %v6040_v52  ;;  %v9377_v5 = vld [vmem:[%s5923_s12 + $0x170] sm:$0xff] }
 0x29f   : > { %v3301_v46 = vadd.f32 %v3294_v35, %v3286_v53  ;;  %v3218_v6 = vmul.f32 %v9363_v63, %v12419_v3  ;;  %v9372_v55 = vsel %vm447_vm3, %v3149_v57, 0.0  ;;  %v3233_v16 = vmul.f32 %v9301_v49, %v12017_v33  ;;  %12456 = vst [vmem:[#allocation96_spill] sm:$0xff] %v9377_v5 }
 0x2a0   : > { %v3210_v39 = vadd.f32 %v3202_v13, %v3195_v51  ;;  %v3071_v29 = vadd.f32 %v3064_v62, %v3056_v31  ;;  %12455 = vst [vmem:[#allocation88_spill] sm:$0xff] %v9372_v55  ;;  %v3173_v15 = vmul.f32 %v9363_v63, %v12417_v44  ;;  %v3188_v23 = vmul.f32 %v9346_v60, %v12012_v12 }
 0x2a1   : > { %5235 = vst [vmem:[%s6394_s26 + $0x118] sm:$0xff] %v3301_v46  ;;  %v3203_v13 = vmul.f32 %v9372_v55, %v12418_v20  ;;  %v3265_v9 = vmul.f32 %v9363_v63, %v12422_v27  ;;  %v3241_v21 = vadd.f32 %v3233_v16, %v3225_v42  ;;  %v3025_v28 = vadd.f32 %v3017_v47, %v3009_v10 }
 0x2a2   : > { %v3086_v35 = vadd.f32 %v3079_v59, %v3071_v29  ;;  %v3033_v0 = vmul.f32 %v12452_v56, %v12276_v32  ;;  %v3280_v62 = vmul.f32 %v9346_v60, %v12424_v26  ;;  %v3126_v38 = vrot.slane %v9377_v5, 7  ;;  %v9397_v59 = vld [vmem:[%s5923_s12 + $0x178] sm:$0xff] }
 0x2a3   : > { %v3150_v53 = vrot.slane %v9377_v5, 1  ;;  %v3226_v57 = vadd.f32 %v3218_v6, %v3210_v39  ;;  %v3257_v31 = vadd.f32 %v3249_v43, %v3241_v21  ;;  %v3234_v41 = vmul.f32 %v9346_v60, %v12017_v33  ;;  %12457 = vst [vmem:[#allocation58_spill] sm:$0xff] %v9397_v59 }
 0x2a4   : > { %v3101_v51 = vadd.f32 %v3094_v40, %v3086_v35  ;;  %v3041_v46 = vadd.f32 %v3033_v0, %v3025_v28  ;;  %v3250_v47 = vmul.f32 %v9372_v55, %v12420_v18  ;;  %v3295_v10 = vmul.f32 %v9372_v55, %v12389_v24 }
 0x2a5   : > { %v9404_v56 = vsel %vm419_vm2, 0.0, %v3126_v38  ;;  %v3189_v42 = vmul.f32 %v9377_v5, %v12012_v12  ;;  %v3272_v43 = vadd.f32 %v3265_v9, %v3257_v31  ;;  %v9409_v39 = vsel %vm447_vm3, %v3150_v53, 0.0  ;;  %v12460_v38 = vld [vmem:[#allocation83_spill] sm:$0xff] }
 0x2a6   : > { %12458 = vst [vmem:[#allocation24_spill] sm:$0xff] %v9404_v56  ;;  %v3181_v40 = vadd.f32 %v3173_v15, %v3101_v51  ;;  %v3057_v6 = vadd.f32 %v3049_v48, %v3041_v46  ;;  %12459 = vst [vmem:[#allocation59_spill] sm:$0xff] %v9409_v39  ;;  %v3219_v29 = vmul.f32 %v9404_v56, %v12419_v3  ;;  %v3127_v21 = vrot.slane %v9397_v59, 7 }
 0x2a7   : > { %v3242_v16 = vadd.f32 %v3234_v41, %v3226_v57  ;;  %v3281_v35 = vmul.f32 %v9377_v5, %v12424_v26  ;;  %v3287_v0 = vadd.f32 %v3280_v62, %v3272_v43  ;;  %v3266_v48 = vmul.f32 %v9404_v56, %v12422_v27  ;;  %v12461_v62 = vld [vmem:[#allocation84_spill] sm:$0xff] }
 0x2a8   : > { %v3196_v28 = vadd.f32 %v3188_v23, %v3181_v40  ;;  %v3072_v15 = vadd.f32 %v3057_v6, %v12460_v38  ;;  %v3174_v9 = vmul.f32 %v9404_v56, %v12417_v44  ;;  %v3204_v53 = vmul.f32 %v9409_v39, %v12418_v20  ;;  %v9428_v40 = vld [vmem:[%s5923_s12 + $0x100] sm:$0xff] }
 0x2a9   : > { %v3258_v57 = vadd.f32 %v3250_v47, %v3242_v16  ;;  %v3151_v51 = vrot.slane %v9397_v59, 1  ;;  %v3302_v23 = vadd.f32 %v3295_v10, %v3287_v0  ;;  %v3251_v41 = vmul.f32 %v9409_v39, %v12420_v18  ;;  %v9438_v47 = vld [vmem:[%s5923_s12 + $0x108] sm:$0xff]  ;;  %v9441_v10 = vld [vmem:[%s5923_s12 + $0x110] sm:$0xff] }
 0x2aa   : > { %v3211_v31 = vadd.f32 %v3203_v13, %v3196_v28  ;;  %v3087_v46 = vadd.f32 %v3072_v15, %v12461_v62  ;;  %v3296_v6 = vmul.f32 %v9409_v39, %v12389_v24  ;;  %v9433_v38 = vsel %vm419_vm2, 0.0, %v3127_v21  ;;  %v12463_v16 = vld [vmem:[#allocation85_spill] sm:$0xff] }
 0x2ab   : > { %v3273_v43 = vadd.f32 %v3266_v48, %v3258_v57  ;;  %12462 = vst [vmem:[#allocation54_spill] sm:$0xff] %v9433_v38  ;;  %v3235_v13 = vmul.f32 %v9377_v5, %v12017_v33  ;;  %5236 = vst [vmem:[%s6394_s26 + $0x120] sm:$0xff] %v3302_v23  ;;  %v9446_v0 = vsel %vm447_vm3, %v3151_v51, 0.0  ;;  %v3220_v15 = vmul.f32 %v9433_v38, %v12419_v3  ;;  %v9458_v23 = vld [vmem:[%s5923_s12 + $0x128] sm:$0xff] }
 0x2ac   : > { %v3102_v28 = vadd.f32 %v3087_v46, %v12463_v16  ;;  %12464 = vst [vmem:[#allocation42_spill] sm:$0xff] %v9446_v0  ;;  %v3227_v48 = vadd.f32 %v3219_v29, %v3211_v31  ;;  %v3252_v57 = vmul.f32 %v9446_v0, %v12420_v18  ;;  %v3267_v62 = vmul.f32 %v9433_v38, %v12422_v27 }
 0x2ad   : > { %v3288_v21 = vadd.f32 %v3281_v35, %v3273_v43  ;;  %v3331_v46 = vrot.slane %v9428_v40, 7  ;;  %v3332_v29 = vrot.slane %v9438_v47, 7  ;;  %v3333_v35 = vrot.slane %v9441_v10, 7 }
 0x2ae   : > { %v3182_v51 = vadd.f32 %v3174_v9, %v3102_v28  ;;  %v3243_v16 = vadd.f32 %v3235_v13, %v3227_v48  ;;  %v3282_v43 = vmul.f32 %v9397_v59, %v12424_v26  ;;  %v3297_v38 = vmul.f32 %v9446_v0, %v12389_v24 }
 0x2af   : > { %v3303_v31 = vadd.f32 %v3296_v6, %v3288_v21  ;;  %v3236_v45 = vmul.f32 %v9397_v59, %v12017_v33  ;;  %v3334_v9 = vrot.slane %v9455_v58, 7  ;;  %v3336_v13 = vrot.slane %v9458_v23, 7 }
 0x2b0   : > { %v3197_v39 = vadd.f32 %v3189_v42, %v3182_v51  ;;  %v3259_v5 = vadd.f32 %v3251_v41, %v3243_v16  ;;  %v3335_v28 = vrot.slane %v9462_v1, 7  ;;  %v3347_v6 = vsel %vm419_vm2, 0.0, %v3331_v46 }
 0x2b1   : > { %5237 = vst [vmem:[%s6394_s26 + $0x128] sm:$0xff] %v3303_v31  ;;  %v9478_v48 = vsel %vm419_vm2, 0.0, %v3332_v29  ;;  %v9481_v21 = vsel %vm419_vm2, 0.0, %v3333_v35  ;;  %v3355_v42 = vrot.slane %v9428_v40, 1  ;;  %v3356_v41 = vrot.slane %v9438_v47, 1 }
 0x2b2   : > { %12465 = vst [vmem:[#allocation41_spill] sm:$0xff] %v9481_v21  ;;  %v3212_v0 = vadd.f32 %v3204_v53, %v3197_v39  ;;  %v3274_v56 = vadd.f32 %v3267_v62, %v3259_v5  ;;  %v3357_v16 = vrot.slane %v9441_v10, 1  ;;  %v3358_v51 = vrot.slane %v9455_v58, 1 }
 0x2b3   : > { %v3359_v31 = vrot.slane %v9462_v1, 1  ;;  %v3360_v46 = vrot.slane %v9458_v23, 1  ;;  %v3350_v35 = vsel %vm419_vm2, 0.0, %v3334_v9  ;;  %v3352_v39 = vsel %vm419_vm2, 0.0, %v3336_v13 }
 0x2b4   : > { %v3289_v59 = vadd.f32 %v3282_v43, %v3274_v56  ;;  %v3228_v29 = vadd.f32 %v3220_v15, %v3212_v0  ;;  %v9492_v5 = vsel %vm419_vm2, 0.0, %v3335_v28  ;;  %v3371_v53 = vsel %vm447_vm3, %v3355_v42, 0.0  ;;  %v12467_v0 = vld [vmem:[#allocation15_spill] sm:$0xff] }
 0x2b5   : > { %12466 = vst [vmem:[#allocation77_spill] sm:$0xff] %v9492_v5  ;;  %v9496_v62 = vsel %vm447_vm3, %v3356_v41, 0.0  ;;  %v9499_v55 = vsel %vm447_vm3, %v3357_v16, 0.0  ;;  %v9502_v56 = vsel %vm447_vm3, %v3358_v51, 0.0  ;;  %v3380_v15 = vmul.f32 %v9478_v48, %v12467_v0 }
 0x2b6   : > { %v3304_v60 = vadd.f32 %v3297_v38, %v3289_v59  ;;  %v3244_v63 = vadd.f32 %v3236_v45, %v3228_v29  ;;  %v9507_v43 = vsel %vm447_vm3, %v3359_v31, 0.0  ;;  %v9510_v9 = vsel %vm447_vm3, %v3360_v46, 0.0  ;;  %v12468_v59 = vld [vmem:[#allocation25_spill] sm:$0xff] }
 0x2b7   : > { %v3382_v13 = vmul.f32 %v3350_v35, %v12467_v0  ;;  %v3384_v28 = vmul.f32 %v3352_v39, %v12467_v0  ;;  %v3387_v45 = vadd.f32 %v12468_v59, %v3380_v15  ;;  %v12469_v38 = vld [vmem:[#allocation69_spill] sm:$0xff]  ;;  %v9521_v51 = vmul.f32 %v3347_v6, %v12467_v0 }
 0x2b8   : > { %5238 = vst [vmem:[%s6394_s26 + $0x130] sm:$0xff] %v3304_v60  ;;  %v3260_v42 = vadd.f32 %v3252_v57, %v3244_v63  ;;  %v3394_v41 = vmul.f32 %v9438_v47, %v12469_v38  ;;  %v3396_v16 = vmul.f32 %v9455_v58, %v12469_v38  ;;  %v3398_v29 = vmul.f32 %v9458_v23, %v12469_v38  ;;  %v12470_v60 = vld [vmem:[#allocation91_spill] sm:$0xff] }
 0x2b9   : > { %v3389_v31 = vadd.f32 %v12468_v59, %v3382_v13  ;;  %v3391_v46 = vadd.f32 %v12468_v59, %v3384_v28  ;;  %v9530_v57 = vmul.f32 %v9481_v21, %v12467_v0  ;;  %v3408_v49 = vmul.f32 %v9496_v62, %v12471_v4 }
 0x2ba   : > { %v3275_v63 = vadd.f32 %v3260_v42, %v12470_v60  ;;  %v3401_v15 = vadd.f32 %v3394_v41, %v3387_v45  ;;  %v9536_v2 = vmul.f32 %v9492_v5, %v12467_v0  ;;  %v9539_v28 = vmul.f32 %v3371_v53, %v12471_v4  ;;  %v12473_v42 = vld [vmem:[#allocation92_spill] sm:$0xff] }
 0x2bb   : > { %v3403_v13 = vadd.f32 %v3396_v16, %v3389_v31  ;;  %v3410_v24 = vmul.f32 %v9502_v56, %v12471_v4  ;;  %v9546_v45 = vmul.f32 %v9499_v55, %v12471_v4  ;;  %v3421_v26 = vmul.f32 %v3347_v6, %v12343_v22  ;;  %v12474_v0 = vld [vmem:[#allocation36_spill] sm:$0xff]  ;;  %v12476_v6 = vld [vmem:[#allocation74_spill] sm:$0xff] }
 0x2bc   : > { %12472 = vst [vmem:[#allocation35_spill] sm:$0xff] %v9539_v28  ;;  %v3290_v60 = vadd.f32 %v3275_v63, %v12473_v42  ;;  %v3415_v41 = vadd.f32 %v3408_v49, %v3401_v15  ;;  %v3405_v27 = vadd.f32 %v3398_v29, %v3391_v46  ;;  %v3412_v16 = vmul.f32 %v9510_v9, %v12471_v4 }
 0x2bd   : > { %v3417_v31 = vadd.f32 %v3410_v24, %v3403_v13  ;;  %v3423_v28 = vmul.f32 %v9481_v21, %v12343_v22  ;;  %v9556_v63 = vmul.f32 %v9507_v43, %v12471_v4  ;;  %v9560_v42 = vmul.f32 %v9478_v48, %v12343_v22 }
 0x2be   : > { %v3305_v38 = vadd.f32 %v3290_v60, %v12474_v0  ;;  %v3425_v49 = vmul.f32 %v9492_v5, %v12343_v22  ;;  %v3429_v46 = vadd.f32 %v3421_v26, %v12476_v6  ;;  %v3437_v24 = vmul.f32 %v9428_v40, %v12130_v25 }
 0x2bf   : > { %12475 = vst [vmem:[#allocation60_spill] sm:$0xff] %v9560_v42  ;;  %v3431_v29 = vadd.f32 %v3423_v28, %v3415_v41  ;;  %v3439_v60 = vmul.f32 %v9441_v10, %v12130_v25  ;;  %v9571_v15 = vmul.f32 %v3350_v35, %v12343_v22  ;;  %v3441_v0 = vmul.f32 %v9462_v1, %v12130_v25 }
 0x2c0   : > { %5239 = vst [vmem:[%s6394_s26 + $0x138] sm:$0xff] %v3305_v38  ;;  %v3433_v13 = vadd.f32 %v3425_v49, %v3417_v31  ;;  %v3453_v21 = vmul.f32 %v3371_v53, %v12398_v36  ;;  %v9576_v5 = vadd.f32 %v3412_v16, %v3405_v27  ;;  %v3445_v26 = vadd.f32 %v3437_v24, %v3429_v46  ;;  %v12479_v31 = vld [vmem:[#allocation19_spill] sm:$0xff]  ;;  %v12480_v46 = vld [vmem:[#allocation72_spill] sm:$0xff] }
 0x2c1   : > { %12477 = vst [vmem:[#allocation67_spill] sm:$0xff] %v9571_v15  ;;  %v3447_v28 = vadd.f32 %v3439_v60, %v3431_v29  ;;  %v3455_v41 = vmul.f32 %v9499_v55, %v12398_v36  ;;  %v9581_v6 = vmul.f32 %v3352_v39, %v12343_v22  ;;  %v3457_v15 = vmul.f32 %v9507_v43, %v12398_v36 }
 0x2c2   : > { %12478 = vst [vmem:[#allocation51_spill] sm:$0xff] %v9576_v5  ;;  %v3449_v38 = vadd.f32 %v3441_v0, %v3433_v13  ;;  %v3469_v49 = vmul.f32 %v9478_v48, %v12479_v31  ;;  %v3461_v42 = vadd.f32 %v3453_v21, %v3445_v26  ;;  %v3471_v27 = vmul.f32 %v3350_v35, %v12479_v31 }
 0x2c3   : > { %v3463_v4 = vadd.f32 %v3455_v41, %v3447_v28  ;;  %v3473_v53 = vmul.f32 %v3352_v39, %v12479_v31  ;;  %v3484_v29 = vmul.f32 %v9438_v47, %v12480_v46  ;;  %v3486_v24 = vmul.f32 %v9455_v58, %v12480_v46  ;;  %v12481_v41 = vld [vmem:[#allocation76_spill] sm:$0xff] }
 0x2c4   : > { %v3465_v16 = vadd.f32 %v3457_v15, %v3449_v38  ;;  %v3488_v0 = vmul.f32 %v9458_v23, %v12480_v46  ;;  %v3476_v60 = vadd.f32 %v3469_v49, %v3461_v42  ;;  %v3499_v48 = vmul.f32 %v9496_v62, %v12395_v61 }
 0x2c5   : > { %v3478_v13 = vadd.f32 %v3471_v27, %v3463_v4  ;;  %v3501_v21 = vmul.f32 %v9502_v56, %v12395_v61  ;;  %v9601_v35 = vmul.f32 %v9496_v62, %v12398_v36  ;;  %v9605_v39 = vmul.f32 %v9502_v56, %v12398_v36  ;;  %v12482_v62 = vld [vmem:[#allocation97_spill] sm:$0xff]  ;;  %v12484_v56 = vld [vmem:[#allocation50_spill] sm:$0xff] }
 0x2c6   : > { %v3480_v15 = vadd.f32 %v3473_v53, %v3465_v16  ;;  %v3503_v26 = vmul.f32 %v9510_v9, %v12395_v61  ;;  %v9611_v4 = vmul.f32 %v9510_v9, %v12398_v36  ;;  %v3491_v42 = vadd.f32 %v3484_v29, %v3476_v60  ;;  %v12486_v29 = vld [vmem:[#allocation44_spill] sm:$0xff]  ;;  %v12490_v36 = vld [vmem:[#allocation49_spill] sm:$0xff] }
 0x2c7   : > { %v3493_v28 = vadd.f32 %v3486_v24, %v3478_v13  ;;  %v3579_v38 = vmul.f32 %v12481_v41, %v12399_v34  ;;  %v9617_v27 = vmul.f32 %v12482_v62, %v12399_v34  ;;  %v9621_v53 = vmul.f32 %v12484_v56, %v12399_v34  ;;  %v12487_v13 = vld [vmem:[#allocation86_spill] sm:$0xff] }
 0x2c8   : > { %v3495_v49 = vadd.f32 %v3488_v0, %v3480_v15  ;;  %v3581_v16 = vmul.f32 %v9258_v8, %v12399_v34  ;;  %v3506_v5 = vadd.f32 %v3499_v48, %v3491_v42  ;;  %v3594_v24 = vmul.f32 %v12486_v29, %v12401_v17  ;;  %v12492_v48 = vld [vmem:[#allocation39_spill] sm:$0xff] }
 0x2c9   : > { %12483 = vst [vmem:[#allocation70_spill] sm:$0xff] %v9617_v27  ;;  %12485 = vst [vmem:[#allocation66_spill] sm:$0xff] %v9621_v53  ;;  %v3508_v9 = vadd.f32 %v3501_v21, %v3493_v28  ;;  %v3596_v60 = vmul.f32 %v9236_v37, %v12401_v17  ;;  %v9631_v15 = vmul.f32 %v12487_v13, %v12403_v30  ;;  %v12489_v27 = vld [vmem:[#allocation81_spill] sm:$0xff] }
 0x2ca   : > { %v3510_v0 = vadd.f32 %v3503_v26, %v3495_v49  ;;  %v3609_v53 = vmul.f32 %v12489_v27, %v12403_v30  ;;  %v9637_v34 = vmul.f32 %v12490_v36, %v12403_v30  ;;  %v3585_v21 = vadd.f32 %v3506_v5, %v12492_v48  ;;  %v12495_v5 = vld [vmem:[#allocation46_spill] sm:$0xff]  ;;  %v12496_v48 = vld [vmem:[#allocation37_spill] sm:$0xff] }
 0x2cb   : > { %12488 = vst [vmem:[#allocation21_spill] sm:$0xff] %v9631_v15  ;;  %v3587_v42 = vadd.f32 %v3579_v38, %v3508_v9  ;;  %v3611_v28 = vmul.f32 %v9264_v14, %v12403_v30  ;;  %v3623_v26 = vmul.f32 %v12482_v62, %v12055_v54  ;;  %v9646_v15 = vmul.f32 %v12481_v41, %v12055_v54 }
 0x2cc   : > { %12491 = vst [vmem:[#allocation89_spill] sm:$0xff] %v9637_v34  ;;  %v3589_v49 = vadd.f32 %v3581_v16, %v3510_v0  ;;  %v3625_v17 = vmul.f32 %v12484_v56, %v12055_v54  ;;  %v9652_v34 = vmul.f32 %v9258_v8, %v12055_v54  ;;  %v3600_v38 = vadd.f32 %v3585_v21, %v12495_v5  ;;  %v9660_v16 = vld [vmem:[%s5923_s12 + $0x180] sm:$0xff] }
 0x2cd   : > { %12493 = vst [vmem:[#allocation38_spill] sm:$0xff] %v9646_v15  ;;  %v3602_v9 = vadd.f32 %v3594_v24, %v3587_v42  ;;  %v3639_v30 = vmul.f32 %v12496_v48, %v12276_v32  ;;  %v3641_v62 = vmul.f32 %v9135_v11, %v12276_v32  ;;  %12497 = vst [vmem:[#allocation82_spill] sm:$0xff] %v9660_v16  ;;  %v9671_v24 = vld [vmem:[%s5923_s12 + $0x188] sm:$0xff]  ;;  %v12500_v42 = vld [vmem:[#allocation45_spill] sm:$0xff] }
 0x2ce   : > { %12494 = vst [vmem:[#allocation80_spill] sm:$0xff] %v9652_v34  ;;  %v3604_v0 = vadd.f32 %v3596_v60, %v3589_v49  ;;  %v3655_v15 = vmul.f32 %v12487_v13, %v6036_v50  ;;  %v9666_v56 = vmul.f32 %v12489_v27, %v6036_v50  ;;  %v3657_v21 = vmul.f32 %v12490_v36, %v6036_v50 }
 0x2cf   : > { %12499 = vst [vmem:[#allocation48_spill] sm:$0xff] %v9671_v24  ;;  %v3615_v48 = vadd.f32 %v3600_v38, %v12500_v42  ;;  %v3617_v5 = vadd.f32 %v3609_v53, %v3602_v9  ;;  %v9676_v34 = vmul.f32 %v9264_v14, %v6036_v50  ;;  %v3671_v60 = vmul.f32 %v12481_v41, %v12147_v7 }
 0x2d0   : > { %12498 = vst [vmem:[#allocation94_spill] sm:$0xff] %v9666_v56  ;;  %v3673_v13 = vmul.f32 %v9258_v8, %v12147_v7  ;;  %v3686_v49 = vmul.f32 %v12486_v29, %v12149_v19  ;;  %v3688_v56 = vmul.f32 %v9236_v37, %v12149_v19  ;;  %v3733_v36 = vrot.slane %v9660_v16, 7 }
 0x2d1   : > { %12501 = vst [vmem:[#allocation71_spill] sm:$0xff] %v9676_v34  ;;  %v3631_v38 = vadd.f32 %v3623_v26, %v3615_v48  ;;  %v3633_v53 = vadd.f32 %v3625_v17, %v3617_v5  ;;  %v3734_v9 = vrot.slane %v9671_v24, 7  ;;  %v3757_v42 = vrot.slane %v9660_v16, 1  ;;  %v9721_v48 = vld [vmem:[%s5923_s12 + $0x130] sm:$0xff] }
 0x2d2   : > { %v9689_v34 = vadd.f32 %v3611_v28, %v3604_v0  ;;  %v3701_v8 = vmul.f32 %v12489_v27, %v6040_v52  ;;  %v3703_v41 = vmul.f32 %v9264_v14, %v6040_v52  ;;  %v3758_v29 = vrot.slane %v9671_v24, 1 }
 0x2d3   : > { %v3647_v19 = vadd.f32 %v3639_v30, %v3631_v38  ;;  %v3649_v7 = vadd.f32 %v3641_v62, %v3633_v53  ;;  %v9697_v26 = vsel %vm419_vm2, 0.0, %v3733_v36  ;;  %v3797_v17 = vmul.f32 %v9671_v24, %v12012_v12 }
 0x2d4   : > { %12502 = vst [vmem:[#allocation52_spill] sm:$0xff] %v9689_v34  ;;  %12503 = vst [vmem:[#allocation40_spill] sm:$0xff] %v9697_v26  ;;  %v9702_v28 = vsel %vm419_vm2, 0.0, %v3734_v9  ;;  %v9705_v5 = vsel %vm447_vm3, %v3757_v42, 0.0  ;;  %v9708_v27 = vsel %vm447_vm3, %v3758_v29, 0.0  ;;  %v9712_v14 = vmul.f32 %v9660_v16, %v12017_v33 }
 0x2d5   : > { %12504 = vst [vmem:[#allocation93_spill] sm:$0xff] %v9702_v28  ;;  %12505 = vst [vmem:[#allocation95_spill] sm:$0xff] %v9705_v5  ;;  %v3663_v30 = vadd.f32 %v3655_v15, %v3647_v19  ;;  %v3665_v62 = vadd.f32 %v3657_v21, %v3649_v7  ;;  %v9716_v36 = vmul.f32 %v9697_v26, %v12417_v44  ;;  %v3337_v29 = vrot.slane %v9721_v48, 7 }
 0x2d6   : > { %12506 = vst [vmem:[#allocation78_spill] sm:$0xff] %v9708_v27  ;;  %v3782_v0 = vmul.f32 %v9702_v28, %v12417_v44  ;;  %v9725_v42 = vmul.f32 %v9705_v5, %v12418_v20  ;;  %v9729_v38 = vmul.f32 %v9708_v27, %v12418_v20  ;;  %v3826_v7 = vmul.f32 %v9697_v26, %v12419_v3  ;;  %v9770_v44 = vld [vmem:[%s6057_s30] ss:$0 sm:$0xff] }
 0x2d7   : > { %12507 = vst [vmem:[#allocation79_spill] sm:$0xff] %v9716_v36  ;;  %v9735_v19 = vmul.f32 %v9702_v28, %v12419_v3  ;;  %v3678_v15 = vadd.f32 %v3671_v60, %v3663_v30  ;;  %v3680_v21 = vadd.f32 %v3673_v13, %v3665_v62  ;;  %v9739_v53 = vmul.f32 %v9705_v5, %v12420_v18  ;;  %v12511_v62 = vld [vmem:[#allocation69_spill] sm:$0xff] }
 0x2d8   : > { %12508 = vst [vmem:[#allocation55_spill] sm:$0xff] %v9725_v42  ;;  %v9743_v9 = vmul.f32 %v9708_v27, %v12420_v18  ;;  %v3361_v42 = vrot.slane %v9721_v48, 1  ;;  %v3386_v26 = vadd.f32 %v12468_v59, %v9521_v51  ;;  %v3390_v30 = vadd.f32 %v12468_v59, %v9536_v2  ;;  %12516 = vst [vmem:[#allocation56_spill] sm:$0xff] %v9770_v44 }
 0x2d9   : > { %12509 = vst [vmem:[#allocation26_spill] sm:$0xff] %v9735_v19  ;;  %v3388_v19 = vadd.f32 %v12468_v59, %v9530_v57  ;;  %v3693_v60 = vadd.f32 %v3686_v49, %v3678_v15  ;;  %v3695_v13 = vadd.f32 %v3688_v56, %v3680_v21  ;;  %v3393_v5 = vmul.f32 %v9428_v40, %v12511_v62  ;;  %v12513_v15 = vld [vmem:[#allocation68_spill] sm:$0xff]  ;;  %v12514_v59 = vld [vmem:[#allocation15_spill] sm:$0xff] }
 0x2da   : > { %12510 = vst [vmem:[#allocation47_spill] sm:$0xff] %v9743_v9  ;;  %v12512_v9 = vld [vmem:[#allocation33_spill] sm:$0xff]  ;;  %v3353_v34 = vsel %vm419_vm2, 0.0, %v3337_v29  ;;  %v3395_v51 = vmul.f32 %v9441_v10, %v12511_v62  ;;  %v3397_v57 = vmul.f32 %v9462_v1, %v12511_v62  ;;  %v9764_v2 = vmul.f32 %v9671_v24, %v12513_v15 }
 0x2db   : > { %v3874_v36 = vmul.f32 %v9702_v28, %v12512_v9  ;;  %v3708_v49 = vadd.f32 %v3701_v8, %v3693_v60  ;;  %v3710_v56 = vadd.f32 %v3703_v41, %v3695_v13  ;;  %v3385_v21 = vmul.f32 %v3353_v34, %v12514_v59  ;;  %v12515_v29 = vld [vmem:[#allocation57_spill] sm:$0xff]  ;;  %v12517_v41 = vld [vmem:[#allocation35_spill] sm:$0xff] }
 0x2dc   : > { %v3377_v40 = vsel %vm447_vm3, %v3361_v42, 0.0  ;;  %v3400_v18 = vadd.f32 %v3393_v5, %v3386_v26  ;;  %v3402_v28 = vadd.f32 %v3395_v51, %v3388_v19  ;;  %v3404_v9 = vadd.f32 %v3397_v57, %v3390_v30  ;;  %v12518_v5 = vld [vmem:[#allocation61_spill] sm:$0xff]  ;;  %v12519_v19 = vld [vmem:[#allocation34_spill] sm:$0xff]  ;;  %v12520_v30 = vld [vmem:[#allocation16_spill] sm:$0xff] }
 0x2dd   : > { %v3788_v20 = vadd.f32 %v3708_v49, %v12515_v29  ;;  %v3790_v3 = vadd.f32 %v3782_v0, %v3710_v56  ;;  %v3392_v33 = vadd.f32 %v9770_v44, %v3385_v21  ;;  %v3399_v8 = vmul.f32 %v9721_v48, %v12511_v62  ;;  %v12521_v49 = vld [vmem:[#allocation60_spill] sm:$0xff] }
 0x2de   : > { %v3414_v60 = vadd.f32 %v12517_v41, %v3400_v18  ;;  %v3416_v13 = vadd.f32 %v9546_v45, %v3402_v28  ;;  %v3418_v59 = vadd.f32 %v9556_v63, %v3404_v9  ;;  %v3438_v26 = vmul.f32 %v9438_v47, %v12130_v25  ;;  %v12522_v18 = vld [vmem:[#allocation67_spill] sm:$0xff]  ;;  %v12523_v28 = vld [vmem:[#allocation62_spill] sm:$0xff] }
 0x2df   : > { %v3803_v42 = vadd.f32 %v3788_v20, %v12518_v5  ;;  %v3904_v0 = vmul.f32 %v9708_v27, %v12519_v19  ;;  %v3413_v51 = vmul.f32 %v3377_v40, %v12520_v30  ;;  %v3440_v57 = vmul.f32 %v9455_v58, %v12130_v25  ;;  %v12524_v58 = vld [vmem:[#allocation41_spill] sm:$0xff] }
 0x2e0   : > { %v3430_v56 = vadd.f32 %v12521_v49, %v3414_v60  ;;  %v3432_v21 = vadd.f32 %v12522_v18, %v3416_v13  ;;  %v3434_v45 = vadd.f32 %v9581_v6, %v3418_v59  ;;  %v3442_v63 = vmul.f32 %v9458_v23, %v12130_v25  ;;  %v12525_v13 = vld [vmem:[#allocation77_spill] sm:$0xff]  ;;  %v12528_v18 = vld [vmem:[#allocation98_spill] sm:$0xff] }
 0x2e1   : > { %v3805_v47 = vadd.f32 %v3797_v17, %v3790_v3  ;;  %v3818_v20 = vadd.f32 %v3803_v42, %v12523_v28  ;;  %v3406_v9 = vadd.f32 %v3399_v8, %v3392_v33  ;;  %v9793_v41 = vmul.f32 %v3353_v34, %v12343_v22 }
 0x2e2   : > { %v3446_v5 = vadd.f32 %v3438_v26, %v3430_v56  ;;  %v3448_v29 = vadd.f32 %v3440_v57, %v3432_v21  ;;  %v3450_v27 = vadd.f32 %v3442_v63, %v3434_v45  ;;  %v3470_v60 = vmul.f32 %v12524_v58, %v12479_v31  ;;  %v5463_v63 = vld [vmem:[%s5923_s12 + $0x140] sm:$0xff] }
 0x2e3   : > { %v3834_v49 = vadd.f32 %v3826_v7, %v3818_v20  ;;  %v3472_v6 = vmul.f32 %v12525_v13, %v12479_v31  ;;  %v3474_v59 = vmul.f32 %v3353_v34, %v12479_v31  ;;  %v3485_v3 = vmul.f32 %v9441_v10, %v12480_v46  ;;  %v12529_v20 = vld [vmem:[#allocation43_spill] sm:$0xff] }
 0x2e4   : > { %v3462_v33 = vadd.f32 %v9601_v35, %v3446_v5  ;;  %v3464_v23 = vadd.f32 %v9605_v39, %v3448_v29  ;;  %v3466_v17 = vadd.f32 %v9611_v4, %v3450_v27  ;;  %v3487_v8 = vmul.f32 %v9462_v1, %v12480_v46  ;;  %v12526_v29 = vld [vmem:[#allocation18_spill] sm:$0xff] }
 0x2e5   : > { %v3850_v26 = vadd.f32 %v9712_v14, %v3834_v49  ;;  %v3489_v7 = vmul.f32 %v9721_v48, %v12480_v46  ;;  %v3500_v34 = vmul.f32 %v9499_v55, %v12395_v61  ;;  %v3502_v10 = vmul.f32 %v9507_v43, %v12395_v61  ;;  %v12527_v43 = vld [vmem:[#allocation22_spill] sm:$0xff]  ;;  %v12532_v49 = vld [vmem:[#allocation87_spill] sm:$0xff] }
 0x2e6   : > { %v3477_v35 = vadd.f32 %v3470_v60, %v3462_v33  ;;  %v3479_v5 = vadd.f32 %v3472_v6, %v3464_v23  ;;  %v3481_v39 = vadd.f32 %v3474_v59, %v3466_v17  ;;  %v3504_v4 = vmul.f32 %v3377_v40, %v12395_v61  ;;  %v12531_v60 = vld [vmem:[#allocation23_spill] sm:$0xff]  ;;  %v5464_v59 = vld [vmem:[%s5923_s12 + $0x148] sm:$0xff]  ;;  %v9842_v23 = vld [vmem:[%s5923_s12 + $0x190] sm:$0xff] }
 0x2e7   : > { %v9816_v27 = vadd.f32 %v9729_v38, %v3805_v47  ;;  %v3866_v1 = vadd.f32 %v9739_v53, %v3850_v26  ;;  %v9819_v14 = vadd.f32 %v3413_v51, %v3406_v9  ;;  %v9822_v42 = vmul.f32 %v3377_v40, %v12526_v29  ;;  %v12530_v51 = vld [vmem:[#allocation90_spill] sm:$0xff] }
 0x2e8   : > { %v3492_v55 = vadd.f32 %v3485_v3, %v3477_v35  ;;  %v3494_v57 = vadd.f32 %v3487_v8, %v3479_v5  ;;  %v3496_v56 = vadd.f32 %v3489_v7, %v3481_v39  ;;  %v3582_v21 = vmul.f32 %v12528_v18, %v12527_v43  ;;  %v12533_v17 = vld [vmem:[#allocation70_spill] sm:$0xff]  ;;  %v12535_v35 = vld [vmem:[#allocation28_spill] sm:$0xff] }
 0x2e9   : > { %v3881_v45 = vadd.f32 %v3874_v36, %v3866_v1  ;;  %v3593_v38 = vmul.f32 %v5463_v63, %v12529_v20  ;;  %v3595_v53 = vmul.f32 %v9135_v11, %v12529_v20  ;;  %v3597_v47 = vmul.f32 %v12530_v51, %v12529_v20  ;;  %v12534_v26 = vld [vmem:[#allocation66_spill] sm:$0xff] }
 0x2ea   : > { %v3507_v40 = vadd.f32 %v3500_v34, %v3492_v55  ;;  %v3509_v9 = vadd.f32 %v3502_v10, %v3494_v57  ;;  %v3511_v58 = vadd.f32 %v3504_v4, %v3496_v56  ;;  %v3612_v13 = vmul.f32 %v12532_v49, %v12531_v60  ;;  %v12536_v5 = vld [vmem:[#allocation50_spill] sm:$0xff] }
 0x2eb   : > { %v3896_v6 = vadd.f32 %v9764_v2, %v3881_v45  ;;  %v3627_v36 = vmul.f32 %v12528_v18, %v12055_v54  ;;  %v3640_v3 = vmul.f32 %v5464_v59, %v12276_v32  ;;  %v3642_v33 = vmul.f32 %v9236_v37, %v12276_v32  ;;  %v12537_v37 = vld [vmem:[#allocation53_spill] sm:$0xff] }
 0x2ec   : > { %v3586_v8 = vadd.f32 %v12533_v17, %v3507_v40  ;;  %v3588_v7 = vadd.f32 %v12534_v26, %v3509_v9  ;;  %v3590_v34 = vadd.f32 %v3582_v21, %v3511_v58  ;;  %v9848_v2 = vmul.f32 %v12532_v49, %v6036_v50  ;;  %v12539_v9 = vld [vmem:[#allocation21_spill] sm:$0xff] }
 0x2ed   : > { %v3911_v10 = vadd.f32 %v3904_v0, %v3896_v6  ;;  %v3672_v39 = vmul.f32 %v12536_v5, %v12535_v35  ;;  %v3674_v4 = vmul.f32 %v12528_v18, %v12535_v35  ;;  %v3687_v1 = vmul.f32 %v9135_v11, %v12537_v37  ;;  %v12538_v0 = vld [vmem:[#allocation49_spill] sm:$0xff]  ;;  %v9876_v6 = vld [vmem:[%s5923_s12 + $0x138] sm:$0xff] }
 0x2ee   : > { %v3601_v55 = vadd.f32 %v3593_v38, %v3586_v8  ;;  %v3603_v57 = vadd.f32 %v3595_v53, %v3588_v7  ;;  %v3605_v56 = vadd.f32 %v3597_v47, %v3590_v34  ;;  %v3735_v21 = vrot.slane %v9842_v23, 7  ;;  %v12540_v11 = vld [vmem:[#allocation89_spill] sm:$0xff]  ;;  %v12544_v8 = vld [vmem:[#allocation64_spill] sm:$0xff]  ;;  %v12546_v7 = vld [vmem:[#allocation38_spill] sm:$0xff] }
 0x2ef   : > { %5264 = vst [vmem:[%s6394_s26 + $0x140] sm:$0xff] %v3911_v10  ;;  %v3689_v45 = vmul.f32 %v12530_v51, %v12537_v37  ;;  %v3702_v63 = vmul.f32 %v12538_v0, %v6040_v52  ;;  %v3704_v40 = vmul.f32 %v12532_v49, %v6040_v52  ;;  %v3759_v18 = vrot.slane %v9842_v23, 1  ;;  %v12547_v10 = vld [vmem:[#allocation80_spill] sm:$0xff]  ;;  %v12549_v0 = vld [vmem:[#allocation31_spill] sm:$0xff] }
 0x2f0   : > { %v3616_v58 = vadd.f32 %v12539_v9, %v3601_v55  ;;  %v3618_v38 = vadd.f32 %v12540_v11, %v3603_v57  ;;  %v9869_v53 = vmul.f32 %v9660_v16, %v12012_v12  ;;  %v9873_v47 = vmul.f32 %v9842_v23, %v12012_v12  ;;  %v12548_v55 = vld [vmem:[#allocation29_spill] sm:$0xff] }
 0x2f1   : > { %v9878_v59 = vadd.f32 %v3612_v13, %v3605_v56  ;;  %v9881_v49 = vsel %vm419_vm2, 0.0, %v3735_v21  ;;  %v9884_v17 = vsel %vm447_vm3, %v3759_v18, 0.0  ;;  %v9888_v26 = vmul.f32 %v9671_v24, %v12544_v8  ;;  %v12550_v56 = vld [vmem:[#allocation30_spill] sm:$0xff]  ;;  %v12551_v18 = vld [vmem:[#allocation33_spill] sm:$0xff]  ;;  %v12554_v24 = vld [vmem:[#allocation32_spill] sm:$0xff] }
 0x2f2   : > { %12542 = vst [vmem:[#allocation76_spill] sm:$0xff] %v9881_v49  ;;  %12543 = vst [vmem:[#allocation97_spill] sm:$0xff] %v9884_v17  ;;  %v3632_v34 = vadd.f32 %v12546_v7, %v3616_v58  ;;  %v3634_v5 = vadd.f32 %v12547_v10, %v3618_v38  ;;  %v3783_v57 = vmul.f32 %v9881_v49, %v12548_v55  ;;  %v3338_v11 = vrot.slane %v9876_v6, 7  ;;  %v12553_v10 = vld [vmem:[#allocation51_spill] sm:$0xff] }
 0x2f3   : > { %12541 = vst [vmem:[#allocation25_spill] sm:$0xff] %v9878_v59  ;;  %12545 = vst [vmem:[#allocation44_spill] sm:$0xff] %v9888_v26  ;;  %v3828_v13 = vmul.f32 %v9881_v49, %v12549_v0  ;;  %v9898_v21 = vmul.f32 %v9884_v17, %v12550_v56  ;;  %v9902_v9 = vmul.f32 %v9881_v49, %v12551_v18  ;;  %v3362_v58 = vrot.slane %v9876_v6, 1 }
 0x2f4   : > { %v3648_v7 = vadd.f32 %v3640_v3, %v3632_v34  ;;  %v3650_v38 = vadd.f32 %v3642_v33, %v3634_v5  ;;  %v3435_v28 = vadd.f32 %v9793_v41, %v12553_v10  ;;  %v3443_v16 = vmul.f32 %v9721_v48, %v12130_v25  ;;  %v12556_v33 = vld [vmem:[#allocation94_spill] sm:$0xff]  ;;  %v12557_v5 = vld [vmem:[#allocation71_spill] sm:$0xff] }
 0x2f5   : > { %12552 = vst [vmem:[#allocation86_spill] sm:$0xff] %v9902_v9  ;;  %v9912_v30 = vmul.f32 %v9884_v17, %v12554_v24  ;;  %v9916_v49 = vmul.f32 %v9842_v23, %v12513_v15  ;;  %v3354_v44 = vsel %vm419_vm2, 0.0, %v3338_v11  ;;  %v3378_v3 = vsel %vm447_vm3, %v3362_v58, 0.0  ;;  %v12558_v11 = vld [vmem:[#allocation75_spill] sm:$0xff] }
 0x2f6   : > { %v3664_v34 = vadd.f32 %v12556_v33, %v3648_v7  ;;  %v3666_v41 = vadd.f32 %v12557_v5, %v3650_v38  ;;  %v9924_v48 = vmul.f32 %v9884_v17, %v12519_v19  ;;  %v3451_v10 = vadd.f32 %v3443_v16, %v3435_v28  ;;  %v9935_v33 = vld [vmem:[%s5923_s12 + $0x198] sm:$0xff]  ;;  %v12559_v28 = vld [vmem:[#allocation27_spill] sm:$0xff] }
 0x2f7   : > { %12555 = vst [vmem:[#allocation81_spill] sm:$0xff] %v9916_v49  ;;  %v3428_v62 = vmul.f32 %v3354_v44, %v12343_v22  ;;  %v3475_v9 = vmul.f32 %v3354_v44, %v12479_v31  ;;  %v3490_v49 = vmul.f32 %v9876_v6, %v12480_v46  ;;  %v3583_v59 = vmul.f32 %v12558_v11, %v12527_v43  ;;  %v12560_v44 = vld [vmem:[#allocation52_spill] sm:$0xff] }
 0x2f8   : > { %v3679_v58 = vadd.f32 %v3672_v39, %v3664_v34  ;;  %v3681_v26 = vadd.f32 %v3674_v4, %v3666_v41  ;;  %v3460_v7 = vmul.f32 %v3378_v3, %v12526_v29  ;;  %v3467_v38 = vadd.f32 %v9822_v42, %v3451_v10  ;;  %v12561_v4 = vld [vmem:[#allocation88_spill] sm:$0xff] }
 0x2f9   : > { %v3505_v16 = vmul.f32 %v3378_v3, %v12395_v61  ;;  %v3598_v5 = vmul.f32 %v12559_v28, %v12529_v20  ;;  %v3635_v17 = vadd.f32 %v3627_v36, %v12560_v44  ;;  %v3643_v46 = vmul.f32 %v12530_v51, %v12276_v32 }
 0x2fa   : > { %v3694_v31 = vadd.f32 %v3687_v1, %v3679_v58  ;;  %v3696_v22 = vadd.f32 %v3689_v45, %v3681_v26  ;;  %v3482_v39 = vadd.f32 %v3475_v9, %v3467_v38  ;;  %v3613_v34 = vmul.f32 %v12561_v4, %v12531_v60 }
 0x2fb   : > { %v3628_v42 = vmul.f32 %v12558_v11, %v12055_v54  ;;  %v3651_v41 = vadd.f32 %v3643_v46, %v3635_v17  ;;  %v3675_v3 = vmul.f32 %v12558_v11, %v12535_v35  ;;  %v3736_v10 = vrot.slane %v9935_v33, 7  ;;  %v12562_v17 = vld [vmem:[#allocation79_spill] sm:$0xff] }
 0x2fc   : > { %v3709_v61 = vadd.f32 %v3702_v63, %v3694_v31  ;;  %v3711_v36 = vadd.f32 %v3704_v40, %v3696_v22  ;;  %v3497_v44 = vadd.f32 %v3490_v49, %v3482_v39  ;;  %v3760_v51 = vrot.slane %v9935_v33, 1 }
 0x2fd   : > { %v3660_v1 = vmul.f32 %v12561_v4, %v6036_v50  ;;  %v3667_v45 = vadd.f32 %v9848_v2, %v3651_v41  ;;  %v3690_v26 = vmul.f32 %v12559_v28, %v12537_v37  ;;  %v3705_v46 = vmul.f32 %v12561_v4, %v6040_v52  ;;  %v12563_v4 = vld [vmem:[#allocation55_spill] sm:$0xff] }
 0x2fe   : > { %v3789_v9 = vadd.f32 %v12562_v17, %v3709_v61  ;;  %v3791_v11 = vadd.f32 %v3783_v57, %v3711_v36  ;;  %v3512_v58 = vadd.f32 %v3505_v16, %v3497_v44  ;;  %v3836_v22 = vadd.f32 %v3828_v13, %v9816_v27 }
 0x2ff   : > { %v3682_v31 = vadd.f32 %v3675_v3, %v3667_v45  ;;  %v9961_v63 = vsel %vm419_vm2, 0.0, %v3736_v10  ;;  %v9964_v40 = vsel %vm447_vm3, %v3760_v51, 0.0  ;;  %v3799_v2 = vmul.f32 %v9935_v33, %v12012_v12  ;;  %v12564_v45 = vld [vmem:[#allocation26_spill] sm:$0xff] }
 0x300   : > { %v3804_v49 = vadd.f32 %v9869_v53, %v3789_v9  ;;  %v3806_v38 = vadd.f32 %v9873_v47, %v3791_v11  ;;  %v3591_v39 = vadd.f32 %v3583_v59, %v3512_v58  ;;  %v3844_v61 = vmul.f32 %v9842_v23, %v12544_v8 }
 0x301   : > { %v3697_v57 = vadd.f32 %v3690_v26, %v3682_v31  ;;  %v3784_v27 = vmul.f32 %v9961_v63, %v12548_v55  ;;  %v3814_v13 = vmul.f32 %v9964_v40, %v12550_v56  ;;  %v3829_v16 = vmul.f32 %v9961_v63, %v12549_v0  ;;  %v12567_v31 = vld [vmem:[#allocation25_spill] sm:$0xff] }
 0x302   : > { %v3819_v41 = vadd.f32 %v12563_v4, %v3804_v49  ;;  %v3606_v3 = vadd.f32 %v3598_v5, %v3591_v39  ;;  %v3852_v53 = vadd.f32 %v3844_v61, %v3836_v22  ;;  %v3876_v47 = vmul.f32 %v9961_v63, %v12551_v18  ;;  %v12569_v61 = vld [vmem:[#allocation59_spill] sm:$0xff] }
 0x303   : > { %v3712_v59 = vadd.f32 %v3705_v46, %v3697_v57  ;;  %v3861_v10 = vmul.f32 %v9964_v40, %v12554_v24  ;;  %v3436_v36 = vadd.f32 %v3428_v62, %v9819_v14  ;;  %v3444_v44 = vmul.f32 %v9876_v6, %v12130_v25  ;;  %v12565_v62 = vld [vmem:[#allocation44_spill] sm:$0xff]  ;;  %v12571_v4 = vld [vmem:[#allocation47_spill] sm:$0xff] }
 0x304   : > { %v3821_v51 = vadd.f32 %v9898_v21, %v3806_v38  ;;  %v3835_v26 = vadd.f32 %v12564_v45, %v3819_v41  ;;  %v3868_v5 = vadd.f32 %v9912_v30, %v3852_v53  ;;  %v3891_v17 = vmul.f32 %v9935_v33, %v12513_v15  ;;  %v12566_v6 = vld [vmem:[#allocation24_spill] sm:$0xff] }
 0x305   : > { %v3621_v9 = vadd.f32 %v3613_v34, %v3606_v3  ;;  %v3792_v46 = vadd.f32 %v3784_v27, %v3712_v59  ;;  %v3906_v11 = vmul.f32 %v9964_v40, %v12519_v19  ;;  %v3452_v58 = vadd.f32 %v3444_v44, %v3436_v36  ;;  %v12568_v30 = vld [vmem:[#allocation96_spill] sm:$0xff]  ;;  %v10004_v27 = vld [vmem:[%s5923_s12 + $0x1a0] sm:$0xff] }
 0x306   : > { %v3851_v14 = vadd.f32 %v12565_v62, %v3835_v26  ;;  %v3883_v22 = vadd.f32 %v3876_v47, %v3868_v5  ;;  %v3584_v21 = vmul.f32 %v12566_v6, %v12527_v43  ;;  %v3636_v49 = vadd.f32 %v3628_v42, %v12567_v31  ;;  %12570 = vst [vmem:[#allocation37_spill] sm:$0xff] %v10004_v27 }
 0x307   : > { %v3468_v38 = vadd.f32 %v3460_v7, %v3452_v58  ;;  %v3599_v39 = vmul.f32 %v12568_v30, %v12529_v20  ;;  %v3614_v34 = vmul.f32 %v12569_v61, %v12531_v60  ;;  %v3644_v57 = vmul.f32 %v12559_v28, %v12276_v32  ;;  %v12572_v7 = vld [vmem:[#allocation73_spill] sm:$0xff]  ;;  %v12573_v28 = vld [vmem:[#allocation86_spill] sm:$0xff] }
 0x308   : > { %v3867_v41 = vadd.f32 %v12571_v4, %v3851_v14  ;;  %v3807_v3 = vadd.f32 %v3799_v2, %v3792_v46  ;;  %v3898_v53 = vadd.f32 %v3891_v17, %v3883_v22  ;;  %v3629_v42 = vmul.f32 %v12566_v6, %v12055_v54  ;;  %v12574_v17 = vld [vmem:[#allocation65_spill] sm:$0xff] }
 0x309   : > { %v3483_v47 = vadd.f32 %v3468_v38, %v12572_v7  ;;  %v3652_v59 = vadd.f32 %v3644_v57, %v3636_v49  ;;  %v3661_v36 = vmul.f32 %v12569_v61, %v6036_v50  ;;  %v3676_v44 = vmul.f32 %v12566_v6, %v12535_v35  ;;  %v12575_v22 = vld [vmem:[#allocation81_spill] sm:$0xff]  ;;  %v12576_v38 = vld [vmem:[#allocation63_spill] sm:$0xff] }
 0x30a   : > { %v3882_v45 = vadd.f32 %v12573_v28, %v3867_v41  ;;  %v3913_v26 = vadd.f32 %v3906_v11, %v3898_v53  ;;  %v3737_v5 = vrot.slane %v10004_v27, 7  ;;  %v3761_v2 = vrot.slane %v10004_v27, 1 }
 0x30b   : > { %v3498_v46 = vadd.f32 %v3483_v47, %v12574_v17  ;;  %v3668_v58 = vadd.f32 %v3660_v1, %v3652_v59  ;;  %v3691_v62 = vmul.f32 %v12568_v30, %v12537_v37  ;;  %v3837_v14 = vadd.f32 %v3829_v16, %v3821_v51 }
 0x30c   : > { %v3897_v31 = vadd.f32 %v12575_v22, %v3882_v45  ;;  %v3822_v49 = vadd.f32 %v3814_v13, %v3807_v3  ;;  %5266 = vst [vmem:[%s6394_s26 + $0x150] sm:$0xff] %v3913_v26  ;;  %v3706_v6 = vmul.f32 %v12569_v61, %v6040_v52  ;;  %v3845_v11 = vmul.f32 %v9935_v33, %v12544_v8  ;;  %v10048_v26 = vld [vmem:[%s5923_s12 + $0x1a8] sm:$0xff] }
 0x30d   : > { %v3513_v57 = vadd.f32 %v3498_v46, %v12576_v38  ;;  %v3683_v4 = vadd.f32 %v3676_v44, %v3668_v58  ;;  %v10028_v1 = vsel %vm419_vm2, 0.0, %v3737_v5  ;;  %v3800_v16 = vmul.f32 %v10004_v27, %v12012_v12  ;;  %12579 = vst [vmem:[#allocation67_spill] sm:$0xff] %v10048_v26 }
 0x30e   : > { %12577 = vst [vmem:[#allocation35_spill] sm:$0xff] %v10028_v1  ;;  %v3912_v13 = vadd.f32 %v9924_v48, %v3897_v31  ;;  %v10034_v51 = vsel %vm447_vm3, %v3761_v2, 0.0  ;;  %v3785_v61 = vmul.f32 %v10028_v1, %v12548_v55  ;;  %v3853_v41 = vadd.f32 %v3845_v11, %v3837_v14 }
 0x30f   : > { %12578 = vst [vmem:[#allocation60_spill] sm:$0xff] %v10034_v51  ;;  %v3592_v3 = vadd.f32 %v3584_v21, %v3513_v57  ;;  %v3698_v53 = vadd.f32 %v3691_v62, %v3683_v4  ;;  %v3815_v47 = vmul.f32 %v10034_v51, %v12550_v56  ;;  %v3877_v59 = vmul.f32 %v10028_v1, %v12551_v18 }
 0x310   : > { %5265 = vst [vmem:[%s6394_s26 + $0x148] sm:$0xff] %v3912_v13  ;;  %v3830_v44 = vmul.f32 %v10028_v1, %v12549_v0  ;;  %v3869_v48 = vadd.f32 %v3861_v10, %v3853_v41  ;;  %v3892_v28 = vmul.f32 %v10004_v27, %v12513_v15  ;;  %v3637_v45 = vadd.f32 %v3629_v42, %v3621_v9  ;;  %v12580_v10 = vld [vmem:[#allocation54_spill] sm:$0xff] }
 0x311   : > { %v3607_v5 = vadd.f32 %v3599_v39, %v3592_v3  ;;  %v3713_v21 = vadd.f32 %v3706_v6, %v3698_v53  ;;  %v3862_v2 = vmul.f32 %v10034_v51, %v12554_v24  ;;  %v3645_v46 = vmul.f32 %v12568_v30, %v12276_v32  ;;  %v12581_v39 = vld [vmem:[#allocation58_spill] sm:$0xff] }
 0x312   : > { %v3884_v58 = vadd.f32 %v3877_v59, %v3869_v48  ;;  %v3907_v62 = vmul.f32 %v10034_v51, %v12519_v19  ;;  %v3630_v14 = vmul.f32 %v12580_v10, %v12055_v54  ;;  %v3677_v9 = vmul.f32 %v12580_v10, %v12535_v35  ;;  %v12583_v59 = vld [vmem:[#allocation42_spill] sm:$0xff] }
 0x313   : > { %v3793_v42 = vadd.f32 %v3785_v61, %v3713_v21  ;;  %v3653_v22 = vadd.f32 %v3645_v46, %v3637_v45  ;;  %v3692_v31 = vmul.f32 %v12581_v39, %v12537_v37  ;;  %v3738_v6 = vrot.slane %v10048_v26, 7 }
 0x314   : > { %v3622_v11 = vadd.f32 %v3614_v34, %v3607_v5  ;;  %v3899_v30 = vadd.f32 %v3892_v28, %v3884_v58  ;;  %v3762_v57 = vrot.slane %v10048_v26, 1  ;;  %v3838_v4 = vadd.f32 %v3830_v44, %v3822_v49  ;;  %v10078_v44 = vld [vmem:[%s5923_s12 + $0x1b0] sm:$0xff] }
 0x315   : > { %v3808_v13 = vadd.f32 %v3800_v16, %v3793_v42  ;;  %v3669_v41 = vadd.f32 %v3661_v36, %v3653_v22  ;;  %v10065_v3 = vsel %vm419_vm2, 0.0, %v3738_v6  ;;  %v3846_v61 = vmul.f32 %v10004_v27, %v12544_v8  ;;  %12584 = vst [vmem:[#allocation77_spill] sm:$0xff] %v10078_v44 }
 0x316   : > { %12582 = vst [vmem:[#allocation41_spill] sm:$0xff] %v10065_v3  ;;  %v3914_v53 = vadd.f32 %v3907_v62, %v3899_v30  ;;  %v3662_v48 = vmul.f32 %v12583_v59, %v6036_v50  ;;  %v3707_v34 = vmul.f32 %v12583_v59, %v6040_v52  ;;  %v3831_v28 = vmul.f32 %v10065_v3, %v12549_v0 }
 0x317   : > { %v3823_v45 = vadd.f32 %v3815_v47, %v3808_v13  ;;  %v3684_v49 = vadd.f32 %v3677_v9, %v3669_v41  ;;  %v3801_v36 = vmul.f32 %v10048_v26, %v12012_v12  ;;  %v3854_v16 = vadd.f32 %v3846_v61, %v3838_v4 }
 0x318   : > { %5267 = vst [vmem:[%s6394_s26 + $0x158] sm:$0xff] %v3914_v53  ;;  %v10082_v5 = vsel %vm447_vm3, %v3762_v57, 0.0  ;;  %v3786_v21 = vmul.f32 %v10065_v3, %v12548_v55  ;;  %v3878_v46 = vmul.f32 %v10065_v3, %v12551_v18  ;;  %v3893_v47 = vmul.f32 %v10048_v26, %v12513_v15  ;;  %v10097_v57 = vld [vmem:[%s5923_s12 + $0x1b8] sm:$0xff] }
 0x319   : > { %12585 = vst [vmem:[#allocation98_spill] sm:$0xff] %v10082_v5  ;;  %v3699_v58 = vadd.f32 %v3692_v31, %v3684_v49  ;;  %v3870_v62 = vadd.f32 %v3862_v2, %v3854_v16  ;;  %v3638_v10 = vadd.f32 %v3630_v14, %v3622_v11  ;;  %v3646_v9 = vmul.f32 %v12581_v39, %v12276_v32 }
 0x31a   : > { %v3908_v42 = vmul.f32 %v10082_v5, %v12519_v19  ;;  %v3739_v22 = vrot.slane %v10078_v44, 7  ;;  %v3763_v6 = vrot.slane %v10078_v44, 1  ;;  %v3839_v30 = vadd.f32 %v3831_v28, %v3823_v45  ;;  %12586 = vst [vmem:[#allocation90_spill] sm:$0xff] %v10097_v57 }
 0x31b   : > { %v3714_v4 = vadd.f32 %v3707_v34, %v3699_v58  ;;  %v3885_v13 = vadd.f32 %v3878_v46, %v3870_v62  ;;  %v3654_v41 = vadd.f32 %v3646_v9, %v3638_v10  ;;  %v3847_v2 = vmul.f32 %v10048_v26, %v12544_v8  ;;  %v12601_v26 = vld [vmem:[#allocation16_spill] sm:$0xff] }
 0x31c   : > { %v3816_v14 = vmul.f32 %v10082_v5, %v12550_v56  ;;  %v3863_v39 = vmul.f32 %v10082_v5, %v12554_v24  ;;  %v10106_v31 = vsel %vm419_vm2, 0.0, %v3739_v22  ;;  %v3802_v11 = vmul.f32 %v10078_v44, %v12012_v12 }
 0x31d   : > { %12587 = vst [vmem:[#allocation87_spill] sm:$0xff] %v10106_v31  ;;  %v3794_v61 = vadd.f32 %v3786_v21, %v3714_v4  ;;  %v3900_v53 = vadd.f32 %v3893_v47, %v3885_v13  ;;  %v3670_v59 = vadd.f32 %v3662_v48, %v3654_v41  ;;  %v3740_v34 = vrot.slane %v10097_v57, 7  ;;  %v12589_v21 = vld [vmem:[#allocation83_spill] sm:$0xff]  ;;  %v10137_v41 = vld [vmem:[%s5923_s12 + $0x148] sm:$0xff] }
 0x31e   : > { %v10112_v28 = vsel %vm447_vm3, %v3763_v6, 0.0  ;;  %v3832_v45 = vmul.f32 %v10106_v31, %v12549_v0  ;;  %v3855_v49 = vadd.f32 %v3847_v2, %v3839_v30  ;;  %v3894_v16 = vmul.f32 %v10078_v44, %v12513_v15  ;;  %v10134_v13 = vld [vmem:[%s5923_s12 + $0x140] sm:$0xff] }
 0x31f   : > { %12588 = vst [vmem:[#allocation70_spill] sm:$0xff] %v10112_v28  ;;  %v3809_v46 = vadd.f32 %v3801_v36, %v3794_v61  ;;  %v3915_v58 = vadd.f32 %v3908_v42, %v3900_v53  ;;  %v3685_v47 = vadd.f32 %v3670_v59, %v12589_v21  ;;  %v3879_v48 = vmul.f32 %v10106_v31, %v12551_v18  ;;  %v12590_v36 = vld [vmem:[#allocation84_spill] sm:$0xff]  ;;  %v10146_v53 = vld [vmem:[%s5923_s12 + $0x150] sm:$0xff] }
 0x320   : > { %v3787_v62 = vmul.f32 %v10106_v31, %v12548_v55  ;;  %v3817_v10 = vmul.f32 %v10112_v28, %v12550_v56  ;;  %v3871_v9 = vadd.f32 %v3863_v39, %v3855_v49  ;;  %v3764_v22 = vrot.slane %v10097_v57, 1  ;;  %v12592_v59 = vld [vmem:[#allocation85_spill] sm:$0xff]  ;;  %v10163_v21 = vld [vmem:[%s5923_s12 + $0x168] sm:$0xff] }
 0x321   : > { %v3824_v6 = vadd.f32 %v3816_v14, %v3809_v46  ;;  %5268 = vst [vmem:[%s6394_s26 + $0x160] sm:$0xff] %v3915_v58  ;;  %v3700_v42 = vadd.f32 %v3685_v47, %v12590_v36  ;;  %v10129_v30 = vsel %vm419_vm2, 0.0, %v3740_v34  ;;  %v3848_v4 = vmul.f32 %v10078_v44, %v12544_v8  ;;  %v10155_v47 = vld [vmem:[%s5923_s12 + $0x158] sm:$0xff]  ;;  %v10160_v36 = vld [vmem:[%s5923_s12 + $0x160] sm:$0xff] }
 0x322   : > { %12591 = vst [vmem:[#allocation66_spill] sm:$0xff] %v10129_v30  ;;  %v3864_v2 = vmul.f32 %v10112_v28, %v12554_v24  ;;  %v3886_v14 = vadd.f32 %v3879_v48, %v3871_v9  ;;  %v3909_v39 = vmul.f32 %v10112_v28, %v12519_v19  ;;  %v3833_v61 = vmul.f32 %v10129_v30, %v12549_v0 }
 0x323   : > { %v3715_v34 = vadd.f32 %v3700_v42, %v12592_v59  ;;  %v10150_v49 = vsel %vm447_vm3, %v3764_v22, 0.0  ;;  %v3840_v46 = vadd.f32 %v3832_v45, %v3824_v6  ;;  %v3880_v58 = vmul.f32 %v10129_v30, %v12551_v18 }
 0x324   : > { %12593 = vst [vmem:[#allocation50_spill] sm:$0xff] %v10150_v49  ;;  %v3901_v48 = vadd.f32 %v3894_v16, %v3886_v14  ;;  %v3895_v9 = vmul.f32 %v10097_v57, %v12513_v15  ;;  %v3944_v42 = vrot.slane %v10134_v13, 7  ;;  %v3945_v22 = vrot.slane %v10137_v41, 7 }
 0x325   : > { %v3795_v59 = vadd.f32 %v3787_v62, %v3715_v34  ;;  %v3856_v45 = vadd.f32 %v3848_v4, %v3840_v46  ;;  %v3865_v6 = vmul.f32 %v10150_v49, %v12554_v24  ;;  %v3946_v30 = vrot.slane %v10146_v53, 7 }
 0x326   : > { %v3916_v16 = vadd.f32 %v3909_v39, %v3901_v48  ;;  %v3910_v14 = vmul.f32 %v10150_v49, %v12519_v19  ;;  %v3849_v38 = vmul.f32 %v10097_v57, %v12544_v8  ;;  %v3947_v17 = vrot.slane %v10155_v47, 7  ;;  %v12603_v19 = vld [vmem:[#allocation92_spill] sm:$0xff] }
 0x327   : > { %v3810_v7 = vadd.f32 %v3802_v11, %v3795_v59  ;;  %v3872_v28 = vadd.f32 %v3864_v2, %v3856_v45  ;;  %v3948_v44 = vrot.slane %v10160_v36, 7  ;;  %v3949_v62 = vrot.slane %v10163_v21, 7 }
 0x328   : > { %5269 = vst [vmem:[%s6394_s26 + $0x168] sm:$0xff] %v3916_v16  ;;  %v3960_v4 = vsel %vm419_vm2, 0.0, %v3944_v42  ;;  %v10180_v34 = vsel %vm419_vm2, 0.0, %v3945_v22  ;;  %v10183_v39 = vsel %vm419_vm2, 0.0, %v3946_v30  ;;  %v3968_v46 = vrot.slane %v10134_v13, 1 }
 0x329   : > { %12594 = vst [vmem:[#allocation49_spill] sm:$0xff] %v10183_v39  ;;  %v3825_v48 = vadd.f32 %v3817_v10, %v3810_v7  ;;  %v3887_v57 = vadd.f32 %v3880_v58, %v3872_v28  ;;  %v3969_v11 = vrot.slane %v10137_v41, 1  ;;  %v3970_v2 = vrot.slane %v10146_v53, 1 }
 0x32a   : > { %v10189_v59 = vsel %vm419_vm2, 0.0, %v3947_v17  ;;  %v3971_v45 = vrot.slane %v10155_v47, 1  ;;  %v3972_v42 = vrot.slane %v10160_v36, 1  ;;  %v3973_v22 = vrot.slane %v10163_v21, 1 }
 0x32b   : > { %v3902_v16 = vadd.f32 %v3895_v9, %v3887_v57  ;;  %v3841_v30 = vadd.f32 %v3833_v61, %v3825_v48  ;;  %v10195_v49 = vsel %vm419_vm2, 0.0, %v3948_v44  ;;  %v3965_v7 = vsel %vm419_vm2, 0.0, %v3949_v62  ;;  %v12598_v44 = vld [vmem:[#allocation15_spill] sm:$0xff] }
 0x32c   : > { %12595 = vst [vmem:[#allocation21_spill] sm:$0xff] %v10195_v49  ;;  %v3984_v28 = vsel %vm447_vm3, %v3968_v46, 0.0  ;;  %v10200_v10 = vsel %vm447_vm3, %v3969_v11, 0.0  ;;  %v10203_v17 = vsel %vm447_vm3, %v3970_v2, 0.0  ;;  %v10206_v58 = vsel %vm447_vm3, %v3971_v45, 0.0  ;;  %v12599_v11 = vld [vmem:[#allocation69_spill] sm:$0xff] }
 0x32d   : > { %12596 = vst [vmem:[#allocation89_spill] sm:$0xff] %v10203_v17  ;;  %v3917_v31 = vadd.f32 %v3910_v14, %v3902_v16  ;;  %v3857_v57 = vadd.f32 %v3849_v38, %v3841_v30  ;;  %v10209_v61 = vsel %vm447_vm3, %v3972_v42, 0.0  ;;  %v3993_v9 = vmul.f32 %v10180_v34, %v12598_v44  ;;  %v12600_v38 = vld [vmem:[#allocation56_spill] sm:$0xff] }
 0x32e   : > { %12597 = vst [vmem:[#allocation64_spill] sm:$0xff] %v10209_v61  ;;  %v10214_v62 = vsel %vm447_vm3, %v3973_v22, 0.0  ;;  %v3995_v46 = vmul.f32 %v10189_v59, %v12598_v44  ;;  %v3997_v48 = vmul.f32 %v3965_v7, %v12598_v44  ;;  %v4007_v2 = vmul.f32 %v10137_v41, %v12599_v11 }
 0x32f   : > { %5270 = vst [vmem:[%s6394_s26 + $0x170] sm:$0xff] %v3917_v31  ;;  %v3873_v14 = vadd.f32 %v3865_v6, %v3857_v57  ;;  %v4000_v45 = vadd.f32 %v12600_v38, %v3993_v9  ;;  %v4009_v42 = vmul.f32 %v10155_v47, %v12599_v11  ;;  %v4011_v16 = vmul.f32 %v10163_v21, %v12599_v11  ;;  %v12602_v31 = vld [vmem:[#allocation91_spill] sm:$0xff] }
 0x330   : > { %v10228_v22 = vmul.f32 %v3960_v4, %v12598_v44  ;;  %v4002_v30 = vadd.f32 %v12600_v38, %v3995_v46  ;;  %v4004_v5 = vadd.f32 %v12600_v38, %v3997_v48  ;;  %v4021_v3 = vmul.f32 %v10200_v10, %v12601_v26 }
 0x331   : > { %v3888_v6 = vadd.f32 %v3873_v14, %v12602_v31  ;;  %v10237_v57 = vmul.f32 %v10183_v39, %v12598_v44  ;;  %v4014_v9 = vadd.f32 %v4007_v2, %v4000_v45  ;;  %v4023_v51 = vmul.f32 %v10206_v58, %v12601_v26  ;;  %v12604_v2 = vld [vmem:[#allocation17_spill] sm:$0xff] }
 0x332   : > { %v10243_v27 = vmul.f32 %v10195_v49, %v12598_v44  ;;  %v4016_v46 = vadd.f32 %v4009_v42, %v4002_v30  ;;  %v4018_v1 = vadd.f32 %v4011_v16, %v4004_v5  ;;  %v10246_v48 = vmul.f32 %v3984_v28, %v12601_v26  ;;  %v12606_v30 = vld [vmem:[#allocation36_spill] sm:$0xff] }
 0x333   : > { %v3903_v15 = vadd.f32 %v3888_v6, %v12603_v19  ;;  %v4025_v14 = vmul.f32 %v10214_v62, %v12601_v26  ;;  %v4028_v31 = vadd.f32 %v4021_v3, %v4014_v9  ;;  %v4034_v45 = vmul.f32 %v3960_v4, %v12604_v2  ;;  %v12608_v4 = vld [vmem:[#allocation74_spill] sm:$0xff] }
 0x334   : > { %v10254_v18 = vmul.f32 %v10203_v17, %v12601_v26  ;;  %v10258_v42 = vmul.f32 %v10209_v61, %v12601_v26  ;;  %v4030_v5 = vadd.f32 %v4023_v51, %v4016_v46  ;;  %v4036_v16 = vmul.f32 %v10183_v39, %v12604_v2 }
 0x335   : > { %v3918_v6 = vadd.f32 %v3903_v15, %v12606_v30  ;;  %v10265_v19 = vmul.f32 %v10180_v34, %v12604_v2  ;;  %v4038_v3 = vmul.f32 %v10195_v49, %v12604_v2  ;;  %v4042_v9 = vadd.f32 %v4034_v45, %v12608_v4 }
 0x336   : > { %12605 = vst [vmem:[#allocation38_spill] sm:$0xff] %v10254_v18  ;;  %v4044_v18 = vadd.f32 %v4036_v16, %v4028_v31  ;;  %v4050_v26 = vmul.f32 %v10134_v13, %v12130_v25  ;;  %v4052_v51 = vmul.f32 %v10146_v53, %v12130_v25  ;;  %v4054_v46 = vmul.f32 %v10160_v36, %v12130_v25 }
 0x337   : > { %12607 = vst [vmem:[#allocation80_spill] sm:$0xff] %v10265_v19  ;;  %5271 = vst [vmem:[%s6394_s26 + $0x178] sm:$0xff] %v3918_v6  ;;  %v10277_v15 = vadd.f32 %v4025_v14, %v4018_v1  ;;  %v4046_v30 = vadd.f32 %v4038_v3, %v4030_v5  ;;  %v4066_v39 = vmul.f32 %v3984_v28, %v12526_v29  ;;  %v12610_v14 = vld [vmem:[#allocation19_spill] sm:$0xff] }
 0x338   : > { %v4068_v49 = vmul.f32 %v10203_v17, %v12526_v29  ;;  %v10284_v31 = vmul.f32 %v10189_v59, %v12604_v2  ;;  %v4058_v45 = vadd.f32 %v4050_v26, %v4042_v9  ;;  %v4060_v16 = vadd.f32 %v4052_v51, %v4044_v18  ;;  %v12611_v17 = vld [vmem:[#allocation72_spill] sm:$0xff] }
 0x339   : > { %12609 = vst [vmem:[#allocation29_spill] sm:$0xff] %v10277_v15  ;;  %v4070_v4 = vmul.f32 %v10209_v61, %v12526_v29  ;;  %v10289_v19 = vmul.f32 %v3965_v7, %v12604_v2  ;;  %v4062_v1 = vadd.f32 %v4054_v46, %v4046_v30  ;;  %v4082_v5 = vmul.f32 %v10180_v34, %v12610_v14 }
 0x33a   : > { %v4084_v28 = vmul.f32 %v10189_v59, %v12610_v14  ;;  %v4074_v6 = vadd.f32 %v4066_v39, %v4058_v45  ;;  %v4076_v3 = vadd.f32 %v4068_v49, %v4060_v16  ;;  %v4086_v15 = vmul.f32 %v3965_v7, %v12610_v14  ;;  %v12612_v39 = vld [vmem:[#allocation20_spill] sm:$0xff] }
 0x33b   : > { %v4097_v18 = vmul.f32 %v10137_v41, %v12611_v17  ;;  %v10300_v26 = vmul.f32 %v10200_v10, %v12526_v29  ;;  %v4078_v9 = vadd.f32 %v4070_v4, %v4062_v1  ;;  %v4099_v30 = vmul.f32 %v10155_v47, %v12611_v17 }
 0x33c   : > { %v4101_v34 = vmul.f32 %v10163_v21, %v12611_v17  ;;  %v4089_v51 = vadd.f32 %v4082_v5, %v4074_v6  ;;  %v4091_v59 = vadd.f32 %v4084_v28, %v4076_v3  ;;  %v4112_v49 = vmul.f32 %v10200_v10, %v12612_v39  ;;  %v12614_v28 = vld [vmem:[#allocation40_spill] sm:$0xff]  ;;  %v12616_v6 = vld [vmem:[#allocation93_spill] sm:$0xff] }
 0x33d   : > { %v4114_v7 = vmul.f32 %v10206_v58, %v12612_v39  ;;  %v10312_v46 = vmul.f32 %v10206_v58, %v12526_v29  ;;  %v10316_v4 = vmul.f32 %v10214_v62, %v12526_v29  ;;  %v4093_v45 = vadd.f32 %v4086_v15, %v4078_v9  ;;  %v12617_v58 = vld [vmem:[#allocation76_spill] sm:$0xff]  ;;  %v12623_v29 = vld [vmem:[#allocation97_spill] sm:$0xff] }
 0x33e   : > { %v4116_v16 = vmul.f32 %v10214_v62, %v12612_v39  ;;  %v4104_v1 = vadd.f32 %v4097_v18, %v4089_v51  ;;  %v4106_v5 = vadd.f32 %v4099_v30, %v4091_v59  ;;  %v10322_v10 = vmul.f32 %v12614_v28, %v12527_v43  ;;  %v12619_v9 = vld [vmem:[#allocation48_spill] sm:$0xff]  ;;  %v12620_v59 = vld [vmem:[#allocation95_spill] sm:$0xff] }
 0x33f   : > { %12613 = vst [vmem:[#allocation30_spill] sm:$0xff] %v10312_v46  ;;  %v4192_v3 = vmul.f32 %v12616_v6, %v12527_v43  ;;  %v4108_v61 = vadd.f32 %v4101_v34, %v4093_v45  ;;  %v10328_v46 = vmul.f32 %v12617_v58, %v12527_v43  ;;  %v4194_v15 = vmul.f32 %v9961_v63, %v12527_v43  ;;  %v12622_v45 = vld [vmem:[#allocation78_spill] sm:$0xff] }
 0x340   : > { %12615 = vst [vmem:[#allocation51_spill] sm:$0xff] %v10322_v10  ;;  %v4207_v62 = vmul.f32 %v12619_v9, %v12529_v20  ;;  %v4119_v18 = vadd.f32 %v4112_v49, %v4104_v1  ;;  %v4121_v30 = vadd.f32 %v4114_v7, %v4106_v5  ;;  %v4209_v51 = vmul.f32 %v9935_v33, %v12529_v20  ;;  %v12625_v7 = vld [vmem:[#allocation39_spill] sm:$0xff] }
 0x341   : > { %12618 = vst [vmem:[#allocation94_spill] sm:$0xff] %v10328_v46  ;;  %v10338_v10 = vmul.f32 %v12620_v59, %v12531_v60  ;;  %v4123_v34 = vadd.f32 %v4116_v16, %v4108_v61  ;;  %v4222_v46 = vmul.f32 %v12622_v45, %v12531_v60  ;;  %v10344_v43 = vmul.f32 %v12623_v29, %v12531_v60 }
 0x342   : > { %v4224_v49 = vmul.f32 %v9964_v40, %v12531_v60  ;;  %v4198_v1 = vadd.f32 %v4119_v18, %v12625_v7  ;;  %v4200_v5 = vadd.f32 %v4192_v3, %v4121_v30  ;;  %v4236_v20 = vmul.f32 %v12614_v28, %v12055_v54  ;;  %v12628_v60 = vld [vmem:[#allocation82_spill] sm:$0xff] }
 0x343   : > { %12621 = vst [vmem:[#allocation71_spill] sm:$0xff] %v10338_v10  ;;  %12624 = vst [vmem:[#allocation75_spill] sm:$0xff] %v10344_v43  ;;  %v10353_v61 = vmul.f32 %v12616_v6, %v12055_v54  ;;  %v4202_v16 = vadd.f32 %v4194_v15, %v4123_v34  ;;  %v4238_v10 = vmul.f32 %v12617_v58, %v12055_v54  ;;  %v12629_v18 = vld [vmem:[#allocation46_spill] sm:$0xff]  ;;  %v10369_v15 = vld [vmem:[%s5923_s12 + $0x1c0] sm:$0xff] }
 0x344   : > { %v10359_v43 = vmul.f32 %v9961_v63, %v12055_v54  ;;  %v4252_v39 = vmul.f32 %v12628_v60, %v12276_v32  ;;  %v4213_v3 = vadd.f32 %v4198_v1, %v12629_v18  ;;  %v4215_v30 = vadd.f32 %v4207_v62, %v4200_v5  ;;  %12630 = vst [vmem:[#allocation88_spill] sm:$0xff] %v10369_v15  ;;  %v10372_v34 = vld [vmem:[%s5923_s12 + $0x1c8] sm:$0xff]  ;;  %v12634_v1 = vld [vmem:[#allocation45_spill] sm:$0xff] }
 0x345   : > { %12626 = vst [vmem:[#allocation27_spill] sm:$0xff] %v10353_v61  ;;  %v4254_v28 = vmul.f32 %v9842_v23, %v12276_v32  ;;  %v4268_v7 = vmul.f32 %v12620_v59, %v6036_v50  ;;  %12631 = vst [vmem:[#allocation79_spill] sm:$0xff] %v10372_v34  ;;  %v4217_v61 = vadd.f32 %v4209_v51, %v4202_v16  ;;  %v4347_v58 = vrot.slane %v10372_v34, 7 }
 0x346   : > { %12627 = vst [vmem:[#allocation52_spill] sm:$0xff] %v10359_v43  ;;  %v10376_v43 = vmul.f32 %v12622_v45, %v6036_v50  ;;  %v4270_v60 = vmul.f32 %v12623_v29, %v6036_v50  ;;  %v10382_v62 = vmul.f32 %v9964_v40, %v6036_v50  ;;  %v4228_v5 = vadd.f32 %v4213_v3, %v12634_v1 }
 0x347   : > { %v4230_v18 = vadd.f32 %v4222_v46, %v4215_v30  ;;  %v4284_v59 = vmul.f32 %v12616_v6, %v12535_v35  ;;  %v4286_v51 = vmul.f32 %v9961_v63, %v12535_v35  ;;  %v4299_v16 = vmul.f32 %v12619_v9, %v12537_v37 }
 0x348   : > { %12632 = vst [vmem:[#allocation55_spill] sm:$0xff] %v10376_v43  ;;  %12633 = vst [vmem:[#allocation26_spill] sm:$0xff] %v10382_v62  ;;  %v4301_v43 = vmul.f32 %v9935_v33, %v12537_v37  ;;  %v4346_v29 = vrot.slane %v10369_v15, 7  ;;  %v4244_v62 = vadd.f32 %v4236_v20, %v4228_v5  ;;  %v4370_v46 = vrot.slane %v10369_v15, 1 }
 0x349   : > { %v4246_v3 = vadd.f32 %v4238_v10, %v4230_v18  ;;  %v4371_v6 = vrot.slane %v10372_v34, 1  ;;  %v10397_v30 = vadd.f32 %v4224_v49, %v4217_v61  ;;  %v4314_v63 = vmul.f32 %v12622_v45, %v6040_v52 }
 0x34a   : > { %v10402_v9 = vsel %vm419_vm2, 0.0, %v4346_v29  ;;  %v10405_v1 = vsel %vm419_vm2, 0.0, %v4347_v58  ;;  %v4260_v37 = vadd.f32 %v4252_v39, %v4244_v62  ;;  %v10408_v20 = vsel %vm447_vm3, %v4370_v46, 0.0  ;;  %v10426_v58 = vld [vmem:[%s5923_s12 + $0x170] sm:$0xff] }
 0x34b   : > { %12635 = vst [vmem:[#allocation44_spill] sm:$0xff] %v10397_v30  ;;  %12636 = vst [vmem:[#allocation24_spill] sm:$0xff] %v10402_v9  ;;  %v4262_v35 = vadd.f32 %v4254_v28, %v4246_v3  ;;  %v10411_v10 = vsel %vm447_vm3, %v4371_v6, 0.0  ;;  %v4316_v49 = vmul.f32 %v9964_v40, %v6040_v52  ;;  %v10417_v45 = vmul.f32 %v10402_v9, %v12548_v55 }
 0x34c   : > { %12637 = vst [vmem:[#allocation25_spill] sm:$0xff] %v10405_v1  ;;  %12638 = vst [vmem:[#allocation96_spill] sm:$0xff] %v10408_v20  ;;  %v4410_v29 = vmul.f32 %v10372_v34, %v12012_v12  ;;  %v10423_v39 = vmul.f32 %v10369_v15, %v12544_v8  ;;  %v4276_v61 = vadd.f32 %v4268_v7, %v4260_v37  ;;  %v3950_v46 = vrot.slane %v10426_v58, 7 }
 0x34d   : > { %12639 = vst [vmem:[#allocation59_spill] sm:$0xff] %v10411_v10  ;;  %12640 = vst [vmem:[#allocation47_spill] sm:$0xff] %v10417_v45  ;;  %v4278_v18 = vadd.f32 %v4270_v60, %v4262_v35  ;;  %v4395_v28 = vmul.f32 %v10405_v1, %v12548_v55  ;;  %v10432_v40 = vmul.f32 %v10408_v20, %v12550_v56  ;;  %v3974_v6 = vrot.slane %v10426_v58, 1 }
 0x34e   : > { %v10436_v62 = vmul.f32 %v10411_v10, %v12550_v56  ;;  %v4439_v5 = vmul.f32 %v10402_v9, %v12549_v0  ;;  %v10442_v3 = vmul.f32 %v10405_v1, %v12549_v0  ;;  %v10446_v35 = vmul.f32 %v10408_v20, %v12554_v24 }
 0x34f   : > { %12641 = vst [vmem:[#allocation86_spill] sm:$0xff] %v10432_v40  ;;  %v4291_v37 = vadd.f32 %v4284_v59, %v4276_v61  ;;  %v4293_v7 = vadd.f32 %v4286_v51, %v4278_v18  ;;  %v10450_v60 = vmul.f32 %v10411_v10, %v12554_v24  ;;  %v3999_v9 = vadd.f32 %v12600_v38, %v10228_v22  ;;  %v12644_v18 = vld [vmem:[#allocation33_spill] sm:$0xff] }
 0x350   : > { %12642 = vst [vmem:[#allocation81_spill] sm:$0xff] %v10442_v3  ;;  %v4001_v3 = vadd.f32 %v12600_v38, %v10237_v57  ;;  %v4003_v20 = vadd.f32 %v12600_v38, %v10243_v27  ;;  %v3966_v51 = vsel %vm419_vm2, 0.0, %v3950_v46  ;;  %v4006_v61 = vmul.f32 %v10134_v13, %v12599_v11 }
 0x351   : > { %12643 = vst [vmem:[#allocation54_spill] sm:$0xff] %v10450_v60  ;;  %v4306_v40 = vadd.f32 %v4299_v16, %v4291_v37  ;;  %v4308_v59 = vadd.f32 %v4301_v43, %v4293_v7  ;;  %v4487_v60 = vmul.f32 %v10405_v1, %v12644_v18  ;;  %v3998_v45 = vmul.f32 %v3966_v51, %v12598_v44  ;;  %v12645_v16 = vld [vmem:[#allocation68_spill] sm:$0xff]  ;;  %v12646_v44 = vld [vmem:[#allocation57_spill] sm:$0xff] }
 0x352   : > { %v4008_v22 = vmul.f32 %v10146_v53, %v12599_v11  ;;  %v4010_v57 = vmul.f32 %v10160_v36, %v12599_v11  ;;  %v10472_v43 = vmul.f32 %v10372_v34, %v12645_v16  ;;  %v4013_v37 = vadd.f32 %v4006_v61, %v3999_v9 }
 0x353   : > { %v4321_v30 = vadd.f32 %v4314_v63, %v4306_v40  ;;  %v4323_v27 = vadd.f32 %v4316_v49, %v4308_v59  ;;  %v3990_v13 = vsel %vm447_vm3, %v3974_v6, 0.0  ;;  %v4012_v7 = vmul.f32 %v10426_v58, %v12599_v11  ;;  %v12647_v49 = vld [vmem:[#allocation34_spill] sm:$0xff] }
 0x354   : > { %v4015_v46 = vadd.f32 %v4008_v22, %v4001_v3  ;;  %v4017_v1 = vadd.f32 %v4010_v57, %v4003_v20  ;;  %v4005_v0 = vadd.f32 %v12600_v38, %v3998_v45  ;;  %v4027_v63 = vadd.f32 %v10246_v48, %v4013_v37  ;;  %v12648_v59 = vld [vmem:[#allocation38_spill] sm:$0xff]  ;;  %v12649_v3 = vld [vmem:[#allocation61_spill] sm:$0xff]  ;;  %v12650_v22 = vld [vmem:[#allocation16_spill] sm:$0xff] }
 0x355   : > { %v4401_v18 = vadd.f32 %v4321_v30, %v12646_v44  ;;  %v4403_v24 = vadd.f32 %v4395_v28, %v4323_v27  ;;  %v10482_v40 = vmul.f32 %v10411_v10, %v12647_v49  ;;  %v4051_v61 = vmul.f32 %v10137_v41, %v12130_v25  ;;  %v12651_v30 = vld [vmem:[#allocation80_spill] sm:$0xff] }
 0x356   : > { %v4029_v9 = vadd.f32 %v12648_v59, %v4015_v46  ;;  %v4031_v6 = vadd.f32 %v10258_v42, %v4017_v1  ;;  %v4026_v44 = vmul.f32 %v3990_v13, %v12650_v22  ;;  %v4043_v28 = vadd.f32 %v12651_v30, %v4027_v63  ;;  %v12652_v1 = vld [vmem:[#allocation62_spill] sm:$0xff]  ;;  %v12653_v59 = vld [vmem:[#allocation49_spill] sm:$0xff] }
 0x357   : > { %v4416_v20 = vadd.f32 %v4401_v18, %v12649_v3  ;;  %v4053_v38 = vmul.f32 %v10155_v47, %v12130_v25  ;;  %v10494_v48 = vmul.f32 %v3966_v51, %v12604_v2  ;;  %v4055_v42 = vmul.f32 %v10163_v21, %v12130_v25  ;;  %v12654_v3 = vld [vmem:[#allocation21_spill] sm:$0xff]  ;;  %v12655_v21 = vld [vmem:[#allocation30_spill] sm:$0xff] }
 0x358   : > { %v4045_v45 = vadd.f32 %v10284_v31, %v4029_v9  ;;  %v4047_v57 = vadd.f32 %v10289_v19, %v4031_v6  ;;  %v4418_v41 = vadd.f32 %v4410_v29, %v4403_v24  ;;  %v4019_v27 = vadd.f32 %v4012_v7, %v4005_v0 }
 0x359   : > { %v4431_v18 = vadd.f32 %v4416_v20, %v12652_v1  ;;  %v4059_v37 = vadd.f32 %v4051_v61, %v4043_v28  ;;  %v4083_v47 = vmul.f32 %v12653_v59, %v12610_v14  ;;  %v4085_v30 = vmul.f32 %v12654_v3, %v12610_v14  ;;  %v12657_v61 = vld [vmem:[#allocation89_spill] sm:$0xff] }
 0x35a   : > { %v4061_v46 = vadd.f32 %v4053_v38, %v4045_v45  ;;  %v4063_v63 = vadd.f32 %v4055_v42, %v4047_v57  ;;  %v4087_v19 = vmul.f32 %v3966_v51, %v12610_v14  ;;  %v4098_v24 = vmul.f32 %v10146_v53, %v12611_v17  ;;  %v12656_v51 = vld [vmem:[#allocation20_spill] sm:$0xff]  ;;  %v12659_v42 = vld [vmem:[#allocation18_spill] sm:$0xff] }
 0x35b   : > { %v4447_v10 = vadd.f32 %v4439_v5, %v4431_v18  ;;  %v4075_v31 = vadd.f32 %v10300_v26, %v4059_v37  ;;  %v4100_v7 = vmul.f32 %v10160_v36, %v12611_v17  ;;  %v4102_v9 = vmul.f32 %v10426_v58, %v12611_v17  ;;  %v12658_v38 = vld [vmem:[#allocation64_spill] sm:$0xff]  ;;  %v12660_v18 = vld [vmem:[#allocation22_spill] sm:$0xff] }
 0x35c   : > { %v4077_v29 = vadd.f32 %v12655_v21, %v4061_v46  ;;  %v4079_v0 = vadd.f32 %v10316_v4, %v4063_v63  ;;  %v10516_v6 = vadd.f32 %v4026_v44, %v4019_v27  ;;  %v4113_v20 = vmul.f32 %v12657_v61, %v12656_v51  ;;  %v12661_v27 = vld [vmem:[#allocation35_spill] sm:$0xff]  ;;  %v12667_v61 = vld [vmem:[#allocation94_spill] sm:$0xff] }
 0x35d   : > { %v4463_v5 = vadd.f32 %v10423_v39, %v4447_v10  ;;  %v4090_v26 = vadd.f32 %v4083_v47, %v4075_v31  ;;  %v4115_v4 = vmul.f32 %v12658_v38, %v12656_v51  ;;  %v4117_v45 = vmul.f32 %v3990_v13, %v12656_v51  ;;  %v5465_v46 = vld [vmem:[%s5923_s12 + $0x180] sm:$0xff]  ;;  %v12668_v38 = vld [vmem:[#allocation28_spill] sm:$0xff] }
 0x35e   : > { %v4092_v53 = vadd.f32 %v4085_v30, %v4077_v29  ;;  %v4094_v28 = vadd.f32 %v4087_v19, %v4079_v0  ;;  %v10524_v36 = vadd.f32 %v10436_v62, %v4418_v41  ;;  %v10528_v10 = vmul.f32 %v3990_v13, %v12659_v42  ;;  %v12662_v63 = vld [vmem:[#allocation43_spill] sm:$0xff]  ;;  %v12665_v19 = vld [vmem:[#allocation60_spill] sm:$0xff] }
 0x35f   : > { %v4479_v57 = vadd.f32 %v10446_v35, %v4463_v5  ;;  %v4105_v39 = vadd.f32 %v4098_v24, %v4090_v26  ;;  %v4195_v37 = vmul.f32 %v12661_v27, %v12660_v18  ;;  %v4206_v59 = vmul.f32 %v5465_v46, %v12662_v63  ;;  %v12663_v35 = vld [vmem:[#allocation37_spill] sm:$0xff]  ;;  %v12664_v31 = vld [vmem:[#allocation23_spill] sm:$0xff] }
 0x360   : > { %v4107_v44 = vadd.f32 %v4100_v7, %v4092_v53  ;;  %v4109_v1 = vadd.f32 %v4102_v9, %v4094_v28  ;;  %v4208_v62 = vmul.f32 %v9842_v23, %v12662_v63  ;;  %v4210_v13 = vmul.f32 %v12663_v35, %v12662_v63  ;;  %v12666_v0 = vld [vmem:[#allocation51_spill] sm:$0xff]  ;;  %v5466_v7 = vld [vmem:[%s5923_s12 + $0x188] sm:$0xff]  ;;  %v10551_v26 = vld [vmem:[%s5923_s12 + $0x1d0] sm:$0xff] }
 0x361   : > { %v4494_v47 = vadd.f32 %v4487_v60, %v4479_v57  ;;  %v4120_v3 = vadd.f32 %v4113_v20, %v4105_v39  ;;  %v4225_v24 = vmul.f32 %v12665_v19, %v12664_v31  ;;  %v10542_v21 = vmul.f32 %v12661_v27, %v12055_v54 }
 0x362   : > { %v4122_v41 = vadd.f32 %v4115_v4, %v4107_v44  ;;  %v4124_v30 = vadd.f32 %v4117_v45, %v4109_v1  ;;  %v4253_v9 = vmul.f32 %v5466_v7, %v12276_v32  ;;  %v4255_v5 = vmul.f32 %v9935_v33, %v12276_v32  ;;  %v12670_v33 = vld [vmem:[#allocation53_spill] sm:$0xff] }
 0x363   : > { %v4509_v29 = vadd.f32 %v10472_v43, %v4494_v47  ;;  %v4199_v60 = vadd.f32 %v12666_v0, %v4120_v3  ;;  %v10556_v28 = vmul.f32 %v12665_v19, %v6036_v50  ;;  %v12669_v43 = vld [vmem:[#allocation76_spill] sm:$0xff]  ;;  %v4287_v39 = vmul.f32 %v12661_v27, %v12668_v38  ;;  %v12671_v3 = vld [vmem:[#allocation71_spill] sm:$0xff] }
 0x364   : > { %v4201_v20 = vadd.f32 %v12667_v61, %v4122_v41  ;;  %v4203_v53 = vadd.f32 %v4195_v37, %v4124_v30  ;;  %v4285_v4 = vmul.f32 %v12669_v43, %v12668_v38  ;;  %v4300_v44 = vmul.f32 %v9842_v23, %v12670_v33  ;;  %v12677_v61 = vld [vmem:[#allocation27_spill] sm:$0xff]  ;;  %v12678_v43 = vld [vmem:[#allocation52_spill] sm:$0xff] }
 0x365   : > { %v4524_v45 = vadd.f32 %v10482_v40, %v4509_v29  ;;  %v4214_v57 = vadd.f32 %v4206_v59, %v4199_v60  ;;  %v4348_v37 = vrot.slane %v10551_v26, 7  ;;  %v4372_v47 = vrot.slane %v10551_v26, 1  ;;  %v12672_v59 = vld [vmem:[#allocation97_spill] sm:$0xff]  ;;  %v12673_v29 = vld [vmem:[#allocation75_spill] sm:$0xff]  ;;  %v10585_v60 = vld [vmem:[%s5923_s12 + $0x178] sm:$0xff] }
 0x366   : > { %v4216_v1 = vadd.f32 %v4208_v62, %v4201_v20  ;;  %v4218_v46 = vadd.f32 %v4210_v13, %v4203_v53  ;;  %v4302_v40 = vmul.f32 %v12663_v35, %v12670_v33  ;;  %v4315_v30 = vmul.f32 %v12672_v59, %v6040_v52 }
 0x367   : > { %5296 = vst [vmem:[%s6394_s26 + $0x180] sm:$0xff] %v4524_v45  ;;  %v4229_v41 = vadd.f32 %v12671_v3, %v4214_v57  ;;  %v4317_v27 = vmul.f32 %v12665_v19, %v6040_v52  ;;  %v10577_v62 = vsel %vm419_vm2, 0.0, %v4348_v37  ;;  %v10580_v13 = vsel %vm447_vm3, %v4372_v47, 0.0  ;;  %v12680_v47 = vld [vmem:[#allocation32_spill] sm:$0xff] }
 0x368   : > { %v4231_v23 = vadd.f32 %v12673_v29, %v4216_v1  ;;  %12674 = vst [vmem:[#allocation58_spill] sm:$0xff] %v10577_v62  ;;  %12675 = vst [vmem:[#allocation42_spill] sm:$0xff] %v10580_v13  ;;  %v4409_v0 = vmul.f32 %v10369_v15, %v12012_v12  ;;  %v10587_v7 = vadd.f32 %v4225_v24, %v4218_v46  ;;  %v12679_v24 = vld [vmem:[#allocation31_spill] sm:$0xff]  ;;  %v3975_v59 = vrot.slane %v10585_v60, 1 }
 0x369   : > { %v4245_v20 = vadd.f32 %v12677_v61, %v4229_v41  ;;  %v4411_v19 = vmul.f32 %v10551_v26, %v12012_v12  ;;  %v10594_v53 = vmul.f32 %v10372_v34, %v12544_v8  ;;  %v4396_v57 = vmul.f32 %v10577_v62, %v12548_v55 }
 0x36a   : > { %12676 = vst [vmem:[#allocation56_spill] sm:$0xff] %v10587_v7  ;;  %v4247_v45 = vadd.f32 %v12678_v43, %v4231_v23  ;;  %v10601_v1 = vmul.f32 %v10580_v13, %v12550_v56  ;;  %v4441_v46 = vmul.f32 %v10577_v62, %v12679_v24  ;;  %v10607_v3 = vmul.f32 %v10580_v13, %v12680_v47  ;;  %v12681_v23 = vld [vmem:[#allocation33_spill] sm:$0xff] }
 0x36b   : > { %v4261_v37 = vadd.f32 %v4253_v9, %v4245_v20  ;;  %v3951_v41 = vrot.slane %v10585_v60, 7  ;;  %v10613_v61 = vmul.f32 %v10577_v62, %v12681_v23  ;;  %v12683_v43 = vld [vmem:[#allocation29_spill] sm:$0xff]  ;;  %v4056_v34 = vmul.f32 %v10426_v58, %v12130_v25  ;;  %v12684_v9 = vld [vmem:[#allocation55_spill] sm:$0xff] }
 0x36c   : > { %v4263_v29 = vadd.f32 %v4255_v5, %v4247_v45  ;;  %v4048_v15 = vadd.f32 %v10494_v48, %v12683_v43  ;;  %v10622_v22 = vmul.f32 %v10551_v26, %v12645_v16  ;;  %v3991_v5 = vsel %vm447_vm3, %v3975_v59, 0.0  ;;  %v12686_v45 = vld [vmem:[#allocation26_spill] sm:$0xff] }
 0x36d   : > { %12682 = vst [vmem:[#allocation17_spill] sm:$0xff] %v10613_v61  ;;  %v4277_v20 = vadd.f32 %v12684_v9, %v4261_v37  ;;  %v3967_v11 = vsel %vm419_vm2, 0.0, %v3951_v41  ;;  %v10629_v61 = vmul.f32 %v10580_v13, %v12647_v49  ;;  %v4103_v58 = vmul.f32 %v10585_v60, %v12611_v17  ;;  %v10641_v13 = vld [vmem:[%s5923_s12 + $0x1d8] sm:$0xff] }
 0x36e   : > { %12685 = vst [vmem:[#allocation40_spill] sm:$0xff] %v10622_v22  ;;  %v4279_v62 = vadd.f32 %v12686_v45, %v4263_v29  ;;  %v4064_v48 = vadd.f32 %v4056_v34, %v4048_v15  ;;  %v4041_v43 = vmul.f32 %v3967_v11, %v12604_v2  ;;  %v4088_v9 = vmul.f32 %v3967_v11, %v12610_v14  ;;  %v12687_v22 = vld [vmem:[#allocation41_spill] sm:$0xff]  ;;  %v12689_v34 = vld [vmem:[#allocation67_spill] sm:$0xff] }
 0x36f   : > { %v4292_v37 = vadd.f32 %v4285_v4, %v4277_v20  ;;  %v4196_v41 = vmul.f32 %v12687_v22, %v12660_v18  ;;  %v4073_v59 = vmul.f32 %v3991_v5, %v12659_v42  ;;  %v4118_v45 = vmul.f32 %v3991_v5, %v12656_v51  ;;  %12688 = vst [vmem:[#allocation93_spill] sm:$0xff] %v10641_v13  ;;  %v12690_v20 = vld [vmem:[#allocation44_spill] sm:$0xff] }
 0x370   : > { %v4294_v7 = vadd.f32 %v4287_v39, %v4279_v62  ;;  %v4080_v29 = vadd.f32 %v10528_v10, %v4064_v48  ;;  %v4211_v4 = vmul.f32 %v12689_v34, %v12662_v63  ;;  %v4248_v17 = vadd.f32 %v10542_v21, %v12690_v20  ;;  %v12691_v62 = vld [vmem:[#allocation98_spill] sm:$0xff] }
 0x371   : > { %v4307_v15 = vadd.f32 %v4300_v44, %v4292_v37  ;;  %v4256_v11 = vmul.f32 %v12663_v35, %v12276_v32  ;;  %v4226_v42 = vmul.f32 %v12691_v62, %v12664_v31  ;;  %v4241_v10 = vmul.f32 %v12687_v22, %v12055_v54 }
 0x372   : > { %v4309_v14 = vadd.f32 %v4302_v40, %v4294_v7  ;;  %v4095_v39 = vadd.f32 %v4088_v9, %v4080_v29  ;;  %v4288_v44 = vmul.f32 %v12687_v22, %v12668_v38  ;;  %v4349_v37 = vrot.slane %v10641_v13, 7  ;;  %v12692_v7 = vld [vmem:[#allocation47_spill] sm:$0xff] }
 0x373   : > { %v4322_v5 = vadd.f32 %v4315_v30, %v4307_v15  ;;  %v4264_v48 = vadd.f32 %v4256_v11, %v4248_v17  ;;  %v4273_v35 = vmul.f32 %v12691_v62, %v6036_v50  ;;  %v4373_v40 = vrot.slane %v10641_v13, 1 }
 0x374   : > { %v4324_v51 = vadd.f32 %v4317_v27, %v4309_v14  ;;  %v4110_v21 = vadd.f32 %v4103_v58, %v4095_v39  ;;  %v4303_v30 = vmul.f32 %v12689_v34, %v12670_v33  ;;  %v10664_v17 = vsel %vm419_vm2, 0.0, %v4349_v37 }
 0x375   : > { %v4402_v9 = vadd.f32 %v12692_v7, %v4322_v5  ;;  %v4280_v29 = vadd.f32 %v10556_v28, %v4264_v48  ;;  %12693 = vst [vmem:[#allocation48_spill] sm:$0xff] %v10664_v17  ;;  %v10667_v14 = vsel %vm447_vm3, %v4373_v40, 0.0  ;;  %v4449_v27 = vadd.f32 %v4441_v46, %v10524_v36 }
 0x376   : > { %v4404_v22 = vadd.f32 %v4396_v57, %v4324_v51  ;;  %v4125_v15 = vadd.f32 %v4118_v45, %v4110_v21  ;;  %12694 = vst [vmem:[#allocation95_spill] sm:$0xff] %v10667_v14  ;;  %v4318_v11 = vmul.f32 %v12691_v62, %v6040_v52  ;;  %v4412_v28 = vmul.f32 %v10641_v13, %v12012_v12  ;;  %v12695_v57 = vld [vmem:[#allocation86_spill] sm:$0xff] }
 0x377   : > { %v4417_v58 = vadd.f32 %v4409_v0, %v4402_v9  ;;  %v4295_v20 = vadd.f32 %v4288_v44, %v4280_v29  ;;  %v4397_v48 = vmul.f32 %v10664_v17, %v12548_v55  ;;  %v4457_v51 = vmul.f32 %v10551_v26, %v12544_v8  ;;  %v12696_v44 = vld [vmem:[#allocation81_spill] sm:$0xff] }
 0x378   : > { %v4419_v39 = vadd.f32 %v4411_v19, %v4404_v22  ;;  %v4204_v5 = vadd.f32 %v4196_v41, %v4125_v15  ;;  %v4427_v36 = vmul.f32 %v10667_v14, %v12550_v56  ;;  %v4442_v0 = vmul.f32 %v10664_v17, %v12679_v24 }
 0x379   : > { %v4432_v45 = vadd.f32 %v12695_v57, %v4417_v58  ;;  %v4310_v37 = vadd.f32 %v4303_v30, %v4295_v20  ;;  %v4465_v62 = vadd.f32 %v4457_v51, %v4449_v27  ;;  %v4474_v19 = vmul.f32 %v10667_v14, %v12680_v47  ;;  %v12700_v57 = vld [vmem:[#allocation77_spill] sm:$0xff] }
 0x37a   : > { %v4219_v46 = vadd.f32 %v4211_v4, %v4204_v5  ;;  %v4489_v41 = vmul.f32 %v10664_v17, %v12681_v23  ;;  %v4049_v7 = vadd.f32 %v4041_v43, %v10516_v6  ;;  %v4057_v9 = vmul.f32 %v10585_v60, %v12130_v25  ;;  %v12697_v43 = vld [vmem:[#allocation87_spill] sm:$0xff] }
 0x37b   : > { %v4448_v21 = vadd.f32 %v12696_v44, %v4432_v45  ;;  %v4325_v40 = vadd.f32 %v4318_v11, %v4310_v37  ;;  %v4434_v29 = vadd.f32 %v10601_v1, %v4419_v39  ;;  %v4481_v4 = vadd.f32 %v10607_v3, %v4465_v62  ;;  %v12698_v11 = vld [vmem:[#allocation56_spill] sm:$0xff]  ;;  %v12699_v39 = vld [vmem:[#allocation54_spill] sm:$0xff]  ;;  %v12703_v62 = vld [vmem:[#allocation17_spill] sm:$0xff] }
 0x37c   : > { %v4504_v30 = vmul.f32 %v10641_v13, %v12645_v16  ;;  %v4519_v22 = vmul.f32 %v10667_v14, %v12647_v49  ;;  %v4234_v27 = vadd.f32 %v4226_v42, %v4219_v46  ;;  %v4065_v20 = vadd.f32 %v4057_v9, %v4049_v7  ;;  %v12704_v44 = vld [vmem:[#allocation73_spill] sm:$0xff] }
 0x37d   : > { %v4464_v15 = vadd.f32 %v10594_v53, %v4448_v21  ;;  %v4405_v58 = vadd.f32 %v4397_v48, %v4325_v40  ;;  %v4496_v6 = vadd.f32 %v4489_v41, %v4481_v4  ;;  %v4197_v60 = vmul.f32 %v12697_v43, %v12660_v18  ;;  %v12701_v53 = vld [vmem:[#allocation70_spill] sm:$0xff]  ;;  %v10709_v48 = vld [vmem:[%s5923_s12 + $0x1e0] sm:$0xff] }
 0x37e   : > { %v4249_v1 = vadd.f32 %v4241_v10, %v12698_v11  ;;  %v4257_v3 = vmul.f32 %v12689_v34, %v12276_v32  ;;  %v4081_v51 = vadd.f32 %v4073_v59, %v4065_v20  ;;  %v4212_v45 = vmul.f32 %v12700_v57, %v12662_v63  ;;  %12702 = vst [vmem:[#allocation78_spill] sm:$0xff] %v10709_v48 }
 0x37f   : > { %v4480_v5 = vadd.f32 %v12699_v39, %v4464_v15  ;;  %v4227_v42 = vmul.f32 %v12701_v53, %v12664_v31  ;;  %v4511_v37 = vadd.f32 %v4504_v30, %v4496_v6  ;;  %v4242_v46 = vmul.f32 %v12697_v43, %v12055_v54  ;;  %v12705_v15 = vld [vmem:[#allocation40_spill] sm:$0xff]  ;;  %v12706_v6 = vld [vmem:[#allocation65_spill] sm:$0xff] }
 0x380   : > { %v4265_v10 = vadd.f32 %v4257_v3, %v4249_v1  ;;  %v4289_v34 = vmul.f32 %v12697_v43, %v12668_v38  ;;  %v4420_v59 = vadd.f32 %v4412_v28, %v4405_v58  ;;  %v4096_v21 = vadd.f32 %v4081_v51, %v12704_v44 }
 0x381   : > { %v4495_v41 = vadd.f32 %v12703_v62, %v4480_v5  ;;  %v4304_v40 = vmul.f32 %v12700_v57, %v12670_v33  ;;  %v4526_v7 = vadd.f32 %v4519_v22, %v4511_v37  ;;  %v4350_v4 = vrot.slane %v10709_v48, 7  ;;  %v12709_v5 = vld [vmem:[#allocation63_spill] sm:$0xff] }
 0x382   : > { %v4281_v9 = vadd.f32 %v4273_v35, %v4265_v10  ;;  %v4374_v30 = vrot.slane %v10709_v48, 1  ;;  %v4111_v11 = vadd.f32 %v4096_v21, %v12706_v6  ;;  %v4319_v43 = vmul.f32 %v12701_v53, %v6040_v52  ;;  %v12734_v6 = vld [vmem:[#allocation36_spill] sm:$0xff] }
 0x383   : > { %v4510_v20 = vadd.f32 %v12705_v15, %v4495_v41  ;;  %v4450_v28 = vadd.f32 %v4442_v0, %v4434_v29  ;;  %5298 = vst [vmem:[%s6394_s26 + $0x190] sm:$0xff] %v4526_v7  ;;  %v10727_v1 = vsel %vm419_vm2, 0.0, %v4350_v4  ;;  %v4458_v22 = vmul.f32 %v10641_v13, %v12544_v8  ;;  %v10752_v7 = vld [vmem:[%s5923_s12 + $0x1e8] sm:$0xff]  ;;  %v12746_v13 = vld [vmem:[#allocation46_spill] sm:$0xff] }
 0x384   : > { %v4296_v58 = vadd.f32 %v4289_v34, %v4281_v9  ;;  %12707 = vst [vmem:[#allocation82_spill] sm:$0xff] %v10727_v1  ;;  %v10730_v35 = vsel %vm447_vm3, %v4374_v30, 0.0  ;;  %v4435_v39 = vadd.f32 %v4427_v36, %v4420_v59  ;;  %v4126_v51 = vadd.f32 %v4111_v11, %v12709_v5  ;;  %12710 = vst [vmem:[#allocation57_spill] sm:$0xff] %v10752_v7 }
 0x385   : > { %12708 = vst [vmem:[#allocation68_spill] sm:$0xff] %v10730_v35  ;;  %v4525_v3 = vadd.f32 %v10629_v61, %v4510_v20  ;;  %v4274_v0 = vmul.f32 %v12701_v53, %v6036_v50  ;;  %v4398_v37 = vmul.f32 %v10727_v1, %v12548_v55  ;;  %v4413_v10 = vmul.f32 %v10709_v48, %v12012_v12 }
 0x386   : > { %v4311_v29 = vadd.f32 %v4304_v40, %v4296_v58  ;;  %v4466_v34 = vadd.f32 %v4458_v22, %v4450_v28  ;;  %v4205_v62 = vadd.f32 %v4197_v60, %v4126_v51  ;;  %v4428_v61 = vmul.f32 %v10730_v35, %v12550_v56 }
 0x387   : > { %5297 = vst [vmem:[%s6394_s26 + $0x188] sm:$0xff] %v4525_v3  ;;  %v4443_v36 = vmul.f32 %v10727_v1, %v12679_v24  ;;  %v4490_v41 = vmul.f32 %v10727_v1, %v12681_v23  ;;  %v4505_v21 = vmul.f32 %v10709_v48, %v12645_v16  ;;  %v4250_v40 = vadd.f32 %v4242_v46, %v4234_v27 }
 0x388   : > { %v4326_v53 = vadd.f32 %v4319_v43, %v4311_v29  ;;  %v4482_v59 = vadd.f32 %v4474_v19, %v4466_v34  ;;  %v4220_v9 = vadd.f32 %v4212_v45, %v4205_v62  ;;  %v4475_v60 = vmul.f32 %v10730_v35, %v12680_v47  ;;  %v12711_v19 = vld [vmem:[#allocation66_spill] sm:$0xff] }
 0x389   : > { %v4520_v4 = vmul.f32 %v10730_v35, %v12647_v49  ;;  %v4258_v30 = vmul.f32 %v12700_v57, %v12276_v32  ;;  %v4243_v11 = vmul.f32 %v12711_v19, %v12055_v54  ;;  %v12712_v43 = vld [vmem:[#allocation50_spill] sm:$0xff]  ;;  %v4290_v45 = vmul.f32 %v12711_v19, %v12668_v38 }
 0x38a   : > { %v4406_v15 = vadd.f32 %v4398_v37, %v4326_v53  ;;  %v4497_v20 = vadd.f32 %v4490_v41, %v4482_v59  ;;  %v4275_v27 = vmul.f32 %v12712_v43, %v6036_v50  ;;  %v4351_v28 = vrot.slane %v10752_v7, 7  ;;  %v12713_v37 = vld [vmem:[#allocation90_spill] sm:$0xff] }
 0x38b   : > { %v4266_v46 = vadd.f32 %v4258_v30, %v4250_v40  ;;  %v4375_v58 = vrot.slane %v10752_v7, 1  ;;  %v4235_v22 = vadd.f32 %v4227_v42, %v4220_v9  ;;  %v4451_v51 = vadd.f32 %v4443_v36, %v4435_v39 }
 0x38c   : > { %v4421_v3 = vadd.f32 %v4413_v10, %v4406_v15  ;;  %v4512_v57 = vadd.f32 %v4505_v21, %v4497_v20  ;;  %v4305_v34 = vmul.f32 %v12713_v37, %v12670_v33  ;;  %v10771_v62 = vsel %vm419_vm2, 0.0, %v4351_v28  ;;  %v10780_v10 = vld [vmem:[%s5923_s12 + $0x1f0] sm:$0xff] }
 0x38d   : > { %v4282_v29 = vadd.f32 %v4274_v0, %v4266_v46  ;;  %12714 = vst [vmem:[#allocation34_spill] sm:$0xff] %v10771_v62  ;;  %v4459_v41 = vmul.f32 %v10709_v48, %v12544_v8  ;;  %v4320_v40 = vmul.f32 %v12712_v43, %v6040_v52  ;;  %v4414_v42 = vmul.f32 %v10752_v7, %v12012_v12 }
 0x38e   : > { %v4436_v53 = vadd.f32 %v4428_v61, %v4421_v3  ;;  %v4527_v59 = vadd.f32 %v4520_v4, %v4512_v57  ;;  %12715 = vst [vmem:[#allocation38_spill] sm:$0xff] %v10780_v10  ;;  %v10783_v0 = vsel %vm447_vm3, %v4375_v58, 0.0  ;;  %v4444_v36 = vmul.f32 %v10771_v62, %v12679_v24 }
 0x38f   : > { %v4297_v39 = vadd.f32 %v4290_v45, %v4282_v29  ;;  %12716 = vst [vmem:[#allocation61_spill] sm:$0xff] %v10783_v0  ;;  %v4467_v21 = vadd.f32 %v4459_v41, %v4451_v51  ;;  %v4399_v61 = vmul.f32 %v10771_v62, %v12548_v55  ;;  %v4491_v9 = vmul.f32 %v10771_v62, %v12681_v23 }
 0x390   : > { %5299 = vst [vmem:[%s6394_s26 + $0x198] sm:$0xff] %v4527_v59  ;;  %v4506_v4 = vmul.f32 %v10752_v7, %v12645_v16  ;;  %v4251_v30 = vadd.f32 %v4243_v11, %v4235_v22  ;;  %v4259_v19 = vmul.f32 %v12713_v37, %v12276_v32  ;;  %v4352_v43 = vrot.slane %v10780_v10, 7 }
 0x391   : > { %v4312_v15 = vadd.f32 %v4305_v34, %v4297_v39  ;;  %v4483_v20 = vadd.f32 %v4475_v60, %v4467_v21  ;;  %v4476_v46 = vmul.f32 %v10783_v0, %v12680_v47  ;;  %v4376_v45 = vrot.slane %v10780_v10, 1 }
 0x392   : > { %v4452_v28 = vadd.f32 %v4444_v36, %v4436_v53  ;;  %v4460_v58 = vmul.f32 %v10752_v7, %v12544_v8  ;;  %v4521_v60 = vmul.f32 %v10783_v0, %v12647_v49  ;;  %v4267_v11 = vadd.f32 %v4259_v19, %v4251_v30  ;;  %v10810_v53 = vld [vmem:[%s5923_s12 + $0x1f8] sm:$0xff] }
 0x393   : > { %v4327_v3 = vadd.f32 %v4320_v40, %v4312_v15  ;;  %v4498_v57 = vadd.f32 %v4491_v9, %v4483_v20  ;;  %v4429_v22 = vmul.f32 %v10783_v0, %v12550_v56  ;;  %v10807_v41 = vsel %vm419_vm2, 0.0, %v4352_v43  ;;  %12718 = vst [vmem:[#allocation62_spill] sm:$0xff] %v10810_v53 }
 0x394   : > { %v4468_v51 = vadd.f32 %v4460_v58, %v4452_v28  ;;  %v4283_v34 = vadd.f32 %v4275_v27, %v4267_v11  ;;  %12717 = vst [vmem:[#allocation80_spill] sm:$0xff] %v10807_v41  ;;  %v10813_v59 = vsel %vm447_vm3, %v4376_v45, 0.0  ;;  %v4492_v39 = vmul.f32 %v10807_v41, %v12681_v23  ;;  %v12720_v27 = vld [vmem:[#allocation83_spill] sm:$0xff]  ;;  %v10833_v58 = vld [vmem:[%s5923_s12 + $0x188] sm:$0xff]  ;;  %v10840_v11 = vld [vmem:[%s5923_s12 + $0x198] sm:$0xff] }
 0x395   : > { %v4407_v29 = vadd.f32 %v4399_v61, %v4327_v3  ;;  %v4513_v37 = vadd.f32 %v4506_v4, %v4498_v57  ;;  %12719 = vst [vmem:[#allocation49_spill] sm:$0xff] %v10813_v59  ;;  %v4507_v36 = vmul.f32 %v10780_v10, %v12645_v16  ;;  %v4445_v4 = vmul.f32 %v10807_v41, %v12679_v24 }
 0x396   : > { %v4484_v40 = vadd.f32 %v4476_v46, %v4468_v51  ;;  %v4298_v9 = vadd.f32 %v4283_v34, %v12720_v27  ;;  %v4522_v15 = vmul.f32 %v10813_v59, %v12647_v49  ;;  %v4353_v20 = vrot.slane %v10810_v53, 7  ;;  %v12721_v46 = vld [vmem:[#allocation84_spill] sm:$0xff]  ;;  %v10848_v34 = vld [vmem:[%s5923_s12 + $0x180] sm:$0xff] }
 0x397   : > { %v4422_v21 = vadd.f32 %v4414_v42, %v4407_v29  ;;  %v4528_v61 = vadd.f32 %v4521_v60, %v4513_v37  ;;  %v4377_v19 = vrot.slane %v10810_v53, 1  ;;  %v4400_v45 = vmul.f32 %v10807_v41, %v12548_v55 }
 0x398   : > { %v4499_v30 = vadd.f32 %v4492_v39, %v4484_v40  ;;  %v4313_v42 = vadd.f32 %v4298_v9, %v12721_v46  ;;  %v4461_v28 = vmul.f32 %v10780_v10, %v12544_v8  ;;  %v4415_v3 = vmul.f32 %v10780_v10, %v12012_v12  ;;  %v10860_v9 = vld [vmem:[%s5923_s12 + $0x190] sm:$0xff] }
 0x399   : > { %v4437_v43 = vadd.f32 %v4429_v22, %v4422_v21  ;;  %5300 = vst [vmem:[%s6394_s26 + $0x1a0] sm:$0xff] %v4528_v61  ;;  %v4430_v57 = vmul.f32 %v10813_v59, %v12550_v56  ;;  %v12722_v22 = vld [vmem:[#allocation85_spill] sm:$0xff]  ;;  %v4477_v55 = vmul.f32 %v10813_v59, %v12680_v47  ;;  %v4508_v37 = vmul.f32 %v10810_v53, %v12645_v16 }
 0x39a   : > { %v4514_v60 = vadd.f32 %v4507_v36, %v4499_v30  ;;  %v4328_v51 = vadd.f32 %v4313_v42, %v12722_v22  ;;  %v10851_v40 = vsel %vm419_vm2, 0.0, %v4353_v20  ;;  %v10854_v56 = vsel %vm447_vm3, %v4377_v19, 0.0  ;;  %v12727_v22 = vld [vmem:[#allocation16_spill] sm:$0xff] }
 0x39b   : > { %v4453_v29 = vadd.f32 %v4445_v4, %v4437_v43  ;;  %12723 = vst [vmem:[#allocation21_spill] sm:$0xff] %v10851_v40  ;;  %12724 = vst [vmem:[#allocation30_spill] sm:$0xff] %v10854_v56  ;;  %v4558_v39 = vrot.slane %v10833_v58, 7  ;;  %v4493_v61 = vmul.f32 %v10851_v40, %v12681_v23  ;;  %v4560_v16 = vrot.slane %v10840_v11, 7 }
 0x39c   : > { %v4529_v12 = vadd.f32 %v4522_v15, %v4514_v60  ;;  %v4408_v36 = vadd.f32 %v4400_v45, %v4328_v51  ;;  %v4462_v4 = vmul.f32 %v10810_v53, %v12544_v8  ;;  %v4557_v30 = vrot.slane %v10848_v34, 7 }
 0x39d   : > { %v4469_v21 = vadd.f32 %v4461_v28, %v4453_v29  ;;  %v4574_v15 = vsel %vm419_vm2, 0.0, %v4558_v39  ;;  %v4582_v20 = vrot.slane %v10833_v58, 1  ;;  %v4446_v43 = vmul.f32 %v10851_v40, %v12679_v24 }
 0x39e   : > { %5301 = vst [vmem:[%s6394_s26 + $0x1a8] sm:$0xff] %v4529_v12  ;;  %v4423_v19 = vadd.f32 %v4415_v3, %v4408_v36  ;;  %v4576_v23 = vsel %vm419_vm2, 0.0, %v4560_v16  ;;  %v4478_v45 = vmul.f32 %v10854_v56, %v12680_v47  ;;  %v4523_v8 = vmul.f32 %v10854_v56, %v12647_v49  ;;  %v12725_v12 = vld [vmem:[#allocation15_spill] sm:$0xff] }
 0x39f   : > { %v4485_v42 = vadd.f32 %v4477_v55, %v4469_v21  ;;  %v4559_v28 = vrot.slane %v10860_v9, 7  ;;  %v4581_v60 = vrot.slane %v10848_v34, 1  ;;  %v4598_v3 = vsel %vm447_vm3, %v4582_v20, 0.0  ;;  %v10885_v16 = vld [vmem:[%s6057_s30] ss:$0 sm:$0xff] }
 0x3a0   : > { %v4438_v51 = vadd.f32 %v4430_v57, %v4423_v19  ;;  %v4606_v24 = vmul.f32 %v4574_v15, %v12725_v12  ;;  %v4573_v55 = vsel %vm419_vm2, 0.0, %v4557_v30  ;;  %v4583_v39 = vrot.slane %v10860_v9, 1 }
 0x3a1   : > { %v4500_v29 = vadd.f32 %v4493_v61, %v4485_v42  ;;  %v4584_v36 = vrot.slane %v10840_v11, 1  ;;  %v4608_v47 = vmul.f32 %v4576_v23, %v12725_v12  ;;  %v12726_v61 = vld [vmem:[#allocation69_spill] sm:$0xff]  ;;  %v10891_v19 = vsel %vm419_vm2, 0.0, %v4559_v28 }
 0x3a2   : > { %v4454_v49 = vadd.f32 %v4446_v43, %v4438_v51  ;;  %v4613_v57 = vadd.f32 %v10885_v16, %v4606_v24  ;;  %v4620_v20 = vmul.f32 %v10833_v58, %v12726_v61  ;;  %v4622_v42 = vmul.f32 %v10840_v11, %v12726_v61 }
 0x3a3   : > { %v4515_v21 = vadd.f32 %v4508_v37, %v4500_v29  ;;  %v4615_v30 = vadd.f32 %v10885_v16, %v4608_v47  ;;  %v4634_v46 = vmul.f32 %v4598_v3, %v12727_v22  ;;  %v4597_v51 = vsel %vm447_vm3, %v4581_v60, 0.0  ;;  %v12728_v60 = vld [vmem:[#allocation74_spill] sm:$0xff] }
 0x3a4   : > { %v4470_v43 = vadd.f32 %v4462_v4, %v4454_v49  ;;  %v4627_v29 = vadd.f32 %v4620_v20, %v4613_v57  ;;  %v10899_v24 = vsel %vm447_vm3, %v4583_v39, 0.0  ;;  %v4600_v27 = vsel %vm447_vm3, %v4584_v36, 0.0  ;;  %v12729_v49 = vld [vmem:[#allocation91_spill] sm:$0xff]  ;;  %v12730_v20 = vld [vmem:[#allocation18_spill] sm:$0xff] }
 0x3a5   : > { %v4530_v37 = vadd.f32 %v4523_v8, %v4515_v21  ;;  %v4605_v28 = vmul.f32 %v4573_v55, %v12725_v12  ;;  %v4647_v56 = vmul.f32 %v4573_v55, %v12604_v2  ;;  %v4607_v53 = vmul.f32 %v10891_v19, %v12725_v12 }
 0x3a6   : > { %v4486_v47 = vadd.f32 %v4478_v45, %v4470_v43  ;;  %v4641_v40 = vadd.f32 %v4634_v46, %v4627_v29  ;;  %v4649_v4 = vmul.f32 %v10891_v19, %v12604_v2  ;;  %v4629_v8 = vadd.f32 %v4622_v42, %v4615_v30  ;;  %v12732_v29 = vld [vmem:[#allocation92_spill] sm:$0xff] }
 0x3a7   : > { %5302 = vst [vmem:[%s6394_s26 + $0x1b0] sm:$0xff] %v4530_v37  ;;  %v4655_v21 = vadd.f32 %v4647_v56, %v12728_v60  ;;  %v4663_v39 = vmul.f32 %v10848_v34, %v12130_v25  ;;  %v4665_v36 = vmul.f32 %v10860_v9, %v12130_v25  ;;  %v4636_v45 = vmul.f32 %v4600_v27, %v12727_v22  ;;  %v12731_v56 = vld [vmem:[#allocation19_spill] sm:$0xff] }
 0x3a8   : > { %v4501_v55 = vadd.f32 %v4486_v47, %v12729_v49  ;;  %v4657_v57 = vadd.f32 %v4649_v4, %v4641_v40  ;;  %v4679_v37 = vmul.f32 %v4597_v51, %v12730_v20  ;;  %v4633_v46 = vmul.f32 %v4597_v51, %v12727_v22 }
 0x3a9   : > { %v4671_v43 = vadd.f32 %v4663_v39, %v4655_v21  ;;  %v4681_v30 = vmul.f32 %v10899_v24, %v12730_v20  ;;  %v4695_v42 = vmul.f32 %v4574_v15, %v12731_v56  ;;  %v4635_v5 = vmul.f32 %v10899_v24, %v12727_v22  ;;  %v12733_v39 = vld [vmem:[#allocation72_spill] sm:$0xff] }
 0x3aa   : > { %v4516_v60 = vadd.f32 %v4501_v55, %v12732_v29  ;;  %v4673_v47 = vadd.f32 %v4665_v36, %v4657_v57  ;;  %v4697_v40 = vmul.f32 %v4576_v23, %v12731_v56  ;;  %v4648_v4 = vmul.f32 %v4574_v15, %v12604_v2  ;;  %v12735_v15 = vld [vmem:[#allocation20_spill] sm:$0xff] }
 0x3ab   : > { %v4650_v51 = vmul.f32 %v4576_v23, %v12604_v2  ;;  %v4687_v21 = vadd.f32 %v4679_v37, %v4671_v43  ;;  %v4710_v49 = vmul.f32 %v10833_v58, %v12733_v39  ;;  %v10930_v10 = vadd.f32 %v4636_v45, %v4629_v8  ;;  %v10938_v23 = vld [vmem:[%s5923_s12 + $0x1a0] sm:$0xff]  ;;  %v12738_v45 = vld [vmem:[#allocation25_spill] sm:$0xff] }
 0x3ac   : > { %v4531_v59 = vadd.f32 %v4516_v60, %v12734_v6  ;;  %v4689_v55 = vadd.f32 %v4681_v30, %v4673_v47  ;;  %v4712_v29 = vmul.f32 %v10840_v11, %v12733_v39  ;;  %v4680_v36 = vmul.f32 %v4598_v3, %v12730_v20  ;;  %v12736_v6 = vld [vmem:[#allocation24_spill] sm:$0xff]  ;;  %v12739_v47 = vld [vmem:[#allocation79_spill] sm:$0xff] }
 0x3ad   : > { %v4682_v57 = vmul.f32 %v4600_v27, %v12730_v20  ;;  %v4702_v44 = vadd.f32 %v4695_v42, %v4687_v21  ;;  %v4725_v41 = vmul.f32 %v4598_v3, %v12735_v15  ;;  %v4727_v43 = vmul.f32 %v4600_v27, %v12735_v15  ;;  %v12740_v42 = vld [vmem:[#allocation96_spill] sm:$0xff] }
 0x3ae   : > { %5303 = vst [vmem:[%s6394_s26 + $0x1b8] sm:$0xff] %v4531_v59  ;;  %v4704_v37 = vadd.f32 %v4697_v40, %v4689_v55  ;;  %v10944_v8 = vmul.f32 %v12736_v6, %v12660_v18  ;;  %v4805_v30 = vmul.f32 %v12738_v45, %v12660_v18  ;;  %v4820_v0 = vmul.f32 %v12739_v47, %v12662_v63  ;;  %v12742_v59 = vld [vmem:[#allocation59_spill] sm:$0xff] }
 0x3af   : > { %v4717_v60 = vadd.f32 %v4710_v49, %v4702_v44  ;;  %v10952_v3 = vmul.f32 %v12740_v42, %v12664_v31  ;;  %v4835_v40 = vmul.f32 %v12742_v59, %v12664_v31  ;;  %v4849_v27 = vmul.f32 %v12736_v6, %v12055_v54  ;;  %v12744_v6 = vld [vmem:[#allocation39_spill] sm:$0xff] }
 0x3b0   : > { %12737 = vst [vmem:[#allocation89_spill] sm:$0xff] %v10944_v8  ;;  %v4719_v21 = vadd.f32 %v4712_v29, %v4704_v37  ;;  %v10960_v55 = vmul.f32 %v12738_v45, %v12055_v54  ;;  %v4561_v44 = vrot.slane %v10938_v23, 7  ;;  %v4585_v7 = vrot.slane %v10938_v23, 1 }
 0x3b1   : > { %12741 = vst [vmem:[#allocation64_spill] sm:$0xff] %v10952_v3  ;;  %v4732_v49 = vadd.f32 %v4725_v41, %v4717_v60  ;;  %v4612_v62 = vadd.f32 %v10885_v16, %v4605_v28  ;;  %v4614_v35 = vadd.f32 %v10885_v16, %v4607_v53  ;;  %v4619_v29 = vmul.f32 %v10848_v34, %v12726_v61 }
 0x3b2   : > { %12743 = vst [vmem:[#allocation22_spill] sm:$0xff] %v10960_v55  ;;  %v4734_v48 = vadd.f32 %v4727_v43, %v4719_v21  ;;  %v4577_v1 = vsel %vm419_vm2, 0.0, %v4561_v44  ;;  %v4621_v37 = vmul.f32 %v10860_v9, %v12726_v61  ;;  %v12745_v55 = vld [vmem:[#allocation88_spill] sm:$0xff]  ;;  %v4623_v28 = vmul.f32 %v10938_v23, %v12726_v61 }
 0x3b3   : > { %v4811_v14 = vadd.f32 %v4732_v49, %v12744_v6  ;;  %v4865_v41 = vmul.f32 %v12745_v55, %v12276_v32  ;;  %v4609_v60 = vmul.f32 %v4577_v1, %v12725_v12  ;;  %v4601_v43 = vsel %vm447_vm3, %v4585_v7, 0.0 }
 0x3b4   : > { %v4813_v53 = vadd.f32 %v4805_v30, %v4734_v48  ;;  %v4626_v21 = vadd.f32 %v4619_v29, %v4612_v62  ;;  %v4628_v44 = vadd.f32 %v4621_v37, %v4614_v35  ;;  %v4881_v17 = vmul.f32 %v12740_v42, %v6036_v50  ;;  %v12747_v62 = vld [vmem:[#allocation45_spill] sm:$0xff] }
 0x3b5   : > { %v4826_v34 = vadd.f32 %v4811_v14, %v12746_v13  ;;  %v10983_v49 = vmul.f32 %v12742_v59, %v6036_v50  ;;  %v4616_v6 = vadd.f32 %v10885_v16, %v4609_v60  ;;  %v4664_v48 = vmul.f32 %v10833_v58, %v12130_v25 }
 0x3b6   : > { %v4640_v3 = vadd.f32 %v4633_v46, %v4626_v21  ;;  %v4642_v8 = vadd.f32 %v4635_v5, %v4628_v44  ;;  %v4666_v7 = vmul.f32 %v10840_v11, %v12130_v25  ;;  %v4828_v35 = vadd.f32 %v4820_v0, %v4813_v53  ;;  %v11012_v44 = vld [vmem:[%s5923_s12 + $0x1a8] sm:$0xff] }
 0x3b7   : > { %v4841_v13 = vadd.f32 %v4826_v34, %v12747_v62  ;;  %v4630_v14 = vadd.f32 %v4623_v28, %v4616_v6  ;;  %v4637_v30 = vmul.f32 %v4601_v43, %v12727_v22  ;;  %v4897_v42 = vmul.f32 %v12738_v45, %v12668_v38  ;;  %v12749_v6 = vld [vmem:[#allocation42_spill] sm:$0xff] }
 0x3b8   : > { %v4912_v29 = vmul.f32 %v12739_v47, %v12670_v33  ;;  %v4656_v46 = vadd.f32 %v4648_v4, %v4640_v3  ;;  %v4658_v5 = vadd.f32 %v4650_v51, %v4642_v8  ;;  %v4927_v58 = vmul.f32 %v12742_v59, %v6040_v52 }
 0x3b9   : > { %v4857_v37 = vadd.f32 %v4849_v27, %v4841_v13  ;;  %v4651_v0 = vmul.f32 %v4577_v1, %v12604_v2  ;;  %v4683_v11 = vmul.f32 %v4601_v43, %v12730_v20  ;;  %v4696_v53 = vmul.f32 %v10891_v19, %v12731_v56 }
 0x3ba   : > { %v4672_v60 = vadd.f32 %v4664_v48, %v4656_v46  ;;  %v4674_v28 = vadd.f32 %v4666_v7, %v4658_v5  ;;  %v4698_v45 = vmul.f32 %v4577_v1, %v12731_v56  ;;  %v4843_v21 = vadd.f32 %v4835_v40, %v4828_v35  ;;  %v12748_v40 = vld [vmem:[#allocation58_spill] sm:$0xff] }
 0x3bb   : > { %v4873_v47 = vadd.f32 %v4865_v41, %v4857_v37  ;;  %v11003_v4 = vadd.f32 %v4637_v30, %v4630_v14  ;;  %v4711_v51 = vmul.f32 %v10860_v9, %v12733_v39  ;;  %v4713_v59 = vmul.f32 %v10938_v23, %v12733_v39  ;;  %v5468_v30 = vld [vmem:[%s5923_s12 + $0x1c8] sm:$0xff] }
 0x3bc   : > { %v4688_v8 = vadd.f32 %v4680_v36, %v4672_v60  ;;  %v4690_v3 = vadd.f32 %v4682_v57, %v4674_v28  ;;  %v4726_v27 = vmul.f32 %v10899_v24, %v12735_v15  ;;  %v4728_v1 = vmul.f32 %v4601_v43, %v12735_v15 }
 0x3bd   : > { %v4889_v19 = vadd.f32 %v4881_v17, %v4873_v47  ;;  %v4806_v41 = vmul.f32 %v12748_v40, %v12660_v18  ;;  %v4819_v9 = vmul.f32 %v12745_v55, %v12662_v63  ;;  %v4821_v34 = vmul.f32 %v10551_v26, %v12662_v63 }
 0x3be   : > { %v4703_v36 = vadd.f32 %v4696_v53, %v4688_v8  ;;  %v4705_v57 = vadd.f32 %v4698_v45, %v4690_v3  ;;  %v11023_v24 = vmul.f32 %v12749_v6, %v12664_v31  ;;  %v4851_v17 = vmul.f32 %v12748_v40, %v12055_v54  ;;  %v12750_v45 = vld [vmem:[#allocation89_spill] sm:$0xff] }
 0x3bf   : > { %v4904_v48 = vadd.f32 %v4897_v42, %v4889_v19  ;;  %v4562_v43 = vrot.slane %v11012_v44, 7  ;;  %v4586_v7 = vrot.slane %v11012_v44, 1  ;;  %v4659_v55 = vadd.f32 %v4651_v0, %v10930_v10 }
 0x3c0   : > { %v4718_v35 = vadd.f32 %v4711_v51, %v4703_v36  ;;  %v4720_v62 = vadd.f32 %v4713_v59, %v4705_v57  ;;  %v4667_v13 = vmul.f32 %v10938_v23, %v12130_v25  ;;  %v4866_v46 = vmul.f32 %v5468_v30, %v12276_v32 }
 0x3c1   : > { %v4919_v14 = vadd.f32 %v4912_v29, %v4904_v48  ;;  %v4883_v42 = vmul.f32 %v12749_v6, %v6036_v50  ;;  %v4578_v5 = vsel %vm419_vm2, 0.0, %v4562_v43  ;;  %v4898_v28 = vmul.f32 %v12748_v40, %v12668_v38 }
 0x3c2   : > { %v4733_v37 = vadd.f32 %v4726_v27, %v4718_v35  ;;  %v4735_v60 = vadd.f32 %v4728_v1, %v4720_v62  ;;  %v4610_v10 = vmul.f32 %v4578_v5, %v12725_v12  ;;  %v4913_v23 = vmul.f32 %v10551_v26, %v12670_v33  ;;  %v12751_v35 = vld [vmem:[#allocation64_spill] sm:$0xff] }
 0x3c3   : > { %v4934_v0 = vadd.f32 %v4927_v58, %v4919_v14  ;;  %v4602_v29 = vsel %vm447_vm3, %v4586_v7, 0.0  ;;  %v4675_v53 = vadd.f32 %v4667_v13, %v4659_v55  ;;  %v11046_v8 = vmul.f32 %v12749_v6, %v6040_v52  ;;  %v11062_v7 = vld [vmem:[%s5923_s12 + $0x1b0] sm:$0xff] }
 0x3c4   : > { %v4812_v47 = vadd.f32 %v12750_v45, %v4733_v37  ;;  %v4814_v51 = vadd.f32 %v4806_v41, %v4735_v60  ;;  %v4699_v3 = vmul.f32 %v4578_v5, %v12731_v56  ;;  %v4617_v59 = vadd.f32 %v10885_v16, %v4610_v10  ;;  %v12753_v13 = vld [vmem:[#allocation93_spill] sm:$0xff] }
 0x3c5   : > { %5320 = vst [vmem:[%s6394_s26 + $0x1c0] sm:$0xff] %v4934_v0  ;;  %v4624_v58 = vmul.f32 %v11012_v44, %v12726_v61  ;;  %v4691_v27 = vadd.f32 %v4683_v11, %v4675_v53  ;;  %v4714_v19 = vmul.f32 %v11012_v44, %v12733_v39  ;;  %v4638_v40 = vmul.f32 %v4602_v29, %v12727_v22 }
 0x3c6   : > { %v4827_v1 = vadd.f32 %v4819_v9, %v4812_v47  ;;  %v4652_v41 = vmul.f32 %v4578_v5, %v12604_v2  ;;  %v4684_v36 = vmul.f32 %v4602_v29, %v12730_v20  ;;  %v4729_v6 = vmul.f32 %v4602_v29, %v12735_v15  ;;  %v12752_v9 = vld [vmem:[#allocation48_spill] sm:$0xff] }
 0x3c7   : > { %v4706_v57 = vadd.f32 %v4699_v3, %v4691_v27  ;;  %v4859_v48 = vadd.f32 %v4851_v17, %v4843_v21  ;;  %v4867_v43 = vmul.f32 %v10551_v26, %v12276_v32  ;;  %v4829_v11 = vadd.f32 %v4821_v34, %v4814_v51  ;;  %v12754_v17 = vld [vmem:[#allocation22_spill] sm:$0xff]  ;;  %v12755_v26 = vld [vmem:[#allocation95_spill] sm:$0xff] }
 0x3c8   : > { %v4842_v62 = vadd.f32 %v12751_v35, %v4827_v1  ;;  %v4807_v55 = vmul.f32 %v12752_v9, %v12660_v18  ;;  %v4822_v14 = vmul.f32 %v12753_v13, %v12662_v63  ;;  %v4631_v30 = vadd.f32 %v4624_v58, %v4617_v59 }
 0x3c9   : > { %v4721_v5 = vadd.f32 %v4714_v19, %v4706_v57  ;;  %v4875_v37 = vadd.f32 %v4867_v43, %v4859_v48  ;;  %v4899_v21 = vmul.f32 %v12752_v9, %v12668_v38  ;;  %v4837_v10 = vmul.f32 %v12755_v26, %v12664_v31 }
 0x3ca   : > { %v4858_v60 = vadd.f32 %v12754_v17, %v4842_v62  ;;  %v4563_v34 = vrot.slane %v11062_v7, 7  ;;  %v4587_v0 = vrot.slane %v11062_v7, 1  ;;  %v4914_v45 = vmul.f32 %v12753_v13, %v12670_v33 }
 0x3cb   : > { %v4736_v29 = vadd.f32 %v4729_v6, %v4721_v5  ;;  %v4891_v53 = vadd.f32 %v4883_v42, %v4875_v37  ;;  %v4660_v47 = vadd.f32 %v4652_v41, %v11003_v4  ;;  %v4852_v3 = vmul.f32 %v12752_v9, %v12055_v54  ;;  %v5311_v37 = vld [vmem:[%s5923_s12 + $0x1b8] sm:$0xff] }
 0x3cc   : > { %v4874_v51 = vadd.f32 %v4866_v46, %v4858_v60  ;;  %v4579_v59 = vsel %vm419_vm2, 0.0, %v4563_v34  ;;  %v4668_v58 = vmul.f32 %v11012_v44, %v12130_v25  ;;  %v4929_v1 = vmul.f32 %v12755_v26, %v6040_v52 }
 0x3cd   : > { %v4815_v27 = vadd.f32 %v4807_v55, %v4736_v29  ;;  %v4906_v19 = vadd.f32 %v4899_v21, %v4891_v53  ;;  %v4611_v42 = vmul.f32 %v4579_v59, %v12725_v12  ;;  %v4844_v57 = vadd.f32 %v11023_v24, %v4829_v11 }
 0x3ce   : > { %v4890_v4 = vadd.f32 %v10983_v49, %v4874_v51  ;;  %v4603_v46 = vsel %vm447_vm3, %v4587_v0, 0.0  ;;  %v4676_v41 = vadd.f32 %v4668_v58, %v4660_v47  ;;  %v4625_v44 = vmul.f32 %v11062_v7, %v12726_v61 }
 0x3cf   : > { %v4830_v6 = vadd.f32 %v4822_v14, %v4815_v27  ;;  %v4921_v48 = vadd.f32 %v4914_v45, %v4906_v19  ;;  %v4700_v43 = vmul.f32 %v4579_v59, %v12731_v56  ;;  %v4618_v62 = vadd.f32 %v10885_v16, %v4611_v42  ;;  %v12758_v19 = vld [vmem:[#allocation68_spill] sm:$0xff] }
 0x3d0   : > { %v4905_v35 = vadd.f32 %v4898_v28, %v4890_v4  ;;  %v4692_v12 = vadd.f32 %v4684_v36, %v4676_v41  ;;  %v4715_v24 = vmul.f32 %v11062_v7, %v12733_v39  ;;  %v4645_v49 = vadd.f32 %v4638_v40, %v4631_v30 }
 0x3d1   : > { %v4884_v11 = vmul.f32 %v12755_v26, %v6036_v50  ;;  %v4936_v9 = vadd.f32 %v4929_v1, %v4921_v48  ;;  %v4639_v55 = vmul.f32 %v4603_v46, %v12727_v22  ;;  %v4653_v61 = vmul.f32 %v4579_v59, %v12604_v2  ;;  %v12757_v26 = vld [vmem:[#allocation78_spill] sm:$0xff] }
 0x3d2   : > { %v4920_v14 = vadd.f32 %v4913_v23, %v4905_v35  ;;  %v4707_v5 = vadd.f32 %v4700_v43, %v4692_v12  ;;  %v4730_v28 = vmul.f32 %v4603_v46, %v12735_v15  ;;  %v4845_v16 = vadd.f32 %v4837_v10, %v4830_v6  ;;  %v12756_v23 = vld [vmem:[#allocation82_spill] sm:$0xff] }
 0x3d3   : > { %5322 = vst [vmem:[%s6394_s26 + $0x1d0] sm:$0xff] %v4936_v9  ;;  %v4685_v36 = vmul.f32 %v4603_v46, %v12730_v20  ;;  %v4860_v21 = vadd.f32 %v4852_v3, %v4844_v57  ;;  %v4868_v40 = vmul.f32 %v12753_v13, %v12276_v32  ;;  %v4632_v17 = vadd.f32 %v4625_v44, %v4618_v62 }
 0x3d4   : > { %v4935_v30 = vadd.f32 %v11046_v8, %v4920_v14  ;;  %v4722_v22 = vadd.f32 %v4715_v24, %v4707_v5  ;;  %v4808_v60 = vmul.f32 %v12756_v23, %v12660_v18  ;;  %v4823_v34 = vmul.f32 %v12757_v26, %v12662_v63 }
 0x3d5   : > { %v4876_v0 = vadd.f32 %v4868_v40, %v4860_v21  ;;  %v4900_v10 = vmul.f32 %v12756_v23, %v12668_v38  ;;  %v4564_v29 = vrot.slane %v5311_v37, 7  ;;  %v4853_v13 = vmul.f32 %v12756_v23, %v12055_v54  ;;  %v12761_v21 = vld [vmem:[#allocation61_spill] sm:$0xff] }
 0x3d6   : > { %5321 = vst [vmem:[%s6394_s26 + $0x1c8] sm:$0xff] %v4935_v30  ;;  %v4737_v53 = vadd.f32 %v4730_v28, %v4722_v22  ;;  %v4661_v45 = vadd.f32 %v4653_v61, %v4645_v49  ;;  %v4669_v8 = vmul.f32 %v11062_v7, %v12130_v25  ;;  %v4915_v51 = vmul.f32 %v12757_v26, %v12670_v33 }
 0x3d7   : > { %v4892_v47 = vadd.f32 %v4884_v11, %v4876_v0  ;;  %v4580_v3 = vsel %vm419_vm2, 0.0, %v4564_v29  ;;  %v4588_v59 = vrot.slane %v5311_v37, 1  ;;  %v4646_v58 = vadd.f32 %v4639_v55, %v4632_v17  ;;  %v12762_v29 = vld [vmem:[#allocation80_spill] sm:$0xff] }
 0x3d8   : > { %v4816_v27 = vadd.f32 %v4808_v60, %v4737_v53  ;;  %v4838_v1 = vmul.f32 %v12758_v19, %v12664_v31  ;;  %v4677_v42 = vadd.f32 %v4669_v8, %v4661_v45  ;;  %v4885_v57 = vmul.f32 %v12758_v19, %v6036_v50 }
 0x3d9   : > { %v4907_v4 = vadd.f32 %v4900_v10, %v4892_v47  ;;  %v4930_v7 = vmul.f32 %v12758_v19, %v6040_v52  ;;  %v4701_v46 = vmul.f32 %v4580_v3, %v12731_v56  ;;  %v4654_v6 = vmul.f32 %v4580_v3, %v12604_v2  ;;  %v12759_v56 = vld [vmem:[#allocation34_spill] sm:$0xff]  ;;  %v12763_v47 = vld [vmem:[#allocation73_spill] sm:$0xff] }
 0x3da   : > { %v4831_v41 = vadd.f32 %v4823_v34, %v4816_v27  ;;  %v4693_v48 = vadd.f32 %v4685_v36, %v4677_v42  ;;  %v4716_v44 = vmul.f32 %v5311_v37, %v12733_v39  ;;  %v4604_v35 = vsel %vm447_vm3, %v4588_v59, 0.0  ;;  %v12764_v59 = vld [vmem:[#allocation38_spill] sm:$0xff] }
 0x3db   : > { %v4922_v43 = vadd.f32 %v4915_v51, %v4907_v4  ;;  %v4861_v62 = vadd.f32 %v4853_v13, %v4845_v16  ;;  %v4869_v12 = vmul.f32 %v12757_v26, %v12276_v32  ;;  %v4731_v11 = vmul.f32 %v4604_v35, %v12735_v15  ;;  %v12760_v15 = vld [vmem:[#allocation57_spill] sm:$0xff] }
 0x3dc   : > { %v4846_v24 = vadd.f32 %v4838_v1, %v4831_v41  ;;  %v4708_v49 = vadd.f32 %v4701_v46, %v4693_v48  ;;  %v4854_v9 = vmul.f32 %v12759_v56, %v12055_v54  ;;  %v4809_v2 = vmul.f32 %v12759_v56, %v12660_v18  ;;  %v12765_v1 = vld [vmem:[#allocation49_spill] sm:$0xff]  ;;  %v12767_v48 = vld [vmem:[#allocation63_spill] sm:$0xff] }
 0x3dd   : > { %v4937_v55 = vadd.f32 %v4930_v7, %v4922_v43  ;;  %v4877_v39 = vadd.f32 %v4869_v12, %v4861_v62  ;;  %v4901_v14 = vmul.f32 %v12759_v56, %v12668_v38  ;;  %v4686_v61 = vmul.f32 %v4604_v35, %v12730_v20  ;;  %v12766_v4 = vld [vmem:[#allocation65_spill] sm:$0xff] }
 0x3de   : > { %v4723_v5 = vadd.f32 %v4716_v44, %v4708_v49  ;;  %v4662_v28 = vadd.f32 %v4654_v6, %v4646_v58  ;;  %v4670_v16 = vmul.f32 %v5311_v37, %v12130_v25  ;;  %v4824_v36 = vmul.f32 %v12760_v15, %v12662_v63 }
 0x3df   : > { %5323 = vst [vmem:[%s6394_s26 + $0x1d8] sm:$0xff] %v4937_v55  ;;  %v4886_v40 = vmul.f32 %v12761_v21, %v6036_v50  ;;  %v4893_v30 = vadd.f32 %v4885_v57, %v4877_v39  ;;  %v4916_v17 = vmul.f32 %v12760_v15, %v12670_v33  ;;  %v4862_v60 = vadd.f32 %v4854_v9, %v4846_v24 }
 0x3e0   : > { %v4738_v22 = vadd.f32 %v4731_v11, %v4723_v5  ;;  %v4678_v23 = vadd.f32 %v4670_v16, %v4662_v28  ;;  %v4870_v20 = vmul.f32 %v12760_v15, %v12276_v32  ;;  %v4839_v25 = vmul.f32 %v12761_v21, %v12664_v31  ;;  %v12768_v11 = vld [vmem:[#allocation21_spill] sm:$0xff] }
 0x3e1   : > { %v4908_v37 = vadd.f32 %v4901_v14, %v4893_v30  ;;  %v4931_v26 = vmul.f32 %v12761_v21, %v6040_v52  ;;  %v4902_v53 = vmul.f32 %v12762_v29, %v12668_v38  ;;  %v4855_v45 = vmul.f32 %v12762_v29, %v12055_v54  ;;  %v12772_v21 = vld [vmem:[#allocation83_spill] sm:$0xff] }
 0x3e2   : > { %v4817_v34 = vadd.f32 %v4809_v2, %v4738_v22  ;;  %v4694_v0 = vadd.f32 %v4686_v61, %v4678_v23  ;;  %v4878_v10 = vadd.f32 %v4870_v20, %v4862_v60  ;;  %v4917_v58 = vmul.f32 %v12764_v59, %v12670_v33  ;;  %v12769_v2 = vld [vmem:[#allocation62_spill] sm:$0xff] }
 0x3e3   : > { %v4923_v13 = vadd.f32 %v4916_v17, %v4908_v37  ;;  %v4810_v19 = vmul.f32 %v12762_v29, %v12660_v18  ;;  %v4932_v42 = vmul.f32 %v12765_v1, %v6040_v52  ;;  %v4871_v41 = vmul.f32 %v12764_v59, %v12276_v32  ;;  %v12770_v61 = vld [vmem:[#allocation30_spill] sm:$0xff] }
 0x3e4   : > { %v4832_v8 = vadd.f32 %v4824_v36, %v4817_v34  ;;  %v4709_v51 = vadd.f32 %v4694_v0, %v12763_v47  ;;  %v4894_v3 = vadd.f32 %v4886_v40, %v4878_v10  ;;  %v4825_v6 = vmul.f32 %v12764_v59, %v12662_v63  ;;  %v12773_v40 = vld [vmem:[#allocation84_spill] sm:$0xff] }
 0x3e5   : > { %v4938_v27 = vadd.f32 %v4931_v26, %v4923_v13  ;;  %v4887_v18 = vmul.f32 %v12765_v1, %v6036_v50  ;;  %v4840_v62 = vmul.f32 %v12765_v1, %v12664_v31  ;;  %v4903_v56 = vmul.f32 %v12768_v11, %v12668_v38 }
 0x3e6   : > { %v4847_v57 = vadd.f32 %v4839_v25, %v4832_v8  ;;  %v4724_v7 = vadd.f32 %v4709_v51, %v12766_v4  ;;  %v4909_v46 = vadd.f32 %v4902_v53, %v4894_v3  ;;  %v4856_v63 = vmul.f32 %v12768_v11, %v12055_v54 }
 0x3e7   : > { %5324 = vst [vmem:[%s6394_s26 + $0x1e0] sm:$0xff] %v4938_v27  ;;  %v4918_v39 = vmul.f32 %v12769_v2, %v12670_v33  ;;  %v4933_v5 = vmul.f32 %v12770_v61, %v6040_v52  ;;  %v4872_v38 = vmul.f32 %v12769_v2, %v12276_v32  ;;  %v4888_v28 = vmul.f32 %v12770_v61, %v6036_v50  ;;  %v12775_v50 = vld [vmem:[#allocation85_spill] sm:$0xff] }
 0x3e8   : > { %v4739_v44 = vadd.f32 %v4724_v7, %v12767_v48  ;;  %v4924_v43 = vadd.f32 %v4917_v58, %v4909_v46  ;;  %v4863_v35 = vadd.f32 %v4855_v45, %v4847_v57 }
 0x3ea   : > { %v4818_v12 = vadd.f32 %v4810_v19, %v4739_v44  ;;  %v4939_v24 = vadd.f32 %v4932_v42, %v4924_v43  ;;  %v4879_v49 = vadd.f32 %v4871_v41, %v4863_v35 }
 0x3ec   : > { %v4833_v9 = vadd.f32 %v4825_v6, %v4818_v12  ;;  %5325 = vst [vmem:[%s6394_s26 + $0x1e8] sm:$0xff] %v4939_v24  ;;  %v4895_v55 = vadd.f32 %v4887_v18, %v4879_v49 }
 0x3ee   : > { %v4848_v14 = vadd.f32 %v4840_v62, %v4833_v9  ;;  %v4910_v31 = vadd.f32 %v4903_v56, %v4895_v55 }
 0x3f0   : > { %v4925_v54 = vadd.f32 %v4918_v39, %v4910_v31  ;;  %v4864_v16 = vadd.f32 %v4856_v63, %v4848_v14 }
 0x3f2   : > { %v4940_v15 = vadd.f32 %v4933_v5, %v4925_v54  ;;  %v4880_v33 = vadd.f32 %v4872_v38, %v4864_v16 }
 0x3f4   : > { %5326 = vst [vmem:[%s6394_s26 + $0x1f0] sm:$0xff] %v4940_v15  ;;  %v4896_v36 = vadd.f32 %v4888_v28, %v4880_v33 }
 0x3f6   : > { %v4911_v52 = vadd.f32 %v4896_v36, %v12772_v21 }
 0x3f8   : > { %v4926_v32 = vadd.f32 %v4911_v52, %v12773_v40 }
 0x3fa   : > { %v4941_v30 = vadd.f32 %v4926_v32, %v12775_v50 }
 0x3fc   : > { %5327 = vst [vmem:[%s6394_s26 + $0x1f8] sm:$0xff] %v4941_v30 }
 0x3fd   : > { %5542 = shalt.err (!%p5539_p2)
}
 0x3fe   : > { %s5543_s24 = scalar_lea.hbm %s11199_s25, 8192  ;;  %s5547_s3 = scalar_lea.hbm %s12774_s5, 32768 }
 0x3ff   : > { %p5544_p9 = scmp.ne.s32.totalorder %s11199_s25, %s5543_s24  ;;  %p5548_p10 = scmp.lt.u32.totalorder %s11199_s25, %s12774_s5 }
 0x400   : > { %p5549_p11 = scmp.lt.u32.totalorder %s5547_s3, %s5543_s24  ;;  %p5551_p3 = scmp.lt.u32.totalorder %s5543_s24, %s11199_s25 }
 0x401   : > { %p5545_p13 = pnand %p5544_p9, %p12776_p8 }
 0x402   : > { %p5550_p0 = por %p5549_p11, %p5548_p10 }
 0x403   : > { %p5546_p4 = pneg %p5545_p13 }
 0x404   : > { %p5552_p7 = por %p5551_p3, %p5550_p0 }
 0x406   : > { %p5553_p12 = pnand %p5552_p7, %p5546_p4 }
 0x408   : > { %5556 = shalt.err (!%p5553_p12)
}
 0x409   : > { %s5664_s18 = smov 128   ;;  %s5665_s12 = smov 256  }
 0x40a   : > { %s5666_s6 = smov 8  }
 0x40b   : > { %5337 = dma.vmem_to_hbm [thread:$0]  (%p12776_p8), %s11201_s11, 8192, %s11199_s25, %s4952_s19, %s5664_s18, %s5665_s12, %s5666_s6  }
 0x40c PF: > { %s12777_s7 = sld [smem:[#allocation11_spill]]  ;;  %p5351_p5 = scmp.ge.s32.totalorder %s5655_s22, 2 }
 0x40d   : > { %p12778_p1 = scmp.ne.s32.totalorder %s11825_s8, 0 }
 0x40f   : > { %p5347_p6 = pnand %p5351_p5, %p12778_p1 }
 0x412   : > { %s4984_s4 = sand.u32 1, %s12777_s7  }
 0x413   : > { %s4985_s23 = scalar_lea.sflag [#allocation4], %s4984_s4 }
 0x414   : > { %5610 = dma.done.wait (!%p5347_p6), %s4985_s23, 8192  }
 0x415   : > { %5612 = vsyncadd (!%p5347_p6), %s4985_s23, 4294959104  ;;  %s22_s22 = sadd.s32 1, %s5655_s22   ;;  %s12779_s27 = sld [smem:[#allocation12_spill]] }
 0x416   : > { %p19_p2 = scmp.ge.s32.totalorder %s22_s22, 6   ;;  %s12780_s29 = sld [smem:[#allocation13_spill]] }
 0x417   : > { %s12781_s12 = smov %s5619_s13  ;;  %s12782_s13 = smov %s5623_s14 }
 0x418   : > { %s12783_s14 = smov %s5856_s10  ;;  %s12784_s15 = smov %s5631_s16 }
 0x419   : > { %s12785_s16 = smov %s5635_s17  ;;  %s12786_s17 = smov %s5791_s9 }
 0x41a   : > { %s12787_s18 = smov %s5647_s20  ;;  %s12788_s19 = smov %s5651_s21 }
 0x41b   : > { %s12789_s20 = smov %s12779_s27  ;;  %21 = sbr.rel (!%p19_p2) target bundleno = 13 (0xd), region = 107 }
 0x41c   : > { %s12790_s21 = smov %s12780_s29 }
 0x422   :  { %4990 = vsyncpa [#allocation3], 1 }
 0x423   :  { %4992 = vsyncpa [#allocation3 + $0x1], 1 }
 0x424   :  { %4993 = vsyncpa [#allocation6], 1 }
 0x425   :  { %4995 = vsyncpa [#allocation6 + $0x1], 1 }
 0x426   :  { %4996 = vsyncpa [#allocation4], 1 }
 0x427   :  { %4998 = vsyncpa [#allocation4 + $0x1], 1 }

</bundles_post_ra>
